<compile_context>
chip_gen: v5e
topology: v5e:2x2
jax: 0.10.0
libtpu: 0.0.40
codegen_flags: <defaults>
</compile_context>

<pallas_src>
import functools

import jax
import jax.numpy as jnp
import numpy as np
from jax.experimental import pallas as pl
from jax.experimental.pallas import tpu as pltpu


# ---------------------------------------------------------------------------
# Small helpers
# ---------------------------------------------------------------------------
def _round_up(x, m):
    return ((x + m - 1) // m) * m


def _pick_lane_tile(lp):
    """Largest lane tile from a capped menu dividing lp (lp is a multiple of 128)."""
    for t in (512, 256, 128):
        if lp % t == 0:
            return t
    return lp


# ---------------------------------------------------------------------------
# Host-side (numpy, lru_cache) constant operators — shape-only, baked constants
# ---------------------------------------------------------------------------
@functools.lru_cache(maxsize=None)
def _col_select_np(w_in, w_out):
    """Sel[dj, 2j+dj, j] = 1: stride-2 column pick of the 3x3/stride-2 conv."""
    s = np.zeros((3, w_in, w_out), np.float32)
    for dj in range(3):
        for j in range(w_out):
            s[dj, 2 * j + dj, j] = 1.0
    return s


@functools.lru_cache(maxsize=None)
def _shift_matrices_np(hp, wp):
    """S[k, p, q] = 1 iff q is the k-th (3x3, pad=1) neighbor of pixel p."""
    p_tot = hp * wp
    s = np.zeros((9, p_tot, p_tot), np.float32)
    for di in range(3):
        for dj in range(3):
            k = di * 3 + dj
            for pi in range(hp):
                for pj in range(wp):
                    qi, qj = pi + di - 1, pj + dj - 1
                    if 0 <= qi < hp and 0 <= qj < wp:
                        s[k, pi * wp + pj, qi * wp + qj] = 1.0
    return s


def _interp_matrix_np(out_size, in_size):
    """Row-interp matrix matching F.interpolate(bilinear, align_corners=False)."""
    scale = in_size / out_size
    d = np.arange(out_size, dtype=np.float64)
    src = np.maximum((d + 0.5) * scale - 0.5, 0.0)
    x0 = np.minimum(np.floor(src).astype(np.int64), in_size - 1)
    x1 = np.minimum(x0 + 1, in_size - 1)
    lam = src - x0
    r = np.zeros((out_size, in_size), np.float64)
    r[np.arange(out_size), x0] += 1.0 - lam
    r[np.arange(out_size), x1] += lam
    return r


@functools.lru_cache(maxsize=None)
def _upsample_operator_np(h_out, w_out, h_in, w_in, l_pad):
    """(P, H*W [padded]) bilinear upsample operator (Kronecker of 1-D interps)."""
    rt = np.kron(_interp_matrix_np(h_out, h_in),
                 _interp_matrix_np(w_out, w_in)).T.astype(np.float32)
    if l_pad > rt.shape[1]:
        rt = np.pad(rt, ((0, 0), (0, l_pad - rt.shape[1])))
    return rt


def _conv3x3_as_matrix(w, b, hp, wp):
    """3x3/pad=1 conv on an hp x wp grid as one dense operator.

    w: (Cout, Cin, 3, 3) PyTorch layout.  Returns (At, b_flat) such that
    out_flat (1, Cout*P) = in_flat (1, Cin*P) @ At + b_flat, flat idx c*P + p.
    """
    p_tot = hp * wp
    s = _shift_matrices_np(hp, wp)                      # (9, P, P) constant
    wk = w.reshape(w.shape[0], w.shape[1], 9)
    a = jnp.einsum("oik,kpq->opiq", wk, s)
    a = a.reshape(w.shape[0] * p_tot, w.shape[1] * p_tot)
    return a.T, jnp.repeat(b, p_tot)


# ---------------------------------------------------------------------------
# Kernel 1: c1 = conv2(conv1(x))  (conv1 folded into conv2, no HBM im2col)
# ---------------------------------------------------------------------------
def _conv12_kernel(x_ref, u_ref, sel_ref, bt_ref, o_ref, *, Ho):
    # x_ref:  (1, C, H, W) f32      u_ref: (3, f, 3C) bf16  (dj-major / di-blocks)
    # sel_ref:(3, W, Wo)   bf16     bt_ref:(f, 1) f32       o_ref: (1, Ho, f, Wo)
    for i in range(Ho):
        rows = [x_ref[0, :, 2 * i + di, :] for di in range(3)]        # 3x(C, W)
        r = jnp.concatenate(rows, axis=0).astype(jnp.bfloat16)        # (3C, W)
        acc = None
        for dj in range(3):
            t = jnp.dot(u_ref[dj], r,
                        preferred_element_type=jnp.float32)           # (f, W)
            c = jnp.dot(t.astype(jnp.bfloat16), sel_ref[dj],
                        preferred_element_type=jnp.float32)           # (f, Wo)
            acc = c if acc is None else acc + c
        o_ref[0, i] = (acc + bt_ref[...]).astype(o_ref.dtype)


# ---------------------------------------------------------------------------
# Kernel 2: fused mid chain + conv_f(conv1) + bilinear upsample + conv4
#           + sigmoid + gating multiply
# ---------------------------------------------------------------------------
def _gate_kernel(x_ref, v_ref, a1_ref, b1_ref, a2_ref, b2_ref, a3_ref, b3_ref,
                 rt_ref, wf_ref, bf_ref, w4_ref, b4_ref, o_ref, *, f):
    # --- mid chain for the current batch (tiny; recomputed each step) ---
    h = v_ref[0]                                                       # (1, D)
    h = jnp.maximum(
        jnp.dot(h.astype(jnp.bfloat16), a1_ref[...],
                preferred_element_type=jnp.float32) + b1_ref[...], 0.0)
    h = jnp.maximum(
        jnp.dot(h.astype(jnp.bfloat16), a2_ref[...],
                preferred_element_type=jnp.float32) + b2_ref[...], 0.0)
    hb = h.astype(jnp.bfloat16)
    # last operator is pre-split per output channel -> no in-kernel reshape
    rows = [jnp.dot(hb, a3_ref[o], preferred_element_type=jnp.float32)
            + b3_ref[o] for o in range(f)]                             # f x (1,P)
    c3s = jnp.concatenate(rows, axis=0).astype(jnp.bfloat16)           # (f, P)

    # --- per-tile gating path (pixels lane-dense) ---
    x = x_ref[0]                                                       # (C, tl)
    xb = x.astype(jnp.bfloat16)
    cf = (jnp.dot(wf_ref[...], xb, preferred_element_type=jnp.float32)
          + bf_ref[...])                                   # conv_f(conv1(x))
    c3u = jnp.dot(c3s, rt_ref[...],
                  preferred_element_type=jnp.float32)      # bilinear upsample
    s = (c3u + cf).astype(jnp.bfloat16)
    c4 = (jnp.dot(w4_ref[...], s, preferred_element_type=jnp.float32)
          + b4_ref[...])                                   # conv4
    m = 0.5 * (jnp.tanh(0.5 * c4) + 1.0)                   # exact, stable sigmoid
    o_ref[0] = (x * m).astype(o_ref.dtype)


# ---------------------------------------------------------------------------
# Plain-JAX glue: tiny max-pool
# ---------------------------------------------------------------------------
def _max_pool_cf(x_nchw, k=7, s=3):
    """F.max_pool2d(kernel_size=k, stride=s) on NCHW (KB-scale -> plain jnp)."""
    _, _, h, w = x_nchw.shape
    ho = (h - k) // s + 1
    wo = (w - k) // s + 1
    out = None
    for ki in range(k):
        for kj in range(k):
            win = x_nchw[:, :, ki:ki + s * (ho - 1) + 1:s,
                         kj:kj + s * (wo - 1) + 1:s]
            out = win if out is None else jnp.maximum(out, win)
    return out


# ---------------------------------------------------------------------------
# ESA parameters (PyTorch-native weight layout) + forward
# ---------------------------------------------------------------------------
def init_esa_params(key, n_feats):
    f = n_feats // 4
    keys = jax.random.split(key, 14)

    def w(k, shape):
        return jax.random.normal(k, shape, jnp.float32) * 0.1

    def b(k, n):
        return jax.random.normal(k, (n,), jnp.float32) * 0.01

    return {
        "conv1_w": w(keys[0], (f, n_feats, 1, 1)),  "conv1_b": b(keys[1], f),
        "conv_f_w": w(keys[2], (f, f, 1, 1)),       "conv_f_b": b(keys[3], f),
        "conv_max_w": w(keys[4], (f, f, 3, 3)),     "conv_max_b": b(keys[5], f),
        "conv2_w": w(keys[6], (f, f, 3, 3)),        "conv2_b": b(keys[7], f),
        "conv3_w": w(keys[8], (f, f, 3, 3)),        "conv3_b": b(keys[9], f),
        "conv3__w": w(keys[10], (f, f, 3, 3)),      "conv3__b": b(keys[11], f),
        "conv4_w": w(keys[12], (n_feats, f, 1, 1)), "conv4_b": b(keys[13], n_feats),
    }


def esa_forward(x_nchw, params):
    x = x_nchw.astype(jnp.float32)
    N, C, H, W = x.shape
    f = params["conv1_b"].shape[0]
    HW = H * W

    # ---- fold the 1x1 convs through neighbouring weights (exact algebra) ----
    W1 = params["conv1_w"].reshape(f, C)
    b1 = params["conv1_b"]
    W2 = params["conv2_w"]                                    # (f, f, 3, 3)
    Wf = params["conv_f_w"].reshape(f, f)
    W4 = params["conv4_w"].reshape(C, f)

    # conv2 ∘ conv1:  U[dj] = [W2[:,:,0,dj]·W1 | W2[:,:,1,dj]·W1 | W2[:,:,2,dj]·W1]
    U = jnp.stack([
        jnp.concatenate([W2[:, :, di, dj] @ W1 for di in range(3)], axis=1)
        for dj in range(3)], axis=0)                          # (3, f, 3C)
    b12 = params["conv2_b"] + W2.sum(axis=(2, 3)) @ b1        # (f,)
    # conv_f ∘ conv1
    Wf1 = Wf @ W1                                             # (f, C)
    bf1 = Wf @ b1 + params["conv_f_b"]                        # (f,)
    # TODO(synk): for inference, precompute these weight-dependent folds (and
    # the A1..A3 operators below) once per weight set instead of per call.

    # ---- kernel 1: c1 = conv2(conv1(x)) straight from x (no HBM im2col) ----
    Ho, Wo = (H - 3) // 2 + 1, (W - 3) // 2 + 1
    sel = jnp.asarray(_col_select_np(W, Wo), jnp.bfloat16)    # (3, W, Wo)
    c1 = pl.pallas_call(
        functools.partial(_conv12_kernel, Ho=Ho),
        out_shape=jax.ShapeDtypeStruct((N, Ho, f, Wo), jnp.float32),
        grid=(N,),
        in_specs=[
            pl.BlockSpec((1, C, H, W), lambda n: (n, 0, 0, 0)),
            pl.BlockSpec((3, f, 3 * C), lambda n: (0, 0, 0)),
            pl.BlockSpec((3, W, Wo), lambda n: (0, 0, 0)),
            pl.BlockSpec((f, 1), lambda n: (0, 0)),
        ],
        out_specs=pl.BlockSpec((1, Ho, f, Wo), lambda n: (n, 0, 0, 0)),
        compiler_params=pltpu.CompilerParams(
            dimension_semantics=("parallel",)),
    )(x, U.astype(jnp.bfloat16), sel, b12.reshape(f, 1))
    c1 = jnp.transpose(c1, (0, 2, 1, 3))                      # (N, f, Ho, Wo)
    # TODO(synk): strip-tile kernel 1 over output rows for very large H*W
    # instead of one whole-image block per batch.

    # ---- max_pool2d(7, 3): kilobytes -> plain jnp (per review) ----
    v_max = _max_pool_cf(c1, k=7, s=3)                        # (N, f, hp, wp)
    hp, wp = int(v_max.shape[2]), int(v_max.shape[3])
    P = hp * wp
    D = f * P
    v_flat = v_max.reshape(N, 1, D)

    # ---- mid-chain dense operators (3x3 pad=1 convs on the pooled grid) ----
    a1, bb1 = _conv3x3_as_matrix(params["conv_max_w"], params["conv_max_b"], hp, wp)
    a2, bb2 = _conv3x3_as_matrix(params["conv3_w"], params["conv3_b"], hp, wp)
    a3, bb3 = _conv3x3_as_matrix(params["conv3__w"], params["conv3__b"], hp, wp)
    a3s = a3.reshape(D, f, P).transpose(1, 0, 2)              # (f, D, P)
    bb3s = bb3.reshape(f, P)[:, None, :]                      # (f, 1, P)
    # TODO(synk): size guard — replace the dense (f*P)^2 operators and the
    # (P, H*W) Kronecker upsample with a real 3x3 conv + separable resize once
    # f*P grows beyond a few hundred (v7x 64 MiB VMEM).

    # ---- kernel 2: fused mid chain + conv_f + upsample + conv4 + sigmoid ----
    Lp = _round_up(HW, 128)                                   # ragged-L padding
    tl = _pick_lane_tile(Lp)                                  # capped at 512
    x_flat = x.reshape(N, C, HW)
    if Lp != HW:
        x_flat = jnp.pad(x_flat, ((0, 0), (0, 0), (0, Lp - HW)))
    rt = jnp.asarray(_upsample_operator_np(H, W, hp, wp, Lp), jnp.bfloat16)

    out = pl.pallas_call(
        functools.partial(_gate_kernel, f=f),
        out_shape=jax.ShapeDtypeStruct((N, C, Lp), jnp.float32),
        grid=(Lp // tl, N),                                   # batch innermost
        in_specs=[
            pl.BlockSpec((1, C, tl), lambda j, n: (n, 0, j)),
            pl.BlockSpec((1, 1, D), lambda j, n: (n, 0, 0)),
            pl.BlockSpec((D, D), lambda j, n: (0, 0)),
            pl.BlockSpec((1, D), lambda j, n: (0, 0)),
            pl.BlockSpec((D, D), lambda j, n: (0, 0)),
            pl.BlockSpec((1, D), lambda j, n: (0, 0)),
            pl.BlockSpec((f, D, P), lambda j, n: (0, 0, 0)),
            pl.BlockSpec((f, 1, P), lambda j, n: (0, 0, 0)),
            pl.BlockSpec((P, tl), lambda j, n: (0, j)),       # Rt: DMA'd once
            pl.BlockSpec((f, C), lambda j, n: (0, 0)),
            pl.BlockSpec((f, 1), lambda j, n: (0, 0)),
            pl.BlockSpec((C, f), lambda j, n: (0, 0)),
            pl.BlockSpec((C, 1), lambda j, n: (0, 0)),
        ],
        out_specs=pl.BlockSpec((1, C, tl), lambda j, n: (n, 0, j)),
        compiler_params=pltpu.CompilerParams(
            dimension_semantics=("parallel", "parallel"),
            vmem_limit_bytes=32 * 1024 * 1024),
    )(x_flat, v_flat,
      a1.astype(jnp.bfloat16), bb1.reshape(1, D),
      a2.astype(jnp.bfloat16), bb2.reshape(1, D),
      a3s.astype(jnp.bfloat16), bb3s,
      rt,
      Wf1.astype(jnp.bfloat16), bf1.reshape(f, 1),
      W4.astype(jnp.bfloat16), params["conv4_b"].reshape(C, 1))

    return out[:, :, :HW].reshape(N, C, H, W)


if __name__ == "__main__":
    key = jax.random.PRNGKey(0)
    kx, kp = jax.random.split(key)

    n_feats = 16            # f = n_feats // 4 = 4
    N, H, W = 2, 32, 32     # conv2 -> 15x15, maxpool(7,3) -> 3x3
    x = jax.random.normal(kx, (N, n_feats, H, W), jnp.float32)
    params = init_esa_params(kp, n_feats)

    out = jax.jit(esa_forward)(x, params)
    out = jax.block_until_ready(out)

    assert out.shape == x.shape, out.shape
    assert bool(jnp.all(jnp.isfinite(out)))
    print("KERNEL_OK")
</pallas_src>

<mosaic_0001>
module attributes {stable_mosaic.version = 11 : i64} {
  func.func @_conv12_kernel(%arg0: i32, %arg1: memref<1x16x32x32xf32, #tpu.memory_space<vmem>>, %arg2: memref<3x4x48xbf16, #tpu.memory_space<vmem>>, %arg3: memref<3x32x15xbf16, #tpu.memory_space<vmem>>, %arg4: memref<4x1xf32, #tpu.memory_space<vmem>>, %arg5: memref<1x15x4x15xf32, #tpu.memory_space<vmem>>) attributes {dimension_semantics = [#tpu.dimension_semantics<parallel>], iteration_bounds = array<i64: 2>, scalar_prefetch = 0 : i64, scratch_operands = 0 : i64, tpu.core_type = #tpu.core_type<tc>, window_params = [{transform_indices = @transform_0, window_bounds = array<i64: 1, 16, 32, 32>}, {pipeline_mode = #tpu.pipeline_mode<synchronous>, transform_indices = @transform_1, window_bounds = array<i64: 3, 4, 48>}, {pipeline_mode = #tpu.pipeline_mode<synchronous>, transform_indices = @transform_2, window_bounds = array<i64: 3, 32, 15>}, {pipeline_mode = #tpu.pipeline_mode<synchronous>, transform_indices = @transform_3, window_bounds = array<i64: 4, 1>}, {transform_indices = @transform_4, window_bounds = array<i64: 1, 15, 4, 15>}]} {
    %c0 = arith.constant 0 : index
    %c0_0 = arith.constant 0 : index
    %c0_1 = arith.constant 0 : index
    %c0_2 = arith.constant 0 : index
    %0 = vector.load %arg1[%c0, %c0_0, %c0_1, %c0_2] : memref<1x16x32x32xf32, #tpu.memory_space<vmem>>, vector<1x16x1x32xf32>
    %1 = vector.shape_cast %0 : vector<1x16x1x32xf32> to vector<16x32xf32>
    %c0_3 = arith.constant 0 : index
    %c0_4 = arith.constant 0 : index
    %c1 = arith.constant 1 : index
    %c0_5 = arith.constant 0 : index
    %2 = vector.load %arg1[%c0_3, %c0_4, %c1, %c0_5] : memref<1x16x32x32xf32, #tpu.memory_space<vmem>>, vector<1x16x1x32xf32>
    %3 = vector.shape_cast %2 : vector<1x16x1x32xf32> to vector<16x32xf32>
    %c0_6 = arith.constant 0 : index
    %c0_7 = arith.constant 0 : index
    %c2 = arith.constant 2 : index
    %c0_8 = arith.constant 0 : index
    %4 = vector.load %arg1[%c0_6, %c0_7, %c2, %c0_8] : memref<1x16x32x32xf32, #tpu.memory_space<vmem>>, vector<1x16x1x32xf32>
    %5 = vector.shape_cast %4 : vector<1x16x1x32xf32> to vector<16x32xf32>
    %6 = tpu.concatenate %1, %3, %5 in 0 : vector<16x32xf32>, vector<16x32xf32>, vector<16x32xf32> -> vector<48x32xf32>
    %7 = arith.truncf %6 : vector<48x32xf32> to vector<48x32xbf16>
    %c0_9 = arith.constant 0 : index
    %c0_10 = arith.constant 0 : index
    %c0_11 = arith.constant 0 : index
    %8 = vector.load %arg2[%c0_9, %c0_10, %c0_11] : memref<3x4x48xbf16, #tpu.memory_space<vmem>>, vector<1x4x48xbf16>
    %9 = vector.shape_cast %8 : vector<1x4x48xbf16> to vector<4x48xbf16>
    %cst = arith.constant dense<0.000000e+00> : vector<4x32xf32>
    %10 = tpu.matmul %9, %7, %cst {dimension_numbers = #tpu.dot_dimension_numbers<[1], [0], [0], [1], [0, 0, 1, 1], [], []>} : vector<4x48xbf16>, vector<48x32xbf16>, vector<4x32xf32> -> vector<4x32xf32>
    %11 = arith.truncf %10 : vector<4x32xf32> to vector<4x32xbf16>
    %c0_12 = arith.constant 0 : index
    %c0_13 = arith.constant 0 : index
    %c0_14 = arith.constant 0 : index
    %12 = vector.load %arg3[%c0_12, %c0_13, %c0_14] : memref<3x32x15xbf16, #tpu.memory_space<vmem>>, vector<1x32x15xbf16>
    %13 = vector.shape_cast %12 : vector<1x32x15xbf16> to vector<32x15xbf16>
    %cst_15 = arith.constant dense<0.000000e+00> : vector<4x15xf32>
    %14 = tpu.matmul %11, %13, %cst_15 {dimension_numbers = #tpu.dot_dimension_numbers<[1], [0], [0], [1], [0, 0, 1, 1], [], []>} : vector<4x32xbf16>, vector<32x15xbf16>, vector<4x15xf32> -> vector<4x15xf32>
    %c1_16 = arith.constant 1 : index
    %c0_17 = arith.constant 0 : index
    %c0_18 = arith.constant 0 : index
    %15 = vector.load %arg2[%c1_16, %c0_17, %c0_18] : memref<3x4x48xbf16, #tpu.memory_space<vmem>>, vector<1x4x48xbf16>
    %16 = vector.shape_cast %15 : vector<1x4x48xbf16> to vector<4x48xbf16>
    %cst_19 = arith.constant dense<0.000000e+00> : vector<4x32xf32>
    %17 = tpu.matmul %16, %7, %cst_19 {dimension_numbers = #tpu.dot_dimension_numbers<[1], [0], [0], [1], [0, 0, 1, 1], [], []>} : vector<4x48xbf16>, vector<48x32xbf16>, vector<4x32xf32> -> vector<4x32xf32>
    %18 = arith.truncf %17 : vector<4x32xf32> to vector<4x32xbf16>
    %c1_20 = arith.constant 1 : index
    %c0_21 = arith.constant 0 : index
    %c0_22 = arith.constant 0 : index
    %19 = vector.load %arg3[%c1_20, %c0_21, %c0_22] : memref<3x32x15xbf16, #tpu.memory_space<vmem>>, vector<1x32x15xbf16>
    %20 = vector.shape_cast %19 : vector<1x32x15xbf16> to vector<32x15xbf16>
    %cst_23 = arith.constant dense<0.000000e+00> : vector<4x15xf32>
    %21 = tpu.matmul %18, %20, %cst_23 {dimension_numbers = #tpu.dot_dimension_numbers<[1], [0], [0], [1], [0, 0, 1, 1], [], []>} : vector<4x32xbf16>, vector<32x15xbf16>, vector<4x15xf32> -> vector<4x15xf32>
    %22 = arith.addf %14, %21 : vector<4x15xf32>
    %c2_24 = arith.constant 2 : index
    %c0_25 = arith.constant 0 : index
    %c0_26 = arith.constant 0 : index
    %23 = vector.load %arg2[%c2_24, %c0_25, %c0_26] : memref<3x4x48xbf16, #tpu.memory_space<vmem>>, vector<1x4x48xbf16>
    %24 = vector.shape_cast %23 : vector<1x4x48xbf16> to vector<4x48xbf16>
    %cst_27 = arith.constant dense<0.000000e+00> : vector<4x32xf32>
    %25 = tpu.matmul %24, %7, %cst_27 {dimension_numbers = #tpu.dot_dimension_numbers<[1], [0], [0], [1], [0, 0, 1, 1], [], []>} : vector<4x48xbf16>, vector<48x32xbf16>, vector<4x32xf32> -> vector<4x32xf32>
    %26 = arith.truncf %25 : vector<4x32xf32> to vector<4x32xbf16>
    %c2_28 = arith.constant 2 : index
    %c0_29 = arith.constant 0 : index
    %c0_30 = arith.constant 0 : index
    %27 = vector.load %arg3[%c2_28, %c0_29, %c0_30] : memref<3x32x15xbf16, #tpu.memory_space<vmem>>, vector<1x32x15xbf16>
    %28 = vector.shape_cast %27 : vector<1x32x15xbf16> to vector<32x15xbf16>
    %cst_31 = arith.constant dense<0.000000e+00> : vector<4x15xf32>
    %29 = tpu.matmul %26, %28, %cst_31 {dimension_numbers = #tpu.dot_dimension_numbers<[1], [0], [0], [1], [0, 0, 1, 1], [], []>} : vector<4x32xbf16>, vector<32x15xbf16>, vector<4x15xf32> -> vector<4x15xf32>
    %30 = arith.addf %22, %29 : vector<4x15xf32>
    %c0_32 = arith.constant 0 : index
    %c0_33 = arith.constant 0 : index
    %31 = vector.load %arg4[%c0_32, %c0_33] : memref<4x1xf32, #tpu.memory_space<vmem>>, vector<4x1xf32>
    %32 = vector.broadcast %31 : vector<4x1xf32> to vector<4x15xf32>
    %33 = arith.addf %30, %32 : vector<4x15xf32>
    %c0_34 = arith.constant 0 : index
    %c0_35 = arith.constant 0 : index
    %c0_36 = arith.constant 0 : index
    %c0_37 = arith.constant 0 : index
    %34 = vector.load %arg5[%c0_34, %c0_35, %c0_36, %c0_37] : memref<1x15x4x15xf32, #tpu.memory_space<vmem>>, vector<1x1x4x15xf32>
    %35 = vector.shape_cast %34 : vector<1x1x4x15xf32> to vector<4x15xf32>
    %36 = vector.shape_cast %33 : vector<4x15xf32> to vector<1x1x4x15xf32>
    tpu.vector_store %arg5[%c0_34, %c0_35, %c0_36, %c0_37], %36 {strides = array<i32>} : memref<1x15x4x15xf32, #tpu.memory_space<vmem>>, vector<1x1x4x15xf32>,
    %c0_38 = arith.constant 0 : index
    %c0_39 = arith.constant 0 : index
    %c2_40 = arith.constant 2 : index
    %c0_41 = arith.constant 0 : index
    %37 = vector.load %arg1[%c0_38, %c0_39, %c2_40, %c0_41] : memref<1x16x32x32xf32, #tpu.memory_space<vmem>>, vector<1x16x1x32xf32>
    %38 = vector.shape_cast %37 : vector<1x16x1x32xf32> to vector<16x32xf32>
    %c0_42 = arith.constant 0 : index
    %c0_43 = arith.constant 0 : index
    %c3 = arith.constant 3 : index
    %c0_44 = arith.constant 0 : index
    %39 = vector.load %arg1[%c0_42, %c0_43, %c3, %c0_44] : memref<1x16x32x32xf32, #tpu.memory_space<vmem>>, vector<1x16x1x32xf32>
    %40 = vector.shape_cast %39 : vector<1x16x1x32xf32> to vector<16x32xf32>
    %c0_45 = arith.constant 0 : index
    %c0_46 = arith.constant 0 : index
    %c4 = arith.constant 4 : index
    %c0_47 = arith.constant 0 : index
    %41 = vector.load %arg1[%c0_45, %c0_46, %c4, %c0_47] : memref<1x16x32x32xf32, #tpu.memory_space<vmem>>, vector<1x16x1x32xf32>
    %42 = vector.shape_cast %41 : vector<1x16x1x32xf32> to vector<16x32xf32>
    %43 = tpu.concatenate %38, %40, %42 in 0 : vector<16x32xf32>, vector<16x32xf32>, vector<16x32xf32> -> vector<48x32xf32>
    %44 = arith.truncf %43 : vector<48x32xf32> to vector<48x32xbf16>
    %c0_48 = arith.constant 0 : index
    %c0_49 = arith.constant 0 : index
    %c0_50 = arith.constant 0 : index
    %45 = vector.load %arg2[%c0_48, %c0_49, %c0_50] : memref<3x4x48xbf16, #tpu.memory_space<vmem>>, vector<1x4x48xbf16>
    %46 = vector.shape_cast %45 : vector<1x4x48xbf16> to vector<4x48xbf16>
    %cst_51 = arith.constant dense<0.000000e+00> : vector<4x32xf32>
    %47 = tpu.matmul %46, %44, %cst_51 {dimension_numbers = #tpu.dot_dimension_numbers<[1], [0], [0], [1], [0, 0, 1, 1], [], []>} : vector<4x48xbf16>, vector<48x32xbf16>, vector<4x32xf32> -> vector<4x32xf32>
    %48 = arith.truncf %47 : vector<4x32xf32> to vector<4x32xbf16>
    %c0_52 = arith.constant 0 : index
    %c0_53 = arith.constant 0 : index
    %c0_54 = arith.constant 0 : index
    %49 = vector.load %arg3[%c0_52, %c0_53, %c0_54] : memref<3x32x15xbf16, #tpu.memory_space<vmem>>, vector<1x32x15xbf16>
    %50 = vector.shape_cast %49 : vector<1x32x15xbf16> to vector<32x15xbf16>
    %cst_55 = arith.constant dense<0.000000e+00> : vector<4x15xf32>
    %51 = tpu.matmul %48, %50, %cst_55 {dimension_numbers = #tpu.dot_dimension_numbers<[1], [0], [0], [1], [0, 0, 1, 1], [], []>} : vector<4x32xbf16>, vector<32x15xbf16>, vector<4x15xf32> -> vector<4x15xf32>
    %c1_56 = arith.constant 1 : index
    %c0_57 = arith.constant 0 : index
    %c0_58 = arith.constant 0 : index
    %52 = vector.load %arg2[%c1_56, %c0_57, %c0_58] : memref<3x4x48xbf16, #tpu.memory_space<vmem>>, vector<1x4x48xbf16>
    %53 = vector.shape_cast %52 : vector<1x4x48xbf16> to vector<4x48xbf16>
    %cst_59 = arith.constant dense<0.000000e+00> : vector<4x32xf32>
    %54 = tpu.matmul %53, %44, %cst_59 {dimension_numbers = #tpu.dot_dimension_numbers<[1], [0], [0], [1], [0, 0, 1, 1], [], []>} : vector<4x48xbf16>, vector<48x32xbf16>, vector<4x32xf32> -> vector<4x32xf32>
    %55 = arith.truncf %54 : vector<4x32xf32> to vector<4x32xbf16>
    %c1_60 = arith.constant 1 : index
    %c0_61 = arith.constant 0 : index
    %c0_62 = arith.constant 0 : index
    %56 = vector.load %arg3[%c1_60, %c0_61, %c0_62] : memref<3x32x15xbf16, #tpu.memory_space<vmem>>, vector<1x32x15xbf16>
    %57 = vector.shape_cast %56 : vector<1x32x15xbf16> to vector<32x15xbf16>
    %cst_63 = arith.constant dense<0.000000e+00> : vector<4x15xf32>
    %58 = tpu.matmul %55, %57, %cst_63 {dimension_numbers = #tpu.dot_dimension_numbers<[1], [0], [0], [1], [0, 0, 1, 1], [], []>} : vector<4x32xbf16>, vector<32x15xbf16>, vector<4x15xf32> -> vector<4x15xf32>
    %59 = arith.addf %51, %58 : vector<4x15xf32>
    %c2_64 = arith.constant 2 : index
    %c0_65 = arith.constant 0 : index
    %c0_66 = arith.constant 0 : index
    %60 = vector.load %arg2[%c2_64, %c0_65, %c0_66] : memref<3x4x48xbf16, #tpu.memory_space<vmem>>, vector<1x4x48xbf16>
    %61 = vector.shape_cast %60 : vector<1x4x48xbf16> to vector<4x48xbf16>
    %cst_67 = arith.constant dense<0.000000e+00> : vector<4x32xf32>
    %62 = tpu.matmul %61, %44, %cst_67 {dimension_numbers = #tpu.dot_dimension_numbers<[1], [0], [0], [1], [0, 0, 1, 1], [], []>} : vector<4x48xbf16>, vector<48x32xbf16>, vector<4x32xf32> -> vector<4x32xf32>
    %63 = arith.truncf %62 : vector<4x32xf32> to vector<4x32xbf16>
    %c2_68 = arith.constant 2 : index
    %c0_69 = arith.constant 0 : index
    %c0_70 = arith.constant 0 : index
    %64 = vector.load %arg3[%c2_68, %c0_69, %c0_70] : memref<3x32x15xbf16, #tpu.memory_space<vmem>>, vector<1x32x15xbf16>
    %65 = vector.shape_cast %64 : vector<1x32x15xbf16> to vector<32x15xbf16>
    %cst_71 = arith.constant dense<0.000000e+00> : vector<4x15xf32>
    %66 = tpu.matmul %63, %65, %cst_71 {dimension_numbers = #tpu.dot_dimension_numbers<[1], [0], [0], [1], [0, 0, 1, 1], [], []>} : vector<4x32xbf16>, vector<32x15xbf16>, vector<4x15xf32> -> vector<4x15xf32>
    %67 = arith.addf %59, %66 : vector<4x15xf32>
    %c0_72 = arith.constant 0 : index
    %c0_73 = arith.constant 0 : index
    %68 = vector.load %arg4[%c0_72, %c0_73] : memref<4x1xf32, #tpu.memory_space<vmem>>, vector<4x1xf32>
    %69 = vector.broadcast %68 : vector<4x1xf32> to vector<4x15xf32>
    %70 = arith.addf %67, %69 : vector<4x15xf32>
    %c0_74 = arith.constant 0 : index
    %c1_75 = arith.constant 1 : index
    %c0_76 = arith.constant 0 : index
    %c0_77 = arith.constant 0 : index
    %71 = vector.load %arg5[%c0_74, %c1_75, %c0_76, %c0_77] : memref<1x15x4x15xf32, #tpu.memory_space<vmem>>, vector<1x1x4x15xf32>
    %72 = vector.shape_cast %71 : vector<1x1x4x15xf32> to vector<4x15xf32>
    %73 = vector.shape_cast %70 : vector<4x15xf32> to vector<1x1x4x15xf32>
    tpu.vector_store %arg5[%c0_74, %c1_75, %c0_76, %c0_77], %73 {strides = array<i32>} : memref<1x15x4x15xf32, #tpu.memory_space<vmem>>, vector<1x1x4x15xf32>,
    %c0_78 = arith.constant 0 : index
    %c0_79 = arith.constant 0 : index
    %c4_80 = arith.constant 4 : index
    %c0_81 = arith.constant 0 : index
    %74 = vector.load %arg1[%c0_78, %c0_79, %c4_80, %c0_81] : memref<1x16x32x32xf32, #tpu.memory_space<vmem>>, vector<1x16x1x32xf32>
    %75 = vector.shape_cast %74 : vector<1x16x1x32xf32> to vector<16x32xf32>
    %c0_82 = arith.constant 0 : index
    %c0_83 = arith.constant 0 : index
    %c5 = arith.constant 5 : index
    %c0_84 = arith.constant 0 : index
    %76 = vector.load %arg1[%c0_82, %c0_83, %c5, %c0_84] : memref<1x16x32x32xf32, #tpu.memory_space<vmem>>, vector<1x16x1x32xf32>
    %77 = vector.shape_cast %76 : vector<1x16x1x32xf32> to vector<16x32xf32>
    %c0_85 = arith.constant 0 : index
    %c0_86 = arith.constant 0 : index
    %c6 = arith.constant 6 : index
    %c0_87 = arith.constant 0 : index
    %78 = vector.load %arg1[%c0_85, %c0_86, %c6, %c0_87] : memref<1x16x32x32xf32, #tpu.memory_space<vmem>>, vector<1x16x1x32xf32>
    %79 = vector.shape_cast %78 : vector<1x16x1x32xf32> to vector<16x32xf32>
    %80 = tpu.concatenate %75, %77, %79 in 0 : vector<16x32xf32>, vector<16x32xf32>, vector<16x32xf32> -> vector<48x32xf32>
    %81 = arith.truncf %80 : vector<48x32xf32> to vector<48x32xbf16>
    %c0_88 = arith.constant 0 : index
    %c0_89 = arith.constant 0 : index
    %c0_90 = arith.constant 0 : index
    %82 = vector.load %arg2[%c0_88, %c0_89, %c0_90] : memref<3x4x48xbf16, #tpu.memory_space<vmem>>, vector<1x4x48xbf16>
    %83 = vector.shape_cast %82 : vector<1x4x48xbf16> to vector<4x48xbf16>
    %cst_91 = arith.constant dense<0.000000e+00> : vector<4x32xf32>
    %84 = tpu.matmul %83, %81, %cst_91 {dimension_numbers = #tpu.dot_dimension_numbers<[1], [0], [0], [1], [0, 0, 1, 1], [], []>} : vector<4x48xbf16>, vector<48x32xbf16>, vector<4x32xf32> -> vector<4x32xf32>
    %85 = arith.truncf %84 : vector<4x32xf32> to vector<4x32xbf16>
    %c0_92 = arith.constant 0 : index
    %c0_93 = arith.constant 0 : index
    %c0_94 = arith.constant 0 : index
    %86 = vector.load %arg3[%c0_92, %c0_93, %c0_94] : memref<3x32x15xbf16, #tpu.memory_space<vmem>>, vector<1x32x15xbf16>
    %87 = vector.shape_cast %86 : vector<1x32x15xbf16> to vector<32x15xbf16>
    %cst_95 = arith.constant dense<0.000000e+00> : vector<4x15xf32>
    %88 = tpu.matmul %85, %87, %cst_95 {dimension_numbers = #tpu.dot_dimension_numbers<[1], [0], [0], [1], [0, 0, 1, 1], [], []>} : vector<4x32xbf16>, vector<32x15xbf16>, vector<4x15xf32> -> vector<4x15xf32>
    %c1_96 = arith.constant 1 : index
    %c0_97 = arith.constant 0 : index
    %c0_98 = arith.constant 0 : index
    %89 = vector.load %arg2[%c1_96, %c0_97, %c0_98] : memref<3x4x48xbf16, #tpu.memory_space<vmem>>, vector<1x4x48xbf16>
    %90 = vector.shape_cast %89 : vector<1x4x48xbf16> to vector<4x48xbf16>
    %cst_99 = arith.constant dense<0.000000e+00> : vector<4x32xf32>
    %91 = tpu.matmul %90, %81, %cst_99 {dimension_numbers = #tpu.dot_dimension_numbers<[1], [0], [0], [1], [0, 0, 1, 1], [], []>} : vector<4x48xbf16>, vector<48x32xbf16>, vector<4x32xf32> -> vector<4x32xf32>
    %92 = arith.truncf %91 : vector<4x32xf32> to vector<4x32xbf16>
    %c1_100 = arith.constant 1 : index
    %c0_101 = arith.constant 0 : index
    %c0_102 = arith.constant 0 : index
    %93 = vector.load %arg3[%c1_100, %c0_101, %c0_102] : memref<3x32x15xbf16, #tpu.memory_space<vmem>>, vector<1x32x15xbf16>
    %94 = vector.shape_cast %93 : vector<1x32x15xbf16> to vector<32x15xbf16>
    %cst_103 = arith.constant dense<0.000000e+00> : vector<4x15xf32>
    %95 = tpu.matmul %92, %94, %cst_103 {dimension_numbers = #tpu.dot_dimension_numbers<[1], [0], [0], [1], [0, 0, 1, 1], [], []>} : vector<4x32xbf16>, vector<32x15xbf16>, vector<4x15xf32> -> vector<4x15xf32>
    %96 = arith.addf %88, %95 : vector<4x15xf32>
    %c2_104 = arith.constant 2 : index
    %c0_105 = arith.constant 0 : index
    %c0_106 = arith.constant 0 : index
    %97 = vector.load %arg2[%c2_104, %c0_105, %c0_106] : memref<3x4x48xbf16, #tpu.memory_space<vmem>>, vector<1x4x48xbf16>
    %98 = vector.shape_cast %97 : vector<1x4x48xbf16> to vector<4x48xbf16>
    %cst_107 = arith.constant dense<0.000000e+00> : vector<4x32xf32>
    %99 = tpu.matmul %98, %81, %cst_107 {dimension_numbers = #tpu.dot_dimension_numbers<[1], [0], [0], [1], [0, 0, 1, 1], [], []>} : vector<4x48xbf16>, vector<48x32xbf16>, vector<4x32xf32> -> vector<4x32xf32>
    %100 = arith.truncf %99 : vector<4x32xf32> to vector<4x32xbf16>
    %c2_108 = arith.constant 2 : index
    %c0_109 = arith.constant 0 : index
    %c0_110 = arith.constant 0 : index
    %101 = vector.load %arg3[%c2_108, %c0_109, %c0_110] : memref<3x32x15xbf16, #tpu.memory_space<vmem>>, vector<1x32x15xbf16>
    %102 = vector.shape_cast %101 : vector<1x32x15xbf16> to vector<32x15xbf16>
    %cst_111 = arith.constant dense<0.000000e+00> : vector<4x15xf32>
    %103 = tpu.matmul %100, %102, %cst_111 {dimension_numbers = #tpu.dot_dimension_numbers<[1], [0], [0], [1], [0, 0, 1, 1], [], []>} : vector<4x32xbf16>, vector<32x15xbf16>, vector<4x15xf32> -> vector<4x15xf32>
    %104 = arith.addf %96, %103 : vector<4x15xf32>
    %c0_112 = arith.constant 0 : index
    %c0_113 = arith.constant 0 : index
    %105 = vector.load %arg4[%c0_112, %c0_113] : memref<4x1xf32, #tpu.memory_space<vmem>>, vector<4x1xf32>
    %106 = vector.broadcast %105 : vector<4x1xf32> to vector<4x15xf32>
    %107 = arith.addf %104, %106 : vector<4x15xf32>
    %c0_114 = arith.constant 0 : index
    %c2_115 = arith.constant 2 : index
    %c0_116 = arith.constant 0 : index
    %c0_117 = arith.constant 0 : index
    %108 = vector.load %arg5[%c0_114, %c2_115, %c0_116, %c0_117] : memref<1x15x4x15xf32, #tpu.memory_space<vmem>>, vector<1x1x4x15xf32>
    %109 = vector.shape_cast %108 : vector<1x1x4x15xf32> to vector<4x15xf32>
    %110 = vector.shape_cast %107 : vector<4x15xf32> to vector<1x1x4x15xf32>
    tpu.vector_store %arg5[%c0_114, %c2_115, %c0_116, %c0_117], %110 {strides = array<i32>} : memref<1x15x4x15xf32, #tpu.memory_space<vmem>>, vector<1x1x4x15xf32>,
    %c0_118 = arith.constant 0 : index
    %c0_119 = arith.constant 0 : index
    %c6_120 = arith.constant 6 : index
    %c0_121 = arith.constant 0 : index
    %111 = vector.load %arg1[%c0_118, %c0_119, %c6_120, %c0_121] : memref<1x16x32x32xf32, #tpu.memory_space<vmem>>, vector<1x16x1x32xf32>
    %112 = vector.shape_cast %111 : vector<1x16x1x32xf32> to vector<16x32xf32>
    %c0_122 = arith.constant 0 : index
    %c0_123 = arith.constant 0 : index
    %c7 = arith.constant 7 : index
    %c0_124 = arith.constant 0 : index
    %113 = vector.load %arg1[%c0_122, %c0_123, %c7, %c0_124] : memref<1x16x32x32xf32, #tpu.memory_space<vmem>>, vector<1x16x1x32xf32>
    %114 = vector.shape_cast %113 : vector<1x16x1x32xf32> to vector<16x32xf32>
    %c0_125 = arith.constant 0 : index
    %c0_126 = arith.constant 0 : index
    %c8 = arith.constant 8 : index
    %c0_127 = arith.constant 0 : index
    %115 = vector.load %arg1[%c0_125, %c0_126, %c8, %c0_127] : memref<1x16x32x32xf32, #tpu.memory_space<vmem>>, vector<1x16x1x32xf32>
    %116 = vector.shape_cast %115 : vector<1x16x1x32xf32> to vector<16x32xf32>
    %117 = tpu.concatenate %112, %114, %116 in 0 : vector<16x32xf32>, vector<16x32xf32>, vector<16x32xf32> -> vector<48x32xf32>
    %118 = arith.truncf %117 : vector<48x32xf32> to vector<48x32xbf16>
    %c0_128 = arith.constant 0 : index
    %c0_129 = arith.constant 0 : index
    %c0_130 = arith.constant 0 : index
    %119 = vector.load %arg2[%c0_128, %c0_129, %c0_130] : memref<3x4x48xbf16, #tpu.memory_space<vmem>>, vector<1x4x48xbf16>
    %120 = vector.shape_cast %119 : vector<1x4x48xbf16> to vector<4x48xbf16>
    %cst_131 = arith.constant dense<0.000000e+00> : vector<4x32xf32>
    %121 = tpu.matmul %120, %118, %cst_131 {dimension_numbers = #tpu.dot_dimension_numbers<[1], [0], [0], [1], [0, 0, 1, 1], [], []>} : vector<4x48xbf16>, vector<48x32xbf16>, vector<4x32xf32> -> vector<4x32xf32>
    %122 = arith.truncf %121 : vector<4x32xf32> to vector<4x32xbf16>
    %c0_132 = arith.constant 0 : index
    %c0_133 = arith.constant 0 : index
    %c0_134 = arith.constant 0 : index
    %123 = vector.load %arg3[%c0_132, %c0_133, %c0_134] : memref<3x32x15xbf16, #tpu.memory_space<vmem>>, vector<1x32x15xbf16>
    %124 = vector.shape_cast %123 : vector<1x32x15xbf16> to vector<32x15xbf16>
    %cst_135 = arith.constant dense<0.000000e+00> : vector<4x15xf32>
    %125 = tpu.matmul %122, %124, %cst_135 {dimension_numbers = #tpu.dot_dimension_numbers<[1], [0], [0], [1], [0, 0, 1, 1], [], []>} : vector<4x32xbf16>, vector<32x15xbf16>, vector<4x15xf32> -> vector<4x15xf32>
    %c1_136 = arith.constant 1 : index
    %c0_137 = arith.constant 0 : index
    %c0_138 = arith.constant 0 : index
    %126 = vector.load %arg2[%c1_136, %c0_137, %c0_138] : memref<3x4x48xbf16, #tpu.memory_space<vmem>>, vector<1x4x48xbf16>
    %127 = vector.shape_cast %126 : vector<1x4x48xbf16> to vector<4x48xbf16>
    %cst_139 = arith.constant dense<0.000000e+00> : vector<4x32xf32>
    %128 = tpu.matmul %127, %118, %cst_139 {dimension_numbers = #tpu.dot_dimension_numbers<[1], [0], [0], [1], [0, 0, 1, 1], [], []>} : vector<4x48xbf16>, vector<48x32xbf16>, vector<4x32xf32> -> vector<4x32xf32>
    %129 = arith.truncf %128 : vector<4x32xf32> to vector<4x32xbf16>
    %c1_140 = arith.constant 1 : index
    %c0_141 = arith.constant 0 : index
    %c0_142 = arith.constant 0 : index
    %130 = vector.load %arg3[%c1_140, %c0_141, %c0_142] : memref<3x32x15xbf16, #tpu.memory_space<vmem>>, vector<1x32x15xbf16>
    %131 = vector.shape_cast %130 : vector<1x32x15xbf16> to vector<32x15xbf16>
    %cst_143 = arith.constant dense<0.000000e+00> : vector<4x15xf32>
    %132 = tpu.matmul %129, %131, %cst_143 {dimension_numbers = #tpu.dot_dimension_numbers<[1], [0], [0], [1], [0, 0, 1, 1], [], []>} : vector<4x32xbf16>, vector<32x15xbf16>, vector<4x15xf32> -> vector<4x15xf32>
    %133 = arith.addf %125, %132 : vector<4x15xf32>
    %c2_144 = arith.constant 2 : index
    %c0_145 = arith.constant 0 : index
    %c0_146 = arith.constant 0 : index
    %134 = vector.load %arg2[%c2_144, %c0_145, %c0_146] : memref<3x4x48xbf16, #tpu.memory_space<vmem>>, vector<1x4x48xbf16>
    %135 = vector.shape_cast %134 : vector<1x4x48xbf16> to vector<4x48xbf16>
    %cst_147 = arith.constant dense<0.000000e+00> : vector<4x32xf32>
    %136 = tpu.matmul %135, %118, %cst_147 {dimension_numbers = #tpu.dot_dimension_numbers<[1], [0], [0], [1], [0, 0, 1, 1], [], []>} : vector<4x48xbf16>, vector<48x32xbf16>, vector<4x32xf32> -> vector<4x32xf32>
    %137 = arith.truncf %136 : vector<4x32xf32> to vector<4x32xbf16>
    %c2_148 = arith.constant 2 : index
    %c0_149 = arith.constant 0 : index
    %c0_150 = arith.constant 0 : index
    %138 = vector.load %arg3[%c2_148, %c0_149, %c0_150] : memref<3x32x15xbf16, #tpu.memory_space<vmem>>, vector<1x32x15xbf16>
    %139 = vector.shape_cast %138 : vector<1x32x15xbf16> to vector<32x15xbf16>
    %cst_151 = arith.constant dense<0.000000e+00> : vector<4x15xf32>
    %140 = tpu.matmul %137, %139, %cst_151 {dimension_numbers = #tpu.dot_dimension_numbers<[1], [0], [0], [1], [0, 0, 1, 1], [], []>} : vector<4x32xbf16>, vector<32x15xbf16>, vector<4x15xf32> -> vector<4x15xf32>
    %141 = arith.addf %133, %140 : vector<4x15xf32>
    %c0_152 = arith.constant 0 : index
    %c0_153 = arith.constant 0 : index
    %142 = vector.load %arg4[%c0_152, %c0_153] : memref<4x1xf32, #tpu.memory_space<vmem>>, vector<4x1xf32>
    %143 = vector.broadcast %142 : vector<4x1xf32> to vector<4x15xf32>
    %144 = arith.addf %141, %143 : vector<4x15xf32>
    %c0_154 = arith.constant 0 : index
    %c3_155 = arith.constant 3 : index
    %c0_156 = arith.constant 0 : index
    %c0_157 = arith.constant 0 : index
    %145 = vector.load %arg5[%c0_154, %c3_155, %c0_156, %c0_157] : memref<1x15x4x15xf32, #tpu.memory_space<vmem>>, vector<1x1x4x15xf32>
    %146 = vector.shape_cast %145 : vector<1x1x4x15xf32> to vector<4x15xf32>
    %147 = vector.shape_cast %144 : vector<4x15xf32> to vector<1x1x4x15xf32>
    tpu.vector_store %arg5[%c0_154, %c3_155, %c0_156, %c0_157], %147 {strides = array<i32>} : memref<1x15x4x15xf32, #tpu.memory_space<vmem>>, vector<1x1x4x15xf32>,
    %c0_158 = arith.constant 0 : index
    %c0_159 = arith.constant 0 : index
    %c8_160 = arith.constant 8 : index
    %c0_161 = arith.constant 0 : index
    %148 = vector.load %arg1[%c0_158, %c0_159, %c8_160, %c0_161] : memref<1x16x32x32xf32, #tpu.memory_space<vmem>>, vector<1x16x1x32xf32>
    %149 = vector.shape_cast %148 : vector<1x16x1x32xf32> to vector<16x32xf32>
    %c0_162 = arith.constant 0 : index
    %c0_163 = arith.constant 0 : index
    %c9 = arith.constant 9 : index
    %c0_164 = arith.constant 0 : index
    %150 = vector.load %arg1[%c0_162, %c0_163, %c9, %c0_164] : memref<1x16x32x32xf32, #tpu.memory_space<vmem>>, vector<1x16x1x32xf32>
    %151 = vector.shape_cast %150 : vector<1x16x1x32xf32> to vector<16x32xf32>
    %c0_165 = arith.constant 0 : index
    %c0_166 = arith.constant 0 : index
    %c10 = arith.constant 10 : index
    %c0_167 = arith.constant 0 : index
    %152 = vector.load %arg1[%c0_165, %c0_166, %c10, %c0_167] : memref<1x16x32x32xf32, #tpu.memory_space<vmem>>, vector<1x16x1x32xf32>
    %153 = vector.shape_cast %152 : vector<1x16x1x32xf32> to vector<16x32xf32>
    %154 = tpu.concatenate %149, %151, %153 in 0 : vector<16x32xf32>, vector<16x32xf32>, vector<16x32xf32> -> vector<48x32xf32>
    %155 = arith.truncf %154 : vector<48x32xf32> to vector<48x32xbf16>
    %c0_168 = arith.constant 0 : index
    %c0_169 = arith.constant 0 : index
    %c0_170 = arith.constant 0 : index
    %156 = vector.load %arg2[%c0_168, %c0_169, %c0_170] : memref<3x4x48xbf16, #tpu.memory_space<vmem>>, vector<1x4x48xbf16>
    %157 = vector.shape_cast %156 : vector<1x4x48xbf16> to vector<4x48xbf16>
    %cst_171 = arith.constant dense<0.000000e+00> : vector<4x32xf32>
    %158 = tpu.matmul %157, %155, %cst_171 {dimension_numbers = #tpu.dot_dimension_numbers<[1], [0], [0], [1], [0, 0, 1, 1], [], []>} : vector<4x48xbf16>, vector<48x32xbf16>, vector<4x32xf32> -> vector<4x32xf32>
    %159 = arith.truncf %158 : vector<4x32xf32> to vector<4x32xbf16>
    %c0_172 = arith.constant 0 : index
    %c0_173 = arith.constant 0 : index
    %c0_174 = arith.constant 0 : index
    %160 = vector.load %arg3[%c0_172, %c0_173, %c0_174] : memref<3x32x15xbf16, #tpu.memory_space<vmem>>, vector<1x32x15xbf16>
    %161 = vector.shape_cast %160 : vector<1x32x15xbf16> to vector<32x15xbf16>
    %cst_175 = arith.constant dense<0.000000e+00> : vector<4x15xf32>
    %162 = tpu.matmul %159, %161, %cst_175 {dimension_numbers = #tpu.dot_dimension_numbers<[1], [0], [0], [1], [0, 0, 1, 1], [], []>} : vector<4x32xbf16>, vector<32x15xbf16>, vector<4x15xf32> -> vector<4x15xf32>
    %c1_176 = arith.constant 1 : index
    %c0_177 = arith.constant 0 : index
    %c0_178 = arith.constant 0 : index
    %163 = vector.load %arg2[%c1_176, %c0_177, %c0_178] : memref<3x4x48xbf16, #tpu.memory_space<vmem>>, vector<1x4x48xbf16>
    %164 = vector.shape_cast %163 : vector<1x4x48xbf16> to vector<4x48xbf16>
    %cst_179 = arith.constant dense<0.000000e+00> : vector<4x32xf32>
    %165 = tpu.matmul %164, %155, %cst_179 {dimension_numbers = #tpu.dot_dimension_numbers<[1], [0], [0], [1], [0, 0, 1, 1], [], []>} : vector<4x48xbf16>, vector<48x32xbf16>, vector<4x32xf32> -> vector<4x32xf32>
    %166 = arith.truncf %165 : vector<4x32xf32> to vector<4x32xbf16>
    %c1_180 = arith.constant 1 : index
    %c0_181 = arith.constant 0 : index
    %c0_182 = arith.constant 0 : index
    %167 = vector.load %arg3[%c1_180, %c0_181, %c0_182] : memref<3x32x15xbf16, #tpu.memory_space<vmem>>, vector<1x32x15xbf16>
    %168 = vector.shape_cast %167 : vector<1x32x15xbf16> to vector<32x15xbf16>
    %cst_183 = arith.constant dense<0.000000e+00> : vector<4x15xf32>
    %169 = tpu.matmul %166, %168, %cst_183 {dimension_numbers = #tpu.dot_dimension_numbers<[1], [0], [0], [1], [0, 0, 1, 1], [], []>} : vector<4x32xbf16>, vector<32x15xbf16>, vector<4x15xf32> -> vector<4x15xf32>
    %170 = arith.addf %162, %169 : vector<4x15xf32>
    %c2_184 = arith.constant 2 : index
    %c0_185 = arith.constant 0 : index
    %c0_186 = arith.constant 0 : index
    %171 = vector.load %arg2[%c2_184, %c0_185, %c0_186] : memref<3x4x48xbf16, #tpu.memory_space<vmem>>, vector<1x4x48xbf16>
    %172 = vector.shape_cast %171 : vector<1x4x48xbf16> to vector<4x48xbf16>
    %cst_187 = arith.constant dense<0.000000e+00> : vector<4x32xf32>
    %173 = tpu.matmul %172, %155, %cst_187 {dimension_numbers = #tpu.dot_dimension_numbers<[1], [0], [0], [1], [0, 0, 1, 1], [], []>} : vector<4x48xbf16>, vector<48x32xbf16>, vector<4x32xf32> -> vector<4x32xf32>
    %174 = arith.truncf %173 : vector<4x32xf32> to vector<4x32xbf16>
    %c2_188 = arith.constant 2 : index
    %c0_189 = arith.constant 0 : index
    %c0_190 = arith.constant 0 : index
    %175 = vector.load %arg3[%c2_188, %c0_189, %c0_190] : memref<3x32x15xbf16, #tpu.memory_space<vmem>>, vector<1x32x15xbf16>
    %176 = vector.shape_cast %175 : vector<1x32x15xbf16> to vector<32x15xbf16>
    %cst_191 = arith.constant dense<0.000000e+00> : vector<4x15xf32>
    %177 = tpu.matmul %174, %176, %cst_191 {dimension_numbers = #tpu.dot_dimension_numbers<[1], [0], [0], [1], [0, 0, 1, 1], [], []>} : vector<4x32xbf16>, vector<32x15xbf16>, vector<4x15xf32> -> vector<4x15xf32>
    %178 = arith.addf %170, %177 : vector<4x15xf32>
    %c0_192 = arith.constant 0 : index
    %c0_193 = arith.constant 0 : index
    %179 = vector.load %arg4[%c0_192, %c0_193] : memref<4x1xf32, #tpu.memory_space<vmem>>, vector<4x1xf32>
    %180 = vector.broadcast %179 : vector<4x1xf32> to vector<4x15xf32>
    %181 = arith.addf %178, %180 : vector<4x15xf32>
    %c0_194 = arith.constant 0 : index
    %c4_195 = arith.constant 4 : index
    %c0_196 = arith.constant 0 : index
    %c0_197 = arith.constant 0 : index
    %182 = vector.load %arg5[%c0_194, %c4_195, %c0_196, %c0_197] : memref<1x15x4x15xf32, #tpu.memory_space<vmem>>, vector<1x1x4x15xf32>
    %183 = vector.shape_cast %182 : vector<1x1x4x15xf32> to vector<4x15xf32>
    %184 = vector.shape_cast %181 : vector<4x15xf32> to vector<1x1x4x15xf32>
    tpu.vector_store %arg5[%c0_194, %c4_195, %c0_196, %c0_197], %184 {strides = array<i32>} : memref<1x15x4x15xf32, #tpu.memory_space<vmem>>, vector<1x1x4x15xf32>,
    %c0_198 = arith.constant 0 : index
    %c0_199 = arith.constant 0 : index
    %c10_200 = arith.constant 10 : index
    %c0_201 = arith.constant 0 : index
    %185 = vector.load %arg1[%c0_198, %c0_199, %c10_200, %c0_201] : memref<1x16x32x32xf32, #tpu.memory_space<vmem>>, vector<1x16x1x32xf32>
    %186 = vector.shape_cast %185 : vector<1x16x1x32xf32> to vector<16x32xf32>
    %c0_202 = arith.constant 0 : index
    %c0_203 = arith.constant 0 : index
    %c11 = arith.constant 11 : index
    %c0_204 = arith.constant 0 : index
    %187 = vector.load %arg1[%c0_202, %c0_203, %c11, %c0_204] : memref<1x16x32x32xf32, #tpu.memory_space<vmem>>, vector<1x16x1x32xf32>
    %188 = vector.shape_cast %187 : vector<1x16x1x32xf32> to vector<16x32xf32>
    %c0_205 = arith.constant 0 : index
    %c0_206 = arith.constant 0 : index
    %c12 = arith.constant 12 : index
    %c0_207 = arith.constant 0 : index
    %189 = vector.load %arg1[%c0_205, %c0_206, %c12, %c0_207] : memref<1x16x32x32xf32, #tpu.memory_space<vmem>>, vector<1x16x1x32xf32>
    %190 = vector.shape_cast %189 : vector<1x16x1x32xf32> to vector<16x32xf32>
    %191 = tpu.concatenate %186, %188, %190 in 0 : vector<16x32xf32>, vector<16x32xf32>, vector<16x32xf32> -> vector<48x32xf32>
    %192 = arith.truncf %191 : vector<48x32xf32> to vector<48x32xbf16>
    %c0_208 = arith.constant 0 : index
    %c0_209 = arith.constant 0 : index
    %c0_210 = arith.constant 0 : index
    %193 = vector.load %arg2[%c0_208, %c0_209, %c0_210] : memref<3x4x48xbf16, #tpu.memory_space<vmem>>, vector<1x4x48xbf16>
    %194 = vector.shape_cast %193 : vector<1x4x48xbf16> to vector<4x48xbf16>
    %cst_211 = arith.constant dense<0.000000e+00> : vector<4x32xf32>
    %195 = tpu.matmul %194, %192, %cst_211 {dimension_numbers = #tpu.dot_dimension_numbers<[1], [0], [0], [1], [0, 0, 1, 1], [], []>} : vector<4x48xbf16>, vector<48x32xbf16>, vector<4x32xf32> -> vector<4x32xf32>
    %196 = arith.truncf %195 : vector<4x32xf32> to vector<4x32xbf16>
    %c0_212 = arith.constant 0 : index
    %c0_213 = arith.constant 0 : index
    %c0_214 = arith.constant 0 : index
    %197 = vector.load %arg3[%c0_212, %c0_213, %c0_214] : memref<3x32x15xbf16, #tpu.memory_space<vmem>>, vector<1x32x15xbf16>
    %198 = vector.shape_cast %197 : vector<1x32x15xbf16> to vector<32x15xbf16>
    %cst_215 = arith.constant dense<0.000000e+00> : vector<4x15xf32>
    %199 = tpu.matmul %196, %198, %cst_215 {dimension_numbers = #tpu.dot_dimension_numbers<[1], [0], [0], [1], [0, 0, 1, 1], [], []>} : vector<4x32xbf16>, vector<32x15xbf16>, vector<4x15xf32> -> vector<4x15xf32>
    %c1_216 = arith.constant 1 : index
    %c0_217 = arith.constant 0 : index
    %c0_218 = arith.constant 0 : index
    %200 = vector.load %arg2[%c1_216, %c0_217, %c0_218] : memref<3x4x48xbf16, #tpu.memory_space<vmem>>, vector<1x4x48xbf16>
    %201 = vector.shape_cast %200 : vector<1x4x48xbf16> to vector<4x48xbf16>
    %cst_219 = arith.constant dense<0.000000e+00> : vector<4x32xf32>
    %202 = tpu.matmul %201, %192, %cst_219 {dimension_numbers = #tpu.dot_dimension_numbers<[1], [0], [0], [1], [0, 0, 1, 1], [], []>} : vector<4x48xbf16>, vector<48x32xbf16>, vector<4x32xf32> -> vector<4x32xf32>
    %203 = arith.truncf %202 : vector<4x32xf32> to vector<4x32xbf16>
    %c1_220 = arith.constant 1 : index
    %c0_221 = arith.constant 0 : index
    %c0_222 = arith.constant 0 : index
    %204 = vector.load %arg3[%c1_220, %c0_221, %c0_222] : memref<3x32x15xbf16, #tpu.memory_space<vmem>>, vector<1x32x15xbf16>
    %205 = vector.shape_cast %204 : vector<1x32x15xbf16> to vector<32x15xbf16>
    %cst_223 = arith.constant dense<0.000000e+00> : vector<4x15xf32>
    %206 = tpu.matmul %203, %205, %cst_223 {dimension_numbers = #tpu.dot_dimension_numbers<[1], [0], [0], [1], [0, 0, 1, 1], [], []>} : vector<4x32xbf16>, vector<32x15xbf16>, vector<4x15xf32> -> vector<4x15xf32>
    %207 = arith.addf %199, %206 : vector<4x15xf32>
    %c2_224 = arith.constant 2 : index
    %c0_225 = arith.constant 0 : index
    %c0_226 = arith.constant 0 : index
    %208 = vector.load %arg2[%c2_224, %c0_225, %c0_226] : memref<3x4x48xbf16, #tpu.memory_space<vmem>>, vector<1x4x48xbf16>
    %209 = vector.shape_cast %208 : vector<1x4x48xbf16> to vector<4x48xbf16>
    %cst_227 = arith.constant dense<0.000000e+00> : vector<4x32xf32>
    %210 = tpu.matmul %209, %192, %cst_227 {dimension_numbers = #tpu.dot_dimension_numbers<[1], [0], [0], [1], [0, 0, 1, 1], [], []>} : vector<4x48xbf16>, vector<48x32xbf16>, vector<4x32xf32> -> vector<4x32xf32>
    %211 = arith.truncf %210 : vector<4x32xf32> to vector<4x32xbf16>
    %c2_228 = arith.constant 2 : index
    %c0_229 = arith.constant 0 : index
    %c0_230 = arith.constant 0 : index
    %212 = vector.load %arg3[%c2_228, %c0_229, %c0_230] : memref<3x32x15xbf16, #tpu.memory_space<vmem>>, vector<1x32x15xbf16>
    %213 = vector.shape_cast %212 : vector<1x32x15xbf16> to vector<32x15xbf16>
    %cst_231 = arith.constant dense<0.000000e+00> : vector<4x15xf32>
    %214 = tpu.matmul %211, %213, %cst_231 {dimension_numbers = #tpu.dot_dimension_numbers<[1], [0], [0], [1], [0, 0, 1, 1], [], []>} : vector<4x32xbf16>, vector<32x15xbf16>, vector<4x15xf32> -> vector<4x15xf32>
    %215 = arith.addf %207, %214 : vector<4x15xf32>
    %c0_232 = arith.constant 0 : index
    %c0_233 = arith.constant 0 : index
    %216 = vector.load %arg4[%c0_232, %c0_233] : memref<4x1xf32, #tpu.memory_space<vmem>>, vector<4x1xf32>
    %217 = vector.broadcast %216 : vector<4x1xf32> to vector<4x15xf32>
    %218 = arith.addf %215, %217 : vector<4x15xf32>
    %c0_234 = arith.constant 0 : index
    %c5_235 = arith.constant 5 : index
    %c0_236 = arith.constant 0 : index
    %c0_237 = arith.constant 0 : index
    %219 = vector.load %arg5[%c0_234, %c5_235, %c0_236, %c0_237] : memref<1x15x4x15xf32, #tpu.memory_space<vmem>>, vector<1x1x4x15xf32>
    %220 = vector.shape_cast %219 : vector<1x1x4x15xf32> to vector<4x15xf32>
    %221 = vector.shape_cast %218 : vector<4x15xf32> to vector<1x1x4x15xf32>
    tpu.vector_store %arg5[%c0_234, %c5_235, %c0_236, %c0_237], %221 {strides = array<i32>} : memref<1x15x4x15xf32, #tpu.memory_space<vmem>>, vector<1x1x4x15xf32>,
    %c0_238 = arith.constant 0 : index
    %c0_239 = arith.constant 0 : index
    %c12_240 = arith.constant 12 : index
    %c0_241 = arith.constant 0 : index
    %222 = vector.load %arg1[%c0_238, %c0_239, %c12_240, %c0_241] : memref<1x16x32x32xf32, #tpu.memory_space<vmem>>, vector<1x16x1x32xf32>
    %223 = vector.shape_cast %222 : vector<1x16x1x32xf32> to vector<16x32xf32>
    %c0_242 = arith.constant 0 : index
    %c0_243 = arith.constant 0 : index
    %c13 = arith.constant 13 : index
    %c0_244 = arith.constant 0 : index
    %224 = vector.load %arg1[%c0_242, %c0_243, %c13, %c0_244] : memref<1x16x32x32xf32, #tpu.memory_space<vmem>>, vector<1x16x1x32xf32>
    %225 = vector.shape_cast %224 : vector<1x16x1x32xf32> to vector<16x32xf32>
    %c0_245 = arith.constant 0 : index
    %c0_246 = arith.constant 0 : index
    %c14 = arith.constant 14 : index
    %c0_247 = arith.constant 0 : index
    %226 = vector.load %arg1[%c0_245, %c0_246, %c14, %c0_247] : memref<1x16x32x32xf32, #tpu.memory_space<vmem>>, vector<1x16x1x32xf32>
    %227 = vector.shape_cast %226 : vector<1x16x1x32xf32> to vector<16x32xf32>
    %228 = tpu.concatenate %223, %225, %227 in 0 : vector<16x32xf32>, vector<16x32xf32>, vector<16x32xf32> -> vector<48x32xf32>
    %229 = arith.truncf %228 : vector<48x32xf32> to vector<48x32xbf16>
    %c0_248 = arith.constant 0 : index
    %c0_249 = arith.constant 0 : index
    %c0_250 = arith.constant 0 : index
    %230 = vector.load %arg2[%c0_248, %c0_249, %c0_250] : memref<3x4x48xbf16, #tpu.memory_space<vmem>>, vector<1x4x48xbf16>
    %231 = vector.shape_cast %230 : vector<1x4x48xbf16> to vector<4x48xbf16>
    %cst_251 = arith.constant dense<0.000000e+00> : vector<4x32xf32>
    %232 = tpu.matmul %231, %229, %cst_251 {dimension_numbers = #tpu.dot_dimension_numbers<[1], [0], [0], [1], [0, 0, 1, 1], [], []>} : vector<4x48xbf16>, vector<48x32xbf16>, vector<4x32xf32> -> vector<4x32xf32>
    %233 = arith.truncf %232 : vector<4x32xf32> to vector<4x32xbf16>
    %c0_252 = arith.constant 0 : index
    %c0_253 = arith.constant 0 : index
    %c0_254 = arith.constant 0 : index
    %234 = vector.load %arg3[%c0_252, %c0_253, %c0_254] : memref<3x32x15xbf16, #tpu.memory_space<vmem>>, vector<1x32x15xbf16>
    %235 = vector.shape_cast %234 : vector<1x32x15xbf16> to vector<32x15xbf16>
    %cst_255 = arith.constant dense<0.000000e+00> : vector<4x15xf32>
    %236 = tpu.matmul %233, %235, %cst_255 {dimension_numbers = #tpu.dot_dimension_numbers<[1], [0], [0], [1], [0, 0, 1, 1], [], []>} : vector<4x32xbf16>, vector<32x15xbf16>, vector<4x15xf32> -> vector<4x15xf32>
    %c1_256 = arith.constant 1 : index
    %c0_257 = arith.constant 0 : index
    %c0_258 = arith.constant 0 : index
    %237 = vector.load %arg2[%c1_256, %c0_257, %c0_258] : memref<3x4x48xbf16, #tpu.memory_space<vmem>>, vector<1x4x48xbf16>
    %238 = vector.shape_cast %237 : vector<1x4x48xbf16> to vector<4x48xbf16>
    %cst_259 = arith.constant dense<0.000000e+00> : vector<4x32xf32>
    %239 = tpu.matmul %238, %229, %cst_259 {dimension_numbers = #tpu.dot_dimension_numbers<[1], [0], [0], [1], [0, 0, 1, 1], [], []>} : vector<4x48xbf16>, vector<48x32xbf16>, vector<4x32xf32> -> vector<4x32xf32>
    %240 = arith.truncf %239 : vector<4x32xf32> to vector<4x32xbf16>
    %c1_260 = arith.constant 1 : index
    %c0_261 = arith.constant 0 : index
    %c0_262 = arith.constant 0 : index
    %241 = vector.load %arg3[%c1_260, %c0_261, %c0_262] : memref<3x32x15xbf16, #tpu.memory_space<vmem>>, vector<1x32x15xbf16>
    %242 = vector.shape_cast %241 : vector<1x32x15xbf16> to vector<32x15xbf16>
    %cst_263 = arith.constant dense<0.000000e+00> : vector<4x15xf32>
    %243 = tpu.matmul %240, %242, %cst_263 {dimension_numbers = #tpu.dot_dimension_numbers<[1], [0], [0], [1], [0, 0, 1, 1], [], []>} : vector<4x32xbf16>, vector<32x15xbf16>, vector<4x15xf32> -> vector<4x15xf32>
    %244 = arith.addf %236, %243 : vector<4x15xf32>
    %c2_264 = arith.constant 2 : index
    %c0_265 = arith.constant 0 : index
    %c0_266 = arith.constant 0 : index
    %245 = vector.load %arg2[%c2_264, %c0_265, %c0_266] : memref<3x4x48xbf16, #tpu.memory_space<vmem>>, vector<1x4x48xbf16>
    %246 = vector.shape_cast %245 : vector<1x4x48xbf16> to vector<4x48xbf16>
    %cst_267 = arith.constant dense<0.000000e+00> : vector<4x32xf32>
    %247 = tpu.matmul %246, %229, %cst_267 {dimension_numbers = #tpu.dot_dimension_numbers<[1], [0], [0], [1], [0, 0, 1, 1], [], []>} : vector<4x48xbf16>, vector<48x32xbf16>, vector<4x32xf32> -> vector<4x32xf32>
    %248 = arith.truncf %247 : vector<4x32xf32> to vector<4x32xbf16>
    %c2_268 = arith.constant 2 : index
    %c0_269 = arith.constant 0 : index
    %c0_270 = arith.constant 0 : index
    %249 = vector.load %arg3[%c2_268, %c0_269, %c0_270] : memref<3x32x15xbf16, #tpu.memory_space<vmem>>, vector<1x32x15xbf16>
    %250 = vector.shape_cast %249 : vector<1x32x15xbf16> to vector<32x15xbf16>
    %cst_271 = arith.constant dense<0.000000e+00> : vector<4x15xf32>
    %251 = tpu.matmul %248, %250, %cst_271 {dimension_numbers = #tpu.dot_dimension_numbers<[1], [0], [0], [1], [0, 0, 1, 1], [], []>} : vector<4x32xbf16>, vector<32x15xbf16>, vector<4x15xf32> -> vector<4x15xf32>
    %252 = arith.addf %244, %251 : vector<4x15xf32>
    %c0_272 = arith.constant 0 : index
    %c0_273 = arith.constant 0 : index
    %253 = vector.load %arg4[%c0_272, %c0_273] : memref<4x1xf32, #tpu.memory_space<vmem>>, vector<4x1xf32>
    %254 = vector.broadcast %253 : vector<4x1xf32> to vector<4x15xf32>
    %255 = arith.addf %252, %254 : vector<4x15xf32>
    %c0_274 = arith.constant 0 : index
    %c6_275 = arith.constant 6 : index
    %c0_276 = arith.constant 0 : index
    %c0_277 = arith.constant 0 : index
    %256 = vector.load %arg5[%c0_274, %c6_275, %c0_276, %c0_277] : memref<1x15x4x15xf32, #tpu.memory_space<vmem>>, vector<1x1x4x15xf32>
    %257 = vector.shape_cast %256 : vector<1x1x4x15xf32> to vector<4x15xf32>
    %258 = vector.shape_cast %255 : vector<4x15xf32> to vector<1x1x4x15xf32>
    tpu.vector_store %arg5[%c0_274, %c6_275, %c0_276, %c0_277], %258 {strides = array<i32>} : memref<1x15x4x15xf32, #tpu.memory_space<vmem>>, vector<1x1x4x15xf32>,
    %c0_278 = arith.constant 0 : index
    %c0_279 = arith.constant 0 : index
    %c14_280 = arith.constant 14 : index
    %c0_281 = arith.constant 0 : index
    %259 = vector.load %arg1[%c0_278, %c0_279, %c14_280, %c0_281] : memref<1x16x32x32xf32, #tpu.memory_space<vmem>>, vector<1x16x1x32xf32>
    %260 = vector.shape_cast %259 : vector<1x16x1x32xf32> to vector<16x32xf32>
    %c0_282 = arith.constant 0 : index
    %c0_283 = arith.constant 0 : index
    %c15 = arith.constant 15 : index
    %c0_284 = arith.constant 0 : index
    %261 = vector.load %arg1[%c0_282, %c0_283, %c15, %c0_284] : memref<1x16x32x32xf32, #tpu.memory_space<vmem>>, vector<1x16x1x32xf32>
    %262 = vector.shape_cast %261 : vector<1x16x1x32xf32> to vector<16x32xf32>
    %c0_285 = arith.constant 0 : index
    %c0_286 = arith.constant 0 : index
    %c16 = arith.constant 16 : index
    %c0_287 = arith.constant 0 : index
    %263 = vector.load %arg1[%c0_285, %c0_286, %c16, %c0_287] : memref<1x16x32x32xf32, #tpu.memory_space<vmem>>, vector<1x16x1x32xf32>
    %264 = vector.shape_cast %263 : vector<1x16x1x32xf32> to vector<16x32xf32>
    %265 = tpu.concatenate %260, %262, %264 in 0 : vector<16x32xf32>, vector<16x32xf32>, vector<16x32xf32> -> vector<48x32xf32>
    %266 = arith.truncf %265 : vector<48x32xf32> to vector<48x32xbf16>
    %c0_288 = arith.constant 0 : index
    %c0_289 = arith.constant 0 : index
    %c0_290 = arith.constant 0 : index
    %267 = vector.load %arg2[%c0_288, %c0_289, %c0_290] : memref<3x4x48xbf16, #tpu.memory_space<vmem>>, vector<1x4x48xbf16>
    %268 = vector.shape_cast %267 : vector<1x4x48xbf16> to vector<4x48xbf16>
    %cst_291 = arith.constant dense<0.000000e+00> : vector<4x32xf32>
    %269 = tpu.matmul %268, %266, %cst_291 {dimension_numbers = #tpu.dot_dimension_numbers<[1], [0], [0], [1], [0, 0, 1, 1], [], []>} : vector<4x48xbf16>, vector<48x32xbf16>, vector<4x32xf32> -> vector<4x32xf32>
    %270 = arith.truncf %269 : vector<4x32xf32> to vector<4x32xbf16>
    %c0_292 = arith.constant 0 : index
    %c0_293 = arith.constant 0 : index
    %c0_294 = arith.constant 0 : index
    %271 = vector.load %arg3[%c0_292, %c0_293, %c0_294] : memref<3x32x15xbf16, #tpu.memory_space<vmem>>, vector<1x32x15xbf16>
    %272 = vector.shape_cast %271 : vector<1x32x15xbf16> to vector<32x15xbf16>
    %cst_295 = arith.constant dense<0.000000e+00> : vector<4x15xf32>
    %273 = tpu.matmul %270, %272, %cst_295 {dimension_numbers = #tpu.dot_dimension_numbers<[1], [0], [0], [1], [0, 0, 1, 1], [], []>} : vector<4x32xbf16>, vector<32x15xbf16>, vector<4x15xf32> -> vector<4x15xf32>
    %c1_296 = arith.constant 1 : index
    %c0_297 = arith.constant 0 : index
    %c0_298 = arith.constant 0 : index
    %274 = vector.load %arg2[%c1_296, %c0_297, %c0_298] : memref<3x4x48xbf16, #tpu.memory_space<vmem>>, vector<1x4x48xbf16>
    %275 = vector.shape_cast %274 : vector<1x4x48xbf16> to vector<4x48xbf16>
    %cst_299 = arith.constant dense<0.000000e+00> : vector<4x32xf32>
    %276 = tpu.matmul %275, %266, %cst_299 {dimension_numbers = #tpu.dot_dimension_numbers<[1], [0], [0], [1], [0, 0, 1, 1], [], []>} : vector<4x48xbf16>, vector<48x32xbf16>, vector<4x32xf32> -> vector<4x32xf32>
    %277 = arith.truncf %276 : vector<4x32xf32> to vector<4x32xbf16>
    %c1_300 = arith.constant 1 : index
    %c0_301 = arith.constant 0 : index
    %c0_302 = arith.constant 0 : index
    %278 = vector.load %arg3[%c1_300, %c0_301, %c0_302] : memref<3x32x15xbf16, #tpu.memory_space<vmem>>, vector<1x32x15xbf16>
    %279 = vector.shape_cast %278 : vector<1x32x15xbf16> to vector<32x15xbf16>
    %cst_303 = arith.constant dense<0.000000e+00> : vector<4x15xf32>
    %280 = tpu.matmul %277, %279, %cst_303 {dimension_numbers = #tpu.dot_dimension_numbers<[1], [0], [0], [1], [0, 0, 1, 1], [], []>} : vector<4x32xbf16>, vector<32x15xbf16>, vector<4x15xf32> -> vector<4x15xf32>
    %281 = arith.addf %273, %280 : vector<4x15xf32>
    %c2_304 = arith.constant 2 : index
    %c0_305 = arith.constant 0 : index
    %c0_306 = arith.constant 0 : index
    %282 = vector.load %arg2[%c2_304, %c0_305, %c0_306] : memref<3x4x48xbf16, #tpu.memory_space<vmem>>, vector<1x4x48xbf16>
    %283 = vector.shape_cast %282 : vector<1x4x48xbf16> to vector<4x48xbf16>
    %cst_307 = arith.constant dense<0.000000e+00> : vector<4x32xf32>
    %284 = tpu.matmul %283, %266, %cst_307 {dimension_numbers = #tpu.dot_dimension_numbers<[1], [0], [0], [1], [0, 0, 1, 1], [], []>} : vector<4x48xbf16>, vector<48x32xbf16>, vector<4x32xf32> -> vector<4x32xf32>
    %285 = arith.truncf %284 : vector<4x32xf32> to vector<4x32xbf16>
    %c2_308 = arith.constant 2 : index
    %c0_309 = arith.constant 0 : index
    %c0_310 = arith.constant 0 : index
    %286 = vector.load %arg3[%c2_308, %c0_309, %c0_310] : memref<3x32x15xbf16, #tpu.memory_space<vmem>>, vector<1x32x15xbf16>
    %287 = vector.shape_cast %286 : vector<1x32x15xbf16> to vector<32x15xbf16>
    %cst_311 = arith.constant dense<0.000000e+00> : vector<4x15xf32>
    %288 = tpu.matmul %285, %287, %cst_311 {dimension_numbers = #tpu.dot_dimension_numbers<[1], [0], [0], [1], [0, 0, 1, 1], [], []>} : vector<4x32xbf16>, vector<32x15xbf16>, vector<4x15xf32> -> vector<4x15xf32>
    %289 = arith.addf %281, %288 : vector<4x15xf32>
    %c0_312 = arith.constant 0 : index
    %c0_313 = arith.constant 0 : index
    %290 = vector.load %arg4[%c0_312, %c0_313] : memref<4x1xf32, #tpu.memory_space<vmem>>, vector<4x1xf32>
    %291 = vector.broadcast %290 : vector<4x1xf32> to vector<4x15xf32>
    %292 = arith.addf %289, %291 : vector<4x15xf32>
    %c0_314 = arith.constant 0 : index
    %c7_315 = arith.constant 7 : index
    %c0_316 = arith.constant 0 : index
    %c0_317 = arith.constant 0 : index
    %293 = vector.load %arg5[%c0_314, %c7_315, %c0_316, %c0_317] : memref<1x15x4x15xf32, #tpu.memory_space<vmem>>, vector<1x1x4x15xf32>
    %294 = vector.shape_cast %293 : vector<1x1x4x15xf32> to vector<4x15xf32>
    %295 = vector.shape_cast %292 : vector<4x15xf32> to vector<1x1x4x15xf32>
    tpu.vector_store %arg5[%c0_314, %c7_315, %c0_316, %c0_317], %295 {strides = array<i32>} : memref<1x15x4x15xf32, #tpu.memory_space<vmem>>, vector<1x1x4x15xf32>,
    %c0_318 = arith.constant 0 : index
    %c0_319 = arith.constant 0 : index
    %c16_320 = arith.constant 16 : index
    %c0_321 = arith.constant 0 : index
    %296 = vector.load %arg1[%c0_318, %c0_319, %c16_320, %c0_321] : memref<1x16x32x32xf32, #tpu.memory_space<vmem>>, vector<1x16x1x32xf32>
    %297 = vector.shape_cast %296 : vector<1x16x1x32xf32> to vector<16x32xf32>
    %c0_322 = arith.constant 0 : index
    %c0_323 = arith.constant 0 : index
    %c17 = arith.constant 17 : index
    %c0_324 = arith.constant 0 : index
    %298 = vector.load %arg1[%c0_322, %c0_323, %c17, %c0_324] : memref<1x16x32x32xf32, #tpu.memory_space<vmem>>, vector<1x16x1x32xf32>
    %299 = vector.shape_cast %298 : vector<1x16x1x32xf32> to vector<16x32xf32>
    %c0_325 = arith.constant 0 : index
    %c0_326 = arith.constant 0 : index
    %c18 = arith.constant 18 : index
    %c0_327 = arith.constant 0 : index
    %300 = vector.load %arg1[%c0_325, %c0_326, %c18, %c0_327] : memref<1x16x32x32xf32, #tpu.memory_space<vmem>>, vector<1x16x1x32xf32>
    %301 = vector.shape_cast %300 : vector<1x16x1x32xf32> to vector<16x32xf32>
    %302 = tpu.concatenate %297, %299, %301 in 0 : vector<16x32xf32>, vector<16x32xf32>, vector<16x32xf32> -> vector<48x32xf32>
    %303 = arith.truncf %302 : vector<48x32xf32> to vector<48x32xbf16>
    %c0_328 = arith.constant 0 : index
    %c0_329 = arith.constant 0 : index
    %c0_330 = arith.constant 0 : index
    %304 = vector.load %arg2[%c0_328, %c0_329, %c0_330] : memref<3x4x48xbf16, #tpu.memory_space<vmem>>, vector<1x4x48xbf16>
    %305 = vector.shape_cast %304 : vector<1x4x48xbf16> to vector<4x48xbf16>
    %cst_331 = arith.constant dense<0.000000e+00> : vector<4x32xf32>
    %306 = tpu.matmul %305, %303, %cst_331 {dimension_numbers = #tpu.dot_dimension_numbers<[1], [0], [0], [1], [0, 0, 1, 1], [], []>} : vector<4x48xbf16>, vector<48x32xbf16>, vector<4x32xf32> -> vector<4x32xf32>
    %307 = arith.truncf %306 : vector<4x32xf32> to vector<4x32xbf16>
    %c0_332 = arith.constant 0 : index
    %c0_333 = arith.constant 0 : index
    %c0_334 = arith.constant 0 : index
    %308 = vector.load %arg3[%c0_332, %c0_333, %c0_334] : memref<3x32x15xbf16, #tpu.memory_space<vmem>>, vector<1x32x15xbf16>
    %309 = vector.shape_cast %308 : vector<1x32x15xbf16> to vector<32x15xbf16>
    %cst_335 = arith.constant dense<0.000000e+00> : vector<4x15xf32>
    %310 = tpu.matmul %307, %309, %cst_335 {dimension_numbers = #tpu.dot_dimension_numbers<[1], [0], [0], [1], [0, 0, 1, 1], [], []>} : vector<4x32xbf16>, vector<32x15xbf16>, vector<4x15xf32> -> vector<4x15xf32>
    %c1_336 = arith.constant 1 : index
    %c0_337 = arith.constant 0 : index
    %c0_338 = arith.constant 0 : index
    %311 = vector.load %arg2[%c1_336, %c0_337, %c0_338] : memref<3x4x48xbf16, #tpu.memory_space<vmem>>, vector<1x4x48xbf16>
    %312 = vector.shape_cast %311 : vector<1x4x48xbf16> to vector<4x48xbf16>
    %cst_339 = arith.constant dense<0.000000e+00> : vector<4x32xf32>
    %313 = tpu.matmul %312, %303, %cst_339 {dimension_numbers = #tpu.dot_dimension_numbers<[1], [0], [0], [1], [0, 0, 1, 1], [], []>} : vector<4x48xbf16>, vector<48x32xbf16>, vector<4x32xf32> -> vector<4x32xf32>
    %314 = arith.truncf %313 : vector<4x32xf32> to vector<4x32xbf16>
    %c1_340 = arith.constant 1 : index
    %c0_341 = arith.constant 0 : index
    %c0_342 = arith.constant 0 : index
    %315 = vector.load %arg3[%c1_340, %c0_341, %c0_342] : memref<3x32x15xbf16, #tpu.memory_space<vmem>>, vector<1x32x15xbf16>
    %316 = vector.shape_cast %315 : vector<1x32x15xbf16> to vector<32x15xbf16>
    %cst_343 = arith.constant dense<0.000000e+00> : vector<4x15xf32>
    %317 = tpu.matmul %314, %316, %cst_343 {dimension_numbers = #tpu.dot_dimension_numbers<[1], [0], [0], [1], [0, 0, 1, 1], [], []>} : vector<4x32xbf16>, vector<32x15xbf16>, vector<4x15xf32> -> vector<4x15xf32>
    %318 = arith.addf %310, %317 : vector<4x15xf32>
    %c2_344 = arith.constant 2 : index
    %c0_345 = arith.constant 0 : index
    %c0_346 = arith.constant 0 : index
    %319 = vector.load %arg2[%c2_344, %c0_345, %c0_346] : memref<3x4x48xbf16, #tpu.memory_space<vmem>>, vector<1x4x48xbf16>
    %320 = vector.shape_cast %319 : vector<1x4x48xbf16> to vector<4x48xbf16>
    %cst_347 = arith.constant dense<0.000000e+00> : vector<4x32xf32>
    %321 = tpu.matmul %320, %303, %cst_347 {dimension_numbers = #tpu.dot_dimension_numbers<[1], [0], [0], [1], [0, 0, 1, 1], [], []>} : vector<4x48xbf16>, vector<48x32xbf16>, vector<4x32xf32> -> vector<4x32xf32>
    %322 = arith.truncf %321 : vector<4x32xf32> to vector<4x32xbf16>
    %c2_348 = arith.constant 2 : index
    %c0_349 = arith.constant 0 : index
    %c0_350 = arith.constant 0 : index
    %323 = vector.load %arg3[%c2_348, %c0_349, %c0_350] : memref<3x32x15xbf16, #tpu.memory_space<vmem>>, vector<1x32x15xbf16>
    %324 = vector.shape_cast %323 : vector<1x32x15xbf16> to vector<32x15xbf16>
    %cst_351 = arith.constant dense<0.000000e+00> : vector<4x15xf32>
    %325 = tpu.matmul %322, %324, %cst_351 {dimension_numbers = #tpu.dot_dimension_numbers<[1], [0], [0], [1], [0, 0, 1, 1], [], []>} : vector<4x32xbf16>, vector<32x15xbf16>, vector<4x15xf32> -> vector<4x15xf32>
    %326 = arith.addf %318, %325 : vector<4x15xf32>
    %c0_352 = arith.constant 0 : index
    %c0_353 = arith.constant 0 : index
    %327 = vector.load %arg4[%c0_352, %c0_353] : memref<4x1xf32, #tpu.memory_space<vmem>>, vector<4x1xf32>
    %328 = vector.broadcast %327 : vector<4x1xf32> to vector<4x15xf32>
    %329 = arith.addf %326, %328 : vector<4x15xf32>
    %c0_354 = arith.constant 0 : index
    %c8_355 = arith.constant 8 : index
    %c0_356 = arith.constant 0 : index
    %c0_357 = arith.constant 0 : index
    %330 = vector.load %arg5[%c0_354, %c8_355, %c0_356, %c0_357] : memref<1x15x4x15xf32, #tpu.memory_space<vmem>>, vector<1x1x4x15xf32>
    %331 = vector.shape_cast %330 : vector<1x1x4x15xf32> to vector<4x15xf32>
    %332 = vector.shape_cast %329 : vector<4x15xf32> to vector<1x1x4x15xf32>
    tpu.vector_store %arg5[%c0_354, %c8_355, %c0_356, %c0_357], %332 {strides = array<i32>} : memref<1x15x4x15xf32, #tpu.memory_space<vmem>>, vector<1x1x4x15xf32>,
    %c0_358 = arith.constant 0 : index
    %c0_359 = arith.constant 0 : index
    %c18_360 = arith.constant 18 : index
    %c0_361 = arith.constant 0 : index
    %333 = vector.load %arg1[%c0_358, %c0_359, %c18_360, %c0_361] : memref<1x16x32x32xf32, #tpu.memory_space<vmem>>, vector<1x16x1x32xf32>
    %334 = vector.shape_cast %333 : vector<1x16x1x32xf32> to vector<16x32xf32>
    %c0_362 = arith.constant 0 : index
    %c0_363 = arith.constant 0 : index
    %c19 = arith.constant 19 : index
    %c0_364 = arith.constant 0 : index
    %335 = vector.load %arg1[%c0_362, %c0_363, %c19, %c0_364] : memref<1x16x32x32xf32, #tpu.memory_space<vmem>>, vector<1x16x1x32xf32>
    %336 = vector.shape_cast %335 : vector<1x16x1x32xf32> to vector<16x32xf32>
    %c0_365 = arith.constant 0 : index
    %c0_366 = arith.constant 0 : index
    %c20 = arith.constant 20 : index
    %c0_367 = arith.constant 0 : index
    %337 = vector.load %arg1[%c0_365, %c0_366, %c20, %c0_367] : memref<1x16x32x32xf32, #tpu.memory_space<vmem>>, vector<1x16x1x32xf32>
    %338 = vector.shape_cast %337 : vector<1x16x1x32xf32> to vector<16x32xf32>
    %339 = tpu.concatenate %334, %336, %338 in 0 : vector<16x32xf32>, vector<16x32xf32>, vector<16x32xf32> -> vector<48x32xf32>
    %340 = arith.truncf %339 : vector<48x32xf32> to vector<48x32xbf16>
    %c0_368 = arith.constant 0 : index
    %c0_369 = arith.constant 0 : index
    %c0_370 = arith.constant 0 : index
    %341 = vector.load %arg2[%c0_368, %c0_369, %c0_370] : memref<3x4x48xbf16, #tpu.memory_space<vmem>>, vector<1x4x48xbf16>
    %342 = vector.shape_cast %341 : vector<1x4x48xbf16> to vector<4x48xbf16>
    %cst_371 = arith.constant dense<0.000000e+00> : vector<4x32xf32>
    %343 = tpu.matmul %342, %340, %cst_371 {dimension_numbers = #tpu.dot_dimension_numbers<[1], [0], [0], [1], [0, 0, 1, 1], [], []>} : vector<4x48xbf16>, vector<48x32xbf16>, vector<4x32xf32> -> vector<4x32xf32>
    %344 = arith.truncf %343 : vector<4x32xf32> to vector<4x32xbf16>
    %c0_372 = arith.constant 0 : index
    %c0_373 = arith.constant 0 : index
    %c0_374 = arith.constant 0 : index
    %345 = vector.load %arg3[%c0_372, %c0_373, %c0_374] : memref<3x32x15xbf16, #tpu.memory_space<vmem>>, vector<1x32x15xbf16>
    %346 = vector.shape_cast %345 : vector<1x32x15xbf16> to vector<32x15xbf16>
    %cst_375 = arith.constant dense<0.000000e+00> : vector<4x15xf32>
    %347 = tpu.matmul %344, %346, %cst_375 {dimension_numbers = #tpu.dot_dimension_numbers<[1], [0], [0], [1], [0, 0, 1, 1], [], []>} : vector<4x32xbf16>, vector<32x15xbf16>, vector<4x15xf32> -> vector<4x15xf32>
    %c1_376 = arith.constant 1 : index
    %c0_377 = arith.constant 0 : index
    %c0_378 = arith.constant 0 : index
    %348 = vector.load %arg2[%c1_376, %c0_377, %c0_378] : memref<3x4x48xbf16, #tpu.memory_space<vmem>>, vector<1x4x48xbf16>
    %349 = vector.shape_cast %348 : vector<1x4x48xbf16> to vector<4x48xbf16>
    %cst_379 = arith.constant dense<0.000000e+00> : vector<4x32xf32>
    %350 = tpu.matmul %349, %340, %cst_379 {dimension_numbers = #tpu.dot_dimension_numbers<[1], [0], [0], [1], [0, 0, 1, 1], [], []>} : vector<4x48xbf16>, vector<48x32xbf16>, vector<4x32xf32> -> vector<4x32xf32>
    %351 = arith.truncf %350 : vector<4x32xf32> to vector<4x32xbf16>
    %c1_380 = arith.constant 1 : index
    %c0_381 = arith.constant 0 : index
    %c0_382 = arith.constant 0 : index
    %352 = vector.load %arg3[%c1_380, %c0_381, %c0_382] : memref<3x32x15xbf16, #tpu.memory_space<vmem>>, vector<1x32x15xbf16>
    %353 = vector.shape_cast %352 : vector<1x32x15xbf16> to vector<32x15xbf16>
    %cst_383 = arith.constant dense<0.000000e+00> : vector<4x15xf32>
    %354 = tpu.matmul %351, %353, %cst_383 {dimension_numbers = #tpu.dot_dimension_numbers<[1], [0], [0], [1], [0, 0, 1, 1], [], []>} : vector<4x32xbf16>, vector<32x15xbf16>, vector<4x15xf32> -> vector<4x15xf32>
    %355 = arith.addf %347, %354 : vector<4x15xf32>
    %c2_384 = arith.constant 2 : index
    %c0_385 = arith.constant 0 : index
    %c0_386 = arith.constant 0 : index
    %356 = vector.load %arg2[%c2_384, %c0_385, %c0_386] : memref<3x4x48xbf16, #tpu.memory_space<vmem>>, vector<1x4x48xbf16>
    %357 = vector.shape_cast %356 : vector<1x4x48xbf16> to vector<4x48xbf16>
    %cst_387 = arith.constant dense<0.000000e+00> : vector<4x32xf32>
    %358 = tpu.matmul %357, %340, %cst_387 {dimension_numbers = #tpu.dot_dimension_numbers<[1], [0], [0], [1], [0, 0, 1, 1], [], []>} : vector<4x48xbf16>, vector<48x32xbf16>, vector<4x32xf32> -> vector<4x32xf32>
    %359 = arith.truncf %358 : vector<4x32xf32> to vector<4x32xbf16>
    %c2_388 = arith.constant 2 : index
    %c0_389 = arith.constant 0 : index
    %c0_390 = arith.constant 0 : index
    %360 = vector.load %arg3[%c2_388, %c0_389, %c0_390] : memref<3x32x15xbf16, #tpu.memory_space<vmem>>, vector<1x32x15xbf16>
    %361 = vector.shape_cast %360 : vector<1x32x15xbf16> to vector<32x15xbf16>
    %cst_391 = arith.constant dense<0.000000e+00> : vector<4x15xf32>
    %362 = tpu.matmul %359, %361, %cst_391 {dimension_numbers = #tpu.dot_dimension_numbers<[1], [0], [0], [1], [0, 0, 1, 1], [], []>} : vector<4x32xbf16>, vector<32x15xbf16>, vector<4x15xf32> -> vector<4x15xf32>
    %363 = arith.addf %355, %362 : vector<4x15xf32>
    %c0_392 = arith.constant 0 : index
    %c0_393 = arith.constant 0 : index
    %364 = vector.load %arg4[%c0_392, %c0_393] : memref<4x1xf32, #tpu.memory_space<vmem>>, vector<4x1xf32>
    %365 = vector.broadcast %364 : vector<4x1xf32> to vector<4x15xf32>
    %366 = arith.addf %363, %365 : vector<4x15xf32>
    %c0_394 = arith.constant 0 : index
    %c9_395 = arith.constant 9 : index
    %c0_396 = arith.constant 0 : index
    %c0_397 = arith.constant 0 : index
    %367 = vector.load %arg5[%c0_394, %c9_395, %c0_396, %c0_397] : memref<1x15x4x15xf32, #tpu.memory_space<vmem>>, vector<1x1x4x15xf32>
    %368 = vector.shape_cast %367 : vector<1x1x4x15xf32> to vector<4x15xf32>
    %369 = vector.shape_cast %366 : vector<4x15xf32> to vector<1x1x4x15xf32>
    tpu.vector_store %arg5[%c0_394, %c9_395, %c0_396, %c0_397], %369 {strides = array<i32>} : memref<1x15x4x15xf32, #tpu.memory_space<vmem>>, vector<1x1x4x15xf32>,
    %c0_398 = arith.constant 0 : index
    %c0_399 = arith.constant 0 : index
    %c20_400 = arith.constant 20 : index
    %c0_401 = arith.constant 0 : index
    %370 = vector.load %arg1[%c0_398, %c0_399, %c20_400, %c0_401] : memref<1x16x32x32xf32, #tpu.memory_space<vmem>>, vector<1x16x1x32xf32>
    %371 = vector.shape_cast %370 : vector<1x16x1x32xf32> to vector<16x32xf32>
    %c0_402 = arith.constant 0 : index
    %c0_403 = arith.constant 0 : index
    %c21 = arith.constant 21 : index
    %c0_404 = arith.constant 0 : index
    %372 = vector.load %arg1[%c0_402, %c0_403, %c21, %c0_404] : memref<1x16x32x32xf32, #tpu.memory_space<vmem>>, vector<1x16x1x32xf32>
    %373 = vector.shape_cast %372 : vector<1x16x1x32xf32> to vector<16x32xf32>
    %c0_405 = arith.constant 0 : index
    %c0_406 = arith.constant 0 : index
    %c22 = arith.constant 22 : index
    %c0_407 = arith.constant 0 : index
    %374 = vector.load %arg1[%c0_405, %c0_406, %c22, %c0_407] : memref<1x16x32x32xf32, #tpu.memory_space<vmem>>, vector<1x16x1x32xf32>
    %375 = vector.shape_cast %374 : vector<1x16x1x32xf32> to vector<16x32xf32>
    %376 = tpu.concatenate %371, %373, %375 in 0 : vector<16x32xf32>, vector<16x32xf32>, vector<16x32xf32> -> vector<48x32xf32>
    %377 = arith.truncf %376 : vector<48x32xf32> to vector<48x32xbf16>
    %c0_408 = arith.constant 0 : index
    %c0_409 = arith.constant 0 : index
    %c0_410 = arith.constant 0 : index
    %378 = vector.load %arg2[%c0_408, %c0_409, %c0_410] : memref<3x4x48xbf16, #tpu.memory_space<vmem>>, vector<1x4x48xbf16>
    %379 = vector.shape_cast %378 : vector<1x4x48xbf16> to vector<4x48xbf16>
    %cst_411 = arith.constant dense<0.000000e+00> : vector<4x32xf32>
    %380 = tpu.matmul %379, %377, %cst_411 {dimension_numbers = #tpu.dot_dimension_numbers<[1], [0], [0], [1], [0, 0, 1, 1], [], []>} : vector<4x48xbf16>, vector<48x32xbf16>, vector<4x32xf32> -> vector<4x32xf32>
    %381 = arith.truncf %380 : vector<4x32xf32> to vector<4x32xbf16>
    %c0_412 = arith.constant 0 : index
    %c0_413 = arith.constant 0 : index
    %c0_414 = arith.constant 0 : index
    %382 = vector.load %arg3[%c0_412, %c0_413, %c0_414] : memref<3x32x15xbf16, #tpu.memory_space<vmem>>, vector<1x32x15xbf16>
    %383 = vector.shape_cast %382 : vector<1x32x15xbf16> to vector<32x15xbf16>
    %cst_415 = arith.constant dense<0.000000e+00> : vector<4x15xf32>
    %384 = tpu.matmul %381, %383, %cst_415 {dimension_numbers = #tpu.dot_dimension_numbers<[1], [0], [0], [1], [0, 0, 1, 1], [], []>} : vector<4x32xbf16>, vector<32x15xbf16>, vector<4x15xf32> -> vector<4x15xf32>
    %c1_416 = arith.constant 1 : index
    %c0_417 = arith.constant 0 : index
    %c0_418 = arith.constant 0 : index
    %385 = vector.load %arg2[%c1_416, %c0_417, %c0_418] : memref<3x4x48xbf16, #tpu.memory_space<vmem>>, vector<1x4x48xbf16>
    %386 = vector.shape_cast %385 : vector<1x4x48xbf16> to vector<4x48xbf16>
    %cst_419 = arith.constant dense<0.000000e+00> : vector<4x32xf32>
    %387 = tpu.matmul %386, %377, %cst_419 {dimension_numbers = #tpu.dot_dimension_numbers<[1], [0], [0], [1], [0, 0, 1, 1], [], []>} : vector<4x48xbf16>, vector<48x32xbf16>, vector<4x32xf32> -> vector<4x32xf32>
    %388 = arith.truncf %387 : vector<4x32xf32> to vector<4x32xbf16>
    %c1_420 = arith.constant 1 : index
    %c0_421 = arith.constant 0 : index
    %c0_422 = arith.constant 0 : index
    %389 = vector.load %arg3[%c1_420, %c0_421, %c0_422] : memref<3x32x15xbf16, #tpu.memory_space<vmem>>, vector<1x32x15xbf16>
    %390 = vector.shape_cast %389 : vector<1x32x15xbf16> to vector<32x15xbf16>
    %cst_423 = arith.constant dense<0.000000e+00> : vector<4x15xf32>
    %391 = tpu.matmul %388, %390, %cst_423 {dimension_numbers = #tpu.dot_dimension_numbers<[1], [0], [0], [1], [0, 0, 1, 1], [], []>} : vector<4x32xbf16>, vector<32x15xbf16>, vector<4x15xf32> -> vector<4x15xf32>
    %392 = arith.addf %384, %391 : vector<4x15xf32>
    %c2_424 = arith.constant 2 : index
    %c0_425 = arith.constant 0 : index
    %c0_426 = arith.constant 0 : index
    %393 = vector.load %arg2[%c2_424, %c0_425, %c0_426] : memref<3x4x48xbf16, #tpu.memory_space<vmem>>, vector<1x4x48xbf16>
    %394 = vector.shape_cast %393 : vector<1x4x48xbf16> to vector<4x48xbf16>
    %cst_427 = arith.constant dense<0.000000e+00> : vector<4x32xf32>
    %395 = tpu.matmul %394, %377, %cst_427 {dimension_numbers = #tpu.dot_dimension_numbers<[1], [0], [0], [1], [0, 0, 1, 1], [], []>} : vector<4x48xbf16>, vector<48x32xbf16>, vector<4x32xf32> -> vector<4x32xf32>
    %396 = arith.truncf %395 : vector<4x32xf32> to vector<4x32xbf16>
    %c2_428 = arith.constant 2 : index
    %c0_429 = arith.constant 0 : index
    %c0_430 = arith.constant 0 : index
    %397 = vector.load %arg3[%c2_428, %c0_429, %c0_430] : memref<3x32x15xbf16, #tpu.memory_space<vmem>>, vector<1x32x15xbf16>
    %398 = vector.shape_cast %397 : vector<1x32x15xbf16> to vector<32x15xbf16>
    %cst_431 = arith.constant dense<0.000000e+00> : vector<4x15xf32>
    %399 = tpu.matmul %396, %398, %cst_431 {dimension_numbers = #tpu.dot_dimension_numbers<[1], [0], [0], [1], [0, 0, 1, 1], [], []>} : vector<4x32xbf16>, vector<32x15xbf16>, vector<4x15xf32> -> vector<4x15xf32>
    %400 = arith.addf %392, %399 : vector<4x15xf32>
    %c0_432 = arith.constant 0 : index
    %c0_433 = arith.constant 0 : index
    %401 = vector.load %arg4[%c0_432, %c0_433] : memref<4x1xf32, #tpu.memory_space<vmem>>, vector<4x1xf32>
    %402 = vector.broadcast %401 : vector<4x1xf32> to vector<4x15xf32>
    %403 = arith.addf %400, %402 : vector<4x15xf32>
    %c0_434 = arith.constant 0 : index
    %c10_435 = arith.constant 10 : index
    %c0_436 = arith.constant 0 : index
    %c0_437 = arith.constant 0 : index
    %404 = vector.load %arg5[%c0_434, %c10_435, %c0_436, %c0_437] : memref<1x15x4x15xf32, #tpu.memory_space<vmem>>, vector<1x1x4x15xf32>
    %405 = vector.shape_cast %404 : vector<1x1x4x15xf32> to vector<4x15xf32>
    %406 = vector.shape_cast %403 : vector<4x15xf32> to vector<1x1x4x15xf32>
    tpu.vector_store %arg5[%c0_434, %c10_435, %c0_436, %c0_437], %406 {strides = array<i32>} : memref<1x15x4x15xf32, #tpu.memory_space<vmem>>, vector<1x1x4x15xf32>,
    %c0_438 = arith.constant 0 : index
    %c0_439 = arith.constant 0 : index
    %c22_440 = arith.constant 22 : index
    %c0_441 = arith.constant 0 : index
    %407 = vector.load %arg1[%c0_438, %c0_439, %c22_440, %c0_441] : memref<1x16x32x32xf32, #tpu.memory_space<vmem>>, vector<1x16x1x32xf32>
    %408 = vector.shape_cast %407 : vector<1x16x1x32xf32> to vector<16x32xf32>
    %c0_442 = arith.constant 0 : index
    %c0_443 = arith.constant 0 : index
    %c23 = arith.constant 23 : index
    %c0_444 = arith.constant 0 : index
    %409 = vector.load %arg1[%c0_442, %c0_443, %c23, %c0_444] : memref<1x16x32x32xf32, #tpu.memory_space<vmem>>, vector<1x16x1x32xf32>
    %410 = vector.shape_cast %409 : vector<1x16x1x32xf32> to vector<16x32xf32>
    %c0_445 = arith.constant 0 : index
    %c0_446 = arith.constant 0 : index
    %c24 = arith.constant 24 : index
    %c0_447 = arith.constant 0 : index
    %411 = vector.load %arg1[%c0_445, %c0_446, %c24, %c0_447] : memref<1x16x32x32xf32, #tpu.memory_space<vmem>>, vector<1x16x1x32xf32>
    %412 = vector.shape_cast %411 : vector<1x16x1x32xf32> to vector<16x32xf32>
    %413 = tpu.concatenate %408, %410, %412 in 0 : vector<16x32xf32>, vector<16x32xf32>, vector<16x32xf32> -> vector<48x32xf32>
    %414 = arith.truncf %413 : vector<48x32xf32> to vector<48x32xbf16>
    %c0_448 = arith.constant 0 : index
    %c0_449 = arith.constant 0 : index
    %c0_450 = arith.constant 0 : index
    %415 = vector.load %arg2[%c0_448, %c0_449, %c0_450] : memref<3x4x48xbf16, #tpu.memory_space<vmem>>, vector<1x4x48xbf16>
    %416 = vector.shape_cast %415 : vector<1x4x48xbf16> to vector<4x48xbf16>
    %cst_451 = arith.constant dense<0.000000e+00> : vector<4x32xf32>
    %417 = tpu.matmul %416, %414, %cst_451 {dimension_numbers = #tpu.dot_dimension_numbers<[1], [0], [0], [1], [0, 0, 1, 1], [], []>} : vector<4x48xbf16>, vector<48x32xbf16>, vector<4x32xf32> -> vector<4x32xf32>
    %418 = arith.truncf %417 : vector<4x32xf32> to vector<4x32xbf16>
    %c0_452 = arith.constant 0 : index
    %c0_453 = arith.constant 0 : index
    %c0_454 = arith.constant 0 : index
    %419 = vector.load %arg3[%c0_452, %c0_453, %c0_454] : memref<3x32x15xbf16, #tpu.memory_space<vmem>>, vector<1x32x15xbf16>
    %420 = vector.shape_cast %419 : vector<1x32x15xbf16> to vector<32x15xbf16>
    %cst_455 = arith.constant dense<0.000000e+00> : vector<4x15xf32>
    %421 = tpu.matmul %418, %420, %cst_455 {dimension_numbers = #tpu.dot_dimension_numbers<[1], [0], [0], [1], [0, 0, 1, 1], [], []>} : vector<4x32xbf16>, vector<32x15xbf16>, vector<4x15xf32> -> vector<4x15xf32>
    %c1_456 = arith.constant 1 : index
    %c0_457 = arith.constant 0 : index
    %c0_458 = arith.constant 0 : index
    %422 = vector.load %arg2[%c1_456, %c0_457, %c0_458] : memref<3x4x48xbf16, #tpu.memory_space<vmem>>, vector<1x4x48xbf16>
    %423 = vector.shape_cast %422 : vector<1x4x48xbf16> to vector<4x48xbf16>
    %cst_459 = arith.constant dense<0.000000e+00> : vector<4x32xf32>
    %424 = tpu.matmul %423, %414, %cst_459 {dimension_numbers = #tpu.dot_dimension_numbers<[1], [0], [0], [1], [0, 0, 1, 1], [], []>} : vector<4x48xbf16>, vector<48x32xbf16>, vector<4x32xf32> -> vector<4x32xf32>
    %425 = arith.truncf %424 : vector<4x32xf32> to vector<4x32xbf16>
    %c1_460 = arith.constant 1 : index
    %c0_461 = arith.constant 0 : index
    %c0_462 = arith.constant 0 : index
    %426 = vector.load %arg3[%c1_460, %c0_461, %c0_462] : memref<3x32x15xbf16, #tpu.memory_space<vmem>>, vector<1x32x15xbf16>
    %427 = vector.shape_cast %426 : vector<1x32x15xbf16> to vector<32x15xbf16>
    %cst_463 = arith.constant dense<0.000000e+00> : vector<4x15xf32>
    %428 = tpu.matmul %425, %427, %cst_463 {dimension_numbers = #tpu.dot_dimension_numbers<[1], [0], [0], [1], [0, 0, 1, 1], [], []>} : vector<4x32xbf16>, vector<32x15xbf16>, vector<4x15xf32> -> vector<4x15xf32>
    %429 = arith.addf %421, %428 : vector<4x15xf32>
    %c2_464 = arith.constant 2 : index
    %c0_465 = arith.constant 0 : index
    %c0_466 = arith.constant 0 : index
    %430 = vector.load %arg2[%c2_464, %c0_465, %c0_466] : memref<3x4x48xbf16, #tpu.memory_space<vmem>>, vector<1x4x48xbf16>
    %431 = vector.shape_cast %430 : vector<1x4x48xbf16> to vector<4x48xbf16>
    %cst_467 = arith.constant dense<0.000000e+00> : vector<4x32xf32>
    %432 = tpu.matmul %431, %414, %cst_467 {dimension_numbers = #tpu.dot_dimension_numbers<[1], [0], [0], [1], [0, 0, 1, 1], [], []>} : vector<4x48xbf16>, vector<48x32xbf16>, vector<4x32xf32> -> vector<4x32xf32>
    %433 = arith.truncf %432 : vector<4x32xf32> to vector<4x32xbf16>
    %c2_468 = arith.constant 2 : index
    %c0_469 = arith.constant 0 : index
    %c0_470 = arith.constant 0 : index
    %434 = vector.load %arg3[%c2_468, %c0_469, %c0_470] : memref<3x32x15xbf16, #tpu.memory_space<vmem>>, vector<1x32x15xbf16>
    %435 = vector.shape_cast %434 : vector<1x32x15xbf16> to vector<32x15xbf16>
    %cst_471 = arith.constant dense<0.000000e+00> : vector<4x15xf32>
    %436 = tpu.matmul %433, %435, %cst_471 {dimension_numbers = #tpu.dot_dimension_numbers<[1], [0], [0], [1], [0, 0, 1, 1], [], []>} : vector<4x32xbf16>, vector<32x15xbf16>, vector<4x15xf32> -> vector<4x15xf32>
    %437 = arith.addf %429, %436 : vector<4x15xf32>
    %c0_472 = arith.constant 0 : index
    %c0_473 = arith.constant 0 : index
    %438 = vector.load %arg4[%c0_472, %c0_473] : memref<4x1xf32, #tpu.memory_space<vmem>>, vector<4x1xf32>
    %439 = vector.broadcast %438 : vector<4x1xf32> to vector<4x15xf32>
    %440 = arith.addf %437, %439 : vector<4x15xf32>
    %c0_474 = arith.constant 0 : index
    %c11_475 = arith.constant 11 : index
    %c0_476 = arith.constant 0 : index
    %c0_477 = arith.constant 0 : index
    %441 = vector.load %arg5[%c0_474, %c11_475, %c0_476, %c0_477] : memref<1x15x4x15xf32, #tpu.memory_space<vmem>>, vector<1x1x4x15xf32>
    %442 = vector.shape_cast %441 : vector<1x1x4x15xf32> to vector<4x15xf32>
    %443 = vector.shape_cast %440 : vector<4x15xf32> to vector<1x1x4x15xf32>
    tpu.vector_store %arg5[%c0_474, %c11_475, %c0_476, %c0_477], %443 {strides = array<i32>} : memref<1x15x4x15xf32, #tpu.memory_space<vmem>>, vector<1x1x4x15xf32>,
    %c0_478 = arith.constant 0 : index
    %c0_479 = arith.constant 0 : index
    %c24_480 = arith.constant 24 : index
    %c0_481 = arith.constant 0 : index
    %444 = vector.load %arg1[%c0_478, %c0_479, %c24_480, %c0_481] : memref<1x16x32x32xf32, #tpu.memory_space<vmem>>, vector<1x16x1x32xf32>
    %445 = vector.shape_cast %444 : vector<1x16x1x32xf32> to vector<16x32xf32>
    %c0_482 = arith.constant 0 : index
    %c0_483 = arith.constant 0 : index
    %c25 = arith.constant 25 : index
    %c0_484 = arith.constant 0 : index
    %446 = vector.load %arg1[%c0_482, %c0_483, %c25, %c0_484] : memref<1x16x32x32xf32, #tpu.memory_space<vmem>>, vector<1x16x1x32xf32>
    %447 = vector.shape_cast %446 : vector<1x16x1x32xf32> to vector<16x32xf32>
    %c0_485 = arith.constant 0 : index
    %c0_486 = arith.constant 0 : index
    %c26 = arith.constant 26 : index
    %c0_487 = arith.constant 0 : index
    %448 = vector.load %arg1[%c0_485, %c0_486, %c26, %c0_487] : memref<1x16x32x32xf32, #tpu.memory_space<vmem>>, vector<1x16x1x32xf32>
    %449 = vector.shape_cast %448 : vector<1x16x1x32xf32> to vector<16x32xf32>
    %450 = tpu.concatenate %445, %447, %449 in 0 : vector<16x32xf32>, vector<16x32xf32>, vector<16x32xf32> -> vector<48x32xf32>
    %451 = arith.truncf %450 : vector<48x32xf32> to vector<48x32xbf16>
    %c0_488 = arith.constant 0 : index
    %c0_489 = arith.constant 0 : index
    %c0_490 = arith.constant 0 : index
    %452 = vector.load %arg2[%c0_488, %c0_489, %c0_490] : memref<3x4x48xbf16, #tpu.memory_space<vmem>>, vector<1x4x48xbf16>
    %453 = vector.shape_cast %452 : vector<1x4x48xbf16> to vector<4x48xbf16>
    %cst_491 = arith.constant dense<0.000000e+00> : vector<4x32xf32>
    %454 = tpu.matmul %453, %451, %cst_491 {dimension_numbers = #tpu.dot_dimension_numbers<[1], [0], [0], [1], [0, 0, 1, 1], [], []>} : vector<4x48xbf16>, vector<48x32xbf16>, vector<4x32xf32> -> vector<4x32xf32>
    %455 = arith.truncf %454 : vector<4x32xf32> to vector<4x32xbf16>
    %c0_492 = arith.constant 0 : index
    %c0_493 = arith.constant 0 : index
    %c0_494 = arith.constant 0 : index
    %456 = vector.load %arg3[%c0_492, %c0_493, %c0_494] : memref<3x32x15xbf16, #tpu.memory_space<vmem>>, vector<1x32x15xbf16>
    %457 = vector.shape_cast %456 : vector<1x32x15xbf16> to vector<32x15xbf16>
    %cst_495 = arith.constant dense<0.000000e+00> : vector<4x15xf32>
    %458 = tpu.matmul %455, %457, %cst_495 {dimension_numbers = #tpu.dot_dimension_numbers<[1], [0], [0], [1], [0, 0, 1, 1], [], []>} : vector<4x32xbf16>, vector<32x15xbf16>, vector<4x15xf32> -> vector<4x15xf32>
    %c1_496 = arith.constant 1 : index
    %c0_497 = arith.constant 0 : index
    %c0_498 = arith.constant 0 : index
    %459 = vector.load %arg2[%c1_496, %c0_497, %c0_498] : memref<3x4x48xbf16, #tpu.memory_space<vmem>>, vector<1x4x48xbf16>
    %460 = vector.shape_cast %459 : vector<1x4x48xbf16> to vector<4x48xbf16>
    %cst_499 = arith.constant dense<0.000000e+00> : vector<4x32xf32>
    %461 = tpu.matmul %460, %451, %cst_499 {dimension_numbers = #tpu.dot_dimension_numbers<[1], [0], [0], [1], [0, 0, 1, 1], [], []>} : vector<4x48xbf16>, vector<48x32xbf16>, vector<4x32xf32> -> vector<4x32xf32>
    %462 = arith.truncf %461 : vector<4x32xf32> to vector<4x32xbf16>
    %c1_500 = arith.constant 1 : index
    %c0_501 = arith.constant 0 : index
    %c0_502 = arith.constant 0 : index
    %463 = vector.load %arg3[%c1_500, %c0_501, %c0_502] : memref<3x32x15xbf16, #tpu.memory_space<vmem>>, vector<1x32x15xbf16>
    %464 = vector.shape_cast %463 : vector<1x32x15xbf16> to vector<32x15xbf16>
    %cst_503 = arith.constant dense<0.000000e+00> : vector<4x15xf32>
    %465 = tpu.matmul %462, %464, %cst_503 {dimension_numbers = #tpu.dot_dimension_numbers<[1], [0], [0], [1], [0, 0, 1, 1], [], []>} : vector<4x32xbf16>, vector<32x15xbf16>, vector<4x15xf32> -> vector<4x15xf32>
    %466 = arith.addf %458, %465 : vector<4x15xf32>
    %c2_504 = arith.constant 2 : index
    %c0_505 = arith.constant 0 : index
    %c0_506 = arith.constant 0 : index
    %467 = vector.load %arg2[%c2_504, %c0_505, %c0_506] : memref<3x4x48xbf16, #tpu.memory_space<vmem>>, vector<1x4x48xbf16>
    %468 = vector.shape_cast %467 : vector<1x4x48xbf16> to vector<4x48xbf16>
    %cst_507 = arith.constant dense<0.000000e+00> : vector<4x32xf32>
    %469 = tpu.matmul %468, %451, %cst_507 {dimension_numbers = #tpu.dot_dimension_numbers<[1], [0], [0], [1], [0, 0, 1, 1], [], []>} : vector<4x48xbf16>, vector<48x32xbf16>, vector<4x32xf32> -> vector<4x32xf32>
    %470 = arith.truncf %469 : vector<4x32xf32> to vector<4x32xbf16>
    %c2_508 = arith.constant 2 : index
    %c0_509 = arith.constant 0 : index
    %c0_510 = arith.constant 0 : index
    %471 = vector.load %arg3[%c2_508, %c0_509, %c0_510] : memref<3x32x15xbf16, #tpu.memory_space<vmem>>, vector<1x32x15xbf16>
    %472 = vector.shape_cast %471 : vector<1x32x15xbf16> to vector<32x15xbf16>
    %cst_511 = arith.constant dense<0.000000e+00> : vector<4x15xf32>
    %473 = tpu.matmul %470, %472, %cst_511 {dimension_numbers = #tpu.dot_dimension_numbers<[1], [0], [0], [1], [0, 0, 1, 1], [], []>} : vector<4x32xbf16>, vector<32x15xbf16>, vector<4x15xf32> -> vector<4x15xf32>
    %474 = arith.addf %466, %473 : vector<4x15xf32>
    %c0_512 = arith.constant 0 : index
    %c0_513 = arith.constant 0 : index
    %475 = vector.load %arg4[%c0_512, %c0_513] : memref<4x1xf32, #tpu.memory_space<vmem>>, vector<4x1xf32>
    %476 = vector.broadcast %475 : vector<4x1xf32> to vector<4x15xf32>
    %477 = arith.addf %474, %476 : vector<4x15xf32>
    %c0_514 = arith.constant 0 : index
    %c12_515 = arith.constant 12 : index
    %c0_516 = arith.constant 0 : index
    %c0_517 = arith.constant 0 : index
    %478 = vector.load %arg5[%c0_514, %c12_515, %c0_516, %c0_517] : memref<1x15x4x15xf32, #tpu.memory_space<vmem>>, vector<1x1x4x15xf32>
    %479 = vector.shape_cast %478 : vector<1x1x4x15xf32> to vector<4x15xf32>
    %480 = vector.shape_cast %477 : vector<4x15xf32> to vector<1x1x4x15xf32>
    tpu.vector_store %arg5[%c0_514, %c12_515, %c0_516, %c0_517], %480 {strides = array<i32>} : memref<1x15x4x15xf32, #tpu.memory_space<vmem>>, vector<1x1x4x15xf32>,
    %c0_518 = arith.constant 0 : index
    %c0_519 = arith.constant 0 : index
    %c26_520 = arith.constant 26 : index
    %c0_521 = arith.constant 0 : index
    %481 = vector.load %arg1[%c0_518, %c0_519, %c26_520, %c0_521] : memref<1x16x32x32xf32, #tpu.memory_space<vmem>>, vector<1x16x1x32xf32>
    %482 = vector.shape_cast %481 : vector<1x16x1x32xf32> to vector<16x32xf32>
    %c0_522 = arith.constant 0 : index
    %c0_523 = arith.constant 0 : index
    %c27 = arith.constant 27 : index
    %c0_524 = arith.constant 0 : index
    %483 = vector.load %arg1[%c0_522, %c0_523, %c27, %c0_524] : memref<1x16x32x32xf32, #tpu.memory_space<vmem>>, vector<1x16x1x32xf32>
    %484 = vector.shape_cast %483 : vector<1x16x1x32xf32> to vector<16x32xf32>
    %c0_525 = arith.constant 0 : index
    %c0_526 = arith.constant 0 : index
    %c28 = arith.constant 28 : index
    %c0_527 = arith.constant 0 : index
    %485 = vector.load %arg1[%c0_525, %c0_526, %c28, %c0_527] : memref<1x16x32x32xf32, #tpu.memory_space<vmem>>, vector<1x16x1x32xf32>
    %486 = vector.shape_cast %485 : vector<1x16x1x32xf32> to vector<16x32xf32>
    %487 = tpu.concatenate %482, %484, %486 in 0 : vector<16x32xf32>, vector<16x32xf32>, vector<16x32xf32> -> vector<48x32xf32>
    %488 = arith.truncf %487 : vector<48x32xf32> to vector<48x32xbf16>
    %c0_528 = arith.constant 0 : index
    %c0_529 = arith.constant 0 : index
    %c0_530 = arith.constant 0 : index
    %489 = vector.load %arg2[%c0_528, %c0_529, %c0_530] : memref<3x4x48xbf16, #tpu.memory_space<vmem>>, vector<1x4x48xbf16>
    %490 = vector.shape_cast %489 : vector<1x4x48xbf16> to vector<4x48xbf16>
    %cst_531 = arith.constant dense<0.000000e+00> : vector<4x32xf32>
    %491 = tpu.matmul %490, %488, %cst_531 {dimension_numbers = #tpu.dot_dimension_numbers<[1], [0], [0], [1], [0, 0, 1, 1], [], []>} : vector<4x48xbf16>, vector<48x32xbf16>, vector<4x32xf32> -> vector<4x32xf32>
    %492 = arith.truncf %491 : vector<4x32xf32> to vector<4x32xbf16>
    %c0_532 = arith.constant 0 : index
    %c0_533 = arith.constant 0 : index
    %c0_534 = arith.constant 0 : index
    %493 = vector.load %arg3[%c0_532, %c0_533, %c0_534] : memref<3x32x15xbf16, #tpu.memory_space<vmem>>, vector<1x32x15xbf16>
    %494 = vector.shape_cast %493 : vector<1x32x15xbf16> to vector<32x15xbf16>
    %cst_535 = arith.constant dense<0.000000e+00> : vector<4x15xf32>
    %495 = tpu.matmul %492, %494, %cst_535 {dimension_numbers = #tpu.dot_dimension_numbers<[1], [0], [0], [1], [0, 0, 1, 1], [], []>} : vector<4x32xbf16>, vector<32x15xbf16>, vector<4x15xf32> -> vector<4x15xf32>
    %c1_536 = arith.constant 1 : index
    %c0_537 = arith.constant 0 : index
    %c0_538 = arith.constant 0 : index
    %496 = vector.load %arg2[%c1_536, %c0_537, %c0_538] : memref<3x4x48xbf16, #tpu.memory_space<vmem>>, vector<1x4x48xbf16>
    %497 = vector.shape_cast %496 : vector<1x4x48xbf16> to vector<4x48xbf16>
    %cst_539 = arith.constant dense<0.000000e+00> : vector<4x32xf32>
    %498 = tpu.matmul %497, %488, %cst_539 {dimension_numbers = #tpu.dot_dimension_numbers<[1], [0], [0], [1], [0, 0, 1, 1], [], []>} : vector<4x48xbf16>, vector<48x32xbf16>, vector<4x32xf32> -> vector<4x32xf32>
    %499 = arith.truncf %498 : vector<4x32xf32> to vector<4x32xbf16>
    %c1_540 = arith.constant 1 : index
    %c0_541 = arith.constant 0 : index
    %c0_542 = arith.constant 0 : index
    %500 = vector.load %arg3[%c1_540, %c0_541, %c0_542] : memref<3x32x15xbf16, #tpu.memory_space<vmem>>, vector<1x32x15xbf16>
    %501 = vector.shape_cast %500 : vector<1x32x15xbf16> to vector<32x15xbf16>
    %cst_543 = arith.constant dense<0.000000e+00> : vector<4x15xf32>
    %502 = tpu.matmul %499, %501, %cst_543 {dimension_numbers = #tpu.dot_dimension_numbers<[1], [0], [0], [1], [0, 0, 1, 1], [], []>} : vector<4x32xbf16>, vector<32x15xbf16>, vector<4x15xf32> -> vector<4x15xf32>
    %503 = arith.addf %495, %502 : vector<4x15xf32>
    %c2_544 = arith.constant 2 : index
    %c0_545 = arith.constant 0 : index
    %c0_546 = arith.constant 0 : index
    %504 = vector.load %arg2[%c2_544, %c0_545, %c0_546] : memref<3x4x48xbf16, #tpu.memory_space<vmem>>, vector<1x4x48xbf16>
    %505 = vector.shape_cast %504 : vector<1x4x48xbf16> to vector<4x48xbf16>
    %cst_547 = arith.constant dense<0.000000e+00> : vector<4x32xf32>
    %506 = tpu.matmul %505, %488, %cst_547 {dimension_numbers = #tpu.dot_dimension_numbers<[1], [0], [0], [1], [0, 0, 1, 1], [], []>} : vector<4x48xbf16>, vector<48x32xbf16>, vector<4x32xf32> -> vector<4x32xf32>
    %507 = arith.truncf %506 : vector<4x32xf32> to vector<4x32xbf16>
    %c2_548 = arith.constant 2 : index
    %c0_549 = arith.constant 0 : index
    %c0_550 = arith.constant 0 : index
    %508 = vector.load %arg3[%c2_548, %c0_549, %c0_550] : memref<3x32x15xbf16, #tpu.memory_space<vmem>>, vector<1x32x15xbf16>
    %509 = vector.shape_cast %508 : vector<1x32x15xbf16> to vector<32x15xbf16>
    %cst_551 = arith.constant dense<0.000000e+00> : vector<4x15xf32>
    %510 = tpu.matmul %507, %509, %cst_551 {dimension_numbers = #tpu.dot_dimension_numbers<[1], [0], [0], [1], [0, 0, 1, 1], [], []>} : vector<4x32xbf16>, vector<32x15xbf16>, vector<4x15xf32> -> vector<4x15xf32>
    %511 = arith.addf %503, %510 : vector<4x15xf32>
    %c0_552 = arith.constant 0 : index
    %c0_553 = arith.constant 0 : index
    %512 = vector.load %arg4[%c0_552, %c0_553] : memref<4x1xf32, #tpu.memory_space<vmem>>, vector<4x1xf32>
    %513 = vector.broadcast %512 : vector<4x1xf32> to vector<4x15xf32>
    %514 = arith.addf %511, %513 : vector<4x15xf32>
    %c0_554 = arith.constant 0 : index
    %c13_555 = arith.constant 13 : index
    %c0_556 = arith.constant 0 : index
    %c0_557 = arith.constant 0 : index
    %515 = vector.load %arg5[%c0_554, %c13_555, %c0_556, %c0_557] : memref<1x15x4x15xf32, #tpu.memory_space<vmem>>, vector<1x1x4x15xf32>
    %516 = vector.shape_cast %515 : vector<1x1x4x15xf32> to vector<4x15xf32>
    %517 = vector.shape_cast %514 : vector<4x15xf32> to vector<1x1x4x15xf32>
    tpu.vector_store %arg5[%c0_554, %c13_555, %c0_556, %c0_557], %517 {strides = array<i32>} : memref<1x15x4x15xf32, #tpu.memory_space<vmem>>, vector<1x1x4x15xf32>,
    %c0_558 = arith.constant 0 : index
    %c0_559 = arith.constant 0 : index
    %c28_560 = arith.constant 28 : index
    %c0_561 = arith.constant 0 : index
    %518 = vector.load %arg1[%c0_558, %c0_559, %c28_560, %c0_561] : memref<1x16x32x32xf32, #tpu.memory_space<vmem>>, vector<1x16x1x32xf32>
    %519 = vector.shape_cast %518 : vector<1x16x1x32xf32> to vector<16x32xf32>
    %c0_562 = arith.constant 0 : index
    %c0_563 = arith.constant 0 : index
    %c29 = arith.constant 29 : index
    %c0_564 = arith.constant 0 : index
    %520 = vector.load %arg1[%c0_562, %c0_563, %c29, %c0_564] : memref<1x16x32x32xf32, #tpu.memory_space<vmem>>, vector<1x16x1x32xf32>
    %521 = vector.shape_cast %520 : vector<1x16x1x32xf32> to vector<16x32xf32>
    %c0_565 = arith.constant 0 : index
    %c0_566 = arith.constant 0 : index
    %c30 = arith.constant 30 : index
    %c0_567 = arith.constant 0 : index
    %522 = vector.load %arg1[%c0_565, %c0_566, %c30, %c0_567] : memref<1x16x32x32xf32, #tpu.memory_space<vmem>>, vector<1x16x1x32xf32>
    %523 = vector.shape_cast %522 : vector<1x16x1x32xf32> to vector<16x32xf32>
    %524 = tpu.concatenate %519, %521, %523 in 0 : vector<16x32xf32>, vector<16x32xf32>, vector<16x32xf32> -> vector<48x32xf32>
    %525 = arith.truncf %524 : vector<48x32xf32> to vector<48x32xbf16>
    %c0_568 = arith.constant 0 : index
    %c0_569 = arith.constant 0 : index
    %c0_570 = arith.constant 0 : index
    %526 = vector.load %arg2[%c0_568, %c0_569, %c0_570] : memref<3x4x48xbf16, #tpu.memory_space<vmem>>, vector<1x4x48xbf16>
    %527 = vector.shape_cast %526 : vector<1x4x48xbf16> to vector<4x48xbf16>
    %cst_571 = arith.constant dense<0.000000e+00> : vector<4x32xf32>
    %528 = tpu.matmul %527, %525, %cst_571 {dimension_numbers = #tpu.dot_dimension_numbers<[1], [0], [0], [1], [0, 0, 1, 1], [], []>} : vector<4x48xbf16>, vector<48x32xbf16>, vector<4x32xf32> -> vector<4x32xf32>
    %529 = arith.truncf %528 : vector<4x32xf32> to vector<4x32xbf16>
    %c0_572 = arith.constant 0 : index
    %c0_573 = arith.constant 0 : index
    %c0_574 = arith.constant 0 : index
    %530 = vector.load %arg3[%c0_572, %c0_573, %c0_574] : memref<3x32x15xbf16, #tpu.memory_space<vmem>>, vector<1x32x15xbf16>
    %531 = vector.shape_cast %530 : vector<1x32x15xbf16> to vector<32x15xbf16>
    %cst_575 = arith.constant dense<0.000000e+00> : vector<4x15xf32>
    %532 = tpu.matmul %529, %531, %cst_575 {dimension_numbers = #tpu.dot_dimension_numbers<[1], [0], [0], [1], [0, 0, 1, 1], [], []>} : vector<4x32xbf16>, vector<32x15xbf16>, vector<4x15xf32> -> vector<4x15xf32>
    %c1_576 = arith.constant 1 : index
    %c0_577 = arith.constant 0 : index
    %c0_578 = arith.constant 0 : index
    %533 = vector.load %arg2[%c1_576, %c0_577, %c0_578] : memref<3x4x48xbf16, #tpu.memory_space<vmem>>, vector<1x4x48xbf16>
    %534 = vector.shape_cast %533 : vector<1x4x48xbf16> to vector<4x48xbf16>
    %cst_579 = arith.constant dense<0.000000e+00> : vector<4x32xf32>
    %535 = tpu.matmul %534, %525, %cst_579 {dimension_numbers = #tpu.dot_dimension_numbers<[1], [0], [0], [1], [0, 0, 1, 1], [], []>} : vector<4x48xbf16>, vector<48x32xbf16>, vector<4x32xf32> -> vector<4x32xf32>
    %536 = arith.truncf %535 : vector<4x32xf32> to vector<4x32xbf16>
    %c1_580 = arith.constant 1 : index
    %c0_581 = arith.constant 0 : index
    %c0_582 = arith.constant 0 : index
    %537 = vector.load %arg3[%c1_580, %c0_581, %c0_582] : memref<3x32x15xbf16, #tpu.memory_space<vmem>>, vector<1x32x15xbf16>
    %538 = vector.shape_cast %537 : vector<1x32x15xbf16> to vector<32x15xbf16>
    %cst_583 = arith.constant dense<0.000000e+00> : vector<4x15xf32>
    %539 = tpu.matmul %536, %538, %cst_583 {dimension_numbers = #tpu.dot_dimension_numbers<[1], [0], [0], [1], [0, 0, 1, 1], [], []>} : vector<4x32xbf16>, vector<32x15xbf16>, vector<4x15xf32> -> vector<4x15xf32>
    %540 = arith.addf %532, %539 : vector<4x15xf32>
    %c2_584 = arith.constant 2 : index
    %c0_585 = arith.constant 0 : index
    %c0_586 = arith.constant 0 : index
    %541 = vector.load %arg2[%c2_584, %c0_585, %c0_586] : memref<3x4x48xbf16, #tpu.memory_space<vmem>>, vector<1x4x48xbf16>
    %542 = vector.shape_cast %541 : vector<1x4x48xbf16> to vector<4x48xbf16>
    %cst_587 = arith.constant dense<0.000000e+00> : vector<4x32xf32>
    %543 = tpu.matmul %542, %525, %cst_587 {dimension_numbers = #tpu.dot_dimension_numbers<[1], [0], [0], [1], [0, 0, 1, 1], [], []>} : vector<4x48xbf16>, vector<48x32xbf16>, vector<4x32xf32> -> vector<4x32xf32>
    %544 = arith.truncf %543 : vector<4x32xf32> to vector<4x32xbf16>
    %c2_588 = arith.constant 2 : index
    %c0_589 = arith.constant 0 : index
    %c0_590 = arith.constant 0 : index
    %545 = vector.load %arg3[%c2_588, %c0_589, %c0_590] : memref<3x32x15xbf16, #tpu.memory_space<vmem>>, vector<1x32x15xbf16>
    %546 = vector.shape_cast %545 : vector<1x32x15xbf16> to vector<32x15xbf16>
    %cst_591 = arith.constant dense<0.000000e+00> : vector<4x15xf32>
    %547 = tpu.matmul %544, %546, %cst_591 {dimension_numbers = #tpu.dot_dimension_numbers<[1], [0], [0], [1], [0, 0, 1, 1], [], []>} : vector<4x32xbf16>, vector<32x15xbf16>, vector<4x15xf32> -> vector<4x15xf32>
    %548 = arith.addf %540, %547 : vector<4x15xf32>
    %c0_592 = arith.constant 0 : index
    %c0_593 = arith.constant 0 : index
    %549 = vector.load %arg4[%c0_592, %c0_593] : memref<4x1xf32, #tpu.memory_space<vmem>>, vector<4x1xf32>
    %550 = vector.broadcast %549 : vector<4x1xf32> to vector<4x15xf32>
    %551 = arith.addf %548, %550 : vector<4x15xf32>
    %c0_594 = arith.constant 0 : index
    %c14_595 = arith.constant 14 : index
    %c0_596 = arith.constant 0 : index
    %c0_597 = arith.constant 0 : index
    %552 = vector.load %arg5[%c0_594, %c14_595, %c0_596, %c0_597] : memref<1x15x4x15xf32, #tpu.memory_space<vmem>>, vector<1x1x4x15xf32>
    %553 = vector.shape_cast %552 : vector<1x1x4x15xf32> to vector<4x15xf32>
    %554 = vector.shape_cast %551 : vector<4x15xf32> to vector<1x1x4x15xf32>
    tpu.vector_store %arg5[%c0_594, %c14_595, %c0_596, %c0_597], %554 {strides = array<i32>} : memref<1x15x4x15xf32, #tpu.memory_space<vmem>>, vector<1x1x4x15xf32>,
    return
  }
  func.func @transform_0(%arg0: i32) -> (i32, i32, i32, i32) {
    %c0_i32 = arith.constant 0 : i32
    %c0_i32_0 = arith.constant 0 : i32
    %c0_i32_1 = arith.constant 0 : i32
    %c0_i32_2 = arith.constant 0 : i32
    return %arg0, %c0_i32, %c0_i32_0, %c0_i32_1 : i32, i32, i32, i32
  }
  func.func @transform_1(%arg0: i32) -> (i32, i32, i32) {
    %c0_i32 = arith.constant 0 : i32
    %c0_i32_0 = arith.constant 0 : i32
    %c0_i32_1 = arith.constant 0 : i32
    %c0_i32_2 = arith.constant 0 : i32
    return %c0_i32, %c0_i32_0, %c0_i32_1 : i32, i32, i32
  }
  func.func @transform_2(%arg0: i32) -> (i32, i32, i32) {
    %c0_i32 = arith.constant 0 : i32
    %c0_i32_0 = arith.constant 0 : i32
    %c0_i32_1 = arith.constant 0 : i32
    %c0_i32_2 = arith.constant 0 : i32
    return %c0_i32, %c0_i32_0, %c0_i32_1 : i32, i32, i32
  }
  func.func @transform_3(%arg0: i32) -> (i32, i32) {
    %c0_i32 = arith.constant 0 : i32
    %c0_i32_0 = arith.constant 0 : i32
    %c0_i32_1 = arith.constant 0 : i32
    return %c0_i32, %c0_i32_0 : i32, i32
  }
  func.func @transform_4(%arg0: i32) -> (i32, i32, i32, i32) {
    %c0_i32 = arith.constant 0 : i32
    %c0_i32_0 = arith.constant 0 : i32
    %c0_i32_1 = arith.constant 0 : i32
    %c0_i32_2 = arith.constant 0 : i32
    return %arg0, %c0_i32, %c0_i32_0, %c0_i32_1 : i32, i32, i32, i32
  }
}

module attributes {stable_mosaic.version = 11 : i64} {
  func.func @_gate_kernel(%arg0: i32, %arg1: i32, %arg2: memref<1x16x512xf32, #tpu.memory_space<vmem>>, %arg3: memref<1x1x36xf32, #tpu.memory_space<vmem>>, %arg4: memref<36x36xbf16, #tpu.memory_space<vmem>>, %arg5: memref<1x36xf32, #tpu.memory_space<vmem>>, %arg6: memref<36x36xbf16, #tpu.memory_space<vmem>>, %arg7: memref<1x36xf32, #tpu.memory_space<vmem>>, %arg8: memref<4x36x9xbf16, #tpu.memory_space<vmem>>, %arg9: memref<4x1x9xf32, #tpu.memory_space<vmem>>, %arg10: memref<9x512xbf16, #tpu.memory_space<vmem>>, %arg11: memref<4x16xbf16, #tpu.memory_space<vmem>>, %arg12: memref<4x1xf32, #tpu.memory_space<vmem>>, %arg13: memref<16x4xbf16, #tpu.memory_space<vmem>>, %arg14: memref<16x1xf32, #tpu.memory_space<vmem>>, %arg15: memref<1x16x512xf32, #tpu.memory_space<vmem>>) attributes {dimension_semantics = [#tpu.dimension_semantics<parallel>, #tpu.dimension_semantics<parallel>], iteration_bounds = array<i64: 2, 2>, scalar_prefetch = 0 : i64, scratch_operands = 0 : i64, tpu.core_type = #tpu.core_type<tc>, window_params = [{transform_indices = @transform_0, window_bounds = array<i64: 1, 16, 512>}, {transform_indices = @transform_1, window_bounds = array<i64: 1, 1, 36>}, {pipeline_mode = #tpu.pipeline_mode<synchronous>, transform_indices = @transform_2, window_bounds = array<i64: 36, 36>}, {pipeline_mode = #tpu.pipeline_mode<synchronous>, transform_indices = @transform_3, window_bounds = array<i64: 1, 36>}, {pipeline_mode = #tpu.pipeline_mode<synchronous>, transform_indices = @transform_4, window_bounds = array<i64: 36, 36>}, {pipeline_mode = #tpu.pipeline_mode<synchronous>, transform_indices = @transform_5, window_bounds = array<i64: 1, 36>}, {pipeline_mode = #tpu.pipeline_mode<synchronous>, transform_indices = @transform_6, window_bounds = array<i64: 4, 36, 9>}, {pipeline_mode = #tpu.pipeline_mode<synchronous>, transform_indices = @transform_7, window_bounds = array<i64: 4, 1, 9>}, {transform_indices = @transform_8, window_bounds = array<i64: 9, 512>}, {pipeline_mode = #tpu.pipeline_mode<synchronous>, transform_indices = @transform_9, window_bounds = array<i64: 4, 16>}, {pipeline_mode = #tpu.pipeline_mode<synchronous>, transform_indices = @transform_10, window_bounds = array<i64: 4, 1>}, {pipeline_mode = #tpu.pipeline_mode<synchronous>, transform_indices = @transform_11, window_bounds = array<i64: 16, 4>}, {pipeline_mode = #tpu.pipeline_mode<synchronous>, transform_indices = @transform_12, window_bounds = array<i64: 16, 1>}, {transform_indices = @transform_13, window_bounds = array<i64: 1, 16, 512>}]} {
    %c0 = arith.constant 0 : index
    %c0_0 = arith.constant 0 : index
    %c0_1 = arith.constant 0 : index
    %0 = vector.load %arg3[%c0, %c0_0, %c0_1] : memref<1x1x36xf32, #tpu.memory_space<vmem>>, vector<1x1x36xf32>
    %1 = vector.shape_cast %0 : vector<1x1x36xf32> to vector<1x36xf32>
    %2 = arith.truncf %1 : vector<1x36xf32> to vector<1x36xbf16>
    %c0_2 = arith.constant 0 : index
    %c0_3 = arith.constant 0 : index
    %3 = vector.load %arg4[%c0_2, %c0_3] : memref<36x36xbf16, #tpu.memory_space<vmem>>, vector<36x36xbf16>
    %cst = arith.constant dense<0.000000e+00> : vector<1x36xf32>
    %4 = tpu.matmul %2, %3, %cst {dimension_numbers = #tpu.dot_dimension_numbers<[1], [0], [0], [1], [0, 0, 1, 1], [], []>} : vector<1x36xbf16>, vector<36x36xbf16>, vector<1x36xf32> -> vector<1x36xf32>
    %c0_4 = arith.constant 0 : index
    %c0_5 = arith.constant 0 : index
    %5 = vector.load %arg5[%c0_4, %c0_5] : memref<1x36xf32, #tpu.memory_space<vmem>>, vector<1x36xf32>
    %6 = arith.addf %4, %5 : vector<1x36xf32>
    %cst_6 = arith.constant 0.000000e+00 : f32
    %7 = vector.broadcast %cst_6 : f32 to vector<1x36xf32>
    %8 = arith.maximumf %6, %7 : vector<1x36xf32>
    %9 = arith.truncf %8 : vector<1x36xf32> to vector<1x36xbf16>
    %c0_7 = arith.constant 0 : index
    %c0_8 = arith.constant 0 : index
    %10 = vector.load %arg6[%c0_7, %c0_8] : memref<36x36xbf16, #tpu.memory_space<vmem>>, vector<36x36xbf16>
    %cst_9 = arith.constant dense<0.000000e+00> : vector<1x36xf32>
    %11 = tpu.matmul %9, %10, %cst_9 {dimension_numbers = #tpu.dot_dimension_numbers<[1], [0], [0], [1], [0, 0, 1, 1], [], []>} : vector<1x36xbf16>, vector<36x36xbf16>, vector<1x36xf32> -> vector<1x36xf32>
    %c0_10 = arith.constant 0 : index
    %c0_11 = arith.constant 0 : index
    %12 = vector.load %arg7[%c0_10, %c0_11] : memref<1x36xf32, #tpu.memory_space<vmem>>, vector<1x36xf32>
    %13 = arith.addf %11, %12 : vector<1x36xf32>
    %cst_12 = arith.constant 0.000000e+00 : f32
    %14 = vector.broadcast %cst_12 : f32 to vector<1x36xf32>
    %15 = arith.maximumf %13, %14 : vector<1x36xf32>
    %16 = arith.truncf %15 : vector<1x36xf32> to vector<1x36xbf16>
    %c0_13 = arith.constant 0 : index
    %c0_14 = arith.constant 0 : index
    %c0_15 = arith.constant 0 : index
    %17 = vector.load %arg8[%c0_13, %c0_14, %c0_15] : memref<4x36x9xbf16, #tpu.memory_space<vmem>>, vector<1x36x9xbf16>
    %18 = vector.shape_cast %17 : vector<1x36x9xbf16> to vector<36x9xbf16>
    %cst_16 = arith.constant dense<0.000000e+00> : vector<1x9xf32>
    %19 = tpu.matmul %16, %18, %cst_16 {dimension_numbers = #tpu.dot_dimension_numbers<[1], [0], [0], [1], [0, 0, 1, 1], [], []>} : vector<1x36xbf16>, vector<36x9xbf16>, vector<1x9xf32> -> vector<1x9xf32>
    %c0_17 = arith.constant 0 : index
    %c0_18 = arith.constant 0 : index
    %c0_19 = arith.constant 0 : index
    %20 = vector.load %arg9[%c0_17, %c0_18, %c0_19] : memref<4x1x9xf32, #tpu.memory_space<vmem>>, vector<1x1x9xf32>
    %21 = vector.shape_cast %20 : vector<1x1x9xf32> to vector<1x9xf32>
    %22 = arith.addf %19, %21 : vector<1x9xf32>
    %c1 = arith.constant 1 : index
    %c0_20 = arith.constant 0 : index
    %c0_21 = arith.constant 0 : index
    %23 = vector.load %arg8[%c1, %c0_20, %c0_21] : memref<4x36x9xbf16, #tpu.memory_space<vmem>>, vector<1x36x9xbf16>
    %24 = vector.shape_cast %23 : vector<1x36x9xbf16> to vector<36x9xbf16>
    %cst_22 = arith.constant dense<0.000000e+00> : vector<1x9xf32>
    %25 = tpu.matmul %16, %24, %cst_22 {dimension_numbers = #tpu.dot_dimension_numbers<[1], [0], [0], [1], [0, 0, 1, 1], [], []>} : vector<1x36xbf16>, vector<36x9xbf16>, vector<1x9xf32> -> vector<1x9xf32>
    %c1_23 = arith.constant 1 : index
    %c0_24 = arith.constant 0 : index
    %c0_25 = arith.constant 0 : index
    %26 = vector.load %arg9[%c1_23, %c0_24, %c0_25] : memref<4x1x9xf32, #tpu.memory_space<vmem>>, vector<1x1x9xf32>
    %27 = vector.shape_cast %26 : vector<1x1x9xf32> to vector<1x9xf32>
    %28 = arith.addf %25, %27 : vector<1x9xf32>
    %c2 = arith.constant 2 : index
    %c0_26 = arith.constant 0 : index
    %c0_27 = arith.constant 0 : index
    %29 = vector.load %arg8[%c2, %c0_26, %c0_27] : memref<4x36x9xbf16, #tpu.memory_space<vmem>>, vector<1x36x9xbf16>
    %30 = vector.shape_cast %29 : vector<1x36x9xbf16> to vector<36x9xbf16>
    %cst_28 = arith.constant dense<0.000000e+00> : vector<1x9xf32>
    %31 = tpu.matmul %16, %30, %cst_28 {dimension_numbers = #tpu.dot_dimension_numbers<[1], [0], [0], [1], [0, 0, 1, 1], [], []>} : vector<1x36xbf16>, vector<36x9xbf16>, vector<1x9xf32> -> vector<1x9xf32>
    %c2_29 = arith.constant 2 : index
    %c0_30 = arith.constant 0 : index
    %c0_31 = arith.constant 0 : index
    %32 = vector.load %arg9[%c2_29, %c0_30, %c0_31] : memref<4x1x9xf32, #tpu.memory_space<vmem>>, vector<1x1x9xf32>
    %33 = vector.shape_cast %32 : vector<1x1x9xf32> to vector<1x9xf32>
    %34 = arith.addf %31, %33 : vector<1x9xf32>
    %c3 = arith.constant 3 : index
    %c0_32 = arith.constant 0 : index
    %c0_33 = arith.constant 0 : index
    %35 = vector.load %arg8[%c3, %c0_32, %c0_33] : memref<4x36x9xbf16, #tpu.memory_space<vmem>>, vector<1x36x9xbf16>
    %36 = vector.shape_cast %35 : vector<1x36x9xbf16> to vector<36x9xbf16>
    %cst_34 = arith.constant dense<0.000000e+00> : vector<1x9xf32>
    %37 = tpu.matmul %16, %36, %cst_34 {dimension_numbers = #tpu.dot_dimension_numbers<[1], [0], [0], [1], [0, 0, 1, 1], [], []>} : vector<1x36xbf16>, vector<36x9xbf16>, vector<1x9xf32> -> vector<1x9xf32>
    %c3_35 = arith.constant 3 : index
    %c0_36 = arith.constant 0 : index
    %c0_37 = arith.constant 0 : index
    %38 = vector.load %arg9[%c3_35, %c0_36, %c0_37] : memref<4x1x9xf32, #tpu.memory_space<vmem>>, vector<1x1x9xf32>
    %39 = vector.shape_cast %38 : vector<1x1x9xf32> to vector<1x9xf32>
    %40 = arith.addf %37, %39 : vector<1x9xf32>
    %41 = tpu.concatenate %22, %28, %34, %40 in 0 : vector<1x9xf32>, vector<1x9xf32>, vector<1x9xf32>, vector<1x9xf32> -> vector<4x9xf32>
    %42 = arith.truncf %41 : vector<4x9xf32> to vector<4x9xbf16>
    %c0_38 = arith.constant 0 : index
    %c0_39 = arith.constant 0 : index
    %c0_40 = arith.constant 0 : index
    %43 = vector.load %arg2[%c0_38, %c0_39, %c0_40] : memref<1x16x512xf32, #tpu.memory_space<vmem>>, vector<1x16x512xf32>
    %44 = vector.shape_cast %43 : vector<1x16x512xf32> to vector<16x512xf32>
    %45 = arith.truncf %44 : vector<16x512xf32> to vector<16x512xbf16>
    %c0_41 = arith.constant 0 : index
    %c0_42 = arith.constant 0 : index
    %46 = vector.load %arg11[%c0_41, %c0_42] : memref<4x16xbf16, #tpu.memory_space<vmem>>, vector<4x16xbf16>
    %cst_43 = arith.constant dense<0.000000e+00> : vector<4x512xf32>
    %47 = tpu.matmul %46, %45, %cst_43 {dimension_numbers = #tpu.dot_dimension_numbers<[1], [0], [0], [1], [0, 0, 1, 1], [], []>} : vector<4x16xbf16>, vector<16x512xbf16>, vector<4x512xf32> -> vector<4x512xf32>
    %c0_44 = arith.constant 0 : index
    %c0_45 = arith.constant 0 : index
    %48 = vector.load %arg12[%c0_44, %c0_45] : memref<4x1xf32, #tpu.memory_space<vmem>>, vector<4x1xf32>
    %49 = vector.broadcast %48 : vector<4x1xf32> to vector<4x512xf32>
    %50 = arith.addf %47, %49 : vector<4x512xf32>
    %c0_46 = arith.constant 0 : index
    %c0_47 = arith.constant 0 : index
    %51 = vector.load %arg10[%c0_46, %c0_47] : memref<9x512xbf16, #tpu.memory_space<vmem>>, vector<9x512xbf16>
    %cst_48 = arith.constant dense<0.000000e+00> : vector<4x512xf32>
    %52 = tpu.matmul %42, %51, %cst_48 {dimension_numbers = #tpu.dot_dimension_numbers<[1], [0], [0], [1], [0, 0, 1, 1], [], []>} : vector<4x9xbf16>, vector<9x512xbf16>, vector<4x512xf32> -> vector<4x512xf32>
    %53 = arith.addf %52, %50 : vector<4x512xf32>
    %54 = arith.truncf %53 : vector<4x512xf32> to vector<4x512xbf16>
    %c0_49 = arith.constant 0 : index
    %c0_50 = arith.constant 0 : index
    %55 = vector.load %arg13[%c0_49, %c0_50] : memref<16x4xbf16, #tpu.memory_space<vmem>>, vector<16x4xbf16>
    %cst_51 = arith.constant dense<0.000000e+00> : vector<16x512xf32>
    %56 = tpu.matmul %55, %54, %cst_51 {dimension_numbers = #tpu.dot_dimension_numbers<[1], [0], [0], [1], [0, 0, 1, 1], [], []>} : vector<16x4xbf16>, vector<4x512xbf16>, vector<16x512xf32> -> vector<16x512xf32>
    %c0_52 = arith.constant 0 : index
    %c0_53 = arith.constant 0 : index
    %57 = vector.load %arg14[%c0_52, %c0_53] : memref<16x1xf32, #tpu.memory_space<vmem>>, vector<16x1xf32>
    %58 = vector.broadcast %57 : vector<16x1xf32> to vector<16x512xf32>
    %59 = arith.addf %56, %58 : vector<16x512xf32>
    %cst_54 = arith.constant 5.000000e-01 : f32
    %60 = vector.broadcast %cst_54 : f32 to vector<16x512xf32>
    %61 = arith.mulf %60, %59 : vector<16x512xf32>
    %62 = math.tanh %61 : vector<16x512xf32>
    %cst_55 = arith.constant 1.000000e+00 : f32
    %63 = vector.broadcast %cst_55 : f32 to vector<16x512xf32>
    %64 = arith.addf %62, %63 : vector<16x512xf32>
    %cst_56 = arith.constant 5.000000e-01 : f32
    %65 = vector.broadcast %cst_56 : f32 to vector<16x512xf32>
    %66 = arith.mulf %65, %64 : vector<16x512xf32>
    %67 = arith.mulf %44, %66 : vector<16x512xf32>
    %c0_57 = arith.constant 0 : index
    %c0_58 = arith.constant 0 : index
    %c0_59 = arith.constant 0 : index
    %68 = vector.load %arg15[%c0_57, %c0_58, %c0_59] : memref<1x16x512xf32, #tpu.memory_space<vmem>>, vector<1x16x512xf32>
    %69 = vector.shape_cast %68 : vector<1x16x512xf32> to vector<16x512xf32>
    %70 = vector.shape_cast %67 : vector<16x512xf32> to vector<1x16x512xf32>
    tpu.vector_store %arg15[%c0_57, %c0_58, %c0_59], %70 {strides = array<i32>} : memref<1x16x512xf32, #tpu.memory_space<vmem>>, vector<1x16x512xf32>,
    return
  }
  func.func @transform_0(%arg0: i32, %arg1: i32) -> (i32, i32, i32) {
    %c0_i32 = arith.constant 0 : i32
    %c0_i32_0 = arith.constant 0 : i32
    return %arg1, %c0_i32, %arg0 : i32, i32, i32
  }
  func.func @transform_1(%arg0: i32, %arg1: i32) -> (i32, i32, i32) {
    %c0_i32 = arith.constant 0 : i32
    %c0_i32_0 = arith.constant 0 : i32
    %c0_i32_1 = arith.constant 0 : i32
    return %arg1, %c0_i32, %c0_i32_0 : i32, i32, i32
  }
  func.func @transform_2(%arg0: i32, %arg1: i32) -> (i32, i32) {
    %c0_i32 = arith.constant 0 : i32
    %c0_i32_0 = arith.constant 0 : i32
    %c0_i32_1 = arith.constant 0 : i32
    return %c0_i32, %c0_i32_0 : i32, i32
  }
  func.func @transform_3(%arg0: i32, %arg1: i32) -> (i32, i32) {
    %c0_i32 = arith.constant 0 : i32
    %c0_i32_0 = arith.constant 0 : i32
    %c0_i32_1 = arith.constant 0 : i32
    return %c0_i32, %c0_i32_0 : i32, i32
  }
  func.func @transform_4(%arg0: i32, %arg1: i32) -> (i32, i32) {
    %c0_i32 = arith.constant 0 : i32
    %c0_i32_0 = arith.constant 0 : i32
    %c0_i32_1 = arith.constant 0 : i32
    return %c0_i32, %c0_i32_0 : i32, i32
  }
  func.func @transform_5(%arg0: i32, %arg1: i32) -> (i32, i32) {
    %c0_i32 = arith.constant 0 : i32
    %c0_i32_0 = arith.constant 0 : i32
    %c0_i32_1 = arith.constant 0 : i32
    return %c0_i32, %c0_i32_0 : i32, i32
  }
  func.func @transform_6(%arg0: i32, %arg1: i32) -> (i32, i32, i32) {
    %c0_i32 = arith.constant 0 : i32
    %c0_i32_0 = arith.constant 0 : i32
    %c0_i32_1 = arith.constant 0 : i32
    %c0_i32_2 = arith.constant 0 : i32
    return %c0_i32, %c0_i32_0, %c0_i32_1 : i32, i32, i32
  }
  func.func @transform_7(%arg0: i32, %arg1: i32) -> (i32, i32, i32) {
    %c0_i32 = arith.constant 0 : i32
    %c0_i32_0 = arith.constant 0 : i32
    %c0_i32_1 = arith.constant 0 : i32
    %c0_i32_2 = arith.constant 0 : i32
    return %c0_i32, %c0_i32_0, %c0_i32_1 : i32, i32, i32
  }
  func.func @transform_8(%arg0: i32, %arg1: i32) -> (i32, i32) {
    %c0_i32 = arith.constant 0 : i32
    %c0_i32_0 = arith.constant 0 : i32
    return %c0_i32, %arg0 : i32, i32
  }
  func.func @transform_9(%arg0: i32, %arg1: i32) -> (i32, i32) {
    %c0_i32 = arith.constant 0 : i32
    %c0_i32_0 = arith.constant 0 : i32
    %c0_i32_1 = arith.constant 0 : i32
    return %c0_i32, %c0_i32_0 : i32, i32
  }
  func.func @transform_10(%arg0: i32, %arg1: i32) -> (i32, i32) {
    %c0_i32 = arith.constant 0 : i32
    %c0_i32_0 = arith.constant 0 : i32
    %c0_i32_1 = arith.constant 0 : i32
    return %c0_i32, %c0_i32_0 : i32, i32
  }
  func.func @transform_11(%arg0: i32, %arg1: i32) -> (i32, i32) {
    %c0_i32 = arith.constant 0 : i32
    %c0_i32_0 = arith.constant 0 : i32
    %c0_i32_1 = arith.constant 0 : i32
    return %c0_i32, %c0_i32_0 : i32, i32
  }
  func.func @transform_12(%arg0: i32, %arg1: i32) -> (i32, i32) {
    %c0_i32 = arith.constant 0 : i32
    %c0_i32_0 = arith.constant 0 : i32
    %c0_i32_1 = arith.constant 0 : i32
    return %c0_i32, %c0_i32_0 : i32, i32
  }
  func.func @transform_13(%arg0: i32, %arg1: i32) -> (i32, i32, i32) {
    %c0_i32 = arith.constant 0 : i32
    %c0_i32_0 = arith.constant 0 : i32
    return %arg1, %c0_i32, %arg0 : i32, i32, i32
  }
}

</mosaic_0001>

<bundles_post_ra>
// kernel: esa_forward.3
= control target key start
LH: loop header
LB: loop body
LE: loop exit
PB: predicated region body
PF: predicated region fallthrough
CT: control target
= control target key end

     0   :  { %s1949_s0 = inlined_call_operand.vmem [shape: f32[2,16,1024], index: 0, kind: input, shape index: {}]   ;;  %s1950_s1 = inlined_call_operand.vmem [shape: f32[2,1,36], index: 1, kind: input, shape index: {}]   ;;  %s1951_s2 = inlined_call_operand.vmem [shape: bf16[36,36], index: 2, kind: input, shape index: {}]   ;;  %s1952_s3 = inlined_call_operand.vmem [shape: f32[1,36], index: 3, kind: input, shape index: {}]   ;;  %s1953_s4 = inlined_call_operand.vmem [shape: bf16[36,36], index: 4, kind: input, shape index: {}]   ;;  %s1954_s5 = inlined_call_operand.vmem [shape: f32[1,36], index: 5, kind: input, shape index: {}]   ;;  %s1955_s6 = inlined_call_operand.vmem [shape: bf16[4,36,9], index: 6, kind: input, shape index: {}]   ;;  %s1956_s7 = inlined_call_operand.vmem [shape: f32[4,1,9], index: 7, kind: input, shape index: {}]   ;;  %s1957_s8 = inlined_call_operand.vmem [shape: bf16[9,1024], index: 8, kind: input, shape index: {}]   ;;  %s1958_s9 = inlined_call_operand.vmem [shape: bf16[4,16], index: 9, kind: input, shape index: {}]   ;;  %s1959_s10 = inlined_call_operand.vmem [shape: f32[4,1], index: 10, kind: input, shape index: {}]   ;;  %s1960_s11 = inlined_call_operand.vmem [shape: bf16[16,4], index: 11, kind: input, shape index: {}]   ;;  %s1961_s12 = inlined_call_operand.vmem [shape: f32[16,1], index: 12, kind: input, shape index: {}]   ;;  %s1962_s13 = inlined_call_operand.vmem [shape: f32[2,16,1024], index: 13, kind: output, shape index: {}]  }
   0x1   :  { %1968 = sst [smem:[#allocation10_spill]] %s1949_s0 }
   0x2   :  { %1969 = sst [smem:[#allocation11_spill]] %s1956_s7 }
   0x3   :  { %1970 = sst [smem:[#allocation12_spill]] %s1960_s11 }
   0x4   :  { %1971 = sst [smem:[#allocation13_spill]] %s1961_s12 }
   0x5   :  { %1972 = sst [smem:[#allocation14_spill]] %s1962_s13 }
   0x6   :  { %s1644_s25 = smov 0   ;;  %s1646_s26 = smov 0  }
   0x7   :  { %s1648_s27 = smov 0   ;;  %s1650_s28 = smov 0  }
   0x8   :  { %s1652_s29 = smov 0   ;;  %s1654_s30 = smov 0  }
   0x9   :  { %s1656_s14 = smov 0   ;;  %s1658_s15 = smov 0  }
   0xa   :  { %s1660_s16 = smov 0  }
   0xb LB: > { %1973 = sst [smem:[#allocation5_spill]] %s1558_s30  ;;  %s32_s17 = sadd.s32 1, %s1562_s14  ;;  %s1570_s16 = sphi %s1660_s16, %s23_s16   ;;  %s1566_s15 = sphi %s1658_s15, %s2000_s15   ;;  %s1562_s14 = sphi %s1656_s14, %s1999_s14   ;;  %s1558_s30 = sphi %s1654_s30, %s1998_s30   ;;  %s1554_s29 = sphi %s1652_s29, %s1997_s29   ;;  %s1550_s28 = sphi %s1650_s28, %s1996_s28   ;;  %s1546_s27 = sphi %s1648_s27, %s1995_s27   ;;  %s1542_s26 = sphi %s1646_s26, %s1994_s26   ;;  %s1538_s25 = sphi %s1644_s25, %s1993_s25  }
   0xc   : > { %p33_p0 = scmp.ge.s32.totalorder %s32_s17, 2  ;;  %s35_s18 = sadd.s32 1, %s1566_s15 }
   0xd   : > { %s1265_s19 = sadd.s32 4294967295, %s1570_s16   ;;  %p51_p1 = scmp.ne.s32.totalorder %s1550_s28, %s1546_s27 }
   0xe   : > { %s2002_s17 = smov (%p33_p0, %s32_s17), 0  ;;  %s2004_s18 = smov (!%p33_p0, %s35_s18), %s1566_s15 }
   0xf   : > { %1974 = sst [smem:[#allocation6_spill]] %s2002_s17  ;;  %s44_s20 = sadd.s32 1, %s1550_s28 }
  0x10   : > { %p52_p2 = scmp.eq.s32.totalorder %s1570_s16, 0  ;;  %p37_p3 = scmp.ge.s32.totalorder %s2004_s18, 2 }
  0x11   : > { %s39_s21 = ssub.s32 %s1562_s14, %s2002_s17  ;;  %p229_p5 = scmp.ne.s32.totalorder %s1542_s26, %s1538_s25 }
  0x12   : > { %p1704_p4 = por %p52_p2, %p51_p1  ;;  %s2006_s18 = smov (%p37_p3, %s2004_s18), 0 }
  0x13   : > { %1976 = sst [smem:[#allocation7_spill]] %s2006_s18  ;;  %p1712_p6 = por %p229_p5, %p52_p2 }
  0x14   : > { %p345_p7 = scmp.eq.s32.totalorder %s1265_s19, 3  ;;  %s40_s24 = ssub.s32 %s1566_s15, %s2006_s18 }
  0x15   : > { %s222_s13 = sadd.s32 1, %s1542_s26  ;;  %s41_s30 = sor.u32 %s40_s24, %s39_s21 }
  0x16   : > { %p220_p8 = scmp.eq.s32.totalorder %s40_s24, 0  ;;  %p42_p9 = scmp.eq.s32.totalorder %s41_s30, 0 }
  0x17   : > { %p1722_p10 = por %p345_p7, %p51_p1  ;;  %p1268_p11 = scmp.ge.s32.totalorder %s1570_s16, 4 }
  0x18   : > { %s1727_s11 = scalar_select %p220_p8, %s1542_s26, %s222_s13  }
  0x19   : > { %s1978_s17 = scalar_select %p1722_p10, 1, 0 }
  0x1a   : > { %s1730_s7 = scalar_select %p42_p9, %s1550_s28, %s44_s20  }
  0x1b   : > { %1979 = sst [smem:[#allocation8_spill]] %s1978_s17  ;;  %397 = sbr.rel (%p1268_p11) target bundleno = 58 (0x3a), region = 56 }
  0x1c   : > { %1980 = sst [smem:[#allocation9_spill]] %s1730_s7 }
  0x20   : > { %400 = sbr.rel (!%p1704_p4) target bundleno = 50 (0x32), region = 60  ;;  %s402_s19 = sand.u32 (%p1704_p4), 1, %s1550_s28  }
  0x21   : > { %s1270_s30 = sshll.u32 (%p1704_p4), %s1566_s15, 2  ;;  %s1269_s21 = sshll.u32 (%p1704_p4), %s402_s19, 6 }
  0x22   : > { %s1271_s24 = sshll.u32 (%p1704_p4), %s1562_s14, 4  ;;  %s1981_s0 = sld [smem:[#allocation10_spill]] (%p1704_p4) }
  0x23   : > { %s407_s18 = sadd.s32 (%p1704_p4), %s1271_s24, %s1270_s30  ;;  %s404_s7 = scalar_lea.vmem (%p1704_p4), [#allocation2], %s1269_s21 }
  0x24   : > { %s1272_s12 = sshll.u32 (%p1704_p4), %s407_s18, 3 }
  0x28   : > { %s409_s20 = scalar_lea.vmem %s1981_s0, %s1272_s12 }
  0x29   : > { %v422_v0 = vld [vmem:[%s409_s20] sm:$0xff]  ;;  %v424_v1 = vld [vmem:[%s409_s20 + $0x8] sm:$0xff]  ;;  %v426_v2 = vld [vmem:[%s409_s20 + $0x10] sm:$0xff] }
  0x2a   : > { %423 = vst [vmem:[%s404_s7] sm:$0xff] %v422_v0  ;;  %v428_v3 = vld [vmem:[%s409_s20 + $0x18] sm:$0xff]  ;;  %v430_v4 = vld [vmem:[%s409_s20 + $0x40] sm:$0xff]  ;;  %v432_v5 = vld [vmem:[%s409_s20 + $0x48] sm:$0xff] }
  0x2b   : > { %425 = vst [vmem:[%s404_s7 + $0x8] sm:$0xff] %v424_v1  ;;  %v434_v6 = vld [vmem:[%s409_s20 + $0x50] sm:$0xff]  ;;  %v436_v7 = vld [vmem:[%s409_s20 + $0x58] sm:$0xff] }
  0x2c   : > { %427 = vst [vmem:[%s404_s7 + $0x10] sm:$0xff] %v426_v2 }
  0x2d   : > { %429 = vst [vmem:[%s404_s7 + $0x18] sm:$0xff] %v428_v3 }
  0x2e   : > { %431 = vst [vmem:[%s404_s7 + $0x20] sm:$0xff] %v430_v4 }
  0x2f   : > { %433 = vst [vmem:[%s404_s7 + $0x28] sm:$0xff] %v432_v5 }
  0x30   : > { %435 = vst [vmem:[%s404_s7 + $0x30] sm:$0xff] %v434_v6 }
  0x31   : > { %437 = vst [vmem:[%s404_s7 + $0x38] sm:$0xff] %v436_v7 }
  0x32 PF: > { %449 = sbr.rel (!%p1712_p6) target bundleno = 58 (0x3a), region = 87  ;;  %s451_s12 = sand.u32 (%p1712_p6), 1, %s1542_s26  }
  0x33   : > { %s1390_s17 = sshll.u32 (%p1712_p6), %s1566_s15, 4  ;;  %s1273_s18 = sshll.u32 (%p1712_p6), %s451_s12, 5 }
  0x34   : > { %s456_s30 = scalar_lea.vmem (%p1712_p6), %s1957_s8, %s1390_s17  ;;  %s453_s21 = scalar_lea.vmem (%p1712_p6), [#allocation3], %s1273_s18 }
  0x35   : > { %v469_v8 = vld [vmem:[%s456_s30] sm:$0xff] (%p1712_p6)  ;;  %v471_v9 = vld [vmem:[%s456_s30 + $0x8] sm:$0xff] (%p1712_p6) }
  0x36   : > { %v473_v10 = vld [vmem:[%s456_s30 + $0x20] sm:$0xff] (%p1712_p6)  ;;  %470 = vst [vmem:[%s453_s21] sm:$0xff] (%p1712_p6), %v469_v8  ;;  %v475_v11 = vld [vmem:[%s456_s30 + $0x28] sm:$0xff] (%p1712_p6) }
  0x37   : > { %472 = vst [vmem:[%s453_s21 + $0x8] sm:$0xff] %v471_v9 }
  0x38   : > { %474 = vst [vmem:[%s453_s21 + $0x10] sm:$0xff] %v473_v10 }
  0x39   : > { %476 = vst [vmem:[%s453_s21 + $0x18] sm:$0xff] %v475_v11 }
  0x3a PF: > { %p1276_p12 = scmp.ge.s32.totalorder %s1570_s16, 1  ;;  %p481_p13 = scmp.lt.s32.totalorder %s1570_s16, 5 }
  0x3c   : > { %p482_p0 = pnand %p1276_p12, %p481_p13 }
  0x3d   : > { %p545_p1 = scmp.lt.s32.totalorder (!%p482_p0), %s1554_s29, 1  ;;  %s488_s30 = sand.u32 (!%p482_p0), 1, %s1546_s27  }
  0x3e   : > { %485 = sbr.rel (%p482_p0) target bundleno = 796 (0x31c), region = 110  ;;  %s1818_s12 = sshll.u32 (!%p482_p0), %s488_s30, 6 }
  0x3f   : > { %s490_s18 = scalar_lea.vmem (!%p482_p0), [#allocation2], %s1818_s12  ;;  %s495_s7 = sand.u32 (!%p482_p0), 1, %s1538_s25  }
  0x40   : > { %s1278_s23 = sshll.u32 (!%p482_p0), %s495_s7, 5  ;;  %s1982_s27 = sld [smem:[#allocation13_spill]] (!%p482_p0) }
  0x41   : > { %s497_s24 = scalar_lea.vmem (!%p482_p0), [#allocation3], %s1278_s23  ;;  %s1984_s30 = sld [smem:[#allocation11_spill]] (!%p482_p0) }
  0x42   : > { %s1986_s22 = sld [smem:[#allocation12_spill]] (!%p482_p0) }
  0x43   : > { %v557_v12 = vld [vmem:[%s1951_s2 + $0x10] sm:$0x3]  ;;  %vm578_vm0 = vcmask 1041408   ;;  %s546_s20 = scalar_select %p545_p1, %s1554_s29, 1  ;;  %v1392_v19 = vld [vmem:[%s1951_s2 + $0x8] sm:$0xff]  ;;  %v1391_v21 = vld [vmem:[%s1951_s2] sm:$0xff] }
  0x44   : > { %v568_v13 = vunpack.c.l.b16 %v557_v12  ;;  %v601_v14 = vld [vmem:[%s1953_s4 + $0x10] sm:$0x3]  ;;  %vm574_vm1 = vcmask 293888   ;;  %v1394_v24 = vld [vmem:[%s1953_s4 + $0x8] sm:$0xff]  ;;  %v1393_v25 = vld [vmem:[%s1953_s4] sm:$0xff]  ;;  %vm830_vm2 = vcmask 130048  }
  0x45   : > { %v612_v15 = vunpack.c.l.b16 %v601_v14  ;;  %s547_s19 = scalar_lea.vmem %s1950_s1, %s546_s20  ;;  %v643_v26 = vld [vmem:[%s1955_s6 + $0x10] sm:$0x3]  ;;  %v1311_v27 = vld [vmem:[%s1955_s6 + $0x24] sm:$0x3]  ;;  %v1326_v28 = vld [vmem:[%s1955_s6 + $0x38] sm:$0x3] }
  0x46   : > { %v571_v16 = vpack.c.b16 %v568_v13, %v568_v13  ;;  %v551_v22 = vld [vmem:[%s547_s19] sm:$0x1]  ;;  %v654_v29 = vunpack.c.l.b16 %v643_v26  ;;  %v696_v30 = vunpack.c.l.b16 %v1311_v27  ;;  %v735_v31 = vunpack.c.l.b16 %v1326_v28  ;;  %v1341_v32 = vld [vmem:[%s1955_s6 + $0x4c] sm:$0x3]  ;;  %v1400_v50 = vld [vmem:[%s1955_s6 + $0x30] sm:$0xff]  ;;  %s1891_s19 = scalar_lea.vmem [#allocation4], %s1818_s12 }
  0x47   : > { %v615_v17 = vpack.c.b16 %v612_v15, %v612_v15  ;;  %v552_v23 = vpack.c.bf16 %v551_v22, %v551_v22  ;;  %v774_v33 = vunpack.c.l.b16 %v1341_v32  ;;  %v558_v42 = vld [vmem:[%s1952_s3] sm:$0x1]  ;;  %v1396_v48 = vld [vmem:[%s1955_s6 + $0x8] sm:$0xff]  ;;  %v1397_v53 = vld [vmem:[%s1955_s6 + $0x14] sm:$0xff]  ;;  %vm910_vm3 = vcmask 1043456   ;;  %s1985_s21 = smov %s1984_s30  ;;  %s1386_s23 = sshll.u32 (%p1722_p10), %s1554_s29, 4 }
  0x48   : > { %v580_v18 = vsel %vm578_vm0, %v571_v16, 0  ;;  %v657_v34 = vpack.c.b16 %v654_v29, %v654_v29  ;;  %v699_v35 = vpack.c.b16 %v696_v30, %v696_v30  ;;  %v738_v36 = vpack.c.b16 %v735_v31, %v735_v31  ;;  %v1398_v49 = vld [vmem:[%s1955_s6 + $0x1c] sm:$0xff]  ;;  %v1402_v51 = vld [vmem:[%s1955_s6 + $0x44] sm:$0xff]  ;;  %v1836_v62 = vld [vmem:[%s490_s18 + $0x10] sm:$0xff]  ;;  %s1989_s20 = sld [smem:[#allocation14_spill]] (%p1722_p10) }
  0x49   : > { %587 = vmatpush.bf16.msra.mxu0 %v580_v18  ;;  %v622_v20 = vsel %vm578_vm0, %v615_v17, 0  ;;  %v777_v37 = vpack.c.b16 %v774_v33, %v774_v33  ;;  %v1395_v52 = vld [vmem:[%s1955_s6] sm:$0xff]  ;;  %v1399_v54 = vld [vmem:[%s1955_s6 + $0x28] sm:$0xff]  ;;  %v1838_v63 = vld [vmem:[%s490_s18 + $0x30] sm:$0xff]  ;;  %vm911_vm4 = vcmask 1044480   ;;  %v1572_v16 = vmov 65535  }
  0x4a   : > { %629 = vmatpush.bf16.msra.mxu1 %v622_v20  ;;  %v664_v38 = vsel %vm578_vm0, %v657_v34, 0  ;;  %v703_v39 = vsel %vm578_vm0, %v699_v35, 0  ;;  %v742_v40 = vsel %vm578_vm0, %v738_v36, 0  ;;  %v1401_v55 = vld [vmem:[%s1955_s6 + $0x3c] sm:$0xff]  ;;  %v1828_v58 = vld [vmem:[%s490_s18 + $0x8] sm:$0xff]  ;;  %v821_v1 = vpack.c.bf16 %v1838_v63, %v1836_v62 }
  0x4b   : > { %671 = vmatpush.bf16.msra.mxu2 %v664_v38  ;;  %710 = vmatpush.bf16.msra.mxu3 %v703_v39  ;;  %v781_v41 = vsel %vm578_vm0, %v777_v37, 0  ;;  %v1824_v56 = vld [vmem:[%s490_s18] sm:$0xff]  ;;  %v1832_v60 = vld [vmem:[%s490_s18 + $0x28] sm:$0xff]  ;;  %v1840_v0 = vld [vmem:[%s490_s18 + $0x18] sm:$0xff]  ;;  %v912_v17 = vsel %vm910_vm3, 4294967295, %v1572_v16  ;;  %v1573_v30 = vmov 0  }
  0x4c   : > { %v1826_v57 = vld [vmem:[%s490_s18 + $0x20] sm:$0xff]  ;;  %v820_v61 = vpack.c.bf16 %v1832_v60, %v1828_v58  ;;  %v1844_v2 = vld [vmem:[%s490_s18 + $0x38] sm:$0xff]  ;;  %v1405_v12 = vld [vmem:[%s497_s24 + $0xc] sm:$0x10]  ;;  %1482 = vset.pattern.permute.xlu0 %v1573_v30  ;;  %1483 = vset.pattern.permute.xlu1 %v1573_v30  ;;  %s1983_s18 = smov %s1982_s27  ;;  %vm805_vm5 = vcmask 1040384   ;;  %vm808_vm6 = vcmask 1042432  }
  0x4d   : > { %588 = vmatpush.bf16.msra.mxu0 %v1392_v19  ;;  %v819_v59 = vpack.c.bf16 %v1826_v57, %v1824_v56  ;;  %v822_v3 = vpack.c.bf16 %v1844_v2, %v1840_v0  ;;  %v602_v4 = vld [vmem:[%s1954_s5] sm:$0x1]  ;;  %v1403_v14 = vld [vmem:[%s497_s24 + $0x4] sm:$0xf]  ;;  %v1360_v15 = vld [vmem:[%s497_s24 + $0x10] sm:$0x10] }
  0x4e   : > { %630 = vmatpush.bf16.msra.mxu1 %v1394_v24  ;;  %v823_v10 = vld [vmem:[%s1958_s9] sm:$0x3]  ;;  %v1363_v18 = vor.u32 %v1403_v14, %v1360_v15  ;;  %v1366_v19 = vld [vmem:[%s497_s24 + $0x8] sm:$0xf]  ;;  %v1406_v20 = vld [vmem:[%s497_s24 + $0x14] sm:$0x10] }
  0x4f   : > { %672 = vmatpush.bf16.msra.mxu2 %v1396_v48  ;;  %711 = vmatpush.bf16.msra.mxu3 %v1398_v49  ;;  %v1358_v11 = vld [vmem:[%s497_s24] sm:$0xf]  ;;  %v1367_v22 = vor.u32 %v1406_v20, %v1366_v19  ;;  %v1368_v24 = vld [vmem:[%s497_s24 + $0x18] sm:$0x10]  ;;  %vm906_vm7 = vcmask 72704   ;;  %vm1001_vm8 = vcmask 31744  }
  0x50   : > { %v1359_v13 = vor.u32 %v1405_v12, %v1358_v11  ;;  %v824_v31 = vld [vmem:[%s1959_s10] sm:$0xf] }
  0x51   : > { %589 = vmatpush.bf16.msra.mxu0 %v1391_v21  ;;  %v913_v21 = vsel %vm911_vm4, %v912_v17, 0  ;;  %827 = vperm.xlu0 %1482, %v824_v31   ;;  %v984_v32 = vld [vmem:[%s1982_s27] sm:$0xff] }
  0x52   : > { %631 = vmatpush.bf16.msra.mxu1 %v1393_v25  ;;  %v915_v25 = vand.u32 %v1359_v13, %v913_v21  ;;  %v918_v26 = vand.u32 %v1363_v18, %v913_v21  ;;  %v921_v28 = vand.u32 %v1367_v22, %v913_v21  ;;  %v1327_v35 = vld [vmem:[%s1984_s30 + $0x2] sm:$0x1]  ;;  %v1342_v36 = vld [vmem:[%s1985_s21 + $0x3] sm:$0x1]  ;;  %v1312_v37 = vld [vmem:[%s1985_s21 + $0x1] sm:$0x1] }
  0x53   : > { %673 = vmatpush.bf16.msra.mxu2 %v1395_v52  ;;  %712 = vmatpush.bf16.msra.mxu3 %v1397_v53  ;;  %v644_v39 = vld [vmem:[%s1985_s21] sm:$0x1]  ;;  %s1988_s30 = sld [smem:[#allocation5_spill]] (%p1722_p10) }
  0x54   : > { %1288 = vmatmul.msk.bf16.vlgmr.msra.gmra.mxu0 %vm574_vm1, %v552_v23  ;;  %v1404_v23 = vld [vmem:[%s497_s24 + $0xc] sm:$0xf] }
  0x55   : > { %749 = vmatpush.bf16.msrb.mxu0 %v742_v40  ;;  %v1371_v27 = vor.u32 %v1404_v23, %v1368_v24  ;;  %v1407_v24 = vld [vmem:[%s1986_s22] sm:$0xff] }
  0x56   : > { %788 = vmatpush.bf16.msrb.mxu1 %v781_v41 }
  0x57   : > { %841 = vmatpush.bf16.msrb.mxu2 %v819_v59  ;;  %854 = vmatpush.bf16.msrb.mxu3 %v820_v61  ;;  %v924_v29 = vand.u32 %v1371_v27, %v913_v21 }
  0x59   : > { %750 = vmatpush.bf16.msrb.mxu0 %v1400_v50  ;;  %988 = vperm.xlu0 %1482, %v984_v32   ;;  %s1385_s7 = sshll.u32 (%p1722_p10), %s1988_s30, 2 }
  0x5a   : > { %789 = vmatpush.bf16.msrb.mxu1 %v1402_v51  ;;  %s1130_s24 = sadd.s32 (%p1722_p10), %s1386_s23, %s1385_s7 }
  0x5b   : > { %s1387_s25 = sshll.u32 (%p1722_p10), %s1130_s24, 3 }
  0x5c   : > { %s1132_s17 = scalar_lea.vmem (%p1722_p10), %s1989_s20, %s1387_s25 }
  0x5d   : > { %751 = vmatpush.bf16.msrb.mxu0 %v1399_v54 }
  0x5e   : > { %790 = vmatpush.bf16.msrb.mxu1 %v1401_v55 }
  0x61   : > { %867 = vmatpush.bf16.msra.mxu0 %v821_v1 }
  0xd1   : > { %v591_v43 = vpop.f32.mrf.mxu0 }
  0xd2   : > { %v592_v44 = vadd.f32 %v591_v43, %v558_v42 }
  0xd4   : > { %v595_v45 = vmax.f32 %v592_v44, 0.0 }
  0xd6   : > { %v596_v46 = vpack.c.bf16 %v595_v45, %v595_v45 }
  0xd8   : > { %1297 = vmatmul.msk.bf16.vlgmr.msra.gmra.mxu1 %vm574_vm1, %v596_v46 }
  0xd9   : > { %v593_v47 = vpop.f32.mrf.mxu0  ;;  %880 = vmatpush.bf16.msra.mxu1 %v822_v3 }
 0x155   : > { %v633_v5 = vpop.f32.mrf.mxu1 }
 0x156   : > { %v634_v6 = vadd.f32 %v633_v5, %v602_v4 }
 0x158   : > { %v637_v7 = vmax.f32 %v634_v6, 0.0 }
 0x15a   : > { %v638_v8 = vpack.c.bf16 %v637_v7, %v637_v7 }
 0x15c   : > { %1306 = vmatmul.msk.bf16.vlgmr.msra.gmra.mxu2 %vm574_vm1, %v638_v8  ;;  %1321 = vmatmul.msk.bf16.vlgmr.msra.gmra.mxu3 %vm574_vm1, %v638_v8 }
 0x15d   : > { %1336 = vmatmul.msk.bf16.vlgmr.msrb.gmra.mxu0 %vm574_vm1, %v638_v8  ;;  %1351 = vmatmul.msk.bf16.vlgmr.msrb.gmra.mxu1 %vm574_vm1, %v638_v8  ;;  %v635_v9 = vpop.f32.mrf.mxu1  ;;  %v985_v8 = vld [vmem:[%s1983_s18 + $0x8] sm:$0xff] }
 0x15e   : > { %933 = vmatpush.bf16.msra.mxu2 %v915_v25  ;;  %946 = vmatpush.bf16.msra.mxu3 %v918_v26  ;;  %v828_v9 = vpop.permute.xlu0 %827 }
 0x15f   : > { %959 = vmatpush.bf16.msrb.mxu0 %v921_v28  ;;  %972 = vmatpush.bf16.msrb.mxu1 %v924_v29 }
 0x160   : > { %993 = vperm.xlu1 %1483, %v985_v8  }
 0x16c   : > { %1352 = vmatmul.msk.bf16.vlgmr.msrb.gmra.mxu2 %vm830_vm2, %v823_v10  ;;  %1353 = vmatmul.msk.bf16.vlgmr.msrb.gmra.mxu3 %vm830_vm2, %v823_v10 }
 0x16d   : > { %1354 = vmatmul.msk.bf16.vlgmr.msra.gmra.mxu0 %vm830_vm2, %v823_v10  ;;  %1355 = vmatmul.msk.bf16.vlgmr.msra.gmra.mxu1 %vm830_vm2, %v823_v10 }
 0x1da   : > { %v753_v33 = vpop.f32.mrf.mxu0  ;;  %v792_v34 = vpop.f32.mrf.mxu1 }
 0x1db   : > { %v754_v38 = vadd.f32 %v1327_v35, %v753_v33  ;;  %v793_v42 = vadd.f32 %v1342_v36, %v792_v34  ;;  %v989_v35 = vpop.permute.xlu0 %988 }
 0x1dd   : > { %v800_v48 = vrot.slane %v754_v38, 6  ;;  %v803_v49 = vrot.slane %v793_v42, 5  ;;  %v994_v42 = vpop.permute.xlu1 %993 }
 0x1df   : > { %v675_v40 = vpop.f32.mrf.mxu2  ;;  %v714_v41 = vpop.f32.mrf.mxu3 }
 0x1e0   : > { %v715_v43 = vadd.f32 %v1312_v37, %v714_v41  ;;  %v676_v44 = vadd.f32 %v675_v40, %v644_v39 }
 0x1e2   : > { %v797_v45 = vrot.slane %v715_v43, 7  ;;  %v755_v46 = vpop.f32.mrf.mxu0  ;;  %v794_v47 = vpop.f32.mrf.mxu1 }
 0x1e4   : > { %v806_v50 = vsel %vm805_vm5, %v676_v44, %v797_v45 }
 0x1e5   : > { %v807_v51 = vsel %vm578_vm0, %v806_v50, %v800_v48 }
 0x1e6   : > { %v809_v52 = vsel %vm808_vm6, %v807_v51, %v803_v49 }
 0x1e7   : > { %v810_v53 = vpack.c.bf16 %v809_v52, %v809_v52  ;;  %v677_v54 = vpop.f32.mrf.mxu2  ;;  %v716_v55 = vpop.f32.mrf.mxu3 }
 0x1e9   : > { %1372 = vmatmul.msk.bf16.vlgmr.msra.gmra.mxu2 %vm906_vm7, %v810_v53  ;;  %1373 = vmatmul.msk.bf16.vlgmr.msra.gmra.mxu3 %vm906_vm7, %v810_v53 }
 0x1ea   : > { %1374 = vmatmul.msk.bf16.vlgmr.msrb.gmra.mxu0 %vm906_vm7, %v810_v53  ;;  %1375 = vmatmul.msk.bf16.vlgmr.msrb.gmra.mxu1 %vm906_vm7, %v810_v53  ;;  %v869_v59 = vpop.f32.mrf.mxu0  ;;  %v882_v61 = vpop.f32.mrf.mxu1 }
 0x1eb   : > { %v870_v10 = vadd.f32 %v869_v59, %v828_v9  ;;  %v883_v11 = vadd.f32 %v882_v61, %v828_v9 }
 0x1ef   : > { %v843_v1 = vpop.f32.mrf.mxu2  ;;  %v856_v3 = vpop.f32.mrf.mxu3 }
 0x1f0   : > { %v844_v18 = vadd.f32 %v843_v1, %v828_v9  ;;  %v857_v19 = vadd.f32 %v856_v3, %v828_v9 }
 0x1f2   : > { %v871_v4 = vpop.f32.mrf.mxu0  ;;  %v884_v5 = vpop.f32.mrf.mxu1 }
 0x1f7   : > { %v845_v6 = vpop.f32.mrf.mxu2  ;;  %v858_v7 = vpop.f32.mrf.mxu3 }
 0x267   : > { %v961_v12 = vpop.f32.mrf.mxu0  ;;  %v974_v13 = vpop.f32.mrf.mxu1 }
 0x268   : > { %v962_v14 = vadd.f32 %v961_v12, %v870_v10  ;;  %v975_v15 = vadd.f32 %v974_v13, %v883_v11 }
 0x26a   : > { %v980_v16 = vpack.c.bf16 %v962_v14, %v962_v14  ;;  %v981_v17 = vpack.c.bf16 %v975_v15, %v975_v15 }
 0x26c   : > { %v1012_v20 = vsel %vm578_vm0, %v980_v16, 0  ;;  %v1015_v21 = vsel %vm578_vm0, %v981_v17, 0  ;;  %v935_v22 = vpop.f32.mrf.mxu2  ;;  %v948_v23 = vpop.f32.mrf.mxu3 }
 0x26d   : > { %v936_v25 = vadd.f32 %v935_v22, %v844_v18  ;;  %v949_v26 = vadd.f32 %v948_v23, %v857_v19  ;;  %1052 = vmatpush.bf16.msra.mxu0 %v1012_v20  ;;  %1066 = vmatpush.bf16.msra.mxu1 %v1015_v21 }
 0x26f   : > { %v978_v27 = vpack.c.bf16 %v936_v25, %v936_v25  ;;  %v979_v28 = vpack.c.bf16 %v949_v26, %v949_v26  ;;  %v963_v29 = vpop.f32.mrf.mxu0  ;;  %v976_v30 = vpop.f32.mrf.mxu1 }
 0x270   : > { %1382 = vmatmul.msk.bf16.vlgmr.msra.gmra.mxu0 %vm1001_vm8, %v1407_v24  ;;  %1383 = vmatmul.msk.bf16.vlgmr.msra.gmra.mxu1 %vm1001_vm8, %v1407_v24 }
 0x271   : > { %v1006_v31 = vsel %vm578_vm0, %v978_v27, 0  ;;  %v1009_v32 = vsel %vm578_vm0, %v979_v28, 0 }
 0x272   : > { %1024 = vmatpush.bf16.msrb.mxu2 %v1006_v31  ;;  %1038 = vmatpush.bf16.msrb.mxu3 %v1009_v32 }
 0x274   : > { %v937_v33 = vpop.f32.mrf.mxu2  ;;  %v950_v34 = vpop.f32.mrf.mxu3 }
 0x275   : > { %1380 = vmatmul.msk.bf16.vlgmr.msrb.gmra.mxu2 %vm1001_vm8, %v1407_v24  ;;  %1381 = vmatmul.msk.bf16.vlgmr.msrb.gmra.mxu3 %vm1001_vm8, %v1407_v24 }
 0x2ed   : > { %v1054_v36 = vpop.f32.mrf.mxu0  ;;  %v1068_v37 = vpop.f32.mrf.mxu1 }
 0x2ee   : > { %v1055_v38 = vadd.f32 %v1054_v36, %v989_v35  ;;  %v1069_v39 = vadd.f32 %v1068_v37, %v989_v35 }
 0x2f0   : > { %v1075_v40 = vmul.f32 0.5, %v1055_v38  ;;  %v1076_v41 = vmul.f32 0.5, %v1069_v39 }
 0x2f2   : > { %1484 = vtanh.f32 %v1075_v40 }
 0x2f3   : > { %1486 = vtanh.f32 %v1076_v41 }
 0x2f5   : > { %v1056_v43 = vpop.f32.mrf.mxu0  ;;  %v1070_v44 = vpop.f32.mrf.mxu1 }
 0x2f6   : > { %v1057_v45 = vadd.f32 %v1056_v43, %v994_v42  ;;  %v1071_v46 = vadd.f32 %v1070_v44, %v994_v42 }
 0x2f8   : > { %v1485_v47 = vpop.eup %1484  ;;  %v1026_v48 = vpop.f32.mrf.mxu2  ;;  %v1079_v50 = vmul.f32 0.5, %v1057_v45  ;;  %v1080_v51 = vmul.f32 0.5, %v1071_v46 }
 0x2f9   : > { %v1040_v49 = vpop.f32.mrf.mxu3  ;;  %v1487_v52 = vpop.eup %1486  ;;  %v1091_v53 = vadd.f32 1.0, %v1485_v47  ;;  %v1027_v54 = vadd.f32 %v1026_v48, %v989_v35 }
 0x2fa   : > { %v1041_v55 = vadd.f32 %v1040_v49, %v989_v35  ;;  %v1092_v59 = vadd.f32 1.0, %v1487_v52  ;;  %1488 = vtanh.f32 %v1079_v50 }
 0x2fb   : > { %v1099_v61 = vmul.f32 0.5, %v1091_v53  ;;  %v1073_v1 = vmul.f32 0.5, %v1027_v54  ;;  %1490 = vtanh.f32 %v1080_v51 }
 0x2fc   : > { %v1074_v3 = vmul.f32 0.5, %v1041_v55  ;;  %v1100_v4 = vmul.f32 0.5, %v1092_v59 }
 0x2fd   : > { %v1107_v5 = vmul.f32 %v1099_v61, %v1836_v62  ;;  %1492 = vtanh.f32 %v1073_v1 }
 0x2fe   : > { %v1108_v6 = vmul.f32 %v1100_v4, %v1840_v0  ;;  %1494 = vtanh.f32 %v1074_v3 }
 0x2ff   : > { %1115 = vst [vmem:[%s1891_s19 + $0x10] sm:$0xff] %v1107_v5 }
 0x300   : > { %v1489_v7 = vpop.eup %1488  ;;  %1116 = vst [vmem:[%s1891_s19 + $0x18] sm:$0xff] %v1108_v6  ;;  %v1028_v8 = vpop.f32.mrf.mxu2 }
 0x301   : > { %v1042_v9 = vpop.f32.mrf.mxu3  ;;  %v1491_v10 = vpop.eup %1490  ;;  %v1029_v11 = vadd.f32 %v1028_v8, %v994_v42  ;;  %v1095_v13 = vadd.f32 1.0, %v1489_v7 }
 0x302   : > { %v1043_v12 = vadd.f32 %v1042_v9, %v994_v42  ;;  %v1096_v14 = vadd.f32 1.0, %v1491_v10 }
 0x303   : > { %v1493_v62 = vpop.eup %1492  ;;  %v1077_v15 = vmul.f32 0.5, %v1029_v11  ;;  %v1103_v16 = vmul.f32 0.5, %v1095_v13 }
 0x304   : > { %v1078_v0 = vmul.f32 0.5, %v1043_v12  ;;  %v1495_v17 = vpop.eup %1494  ;;  %v1089_v18 = vadd.f32 1.0, %v1493_v62  ;;  %v1104_v19 = vmul.f32 0.5, %v1096_v14 }
 0x305   : > { %v1090_v20 = vadd.f32 1.0, %v1495_v17  ;;  %1496 = vtanh.f32 %v1077_v15  ;;  %v1111_v21 = vmul.f32 %v1103_v16, %v1838_v63 }
 0x306   : > { %v1097_v22 = vmul.f32 0.5, %v1089_v18  ;;  %1498 = vtanh.f32 %v1078_v0  ;;  %v1112_v23 = vmul.f32 %v1104_v19, %v1844_v2 }
 0x307   : > { %v1098_v24 = vmul.f32 0.5, %v1090_v20  ;;  %1119 = vst [vmem:[%s1891_s19 + $0x30] sm:$0xff] %v1111_v21 }
 0x308   : > { %v1105_v25 = vmul.f32 %v1097_v22, %v1824_v56  ;;  %1120 = vst [vmem:[%s1891_s19 + $0x38] sm:$0xff] %v1112_v23 }
 0x309   : > { %v1106_v26 = vmul.f32 %v1098_v24, %v1828_v58  ;;  %v1149_v58 = vld [vmem:[%s1891_s19 + $0x10] sm:$0xff] (%p1722_p10) }
 0x30a   : > { %1113 = vst [vmem:[%s1891_s19] sm:$0xff] %v1105_v25 }
 0x30b   : > { %v1497_v27 = vpop.eup %1496  ;;  %1114 = vst [vmem:[%s1891_s19 + $0x8] sm:$0xff] %v1106_v26 }
 0x30c   : > { %v1499_v28 = vpop.eup %1498  ;;  %v1093_v29 = vadd.f32 1.0, %v1497_v27  ;;  %1150 = vst [vmem:[%s1132_s17 + $0x10] sm:$0xff] (%p1722_p10), %v1149_v58 }
 0x30d   : > { %v1094_v30 = vadd.f32 1.0, %v1499_v28 }
 0x30e   : > { %v1101_v63 = vmul.f32 0.5, %v1093_v29  ;;  %v1157_v35 = vld [vmem:[%s1891_s19 + $0x30] sm:$0xff] (%p1722_p10) }
 0x30f   : > { %v1102_v31 = vmul.f32 0.5, %v1094_v30  ;;  %1127 = sbr.rel (!%p1722_p10) target bundleno = 796 (0x31c), region = 122  ;;  %v1159_v36 = vld [vmem:[%s1891_s19 + $0x38] sm:$0xff] (%p1722_p10)  ;;  %1158 = vst [vmem:[%s1132_s17 + $0x50] sm:$0xff] (%p1722_p10), %v1157_v35 }
 0x310   : > { %v1109_v32 = vmul.f32 %v1101_v63, %v1826_v57  ;;  %1160 = vst [vmem:[%s1132_s17 + $0x58] sm:$0xff] (%p1722_p10), %v1159_v36 }
 0x311   : > { %v1110_v2 = vmul.f32 %v1102_v31, %v1832_v60  ;;  %v1145_v56 = vld [vmem:[%s1891_s19] sm:$0xff] (%p1722_p10)  ;;  %v1151_v60 = vld [vmem:[%s1891_s19 + $0x18] sm:$0xff] (%p1722_p10) }
 0x312   : > { %1117 = vst [vmem:[%s1891_s19 + $0x20] sm:$0xff] %v1109_v32  ;;  %v1147_v57 = vld [vmem:[%s1891_s19 + $0x8] sm:$0xff] (%p1722_p10) }
 0x313   : > { %1118 = vst [vmem:[%s1891_s19 + $0x28] sm:$0xff] %v1110_v2 }
 0x314   : > { %1146 = vst [vmem:[%s1132_s17] sm:$0xff] %v1145_v56 }
 0x315   : > { %1148 = vst [vmem:[%s1132_s17 + $0x8] sm:$0xff] %v1147_v57 }
 0x316   : > { %1152 = vst [vmem:[%s1132_s17 + $0x18] sm:$0xff] %v1151_v60 }
 0x319   : > { %v1153_v33 = vld [vmem:[%s1891_s19 + $0x20] sm:$0xff] }
 0x31a   : > { %v1155_v34 = vld [vmem:[%s1891_s19 + $0x28] sm:$0xff]  ;;  %1154 = vst [vmem:[%s1132_s17 + $0x40] sm:$0xff] %v1153_v33 }
 0x31b   : > { %1156 = vst [vmem:[%s1132_s17 + $0x48] sm:$0xff] %v1155_v34 }
 0x31c PF: > { %s23_s16 = sadd.s32 1, %s1570_s16   ;;  %s1990_s29 = sld [smem:[#allocation9_spill]] }
 0x31d   : > { %p20_p2 = scmp.ge.s32.totalorder %s23_s16, 6   ;;  %s1991_s22 = sld [smem:[#allocation6_spill]] }
 0x31e   : > { %s1992_s12 = sld [smem:[#allocation7_spill]]  ;;  %s1993_s25 = smov %s1542_s26 }
 0x31f   : > { %s1994_s26 = smov %s1727_s11  ;;  %s1995_s27 = smov %s1550_s28 }
 0x320   : > { %s1998_s30 = smov %s1566_s15  ;;  %22 = sbr.rel (!%p20_p2) target bundleno = 11 (0xb), region = 193 }
 0x322   : > { %s1996_s28 = smov %s1990_s29  ;;  %s1997_s29 = smov %s1562_s14 }
 0x323   : > { %s1999_s14 = smov %s1991_s22 }
 0x324   : > { %s2000_s15 = smov %s1992_s12 }

// kernel: esa_forward.2
= control target key start
LH: loop header
LB: loop body
LE: loop exit
PB: predicated region body
PF: predicated region fallthrough
CT: control target
= control target key end

     0   :  { %9 = vsyncpa [#allocation3], 0  ;;  %s8542_s0 = inlined_call_operand.hbm [shape: f32[2,16,32,32], index: 0, kind: input, shape index: {}]   ;;  %s8543_s1 = inlined_call_operand.vmem [shape: bf16[3,4,48], index: 1, kind: input, shape index: {}]   ;;  %s8544_s2 = inlined_call_operand.vmem [shape: bf16[3,32,15], index: 2, kind: input, shape index: {}]   ;;  %s8545_s3 = inlined_call_operand.vmem [shape: f32[4,1], index: 3, kind: input, shape index: {}]   ;;  %s8546_s4 = inlined_call_operand.vmem [shape: f32[2,15,4,15], index: 4, kind: output, shape index: {}]  }
   0x1   :  { %11 = vsyncpa [#allocation3 + $0x1], 0  ;;  %s6392_s15 = smov 0   ;;  %s6394_s16 = smov 0  }
   0x2   :  { %s6396_s17 = smov 0   ;;  %s6398_s18 = smov 0  }
   0x3 LB: > { %s6411_s19 = sadd.s32 4294967295, %s6362_s18   ;;  %s6414_s20 = sadd.s32 1, %s6362_s18   ;;  %s6362_s18 = sphi %s6398_s18, %s8553_s18   ;;  %s6358_s17 = sphi %s6396_s17, %s8552_s17   ;;  %s6354_s16 = sphi %s6394_s16, %s8551_s16   ;;  %s6350_s15 = sphi %s6392_s15, %s8550_s15  }
   0x4   : > { %s21_s21 = ssub.s32 %s6362_s18, %s6414_s20  ;;  %s24_s22 = sadd.s32 1, %s6358_s17 }
   0x5   : > { %p22_p0 = scmp.eq.s32.totalorder %s21_s21, 0  ;;  %p31_p1 = scmp.ne.s32.totalorder %s6358_s17, %s6354_s16 }
   0x6   : > { %p32_p2 = scmp.eq.s32.totalorder %s6362_s18, 0  ;;  %p37_p3 = scmp.ne.s32.totalorder %s6354_s16, %s6350_s15 }
   0x7   : > { %s6424_s23 = scalar_select %p22_p0, %s6358_s17, %s24_s22  }
   0x8   : > { %p6426_p4 = por %p32_p2, %p31_p1  ;;  %p38_p5 = scmp.eq.s32.totalorder %s6411_s19, 0 }
   0x9   : > { %p6259_p6 = scmp.lt.s32.totalorder %s6362_s18, 2  ;;  %s159_s26 = sand.u32 1, %s6358_s17  }
   0xa   : > { %p6432_p7 = por %p38_p5, %p37_p3  ;;  %s5539_s27 = sshll.u32 %s159_s26, 9 }
   0xb   : > { %s6161_s28 = sshll.u32 %s6362_s18, 9  ;;  %s163_s6 = scalar_lea.vmem [#allocation2], %s5539_s27 }
   0xc   : > { %s168_s5 = scalar_lea.hbm %s8542_s0, %s6161_s28  ;;  %s171_s7 = sshll.u32 %s163_s6, 4  ;;  %s172_s7 = int_to_ptr.vmem [resolvable:$true] %s171_s7 }
   0xd   : > { %s169_s8 = sshll.u32 %s168_s5, 4  ;;  %p6443_p8 = pnand %p6259_p6, %p6426_p4  ;;  %s170_s8 = int_to_ptr.hbm [resolvable:$true] %s169_s8 }
   0xe   : > { %p5542_p9 = scmp.ge.s32.totalorder %s6362_s18, 1  ;;  %s160_s10 = scalar_lea.sflag [#allocation3], %s159_s26 }
   0xf   : > { %s6298_s11 = sshra.s32 %s170_s8, 4  ;;  %p6302_p11 = pneg %p6443_p8  ;;  %s6299_s11 = int_to_ptr.hbm [resolvable:$true] %s6298_s11 }
  0x10   : > { %s6300_s12 = scalar_lea.hbm %s6299_s11, 512  ;;  %s6305_s15 = scalar_lea.hbm %s8542_s0, 1024 }
  0x11   : > { %p6301_p10 = scmp.ne.s32.totalorder %s6299_s11, %s6300_s12  ;;  %p6306_p0 = scmp.lt.s32.totalorder %s6299_s11, %s8542_s0 }
  0x12   : > { %p6307_p1 = scmp.lt.s32.totalorder %s6305_s15, %s6300_s12 }
  0x13   : > { %p6303_p12 = pnand %p6302_p11, %p6301_p10 }
  0x14   : > { %p6308_p2 = por %p6307_p1, %p6306_p0 }
  0x15   : > { %p6304_p13 = pneg %p6303_p12 }
  0x17   : > { %p6309_p3 = pnand %p6308_p2, %p6304_p13 }
  0x19   : > { %6312 = shalt.err (!%p6309_p3)
}
  0x1a   : > { %s6364_s24 = smov 128   ;;  %s6365_s26 = smov 8  }
  0x1b   : > { %6258 = dma.hbm_to_vmem [thread:$0]  (!%p6443_p8), %s170_s8, 8192, %s172_s7, %s160_s10, %s6364_s24, %s6364_s24, %s6365_s26  }
  0x1c   : > { %p179_p4 = scmp.lt.s32.totalorder %s6362_s18, 3 }
  0x1e   : > { %p180_p5 = pnand %p5542_p9, %p179_p4 }
  0x1f   : > { %s185_s27 = sand.u32 (!%p180_p5), 1, %s6354_s16  }
  0x20   : > { %183 = sbr.rel (%p180_p5) target bundleno = 2420 (0x974), region = 36  ;;  %s5543_s28 = sshll.u32 (!%p180_p5), %s185_s27, 9 }
  0x21   : > { %s186_s29 = scalar_lea.sflag (!%p180_p5), [#allocation3], %s185_s27  ;;  %s6462_s30 = scalar_lea.vmem (!%p180_p5), [#allocation2], %s5543_s28 }
  0x25   : > { %6345 = dma.done.wait (%p6432_p7), %s186_s29, 8192  }
  0x26   : > { %6347 = vsyncadd (%p6432_p7), %s186_s29, 4294959104  ;;  %vm286_vm0 = vcmask 1041409   ;;  %vm289_vm1 = vcmask 1042434   ;;  %vm292_vm2 = vcmask 1043459   ;;  %vm295_vm3 = vcmask 1044484   ;;  %v6165_v28 = vld [vmem:[%s8544_s2 + $0x18] sm:$0xff] }
  0x27   : > { %vm298_vm4 = vcmask 1045509   ;;  %v254_v0 = vld [vmem:[%s6462_s30 + $0x22] sm:$0x1]  ;;  %vm301_vm5 = vcmask 1046534   ;;  %v238_v27 = vld [vmem:[%s6462_s30 + $0x21] sm:$0x1]  ;;  %486 = vmatpush.bf16.msra.mxu2 %v6165_v28 }
  0x28   : > { %v255_v1 = vld [vmem:[%s6462_s30 + $0x42] sm:$0x1]  ;;  %v384_v15 = vrot.slane %v254_v0, 7  ;;  %v237_v36 = vld [vmem:[%s6462_s30 + $0x1] sm:$0x1]  ;;  %v338_v38 = vrot.slane %v238_v27, 7 }
  0x29   : > { %v256_v2 = vld [vmem:[%s6462_s30 + $0x62] sm:$0x1]  ;;  %v386_v16 = vrot.slane %v255_v1, 6  ;;  %v239_v37 = vld [vmem:[%s6462_s30 + $0x41] sm:$0x1]  ;;  %vm304_vm6 = vcmask 1047559  }
  0x2a   : > { %v253_v3 = vld [vmem:[%s6462_s30 + $0x2] sm:$0x1]  ;;  %v388_v17 = vrot.slane %v256_v2, 5  ;;  %v240_v42 = vld [vmem:[%s6462_s30 + $0x61] sm:$0x1]  ;;  %v339_v54 = vsel %vm286_vm0, %v338_v38, %v237_v36  ;;  %v340_v59 = vrot.slane %v239_v37, 6 }
  0x2b   : > { %v257_v4 = vld [vmem:[%s6462_s30 + $0x82] sm:$0x1]  ;;  %v385_v23 = vsel %vm286_vm0, %v384_v15, %v253_v3  ;;  %v241_v43 = vld [vmem:[%s6462_s30 + $0x81] sm:$0x1]  ;;  %v342_v60 = vrot.slane %v240_v42, 5  ;;  %v6163_v2 = vld [vmem:[%s8544_s2 + $0x8] sm:$0xff] }
  0x2c   : > { %v258_v5 = vld [vmem:[%s6462_s30 + $0xa2] sm:$0x1]  ;;  %v390_v19 = vrot.slane %v257_v4, 4  ;;  %v387_v29 = vsel %vm289_vm1, %v386_v16, %v385_v23  ;;  %v242_v46 = vld [vmem:[%s6462_s30 + $0xa1] sm:$0x1]  ;;  %v344_v63 = vrot.slane %v241_v43, 4  ;;  %514 = vmatpush.bf16.msra.mxu3 %v6163_v2 }
  0x2d   : > { %v259_v6 = vld [vmem:[%s6462_s30 + $0xc2] sm:$0x1]  ;;  %v392_v20 = vrot.slane %v258_v5, 3  ;;  %v389_v33 = vsel %vm292_vm2, %v388_v17, %v387_v29  ;;  %v243_v47 = vld [vmem:[%s6462_s30 + $0xc1] sm:$0x1]  ;;  %v346_v0 = vrot.slane %v242_v46, 3  ;;  %v341_v5 = vsel %vm289_vm1, %v340_v59, %v339_v54 }
  0x2e   : > { %v260_v7 = vld [vmem:[%s6462_s30 + $0xe2] sm:$0x1]  ;;  %v394_v21 = vrot.slane %v259_v6, 2  ;;  %v391_v39 = vsel %vm295_vm3, %v390_v19, %v389_v33  ;;  %v244_v48 = vld [vmem:[%s6462_s30 + $0xe1] sm:$0x1]  ;;  %v348_v1 = vrot.slane %v243_v47, 2 }
  0x2f   : > { %v261_v8 = vld [vmem:[%s6462_s30 + $0x102] sm:$0x1]  ;;  %v396_v30 = vrot.slane %v260_v7, 1  ;;  %v393_v44 = vsel %vm298_vm4, %v392_v20, %v391_v39  ;;  %v245_v51 = vld [vmem:[%s6462_s30 + $0x101] sm:$0x1]  ;;  %v350_v6 = vrot.slane %v244_v48, 1 }
  0x30   : > { %v262_v9 = vld [vmem:[%s6462_s30 + $0x122] sm:$0x1]  ;;  %v395_v49 = vsel %vm301_vm5, %v394_v21, %v393_v44  ;;  %v246_v52 = vld [vmem:[%s6462_s30 + $0x121] sm:$0x1]  ;;  %v221_v17 = vld [vmem:[%s6462_s30] sm:$0x1] }
  0x31   : > { %v263_v10 = vld [vmem:[%s6462_s30 + $0x142] sm:$0x1]  ;;  %v398_v22 = vrot.slane %v262_v9, 7  ;;  %v247_v53 = vld [vmem:[%s6462_s30 + $0x141] sm:$0x1]  ;;  %v397_v55 = vsel %vm304_vm6, %v396_v30, %v395_v49  ;;  %v352_v7 = vrot.slane %v246_v52, 7 }
  0x32   : > { %v264_v11 = vld [vmem:[%s6462_s30 + $0x162] sm:$0x1]  ;;  %v400_v24 = vrot.slane %v263_v10, 6  ;;  %v248_v57 = vld [vmem:[%s6462_s30 + $0x161] sm:$0x1]  ;;  %v343_v10 = vsel %vm292_vm2, %v342_v60, %v341_v5  ;;  %vm418_vm7 = vcmask 392192  }
  0x33   : > { %v265_v12 = vld [vmem:[%s6462_s30 + $0x182] sm:$0x1]  ;;  %v402_v25 = vrot.slane %v264_v11, 5  ;;  %v399_v31 = vsel %vm286_vm0, %v398_v22, %v261_v8  ;;  %v249_v58 = vld [vmem:[%s6462_s30 + $0x181] sm:$0x1]  ;;  %v354_v11 = vrot.slane %v247_v53, 6  ;;  %v353_v15 = vsel %vm286_vm0, %v352_v7, %v245_v51 }
  0x34   : > { %v266_v13 = vld [vmem:[%s6462_s30 + $0x1a2] sm:$0x1]  ;;  %v404_v26 = vrot.slane %v265_v12, 4  ;;  %v401_v34 = vsel %vm289_vm1, %v400_v24, %v399_v31  ;;  %v250_v62 = vld [vmem:[%s6462_s30 + $0x1a1] sm:$0x1]  ;;  %v356_v12 = vrot.slane %v248_v57, 5 }
  0x35   : > { %v267_v14 = vld [vmem:[%s6462_s30 + $0x1c2] sm:$0x1]  ;;  %v406_v32 = vrot.slane %v266_v13, 3  ;;  %v403_v40 = vsel %vm292_vm2, %v402_v25, %v401_v34  ;;  %v251_v4 = vld [vmem:[%s6462_s30 + $0x1c1] sm:$0x1]  ;;  %v358_v13 = vrot.slane %v249_v58, 4  ;;  %v355_v20 = vsel %vm289_vm1, %v354_v11, %v353_v15 }
  0x36   : > { %v268_v18 = vld [vmem:[%s6462_s30 + $0x1e2] sm:$0x1]  ;;  %v408_v35 = vrot.slane %v267_v14, 2  ;;  %v405_v45 = vsel %vm295_vm3, %v404_v26, %v403_v40  ;;  %v222_v8 = vld [vmem:[%s6462_s30 + $0x20] sm:$0x1]  ;;  %v345_v14 = vsel %vm295_vm3, %v344_v63, %v343_v10  ;;  %v360_v16 = vrot.slane %v250_v62, 3 }
  0x37   : > { %v410_v41 = vrot.slane %v268_v18, 1  ;;  %v407_v50 = vsel %vm298_vm4, %v406_v32, %v405_v45  ;;  %v252_v9 = vld [vmem:[%s6462_s30 + $0x1e1] sm:$0x1]  ;;  %v223_v18 = vld [vmem:[%s6462_s30 + $0x40] sm:$0x1]  ;;  %v347_v19 = vsel %vm298_vm4, %v346_v0, %v345_v14  ;;  %v362_v21 = vrot.slane %v251_v4, 2 }
  0x38   : > { %v409_v56 = vsel %vm301_vm5, %v408_v35, %v407_v50  ;;  %v224_v22 = vld [vmem:[%s6462_s30 + $0x60] sm:$0x1]  ;;  %v285_v24 = vrot.slane %v222_v8, 7  ;;  %v349_v25 = vsel %vm301_vm5, %v348_v1, %v347_v19  ;;  %v357_v26 = vsel %vm292_vm2, %v356_v12, %v355_v20  ;;  %v5546_v11 = vld [vmem:[%s8543_s1 + $0x2] sm:$0x3]  ;;  %p215_p6 = scmp.lt.s32.totalorder %s6411_s19, 1 }
  0x39   : > { %v411_v61 = vsel %vm304_vm6, %v410_v41, %v409_v56  ;;  %v225_v23 = vld [vmem:[%s6462_s30 + $0x80] sm:$0x1]  ;;  %v364_v27 = vrot.slane %v252_v9, 1  ;;  %v351_v30 = vsel %vm304_vm6, %v350_v6, %v349_v25  ;;  %v359_v31 = vsel %vm295_vm3, %v358_v13, %v357_v26  ;;  %v616_v12 = vld [vmem:[%s6462_s30 + $0x24] sm:$0x1] }
  0x3a   : > { %v6519_v3 = vpack.c.bf16 %v411_v61, %v397_v55  ;;  %v226_v28 = vld [vmem:[%s6462_s30 + $0xa0] sm:$0x1]  ;;  %v287_v36 = vsel %vm286_vm0, %v285_v24, %v221_v17  ;;  %v361_v37 = vsel %vm298_vm4, %v360_v16, %v359_v31  ;;  %v288_v39 = vrot.slane %v223_v18, 6  ;;  %v624_v13 = vld [vmem:[%s6462_s30 + $0x124] sm:$0x1]  ;;  %s8555_s19 = smov (!%p215_p6, %s6411_s19), 1 }
  0x3b   : > { %v227_v29 = vld [vmem:[%s6462_s30 + $0xc0] sm:$0x1]  ;;  %v291_v40 = vrot.slane %v224_v22, 5  ;;  %v294_v41 = vrot.slane %v225_v23, 4  ;;  %v363_v42 = vsel %vm301_vm5, %v362_v21, %v361_v37  ;;  %v297_v45 = vrot.slane %v226_v28, 3  ;;  %s6252_s28 = smul.u32 60, %s8555_s19 }
  0x3c   : > { %427 = vmatpush.bf16.msra.mxu0 %v6519_v3  ;;  %450 = vmatpush.bf16.msra.mxu1 %v6519_v3  ;;  %v228_v32 = vld [vmem:[%s6462_s30 + $0xe0] sm:$0x1]  ;;  %v300_v46 = vrot.slane %v227_v29, 2  ;;  %v365_v47 = vsel %vm304_vm6, %v364_v27, %v363_v42  ;;  %v290_v49 = vsel %vm289_vm1, %v288_v39, %v287_v36  ;;  %v617_v14 = vld [vmem:[%s6462_s30 + $0x44] sm:$0x1]  ;;  %v739_v16 = vrot.slane %v616_v12, 7 }
  0x3d   : > { %v230_v33 = vld [vmem:[%s6462_s30 + $0x120] sm:$0x1]  ;;  %v6555_v52 = vpack.c.bf16 %v365_v47, %v351_v30  ;;  %v293_v54 = vsel %vm292_vm2, %v291_v40, %v290_v49  ;;  %v303_v58 = vrot.slane %v228_v32, 1  ;;  %v625_v15 = vld [vmem:[%s6462_s30 + $0x144] sm:$0x1]  ;;  %v753_v17 = vrot.slane %v624_v13, 7  ;;  %s6982_s6 = scalar_lea.vmem %s8546_s4, %s6252_s28 }
  0x3e   : > { %v231_v34 = vld [vmem:[%s6462_s30 + $0x140] sm:$0x1]  ;;  %v306_v50 = vrot.slane %v230_v33, 7  ;;  %v296_v57 = vsel %vm295_vm3, %v294_v41, %v293_v54  ;;  %v615_v18 = vld [vmem:[%s6462_s30 + $0x4] sm:$0x1]  ;;  %v741_v27 = vrot.slane %v617_v14, 6 }
  0x3f   : > { %v232_v35 = vld [vmem:[%s6462_s30 + $0x160] sm:$0x1]  ;;  %v308_v51 = vrot.slane %v231_v34, 6  ;;  %v299_v61 = vsel %vm298_vm4, %v297_v45, %v296_v57  ;;  %v618_v19 = vld [vmem:[%s6462_s30 + $0x64] sm:$0x1]  ;;  %v740_v24 = vsel %vm286_vm0, %v739_v16, %v615_v18  ;;  %vm476_vm8 = vcmask 261120  }
  0x40   : > { %v233_v38 = vld [vmem:[%s6462_s30 + $0x180] sm:$0x1]  ;;  %v310_v55 = vrot.slane %v232_v35, 5  ;;  %428 = vmatpush.bf16.msra.mxu0 %v6555_v52  ;;  %451 = vmatpush.bf16.msra.mxu1 %v6555_v52  ;;  %v302_v0 = vsel %vm301_vm5, %v300_v46, %v299_v61  ;;  %v623_v20 = vld [vmem:[%s6462_s30 + $0x104] sm:$0x1]  ;;  %v743_v28 = vrot.slane %v618_v19, 5  ;;  %v742_v36 = vsel %vm289_vm1, %v741_v27, %v740_v24 }
  0x41   : > { %v229_v43 = vld [vmem:[%s6462_s30 + $0x100] sm:$0x1]  ;;  %v312_v56 = vrot.slane %v233_v38, 4  ;;  %v305_v5 = vsel %vm304_vm6, %v303_v58, %v302_v0  ;;  %v619_v21 = vld [vmem:[%s6462_s30 + $0x84] sm:$0x1]  ;;  %v754_v33 = vsel %vm286_vm0, %v753_v17, %v623_v20  ;;  %v755_v38 = vrot.slane %v625_v15, 6 }
  0x42   : > { %v234_v44 = vld [vmem:[%s6462_s30 + $0x1a0] sm:$0x1]  ;;  %v307_v59 = vsel %vm286_vm0, %v306_v50, %v229_v43  ;;  %v626_v22 = vld [vmem:[%s6462_s30 + $0x164] sm:$0x1]  ;;  %v745_v31 = vrot.slane %v619_v21, 4  ;;  %v744_v39 = vsel %vm292_vm2, %v743_v28, %v742_v36  ;;  %vm581_vm9 = vcmask 117760  }
  0x43   : > { %v235_v48 = vld [vmem:[%s6462_s30 + $0x1c0] sm:$0x1]  ;;  %v314_v60 = vrot.slane %v234_v44, 3  ;;  %v309_v62 = vsel %vm289_vm1, %v308_v51, %v307_v59  ;;  %v627_v23 = vld [vmem:[%s6462_s30 + $0x184] sm:$0x1]  ;;  %v757_v41 = vrot.slane %v626_v22, 5  ;;  %v756_v45 = vsel %vm289_vm1, %v755_v38, %v754_v33 }
  0x44   : > { %v236_v53 = vld [vmem:[%s6462_s30 + $0x1e0] sm:$0x1]  ;;  %v316_v63 = vrot.slane %v235_v48, 2  ;;  %v311_v1 = vsel %vm292_vm2, %v310_v55, %v309_v62  ;;  %v620_v25 = vld [vmem:[%s6462_s30 + $0xa4] sm:$0x1]  ;;  %v759_v42 = vrot.slane %v627_v23, 4  ;;  %v746_v44 = vsel %vm295_vm3, %v745_v31, %v744_v39 }
  0x45   : > { %v318_v2 = vrot.slane %v236_v53, 1  ;;  %v313_v4 = vsel %vm295_vm3, %v312_v56, %v311_v1  ;;  %v417_v10 = vld [vmem:[%s8543_s1] sm:$0x3]  ;;  %v628_v26 = vld [vmem:[%s6462_s30 + $0x1a4] sm:$0x1]  ;;  %v747_v32 = vrot.slane %v620_v25, 3  ;;  %v758_v51 = vsel %vm292_vm2, %v757_v41, %v756_v45 }
  0x46   : > { %v315_v6 = vsel %vm298_vm4, %v314_v60, %v313_v4  ;;  %v621_v29 = vld [vmem:[%s6462_s30 + $0xc4] sm:$0x1]  ;;  %v599_v43 = vld [vmem:[%s6462_s30 + $0x3] sm:$0x1]  ;;  %v761_v46 = vrot.slane %v628_v26, 3  ;;  %v6164_v56 = vld [vmem:[%s8544_s2 + $0x10] sm:$0xff]  ;;  %v760_v59 = vsel %vm295_vm3, %v759_v42, %v758_v51 }
  0x47   : > { %v317_v7 = vsel %vm301_vm5, %v316_v63, %v315_v6  ;;  %v629_v30 = vld [vmem:[%s6462_s30 + $0x1c4] sm:$0x1]  ;;  %v749_v37 = vrot.slane %v621_v29, 2  ;;  %v600_v48 = vld [vmem:[%s6462_s30 + $0x23] sm:$0x1]  ;;  %v748_v50 = vsel %vm298_vm4, %v747_v32, %v746_v44  ;;  %487 = vmatpush.bf16.msra.mxu2 %v6164_v56 }
  0x48   : > { %v319_v8 = vsel %vm304_vm6, %v318_v2, %v317_v7  ;;  %v622_v34 = vld [vmem:[%s6462_s30 + $0xe4] sm:$0x1]  ;;  %v763_v47 = vrot.slane %v629_v30, 2  ;;  %v601_v49 = vld [vmem:[%s6462_s30 + $0x43] sm:$0x1]  ;;  %v693_v55 = vrot.slane %v600_v48, 7  ;;  %v762_v0 = vsel %vm298_vm4, %v761_v46, %v760_v59 }
  0x49   : > { %v6572_v9 = vpack.c.bf16 %v319_v8, %v305_v5  ;;  %v630_v35 = vld [vmem:[%s6462_s30 + $0x1e4] sm:$0x1]  ;;  %v751_v40 = vrot.slane %v622_v34, 1  ;;  %v602_v54 = vld [vmem:[%s6462_s30 + $0x63] sm:$0x1]  ;;  %v750_v58 = vsel %vm301_vm5, %v749_v37, %v748_v50  ;;  %v695_v61 = vrot.slane %v601_v49, 6 }
  0x4a   : > { %v765_v53 = vrot.slane %v630_v35, 1  ;;  %v6162_v57 = vld [vmem:[%s8544_s2] sm:$0xff]  ;;  %v697_v62 = vrot.slane %v602_v54, 5  ;;  %v694_v4 = vsel %vm286_vm0, %v693_v55, %v599_v43  ;;  %v764_v5 = vsel %vm301_vm5, %v763_v47, %v762_v0 }
  0x4b   : > { %429 = vmatpush.bf16.msra.mxu0 %v6572_v9  ;;  %452 = vmatpush.bf16.msra.mxu1 %v6572_v9  ;;  %v603_v60 = vld [vmem:[%s6462_s30 + $0x83] sm:$0x1]  ;;  %v752_v63 = vsel %vm304_vm6, %v751_v40, %v750_v58  ;;  %v584_v34 = vld [vmem:[%s6462_s30 + $0x22] sm:$0x1] }
  0x4c   : > { %v604_v1 = vld [vmem:[%s6462_s30 + $0xa3] sm:$0x1]  ;;  %515 = vmatpush.bf16.msra.mxu3 %v6162_v57  ;;  %531 = vmatpush.bf16.msrb.mxu2 %v6519_v3  ;;  %v699_v15 = vrot.slane %v603_v60, 4  ;;  %v583_v37 = vld [vmem:[%s6462_s30 + $0x2] sm:$0x1]  ;;  %v647_v51 = vrot.slane %v584_v34, 7 }
  0x4d   : > { %v605_v2 = vld [vmem:[%s6462_s30 + $0xc3] sm:$0x1]  ;;  %v701_v19 = vrot.slane %v604_v1, 3  ;;  %v585_v38 = vld [vmem:[%s6462_s30 + $0x42] sm:$0x1] }
  0x4e   : > { %5545 = vmatmul.msk.bf16.vlgmr.msra.gmra.mxu0 %vm418_vm7, %v417_v10  ;;  %5547 = vmatmul.msk.bf16.vlgmr.msra.gmra.mxu1 %vm418_vm7, %v5546_v11  ;;  %v606_v6 = vld [vmem:[%s6462_s30 + $0xe3] sm:$0x1]  ;;  %v696_v10 = vsel %vm289_vm1, %v695_v61, %v694_v4  ;;  %v766_v11 = vsel %vm304_vm6, %v765_v53, %v764_v5  ;;  %v703_v20 = vrot.slane %v605_v2, 2  ;;  %v586_v39 = vld [vmem:[%s6462_s30 + $0x62] sm:$0x1]  ;;  %v649_v53 = vrot.slane %v585_v38, 6 }
  0x4f   : > { %v608_v7 = vld [vmem:[%s6462_s30 + $0x123] sm:$0x1]  ;;  %v698_v14 = vsel %vm292_vm2, %v697_v62, %v696_v10  ;;  %v6636_v16 = vpack.c.bf16 %v766_v11, %v752_v63  ;;  %v705_v28 = vrot.slane %v606_v6, 1  ;;  %v588_v41 = vld [vmem:[%s6462_s30 + $0xa2] sm:$0x1]  ;;  %v651_v54 = vrot.slane %v586_v39, 5 }
  0x50   : > { %v609_v8 = vld [vmem:[%s6462_s30 + $0x143] sm:$0x1]  ;;  %v700_v22 = vsel %vm295_vm3, %v699_v15, %v698_v14  ;;  %v707_v23 = vrot.slane %v608_v7, 7  ;;  %532 = vmatpush.bf16.msrb.mxu2 %v6555_v52  ;;  %v587_v52 = vld [vmem:[%s6462_s30 + $0x82] sm:$0x1]  ;;  %v655_v59 = vrot.slane %v588_v41, 3  ;;  %v648_v62 = vsel %vm286_vm0, %v647_v51, %v583_v37 }
  0x51   : > { %v610_v12 = vld [vmem:[%s6462_s30 + $0x163] sm:$0x1]  ;;  %v709_v24 = vrot.slane %v609_v8, 6  ;;  %803 = vmatpush.bf16.msrb.mxu1 %v6636_v16  ;;  %v702_v25 = vsel %vm298_vm4, %v701_v19, %v700_v22  ;;  %781 = vmatpush.bf16.msrb.mxu0 %v6636_v16  ;;  %v589_v42 = vld [vmem:[%s6462_s30 + $0xc2] sm:$0x1]  ;;  %v653_v58 = vrot.slane %v587_v52, 4  ;;  %v650_v1 = vsel %vm289_vm1, %v649_v53, %v648_v62 }
  0x52   : > { %v611_v13 = vld [vmem:[%s6462_s30 + $0x183] sm:$0x1]  ;;  %v711_v26 = vrot.slane %v610_v12, 5  ;;  %v704_v31 = vsel %vm301_vm5, %v703_v20, %v702_v25  ;;  %v590_v45 = vld [vmem:[%s6462_s30 + $0xe2] sm:$0x1]  ;;  %v657_v63 = vrot.slane %v589_v42, 2  ;;  %v652_v6 = vsel %vm292_vm2, %v651_v54, %v650_v1 }
  0x53   : > { %v607_v17 = vld [vmem:[%s6462_s30 + $0x103] sm:$0x1]  ;;  %v713_v27 = vrot.slane %v611_v13, 4  ;;  %v706_v43 = vsel %vm304_vm6, %v705_v28, %v704_v31  ;;  %v592_v46 = vld [vmem:[%s6462_s30 + $0x122] sm:$0x1]  ;;  %v659_v7 = vrot.slane %v590_v45, 1  ;;  %v654_v11 = vsel %vm295_vm3, %v653_v58, %v652_v6 }
  0x54   : > { %v612_v18 = vld [vmem:[%s6462_s30 + $0x1a3] sm:$0x1]  ;;  %v708_v29 = vsel %vm286_vm0, %v707_v23, %v607_v17  ;;  %v593_v47 = vld [vmem:[%s6462_s30 + $0x142] sm:$0x1]  ;;  %533 = vmatpush.bf16.msrb.mxu2 %v6572_v9  ;;  %v661_v0 = vrot.slane %v592_v46, 7  ;;  %v656_v14 = vsel %vm298_vm4, %v655_v59, %v654_v11  ;;  %v6171_v28 = vld [vmem:[%s8544_s2 + $0x18] sm:$0xff] }
  0x55   : > { %v613_v21 = vld [vmem:[%s6462_s30 + $0x1c3] sm:$0x1]  ;;  %v715_v30 = vrot.slane %v612_v18, 3  ;;  %v710_v32 = vsel %vm289_vm1, %v709_v24, %v708_v29  ;;  %v594_v48 = vld [vmem:[%s6462_s30 + $0x162] sm:$0x1]  ;;  %v663_v2 = vrot.slane %v593_v47, 6  ;;  %v658_v18 = vsel %vm301_vm5, %v657_v63, %v656_v14 }
  0x56   : > { %v614_v3 = vld [vmem:[%s6462_s30 + $0x1e3] sm:$0x1]  ;;  %v717_v33 = vrot.slane %v613_v21, 2  ;;  %v712_v35 = vsel %vm292_vm2, %v711_v26, %v710_v32  ;;  %v595_v50 = vld [vmem:[%s6462_s30 + $0x182] sm:$0x1]  ;;  %v665_v4 = vrot.slane %v594_v48, 5  ;;  %v660_v20 = vsel %vm304_vm6, %v659_v7, %v658_v18 }
  0x57   : > { %v719_v36 = vrot.slane %v614_v3, 1  ;;  %v714_v40 = vsel %vm295_vm3, %v713_v27, %v712_v35  ;;  %v591_v56 = vld [vmem:[%s6462_s30 + $0x102] sm:$0x1]  ;;  %v667_v5 = vrot.slane %v595_v50, 4  ;;  %v772_v25 = vld [vmem:[%s8543_s1] sm:$0x3] }
  0x58   : > { %v716_v44 = vsel %vm298_vm4, %v715_v30, %v714_v40  ;;  %v596_v57 = vld [vmem:[%s6462_s30 + $0x1a2] sm:$0x1]  ;;  %v662_v8 = vsel %vm286_vm0, %v661_v0, %v591_v56  ;;  %v965_v34 = vld [vmem:[%s6462_s30 + $0x26] sm:$0x1]  ;;  %v6170_v39 = vld [vmem:[%s8544_s2 + $0x10] sm:$0xff] }
  0x59   : > { %v718_v49 = vsel %vm301_vm5, %v717_v33, %v716_v44  ;;  %v597_v61 = vld [vmem:[%s6462_s30 + $0x1c2] sm:$0x1]  ;;  %v669_v10 = vrot.slane %v596_v57, 3  ;;  %v664_v12 = vsel %vm289_vm1, %v663_v2, %v662_v8  ;;  %v5570_v33 = vld [vmem:[%s8543_s1 + $0x4] sm:$0x3]  ;;  %v1088_v37 = vrot.slane %v965_v34, 7 }
  0x5a   : > { %v720_v55 = vsel %vm304_vm6, %v719_v36, %v718_v49  ;;  %v598_v9 = vld [vmem:[%s6462_s30 + $0x1e2] sm:$0x1]  ;;  %v671_v13 = vrot.slane %v597_v61, 2  ;;  %v666_v15 = vsel %vm292_vm2, %v665_v4, %v664_v12  ;;  %v973_v35 = vld [vmem:[%s6462_s30 + $0x126] sm:$0x1]  ;;  %v6167_v42 = vld [vmem:[%s8544_s2 + $0x28] sm:$0xff] }
  0x5b   : > { %v770_v60 = vpack.c.bf16 %v720_v55, %v706_v43  ;;  %v673_v17 = vrot.slane %v598_v9, 1  ;;  %v668_v19 = vsel %vm295_vm3, %v667_v5, %v666_v15  ;;  %v5586_v3 = vld [vmem:[%s8543_s1 + $0x2] sm:$0x3]  ;;  %v966_v36 = vld [vmem:[%s6462_s30 + $0x46] sm:$0x1]  ;;  %v1102_v38 = vrot.slane %v973_v35, 7  ;;  %566 = vmatpush.bf16.msrb.mxu3 %v6167_v42 }
  0x5c   : > { %v670_v21 = vsel %vm298_vm4, %v669_v10, %v668_v19  ;;  %v964_v40 = vld [vmem:[%s6462_s30 + $0x6] sm:$0x1]  ;;  %v1090_v41 = vrot.slane %v966_v36, 6  ;;  %v948_v5 = vld [vmem:[%s6462_s30 + $0x5] sm:$0x1] }
  0x5d   : > { %804 = vmatpush.bf16.msrb.mxu1 %v770_v60  ;;  %782 = vmatpush.bf16.msrb.mxu0 %v770_v60  ;;  %v672_v22 = vsel %vm301_vm5, %v671_v13, %v670_v21  ;;  %v967_v52 = vld [vmem:[%s6462_s30 + $0x66] sm:$0x1]  ;;  %v1089_v45 = vsel %vm286_vm0, %v1088_v37, %v964_v40  ;;  %v949_v6 = vld [vmem:[%s6462_s30 + $0x25] sm:$0x1] }
  0x5e   : > { %v674_v23 = vsel %vm304_vm6, %v673_v17, %v672_v22  ;;  %v968_v43 = vld [vmem:[%s6462_s30 + $0x86] sm:$0x1]  ;;  %v1092_v46 = vrot.slane %v967_v52, 5  ;;  %v1091_v50 = vsel %vm289_vm1, %v1090_v41, %v1089_v45  ;;  %v950_v11 = vld [vmem:[%s6462_s30 + $0x45] sm:$0x1]  ;;  %v1042_v12 = vrot.slane %v949_v6, 7 }
  0x5f   : > { %v769_v24 = vpack.c.bf16 %v674_v23, %v660_v20  ;;  %v972_v44 = vld [vmem:[%s6462_s30 + $0x106] sm:$0x1]  ;;  %v1094_v58 = vrot.slane %v968_v43, 4  ;;  %v951_v18 = vld [vmem:[%s6462_s30 + $0x65] sm:$0x1]  ;;  %v1044_v19 = vrot.slane %v950_v11, 6 }
  0x60   : > { %v969_v47 = vld [vmem:[%s6462_s30 + $0xa6] sm:$0x1]  ;;  %v1093_v55 = vsel %vm292_vm2, %v1092_v46, %v1091_v50  ;;  %v952_v21 = vld [vmem:[%s6462_s30 + $0x85] sm:$0x1]  ;;  %v1046_v35 = vrot.slane %v951_v18, 5  ;;  %v6169_v18 = vld [vmem:[%s8544_s2 + $0x8] sm:$0xff] }
  0x61   : > { %805 = vmatpush.bf16.msrb.mxu1 %v769_v24  ;;  %783 = vmatpush.bf16.msrb.mxu0 %v769_v24  ;;  %v974_v48 = vld [vmem:[%s6462_s30 + $0x146] sm:$0x1]  ;;  %v1096_v59 = vrot.slane %v969_v47, 3  ;;  %v1095_v1 = vsel %vm295_vm3, %v1094_v58, %v1093_v55  ;;  %v953_v22 = vld [vmem:[%s6462_s30 + $0xa5] sm:$0x1]  ;;  %v1048_v36 = vrot.slane %v952_v21, 4 }
  0x62   : > { %v975_v49 = vld [vmem:[%s6462_s30 + $0x166] sm:$0x1]  ;;  %v1104_v0 = vrot.slane %v974_v48, 6  ;;  %v954_v23 = vld [vmem:[%s6462_s30 + $0xc5] sm:$0x1]  ;;  %v1050_v37 = vrot.slane %v953_v22, 3 }
  0x63   : > { %v970_v51 = vld [vmem:[%s6462_s30 + $0xc6] sm:$0x1]  ;;  %v1106_v9 = vrot.slane %v975_v49, 5  ;;  %v1097_v7 = vsel %vm298_vm4, %v1096_v59, %v1095_v1  ;;  %v961_v34 = vld [vmem:[%s6462_s30 + $0x1a5] sm:$0x1]  ;;  %v1052_v52 = vrot.slane %v954_v23, 2 }
  0x64   : > { %5587 = vmatmul.msk.bf16.vlgmr.msrb.gmra.mxu1 %vm418_vm7, %v5586_v3  ;;  %5585 = vmatmul.msk.bf16.vlgmr.msrb.gmra.mxu0 %vm418_vm7, %v772_v25  ;;  %v976_v53 = vld [vmem:[%s6462_s30 + $0x186] sm:$0x1]  ;;  %v1098_v62 = vrot.slane %v970_v51, 2  ;;  %v963_v40 = vld [vmem:[%s6462_s30 + $0x1e5] sm:$0x1]  ;;  %v1064_v50 = vrot.slane %v961_v34, 3 }
  0x65   : > { %881 = vmatpush.bf16.msra.mxu0 %v6636_v16  ;;  %v5610_v16 = vld [vmem:[%s8543_s1 + $0x4] sm:$0x3]  ;;  %v977_v54 = vld [vmem:[%s6462_s30 + $0x1a6] sm:$0x1]  ;;  %v1108_v2 = vrot.slane %v976_v53, 4 }
  0x66   : > { %v971_v56 = vld [vmem:[%s6462_s30 + $0xe6] sm:$0x1]  ;;  %v1110_v4 = vrot.slane %v977_v54, 3  ;;  %v1099_v13 = vsel %vm301_vm5, %v1098_v62, %v1097_v7  ;;  %v933_v46 = vld [vmem:[%s6462_s30 + $0x24] sm:$0x1] }
  0x67   : > { %v978_v57 = vld [vmem:[%s6462_s30 + $0x1c6] sm:$0x1]  ;;  %v1100_v63 = vrot.slane %v971_v56, 1  ;;  %v932_v55 = vld [vmem:[%s6462_s30 + $0x4] sm:$0x1] }
  0x68   : > { %v979_v61 = vld [vmem:[%s6462_s30 + $0x1e6] sm:$0x1]  ;;  %v1112_v10 = vrot.slane %v978_v57, 2  ;;  %v934_v56 = vld [vmem:[%s6462_s30 + $0x44] sm:$0x1]  ;;  %v996_v57 = vrot.slane %v933_v46, 7 }
  0x69   : > { %882 = vmatpush.bf16.msra.mxu0 %v770_v60  ;;  %v1103_v60 = vsel %vm286_vm0, %v1102_v38, %v972_v44  ;;  %v1114_v15 = vrot.slane %v979_v61, 1  ;;  %v6166_v17 = vld [vmem:[%s8544_s2 + $0x20] sm:$0xff]  ;;  %v1101_v3 = vsel %vm304_vm6, %v1100_v63, %v1099_v13  ;;  %v1068_v61 = vrot.slane %v963_v40, 1 }
  0x6a   : > { %v1105_v8 = vsel %vm289_vm1, %v1104_v0, %v1103_v60  ;;  %567 = vmatpush.bf16.msrb.mxu3 %v6166_v17  ;;  %v935_v62 = vld [vmem:[%s6462_s30 + $0x64] sm:$0x1]  ;;  %v997_v11 = vsel %vm286_vm0, %v996_v57, %v932_v55  ;;  %v574_v57 = vld [vmem:[%s8545_s3] sm:$0xf] }
  0x6b   : > { %v1107_v14 = vsel %vm292_vm2, %v1106_v9, %v1105_v8  ;;  %v936_v63 = vld [vmem:[%s6462_s30 + $0x84] sm:$0x1] }
  0x6c   : > { %v1109_v20 = vsel %vm295_vm3, %v1108_v2, %v1107_v14  ;;  %v937_v1 = vld [vmem:[%s6462_s30 + $0xa4] sm:$0x1]  ;;  %v998_v14 = vrot.slane %v934_v56, 6  ;;  %v1002_v17 = vrot.slane %v936_v63, 4  ;;  %v6173_v56 = vld [vmem:[%s8544_s2 + $0x28] sm:$0xff] }
  0x6d   : > { %883 = vmatpush.bf16.msra.mxu0 %v769_v24  ;;  %v1043_v24 = vsel %vm286_vm0, %v1042_v12, %v948_v5  ;;  %v1111_v25 = vsel %vm298_vm4, %v1110_v4, %v1109_v20  ;;  %v938_v2 = vld [vmem:[%s6462_s30 + $0xc4] sm:$0x1]  ;;  %v1004_v22 = vrot.slane %v937_v1, 3  ;;  %915 = vmatpush.bf16.msra.mxu1 %v6173_v56  ;;  %v1299_v56 = vld [vmem:[%s6462_s30 + $0x47] sm:$0x1] }
  0x6e   : > { %v939_v6 = vld [vmem:[%s6462_s30 + $0xe4] sm:$0x1]  ;;  %v1006_v23 = vrot.slane %v938_v2, 2 }
  0x6f   : > { %v941_v7 = vld [vmem:[%s6462_s30 + $0x124] sm:$0x1] }
  0x70   : > { %v942_v8 = vld [vmem:[%s6462_s30 + $0x144] sm:$0x1] }
  0x71   : > { %v944_v13 = vld [vmem:[%s6462_s30 + $0x184] sm:$0x1] }
  0x72   : > { %v940_v20 = vld [vmem:[%s6462_s30 + $0x104] sm:$0x1] }
  0x73   : > { %v945_v21 = vld [vmem:[%s6462_s30 + $0x1a4] sm:$0x1] }
  0x74   : > { %5611 = vmatmul.msk.bf16.vlgmr.msra.gmra.mxu0 %vm418_vm7, %v5610_v16  ;;  %v959_v16 = vld [vmem:[%s6462_s30 + $0x165] sm:$0x1]  ;;  %v1018_v34 = vrot.slane %v945_v21, 3  ;;  %v1321_v21 = vld [vmem:[%s6462_s30 + $0x108] sm:$0x1] }
  0x75   : > { %v1060_v44 = vrot.slane %v959_v16, 5  ;;  %v1016_v16 = vrot.slane %v944_v13, 4  ;;  %v5651_v1 = vld [vmem:[%s8543_s1 + $0x4] sm:$0x3] }
  0xcb   : > { %v431_v26 = vpop.f32.mrf.mxu0  ;;  %v454_v27 = vpop.f32.mrf.mxu1 }
  0xcc   : > { %v435_v29 = vpack.c.bf16 %v431_v26, %v431_v26  ;;  %v458_v30 = vpack.c.bf16 %v454_v27, %v454_v27  ;;  %v955_v26 = vld [vmem:[%s6462_s30 + $0xe5] sm:$0x1] }
  0xcd   : > { %v956_v27 = vld [vmem:[%s6462_s30 + $0x105] sm:$0x1]  ;;  %v1054_v48 = vrot.slane %v955_v26, 1  ;;  %v1010_v26 = vrot.slane %v941_v7, 7  ;;  %v5627_v7 = vld [vmem:[%s8543_s1 + $0x2] sm:$0x3] }
  0xce   : > { %5560 = vmatmul.msk.bf16.vlgmr.msra.gmra.mxu2 %vm476_vm8, %v458_v30  ;;  %5569 = vmatmul.msk.bf16.vlgmr.msra.gmra.mxu3 %vm476_vm8, %v435_v29  ;;  %v1113_v29 = vsel %vm301_vm5, %v1112_v10, %v1111_v25  ;;  %v958_v30 = vld [vmem:[%s6462_s30 + $0x145] sm:$0x1]  ;;  %v943_v10 = vld [vmem:[%s6462_s30 + $0x164] sm:$0x1]  ;;  %v999_v25 = vsel %vm289_vm1, %v998_v14, %v997_v11  ;;  %v1315_v11 = vld [vmem:[%s6462_s30 + $0x48] sm:$0x1] }
  0xcf   : > { %837 = vmatpush.bf16.msra.mxu2 %v6171_v28  ;;  %v957_v28 = vld [vmem:[%s6462_s30 + $0x125] sm:$0x1]  ;;  %v1058_v43 = vrot.slane %v958_v30, 6  ;;  %865 = vmatpush.bf16.msra.mxu3 %v6169_v18  ;;  %v1014_v30 = vrot.slane %v943_v10, 5  ;;  %v1322_v10 = vld [vmem:[%s6462_s30 + $0x128] sm:$0x1] }
  0xd0   : > { %v1056_v41 = vrot.slane %v957_v28, 7  ;;  %v947_v28 = vld [vmem:[%s6462_s30 + $0x1e4] sm:$0x1]  ;;  %v1451_v13 = vrot.slane %v1322_v10, 7  ;;  %v1439_v18 = vrot.slane %v1315_v11, 6 }
  0xd1   : > { %v6174_v14 = vld [vmem:[%s8544_s2] sm:$0xff] }
  0xd2   : > { %v1057_v49 = vsel %vm286_vm0, %v1056_v41, %v956_v27  ;;  %v1012_v27 = vrot.slane %v942_v8, 6  ;;  %v1314_v8 = vld [vmem:[%s6462_s30 + $0x28] sm:$0x1] }
  0xd3   : > { %v456_v31 = vpop.f32.mrf.mxu1  ;;  %v433_v32 = vpop.f32.mrf.mxu0  ;;  %838 = vmatpush.bf16.msra.mxu2 %v6170_v39  ;;  %v962_v39 = vld [vmem:[%s6462_s30 + $0x1c5] sm:$0x1]  ;;  %v1059_v53 = vsel %vm289_vm1, %v1058_v43, %v1057_v49  ;;  %v1022_v43 = vrot.slane %v947_v28, 1  ;;  %v1325_v28 = vld [vmem:[%s6462_s30 + $0x188] sm:$0x1] }
  0xd4   : > { %v960_v31 = vld [vmem:[%s6462_s30 + $0x185] sm:$0x1]  ;;  %v1045_v32 = vsel %vm289_vm1, %v1044_v19, %v1043_v24  ;;  %v1066_v54 = vrot.slane %v962_v39, 2  ;;  %v1061_v60 = vsel %vm292_vm2, %v1060_v44, %v1059_v53 }
  0xd5   : > { %v1047_v42 = vsel %vm292_vm2, %v1046_v35, %v1045_v32  ;;  %v1062_v45 = vrot.slane %v960_v31, 4  ;;  %v1008_v32 = vrot.slane %v939_v6, 1 }
  0xd6   : > { %v1049_v47 = vsel %vm295_vm3, %v1048_v36, %v1047_v42  ;;  %v6168_v36 = vld [vmem:[%s8544_s2] sm:$0xff] }
  0xd7   : > { %v1051_v51 = vsel %vm298_vm4, %v1050_v37, %v1049_v47  ;;  %v1063_v9 = vsel %vm295_vm3, %v1062_v45, %v1061_v60  ;;  %866 = vmatpush.bf16.msra.mxu3 %v6168_v36 }
  0xd8   : > { %v1053_v59 = vsel %vm301_vm5, %v1052_v52, %v1051_v51  ;;  %v1065_v5 = vsel %vm298_vm4, %v1064_v50, %v1063_v9 }
  0xd9   : > { %v1055_v4 = vsel %vm304_vm6, %v1054_v48, %v1053_v59  ;;  %v1067_v12 = vsel %vm301_vm5, %v1066_v54, %v1065_v5  ;;  %v1121_v54 = vld [vmem:[%s8543_s1] sm:$0x3]  ;;  %v6366_v59 = vmov 0  }
  0xda   : > { %v1069_v19 = vsel %vm304_vm6, %v1068_v61, %v1067_v12  ;;  %6295 = vset.pattern.permute.xlu0 %v6366_v59  ;;  %6296 = vset.pattern.permute.xlu1 %v6366_v59  ;;  %v1437_v12 = vrot.slane %v1314_v8, 7 }
  0xdb   : > { %v6800_v24 = vpack.c.bf16 %v1069_v19, %v1055_v4  ;;  %577 = vperm.xlu0 %6295, %v574_v57   ;;  %6297 = vset.pattern.permute.xlu2 %v6366_v59  ;;  %v923_v4 = vld [vmem:[%s8545_s3] sm:$0xf]  ;;  %v1300_v57 = vld [vmem:[%s6462_s30 + $0x67] sm:$0x1] }
  0xdc   : > { %v1395_v8 = vrot.slane %v1300_v57, 5 }
  0xde   : > { %5571 = vmatmul.msk.bf16.vlgmr.msrb.gmra.mxu2 %vm418_vm7, %v5570_v33  ;;  %v1115_v33 = vsel %vm304_vm6, %v1114_v15, %v1113_v29  ;;  %v1000_v15 = vrot.slane %v935_v62, 5 }
  0xdf   : > { %v6764_v38 = vpack.c.bf16 %v1115_v33, %v1101_v3  ;;  %v946_v3 = vld [vmem:[%s6462_s30 + $0x1c4] sm:$0x1]  ;;  %v1011_v33 = vsel %vm286_vm0, %v1010_v26, %v940_v20  ;;  %v1317_v20 = vld [vmem:[%s6462_s30 + $0x88] sm:$0x1] }
  0xe0   : > { %v1001_v29 = vsel %vm292_vm2, %v1000_v15, %v999_v25  ;;  %v1013_v40 = vsel %vm289_vm1, %v1012_v27, %v1011_v33  ;;  %v1020_v52 = vrot.slane %v946_v3, 2  ;;  %v1313_v15 = vld [vmem:[%s6462_s30 + $0x8] sm:$0x1] }
  0xe1   : > { %1130 = vmatpush.bf16.msrb.mxu2 %v6764_v38  ;;  %v807_v58 = vpop.f32.mrf.mxu1  ;;  %v1003_v31 = vsel %vm295_vm3, %v1002_v17, %v1001_v29  ;;  %v785_v35 = vpop.f32.mrf.mxu0  ;;  %v1015_v42 = vsel %vm292_vm2, %v1014_v30, %v1013_v40  ;;  %v1316_v17 = vld [vmem:[%s6462_s30 + $0x68] sm:$0x1] }
  0xe2   : > { %v811_v0 = vpack.c.bf16 %v807_v58, %v807_v58  ;;  %v1005_v39 = vsel %vm298_vm4, %v1004_v22, %v1003_v31  ;;  %v1017_v44 = vsel %vm295_vm3, %v1016_v16, %v1015_v42  ;;  %v6172_v58 = vld [vmem:[%s8544_s2 + $0x20] sm:$0xff]  ;;  %v789_v6 = vpack.c.bf16 %v785_v35, %v785_v35  ;;  %v1323_v3 = vld [vmem:[%s6462_s30 + $0x148] sm:$0x1] }
  0xe3   : > { %v1007_v41 = vsel %vm301_vm5, %v1006_v23, %v1005_v39  ;;  %v1019_v46 = vsel %vm298_vm4, %v1018_v34, %v1017_v44  ;;  %916 = vmatpush.bf16.msra.mxu1 %v6172_v58  ;;  %926 = vperm.xlu0 %6295, %v923_v4   ;;  %v1438_v22 = vsel %vm286_vm0, %v1437_v12, %v1313_v15  ;;  %v1441_v23 = vrot.slane %v1316_v17, 5  ;;  %v1324_v25 = vld [vmem:[%s6462_s30 + $0x168] sm:$0x1]  ;;  %v1301_v58 = vld [vmem:[%s6462_s30 + $0x87] sm:$0x1] }
  0xe4   : > { %v1009_v45 = vsel %vm304_vm6, %v1008_v32, %v1007_v41  ;;  %v1021_v47 = vsel %vm301_vm5, %v1020_v52, %v1019_v46  ;;  %v1440_v26 = vsel %vm289_vm1, %v1439_v18, %v1438_v22  ;;  %v1319_v27 = vld [vmem:[%s6462_s30 + $0xc8] sm:$0x1]  ;;  %v1443_v32 = vrot.slane %v1317_v20, 4  ;;  %v1308_v4 = vld [vmem:[%s6462_s30 + $0x167] sm:$0x1] }
  0xe5   : > { %1131 = vmatpush.bf16.msrb.mxu2 %v6800_v24  ;;  %v1023_v48 = vsel %vm304_vm6, %v1022_v43, %v1021_v47  ;;  %v1326_v29 = vld [vmem:[%s6462_s30 + $0x1a8] sm:$0x1]  ;;  %v1442_v30 = vsel %vm292_vm2, %v1441_v23, %v1440_v26  ;;  %v1452_v34 = vsel %vm286_vm0, %v1451_v13, %v1321_v21  ;;  %v1447_v36 = vrot.slane %v1319_v27, 2  ;;  %v1298_v43 = vld [vmem:[%s6462_s30 + $0x27] sm:$0x1] }
  0xe6   : > { %v1118_v49 = vpack.c.bf16 %v1023_v48, %v1009_v45  ;;  %v1320_v16 = vld [vmem:[%s6462_s30 + $0xe8] sm:$0x1]  ;;  %v1455_v39 = vrot.slane %v1324_v25, 5  ;;  %v1444_v40 = vsel %vm295_vm3, %v1443_v32, %v1442_v30  ;;  %v1457_v41 = vrot.slane %v1325_v28, 4  ;;  %v1310_v12 = vld [vmem:[%s6462_s30 + $0x1a7] sm:$0x1] }
  0xe7   : > { %v1327_v31 = vld [vmem:[%s6462_s30 + $0x1c8] sm:$0x1]  ;;  %v1449_v52 = vrot.slane %v1320_v16, 1  ;;  %v1459_v42 = vrot.slane %v1326_v29, 3  ;;  %v1391_v47 = vrot.slane %v1298_v43, 7  ;;  %v1397_v10 = vrot.slane %v1301_v58, 4 }
  0xe8   : > { %v1328_v35 = vld [vmem:[%s6462_s30 + $0x1e8] sm:$0x1]  ;;  %v1461_v46 = vrot.slane %v1327_v31, 2  ;;  %v1282_v15 = vld [vmem:[%s6462_s30 + $0x26] sm:$0x1]  ;;  %v1409_v22 = vrot.slane %v1308_v4, 5 }
  0xe9   : > { %v809_v37 = vpop.f32.mrf.mxu1  ;;  %1132 = vmatpush.bf16.msrb.mxu2 %v1118_v49  ;;  %v787_v55 = vpop.f32.mrf.mxu0  ;;  %v1311_v17 = vld [vmem:[%s6462_s30 + $0x1c7] sm:$0x1]  ;;  %v1413_v28 = vrot.slane %v1310_v12, 3  ;;  %v1281_v29 = vld [vmem:[%s6462_s30 + $0x6] sm:$0x1]  ;;  %v1345_v16 = vrot.slane %v1282_v15, 7 }
  0xea   : > { %v1453_v37 = vrot.slane %v1323_v3, 6  ;;  %v1312_v23 = vld [vmem:[%s6462_s30 + $0x1e7] sm:$0x1]  ;;  %v1283_v30 = vld [vmem:[%s6462_s30 + $0x46] sm:$0x1]  ;;  %v6177_v58 = vld [vmem:[%s8544_s2 + $0x18] sm:$0xff] }
  0xeb   : > { %1186 = vmatpush.bf16.msrb.mxu0 %v6177_v58  ;;  %v1666_v58 = vld [vmem:[%s6462_s30 + $0x8a] sm:$0x1] }
  0xec   : > { %v1454_v45 = vsel %vm289_vm1, %v1453_v37, %v1452_v34  ;;  %v1415_v34 = vrot.slane %v1311_v17, 2  ;;  %v6176_v17 = vld [vmem:[%s8544_s2 + $0x10] sm:$0xff] }
  0xee   : > { %5600 = vmatmul.msk.bf16.vlgmr.msra.gmra.mxu2 %vm476_vm8, %v811_v0 }
  0xef   : > { %1230 = vmatpush.bf16.msra.mxu2 %v6764_v38  ;;  %1187 = vmatpush.bf16.msrb.mxu0 %v6176_v17 }
  0xf1   : > { %v885_v62 = vpop.f32.mrf.mxu0 }
  0xf2   : > { %v889_v63 = vpack.c.bf16 %v885_v62, %v885_v62  ;;  %v1303_v62 = vld [vmem:[%s6462_s30 + $0xc7] sm:$0x1] }
  0xf3   : > { %1231 = vmatpush.bf16.msra.mxu2 %v6800_v24 }
  0xf4   : > { %5624 = vmatmul.msk.bf16.vlgmr.msra.gmra.mxu1 %vm476_vm8, %v889_v63  ;;  %v1304_v63 = vld [vmem:[%s6462_s30 + $0xe7] sm:$0x1] }
  0xf5   : > { %v1403_v3 = vrot.slane %v1304_v63, 1 }
  0xf7   : > { %1232 = vmatpush.bf16.msra.mxu2 %v1118_v49 }
  0xf9   : > { %v887_v2 = vpop.f32.mrf.mxu0 }
  0xfa   : > { %v1307_v2 = vld [vmem:[%s6462_s30 + $0x147] sm:$0x1] }
  0xfb   : > { %v1407_v21 = vrot.slane %v1307_v2, 6 }
  0xfe   : > { %5626 = vmatmul.msk.bf16.vlgmr.msrb.gmra.mxu2 %vm418_vm7, %v1121_v54 }
 0x10e   : > { %5652 = vmatmul.msk.bf16.vlgmr.msra.gmra.mxu2 %vm418_vm7, %v5651_v1  ;;  %v1306_v1 = vld [vmem:[%s6462_s30 + $0x127] sm:$0x1] }
 0x10f   : > { %v1405_v20 = vrot.slane %v1306_v1, 7 }
 0x151   : > { %v489_v50 = vpop.f32.mrf.mxu2  ;;  %v517_v51 = vpop.f32.mrf.mxu3 }
 0x152   : > { %v6821_v53 = vadd.f32 %v517_v51, %v489_v50  ;;  %v1463_v50 = vrot.slane %v1328_v35, 1  ;;  %v1297_v51 = vld [vmem:[%s6462_s30 + $0x7] sm:$0x1]  ;;  %v1284_v35 = vld [vmem:[%s6462_s30 + $0x66] sm:$0x1] }
 0x159   : > { %v491_v60 = vpop.f32.mrf.mxu2  ;;  %v519_v61 = vpop.f32.mrf.mxu3 }
 0x15a   : > { %v1302_v61 = vld [vmem:[%s6462_s30 + $0xa7] sm:$0x1] }
 0x15b   : > { %v1399_v13 = vrot.slane %v1302_v61, 3  ;;  %v1294_v61 = vld [vmem:[%s6462_s30 + $0x1a6] sm:$0x1] }
 0x15c   : > { %v1367_v15 = vrot.slane %v1294_v61, 3  ;;  %v1669_v61 = vld [vmem:[%s6462_s30 + $0xea] sm:$0x1] }
 0x161   : > { %v535_v0 = vpop.f32.mrf.mxu2 }
 0x162   : > { %v539_v9 = vpack.c.bf16 %v535_v0, %v535_v0 }
 0x164   : > { %5584 = vmatmul.msk.bf16.vlgmr.msrb.gmra.mxu3 %vm476_vm8, %v539_v9  ;;  %v1305_v9 = vld [vmem:[%s6462_s30 + $0x107] sm:$0x1] }
 0x165   : > { %1152 = vmatpush.bf16.msrb.mxu3 %v6764_v38  ;;  %v6175_v38 = vld [vmem:[%s8544_s2 + $0x8] sm:$0xff]  ;;  %v1406_v27 = vsel %vm286_vm0, %v1405_v20, %v1305_v9  ;;  %v1295_v9 = vld [vmem:[%s6462_s30 + $0x1c6] sm:$0x1] }
 0x166   : > { %1214 = vmatpush.bf16.msrb.mxu1 %v6175_v38  ;;  %v1393_v38 = vrot.slane %v1299_v56, 6  ;;  %v1349_v56 = vrot.slane %v1284_v35, 5  ;;  %v5668_v35 = vld [vmem:[%s8543_s1 + $0x2] sm:$0x3] }
 0x169   : > { %v537_v5 = vpop.f32.mrf.mxu2  ;;  %1153 = vmatpush.bf16.msrb.mxu3 %v6800_v24  ;;  %v1318_v24 = vld [vmem:[%s6462_s30 + $0xa8] sm:$0x1] }
 0x16a   : > { %1215 = vmatpush.bf16.msrb.mxu1 %v6174_v14  ;;  %v1445_v33 = vrot.slane %v1318_v24, 3  ;;  %v1392_v5 = vsel %vm286_vm0, %v1391_v47, %v1297_v51  ;;  %v1401_v14 = vrot.slane %v1303_v62, 2  ;;  %v1290_v47 = vld [vmem:[%s6462_s30 + $0x126] sm:$0x1] }
 0x16b   : > { %v1394_v18 = vsel %vm289_vm1, %v1393_v38, %v1392_v5  ;;  %v1359_v2 = vrot.slane %v1290_v47, 7  ;;  %v6179_v5 = vld [vmem:[%s8544_s2 + $0x28] sm:$0xff] }
 0x16c   : > { %v1446_v44 = vsel %vm298_vm4, %v1445_v33, %v1444_v40  ;;  %v1396_v24 = vsel %vm292_vm2, %v1395_v8, %v1394_v18  ;;  %v1408_v33 = vsel %vm289_vm1, %v1407_v21, %v1406_v27  ;;  %v6178_v18 = vld [vmem:[%s8544_s2 + $0x20] sm:$0xff] }
 0x16d   : > { %1154 = vmatpush.bf16.msrb.mxu3 %v1118_v49  ;;  %v1448_v48 = vsel %vm301_vm5, %v1447_v36, %v1446_v44  ;;  %v1456_v49 = vsel %vm292_vm2, %v1455_v39, %v1454_v45  ;;  %v1398_v26 = vsel %vm295_vm3, %v1397_v10, %v1396_v24  ;;  %v1285_v36 = vld [vmem:[%s6462_s30 + $0x86] sm:$0x1]  ;;  %v1410_v40 = vsel %vm292_vm2, %v1409_v22, %v1408_v33  ;;  %v578_v33 = vpop.permute.xlu0 %577 }
 0x16e   : > { %v1458_v55 = vsel %vm295_vm3, %v1457_v41, %v1456_v49  ;;  %v1450_v59 = vsel %vm304_vm6, %v1449_v52, %v1448_v48  ;;  %v1400_v32 = vsel %vm298_vm4, %v1399_v13, %v1398_v26  ;;  %v1417_v52 = vrot.slane %v1312_v23, 1  ;;  %v1286_v41 = vld [vmem:[%s6462_s30 + $0xa6] sm:$0x1] }
 0x16f   : > { %v1460_v60 = vsel %vm298_vm4, %v1459_v42, %v1458_v55  ;;  %v1402_v39 = vsel %vm301_vm5, %v1401_v14, %v1400_v32  ;;  %v1287_v42 = vld [vmem:[%s6462_s30 + $0xc6] sm:$0x1]  ;;  %v1347_v55 = vrot.slane %v1283_v30, 6  ;;  %v1351_v57 = vrot.slane %v1285_v36, 4 }
 0x170   : > { %v1462_v0 = vsel %vm301_vm5, %v1461_v46, %v1460_v60  ;;  %v1404_v43 = vsel %vm304_vm6, %v1403_v3, %v1402_v39  ;;  %v1288_v46 = vld [vmem:[%s6462_s30 + $0xe6] sm:$0x1]  ;;  %v1353_v62 = vrot.slane %v1286_v41, 3  ;;  %v1355_v63 = vrot.slane %v1287_v42, 2 }
 0x171   : > { %v6865_v19 = vpop.f32.mrf.mxu2  ;;  %v6929_v45 = vpop.f32.mrf.mxu1  ;;  %v1291_v48 = vld [vmem:[%s6462_s30 + $0x146] sm:$0x1]  ;;  %v1357_v13 = vrot.slane %v1288_v46, 1  ;;  %v1369_v23 = vrot.slane %v1295_v9, 2  ;;  %v1673_v9 = vld [vmem:[%s6462_s30 + $0x16a] sm:$0x1] }
 0x172   : > { %v1292_v49 = vld [vmem:[%s6462_s30 + $0x166] sm:$0x1]  ;;  %v1361_v4 = vrot.slane %v1291_v48, 6  ;;  %v1804_v17 = vrot.slane %v1673_v9, 5 }
 0x173   : > { %v1289_v60 = vld [vmem:[%s6462_s30 + $0x106] sm:$0x1]  ;;  %v1363_v8 = vrot.slane %v1292_v49, 5 }
 0x174   : > { %5609 = vmatmul.msk.bf16.vlgmr.msra.gmra.mxu3 %vm476_vm8, %v789_v6  ;;  %v1464_v6 = vsel %vm304_vm6, %v1463_v50, %v1462_v0  ;;  %v1346_v50 = vsel %vm286_vm0, %v1345_v16, %v1281_v29  ;;  %v1360_v14 = vsel %vm286_vm0, %v1359_v2, %v1289_v60  ;;  %v1668_v60 = vld [vmem:[%s6462_s30 + $0xca] sm:$0x1] }
 0x175   : > { %v6906_v11 = vpack.c.bf16 %v1464_v6, %v1450_v59  ;;  %v1348_v1 = vsel %vm289_vm1, %v1347_v55, %v1346_v50  ;;  %1264 = vmatpush.bf16.msra.mxu3 %v6179_v5  ;;  %v1362_v22 = vsel %vm289_vm1, %v1361_v4, %v1360_v14  ;;  %v1664_v55 = vld [vmem:[%s6462_s30 + $0x4a] sm:$0x1] }
 0x176   : > { %v1350_v38 = vsel %vm292_vm2, %v1349_v56, %v1348_v1  ;;  %v1364_v3 = vsel %vm292_vm2, %v1363_v8, %v1362_v22  ;;  %v1665_v56 = vld [vmem:[%s6462_s30 + $0x6a] sm:$0x1]  ;;  %v1792_v8 = vrot.slane %v1666_v58, 4  ;;  %v1661_v58 = vld [vmem:[%s6462_s30 + $0x1e9] sm:$0x1] }
 0x177   : > { %1501 = vmatpush.bf16.msra.mxu1 %v6906_v11  ;;  %v1352_v12 = vsel %vm295_vm3, %v1351_v57, %v1350_v38  ;;  %1479 = vmatpush.bf16.msra.mxu0 %v6906_v11  ;;  %v1662_v57 = vld [vmem:[%s6462_s30 + $0xa] sm:$0x1] }
 0x178   : > { %v1354_v21 = vsel %vm298_vm4, %v1353_v62, %v1352_v12  ;;  %v1670_v62 = vld [vmem:[%s6462_s30 + $0x10a] sm:$0x1]  ;;  %v1796_v12 = vrot.slane %v1668_v60, 2 }
 0x179   : > { %v842_v54 = vpop.f32.mrf.mxu2  ;;  %v1356_v24 = vsel %vm301_vm5, %v1355_v63, %v1354_v21  ;;  %v920_v27 = vpop.f32.mrf.mxu1  ;;  %1265 = vmatpush.bf16.msra.mxu3 %v6178_v18  ;;  %v1671_v63 = vld [vmem:[%s6462_s30 + $0x12a] sm:$0x1] }
 0x17a   : > { %v1293_v54 = vld [vmem:[%s6462_s30 + $0x186] sm:$0x1]  ;;  %v1674_v1 = vld [vmem:[%s6462_s30 + $0x18a] sm:$0x1] }
 0x17b   : > { %v1365_v10 = vrot.slane %v1293_v54, 4  ;;  %v1663_v54 = vld [vmem:[%s6462_s30 + $0x2a] sm:$0x1]  ;;  %v1806_v18 = vrot.slane %v1674_v1, 4 }
 0x17c   : > { %v1675_v2 = vld [vmem:[%s6462_s30 + $0x1aa] sm:$0x1]  ;;  %v1786_v5 = vrot.slane %v1663_v54, 7 }
 0x17d   : > { %v1366_v26 = vsel %vm295_vm3, %v1365_v10, %v1364_v3  ;;  %v1676_v4 = vld [vmem:[%s6462_s30 + $0x1ca] sm:$0x1]  ;;  %v1808_v3 = vrot.slane %v1675_v2, 3 }
 0x17e   : > { %v1368_v29 = vsel %vm298_vm4, %v1367_v15, %v1366_v26  ;;  %v1677_v38 = vld [vmem:[%s6462_s30 + $0x1ea] sm:$0x1]  ;;  %v1787_v14 = vsel %vm286_vm0, %v1786_v5, %v1662_v57  ;;  %v1810_v27 = vrot.slane %v1676_v4, 2  ;;  %v1632_v4 = vld [vmem:[%s6462_s30 + $0x48] sm:$0x1] }
 0x17f   : > { %v1370_v30 = vsel %vm301_vm5, %v1369_v23, %v1368_v29  ;;  %v1798_v23 = vrot.slane %v1669_v61, 1  ;;  %v1648_v29 = vld [vmem:[%s6462_s30 + $0x49] sm:$0x1] }
 0x181   : > { %v1134_v31 = vpop.f32.mrf.mxu2 }
 0x182   : > { %v1138_v37 = vpack.c.bf16 %v1134_v31, %v1134_v31 }
 0x184   : > { %5628 = vmatmul.msk.bf16.vlgmr.msrb.gmra.mxu3 %vm418_vm7, %v5627_v7  ;;  %v1309_v7 = vld [vmem:[%s6462_s30 + $0x187] sm:$0x1]  ;;  %5650 = vmatmul.msk.bf16.vlgmr.msrb.gmra.mxu1 %vm476_vm8, %v1138_v37 }
 0x185   : > { %v1411_v25 = vrot.slane %v1309_v7, 4  ;;  %v1296_v7 = vld [vmem:[%s6462_s30 + $0x1e6] sm:$0x1] }
 0x187   : > { %v1412_v44 = vsel %vm295_vm3, %v1411_v25, %v1410_v40  ;;  %v1371_v25 = vrot.slane %v1296_v7, 1  ;;  %v1272_v40 = vld [vmem:[%s8545_s3] sm:$0xf]  ;;  %v1790_v7 = vrot.slane %v1665_v56, 5 }
 0x188   : > { %v1414_v51 = vsel %vm298_vm4, %v1413_v28, %v1412_v44  ;;  %v1358_v28 = vsel %vm304_vm6, %v1357_v13, %v1356_v24  ;;  %1275 = vperm.xlu1 %6296, %v1272_v40   ;;  %v1800_v13 = vrot.slane %v1671_v63, 7 }
 0x189   : > { %v1416_v59 = vsel %vm301_vm5, %v1415_v34, %v1414_v51  ;;  %v1136_v20 = vpop.f32.mrf.mxu2  ;;  %v1372_v16 = vsel %vm304_vm6, %v1371_v25, %v1370_v30  ;;  %v6182_v51 = vld [vmem:[%s8544_s2 + $0x10] sm:$0xff] }
 0x18a   : > { %v1418_v0 = vsel %vm304_vm6, %v1417_v52, %v1416_v59  ;;  %v1467_v31 = vpack.c.bf16 %v1372_v16, %v1358_v28  ;;  %v1667_v59 = vld [vmem:[%s6462_s30 + $0xaa] sm:$0x1]  ;;  %v1647_v20 = vld [vmem:[%s6462_s30 + $0x29] sm:$0x1]  ;;  %v1801_v24 = vsel %vm286_vm0, %v1800_v13, %v1670_v62  ;;  %v1631_v62 = vld [vmem:[%s6462_s30 + $0x28] sm:$0x1] }
 0x18b   : > { %v1468_v6 = vpack.c.bf16 %v1418_v0, %v1404_v43  ;;  %v927_v43 = vpop.permute.xlu0 %926  ;;  %v1672_v0 = vld [vmem:[%s6462_s30 + $0x14a] sm:$0x1]  ;;  %v1794_v10 = vrot.slane %v1667_v59, 3  ;;  %v1646_v28 = vld [vmem:[%s6462_s30 + $0x9] sm:$0x1]  ;;  %v1740_v30 = vrot.slane %v1647_v20, 7 }
 0x18c   : > { %v1802_v15 = vrot.slane %v1672_v0, 6 }
 0x18d   : > { %1502 = vmatpush.bf16.msra.mxu1 %v1468_v6  ;;  %1480 = vmatpush.bf16.msra.mxu0 %v1468_v6 }
 0x18e   : > { %v1803_v26 = vsel %vm289_vm1, %v1802_v15, %v1801_v24  ;;  %v1635_v15 = vld [vmem:[%s6462_s30 + $0xa8] sm:$0x1] }
 0x18f   : > { %v1637_v24 = vld [vmem:[%s6462_s30 + $0xe8] sm:$0x1] }
 0x191   : > { %1503 = vmatpush.bf16.msra.mxu1 %v1467_v31  ;;  %v1234_v36 = vpop.f32.mrf.mxu2  ;;  %1481 = vmatpush.bf16.msra.mxu0 %v1467_v31 }
 0x192   : > { %v1238_v37 = vpack.c.bf16 %v1234_v36, %v1234_v36 }
 0x194   : > { %5669 = vmatmul.msk.bf16.vlgmr.msra.gmra.mxu1 %vm418_vm7, %v5668_v35  ;;  %5665 = vmatmul.msk.bf16.vlgmr.msra.gmra.mxu3 %vm476_vm8, %v1238_v37  ;;  %v1651_v37 = vld [vmem:[%s6462_s30 + $0xa9] sm:$0x1] }
 0x199   : > { %v1236_v52 = vpop.f32.mrf.mxu2 }
 0x1e7   : > { %v569_v32 = vpop.f32.mrf.mxu3 }
 0x1e8   : > { %v573_v34 = vadd.f32 %v569_v32, %v6821_v53  ;;  %v1812_v32 = vrot.slane %v1677_v38, 1  ;;  %v1630_v38 = vld [vmem:[%s6462_s30 + $0x8] sm:$0x1] }
 0x1ea   : > { %v580_v39 = vadd.f32 %v578_v33, %v573_v34  ;;  %v1649_v33 = vld [vmem:[%s6462_s30 + $0x69] sm:$0x1] }
 0x1eb   : > { %v1650_v34 = vld [vmem:[%s6462_s30 + $0x89] sm:$0x1] }
 0x1ec   : > { %582 = vst.msk [vmem:[%s6982_s6] sm:$0xf] %vm581_vm9, %v580_v39  ;;  %v1652_v39 = vld [vmem:[%s6462_s30 + $0xc9] sm:$0x1]  ;;  %v1746_v54 = vrot.slane %v1650_v34, 4 }
 0x1ed   : > { %v1750_v56 = vrot.slane %v1652_v39, 2 }
 0x1ef   : > { %v571_v53 = vpop.f32.mrf.mxu3 }
 0x1f0   : > { %v1653_v53 = vld [vmem:[%s6462_s30 + $0xe9] sm:$0x1] }
 0x1f1   : > { %v1752_v60 = vrot.slane %v1653_v53, 1  ;;  %v1706_v53 = vrot.slane %v1637_v24, 1 }
 0x1f7   : > { %v868_v41 = vpop.f32.mrf.mxu3 }
 0x1f8   : > { %v869_v42 = vadd.f32 %v868_v41, %v6865_v19  ;;  %v1470_v19 = vld [vmem:[%s8543_s1] sm:$0x3]  ;;  %v1654_v41 = vld [vmem:[%s6462_s30 + $0x109] sm:$0x1] }
 0x1fa   : > { %v922_v44 = vadd.f32 %v6929_v45, %v869_v42  ;;  %v5692_v45 = vld [vmem:[%s8543_s1 + $0x4] sm:$0x3]  ;;  %v1655_v42 = vld [vmem:[%s6462_s30 + $0x129] sm:$0x1] }
 0x1fb   : > { %v1754_v61 = vrot.slane %v1655_v42, 7 }
 0x1fc   : > { %v929_v46 = vadd.f32 %v927_v43, %v922_v44  ;;  %v1656_v43 = vld [vmem:[%s6462_s30 + $0x149] sm:$0x1] }
 0x1fd   : > { %v1657_v44 = vld [vmem:[%s6462_s30 + $0x169] sm:$0x1]  ;;  %v1756_v9 = vrot.slane %v1656_v43, 6 }
 0x1fe   : > { %5625 = vst.msk [vmem:[%s6982_s6 + $0x4] sm:$0xf] %vm581_vm9, %v929_v46  ;;  %v1741_v46 = vsel %vm286_vm0, %v1740_v30, %v1646_v28  ;;  %v1758_v1 = vrot.slane %v1657_v44, 5  ;;  %v1640_v28 = vld [vmem:[%s6462_s30 + $0x148] sm:$0x1] }
 0x1ff   : > { %v870_v47 = vpop.f32.mrf.mxu3  ;;  %v1710_v43 = vrot.slane %v1640_v28, 6  ;;  %v6186_v28 = vld [vmem:[%s8544_s2] sm:$0xff] }
 0x201   : > { %v7029_v21 = vpop.f32.mrf.mxu1 }
 0x207   : > { %v1156_v48 = vpop.f32.mrf.mxu3 }
 0x208   : > { %v1160_v49 = vpack.c.bf16 %v1156_v48, %v1156_v48 }
 0x209   : > { %v1219_v63 = vpop.f32.mrf.mxu1 }
 0x20a   : > { %5641 = vmatmul.msk.bf16.vlgmr.msrb.gmra.mxu0 %vm476_vm8, %v1160_v49  ;;  %v1658_v49 = vld [vmem:[%s6462_s30 + $0x189] sm:$0x1] }
 0x20b   : > { %1579 = vmatpush.bf16.msrb.mxu0 %v6906_v11  ;;  %v6183_v11 = vld [vmem:[%s8544_s2 + $0x18] sm:$0xff]  ;;  %v1760_v2 = vrot.slane %v1658_v49, 4 }
 0x20c   : > { %1535 = vmatpush.bf16.msrb.mxu2 %v6183_v11 }
 0x20f   : > { %v1158_v50 = vpop.f32.mrf.mxu3  ;;  %1580 = vmatpush.bf16.msrb.mxu0 %v1468_v6  ;;  %v1788_v6 = vrot.slane %v1664_v55, 6  ;;  %v1748_v55 = vrot.slane %v1651_v37, 3  ;;  %v1702_v37 = vrot.slane %v1635_v15, 3 }
 0x210   : > { %1536 = vmatpush.bf16.msrb.mxu2 %v6182_v51  ;;  %v1659_v50 = vld [vmem:[%s6462_s30 + $0x1a9] sm:$0x1] }
 0x211   : > { %v1789_v22 = vsel %vm289_vm1, %v1788_v6, %v1787_v14  ;;  %v1660_v51 = vld [vmem:[%s6462_s30 + $0x1c9] sm:$0x1]  ;;  %v1755_v6 = vsel %vm286_vm0, %v1754_v61, %v1654_v41  ;;  %v1634_v14 = vld [vmem:[%s6462_s30 + $0x88] sm:$0x1]  ;;  %v1505_v44 = vpop.f32.mrf.mxu1 }
 0x212   : > { %v1791_v25 = vsel %vm292_vm2, %v1790_v7, %v1789_v22  ;;  %v1762_v7 = vrot.slane %v1659_v50, 3  ;;  %v1764_v13 = vrot.slane %v1660_v51, 2  ;;  %v1766_v22 = vrot.slane %v1661_v58, 1  ;;  %v6181_v58 = vld [vmem:[%s8544_s2 + $0x8] sm:$0xff] }
 0x213   : > { %1581 = vmatpush.bf16.msrb.mxu0 %v1467_v31  ;;  %v1793_v16 = vsel %vm295_vm3, %v1792_v8, %v1791_v25  ;;  %v1805_v31 = vsel %vm292_vm2, %v1804_v17, %v1803_v26  ;;  %v1633_v8 = vld [vmem:[%s6462_s30 + $0x68] sm:$0x1]  ;;  %v1694_v17 = vrot.slane %v1631_v62, 7  ;;  %v1700_v34 = vrot.slane %v1634_v14, 4  ;;  %1563 = vmatpush.bf16.msrb.mxu3 %v6181_v58  ;;  %v1276_v14 = vpop.permute.xlu1 %1275 }
 0x214   : > { %v1795_v35 = vsel %vm298_vm4, %v1794_v10, %v1793_v16  ;;  %v1807_v36 = vsel %vm295_vm3, %v1806_v18, %v1805_v31  ;;  %v1638_v26 = vld [vmem:[%s6462_s30 + $0x108] sm:$0x1] }
 0x215   : > { %v1797_v40 = vsel %vm301_vm5, %v1796_v12, %v1795_v35  ;;  %v1809_v52 = vsel %vm298_vm4, %v1808_v3, %v1807_v36  ;;  %v1757_v12 = vsel %vm289_vm1, %v1756_v9, %v1755_v6  ;;  %v1695_v30 = vsel %vm286_vm0, %v1694_v17, %v1630_v38  ;;  %v1642_v31 = vld [vmem:[%s6462_s30 + $0x188] sm:$0x1]  ;;  %v1819_v38 = vld [vmem:[%s8543_s1] sm:$0x3] }
 0x216   : > { %v1799_v47 = vsel %vm304_vm6, %v1798_v23, %v1797_v40  ;;  %v1811_v48 = vsel %vm301_vm5, %v1810_v27, %v1809_v52  ;;  %v1759_v20 = vsel %vm292_vm2, %v1758_v1, %v1757_v12  ;;  %v1636_v23 = vld [vmem:[%s6462_s30 + $0xc8] sm:$0x1]  ;;  %v1714_v50 = vrot.slane %v1642_v31, 4  ;;  %v1621_v17 = vld [vmem:[%s8545_s3] sm:$0xf] }
 0x217   : > { %v1813_v11 = vsel %vm304_vm6, %v1812_v32, %v1811_v48  ;;  %v1761_v25 = vsel %vm295_vm3, %v1760_v2, %v1759_v20  ;;  %v1639_v27 = vld [vmem:[%s6462_s30 + $0x128] sm:$0x1]  ;;  %v1696_v32 = vrot.slane %v1632_v4, 6  ;;  %v1704_v39 = vrot.slane %v1636_v23, 2  ;;  %v1267_v9 = vpop.f32.mrf.mxu3  ;;  %v6180_v4 = vld [vmem:[%s8544_s2] sm:$0xff]  ;;  %1624 = vperm.xlu1 %6296, %v1621_v17  }
 0x218   : > { %v7059_v57 = vpack.c.bf16 %v1813_v11, %v1799_v47  ;;  %v1763_v16 = vsel %vm298_vm4, %v1762_v7, %v1761_v25  ;;  %v1643_v36 = vld [vmem:[%s6462_s30 + $0x1a8] sm:$0x1]  ;;  %v1708_v42 = vrot.slane %v1639_v27, 7  ;;  %1564 = vmatpush.bf16.msrb.mxu3 %v6180_v4  ;;  %v2011_v31 = vld [vmem:[%s6462_s30 + $0xc] sm:$0x1] }
 0x219   : > { %v1765_v35 = vsel %vm301_vm5, %v1764_v13, %v1763_v16  ;;  %v1644_v52 = vld [vmem:[%s6462_s30 + $0x1c8] sm:$0x1]  ;;  %v1697_v41 = vsel %vm289_vm1, %v1696_v32, %v1695_v30  ;;  %v1716_v51 = vrot.slane %v1643_v36, 3  ;;  %v5733_v13 = vld [vmem:[%s8543_s1 + $0x4] sm:$0x3] }
 0x21a   : > { %5667 = vmatmul.msk.bf16.vlgmr.msra.gmra.mxu0 %vm418_vm7, %v1470_v19  ;;  %v1742_v19 = vrot.slane %v1648_v29, 6  ;;  %1828 = vmatpush.bf16.msra.mxu2 %v7059_v57  ;;  %v1641_v29 = vld [vmem:[%s6462_s30 + $0x168] sm:$0x1]  ;;  %v1767_v40 = vsel %vm304_vm6, %v1766_v22, %v1765_v35  ;;  %v1709_v11 = vsel %vm286_vm0, %v1708_v42, %v1638_v26  ;;  %v2013_v30 = vld [vmem:[%s6462_s30 + $0x4c] sm:$0x1] }
 0x21b   : > { %v1645_v47 = vld [vmem:[%s6462_s30 + $0x1e8] sm:$0x1]  ;;  %v1712_v49 = vrot.slane %v1641_v29, 5  ;;  %v2012_v29 = vld [vmem:[%s6462_s30 + $0x2c] sm:$0x1] }
 0x21c   : > { %v1743_v59 = vsel %vm289_vm1, %v1742_v19, %v1741_v46  ;;  %v1509_v19 = vpack.c.bf16 %v1505_v44, %v1505_v44  ;;  %v1720_v61 = vrot.slane %v1645_v47, 1  ;;  %1850 = vmatpush.bf16.msra.mxu3 %v7059_v57  ;;  %v6187_v27 = vld [vmem:[%s8544_s2 + $0x8] sm:$0xff]  ;;  %v2135_v42 = vrot.slane %v2012_v29, 7 }
 0x21d   : > { %v2014_v16 = vld [vmem:[%s6462_s30 + $0x6c] sm:$0x1]  ;;  %v2004_v17 = vld [vmem:[%s6462_s30 + $0x12b] sm:$0x1] }
 0x21e   : > { %5682 = vmatmul.msk.bf16.vlgmr.msrb.gmra.mxu2 %vm476_vm8, %v1509_v19  ;;  %v2015_v32 = vld [vmem:[%s6462_s30 + $0x8c] sm:$0x1]  ;;  %v2139_v44 = vrot.slane %v2014_v16, 5  ;;  %v2136_v19 = vsel %vm286_vm0, %v2135_v42, %v2011_v31 }
 0x21f   : > { %v1269_v7 = vpop.f32.mrf.mxu3  ;;  %v2018_v35 = vld [vmem:[%s6462_s30 + $0xec] sm:$0x1]  ;;  %v2141_v47 = vrot.slane %v2015_v32, 4  ;;  %v2010_v32 = vld [vmem:[%s6462_s30 + $0x1eb] sm:$0x1] }
 0x220   : > { %v2019_v36 = vld [vmem:[%s6462_s30 + $0x10c] sm:$0x1]  ;;  %v2147_v58 = vrot.slane %v2018_v35, 1  ;;  %v1999_v7 = vld [vmem:[%s6462_s30 + $0x8b] sm:$0x1]  ;;  %v2103_v35 = vrot.slane %v2004_v17, 7 }
 0x221   : > { %v2095_v29 = vrot.slane %v1999_v7, 4 }
 0x22a   : > { %5693 = vmatmul.msk.bf16.vlgmr.msrb.gmra.mxu0 %vm418_vm7, %v5692_v45  ;;  %v1744_v45 = vrot.slane %v1649_v33, 5  ;;  %v1698_v33 = vrot.slane %v1633_v8, 5  ;;  %v6185_v8 = vld [vmem:[%s8544_s2 + $0x28] sm:$0xff] }
 0x22b   : > { %1613 = vmatpush.bf16.msrb.mxu1 %v6185_v8 }
 0x22c   : > { %v1745_v0 = vsel %vm292_vm2, %v1744_v45, %v1743_v59  ;;  %v1699_v48 = vsel %vm292_vm2, %v1698_v33, %v1697_v41  ;;  %v2016_v33 = vld [vmem:[%s6462_s30 + $0xac] sm:$0x1] }
 0x22d   : > { %v1747_v5 = vsel %vm295_vm3, %v1746_v54, %v1745_v0  ;;  %v1701_v45 = vsel %vm295_vm3, %v1700_v34, %v1699_v48  ;;  %v2017_v34 = vld [vmem:[%s6462_s30 + $0xcc] sm:$0x1]  ;;  %v2143_v48 = vrot.slane %v2016_v33, 3 }
 0x22e   : > { %v1749_v10 = vsel %vm298_vm4, %v1748_v55, %v1747_v5  ;;  %v1703_v54 = vsel %vm298_vm4, %v1702_v37, %v1701_v45  ;;  %v1711_v55 = vsel %vm289_vm1, %v1710_v43, %v1709_v11  ;;  %v1507_v5 = vpop.f32.mrf.mxu1  ;;  %v2020_v37 = vld [vmem:[%s6462_s30 + $0x12c] sm:$0x1]  ;;  %v2137_v43 = vrot.slane %v2013_v30, 6 }
 0x22f   : > { %v1751_v18 = vsel %vm301_vm5, %v1750_v56, %v1749_v10  ;;  %v1718_v56 = vrot.slane %v1644_v52, 2  ;;  %v1705_v59 = vsel %vm301_vm5, %v1704_v39, %v1703_v54  ;;  %v2021_v39 = vld [vmem:[%s6462_s30 + $0x14c] sm:$0x1]  ;;  %v1996_v54 = vld [vmem:[%s6462_s30 + $0x2b] sm:$0x1] }
 0x230   : > { %v1753_v3 = vsel %vm304_vm6, %v1752_v60, %v1751_v18  ;;  %v1713_v60 = vsel %vm292_vm2, %v1712_v49, %v1711_v55  ;;  %v1707_v63 = vsel %vm304_vm6, %v1706_v53, %v1705_v59  ;;  %v2022_v53 = vld [vmem:[%s6462_s30 + $0x16c] sm:$0x1]  ;;  %v2145_v49 = vrot.slane %v2017_v34, 2 }
 0x231   : > { %v1817_v46 = vpack.c.bf16 %v1767_v40, %v1753_v3  ;;  %v1715_v62 = vsel %vm295_vm3, %v1714_v50, %v1713_v60  ;;  %v5709_v3 = vld [vmem:[%s8543_s1 + $0x2] sm:$0x3]  ;;  %v2023_v40 = vld [vmem:[%s6462_s30 + $0x18c] sm:$0x1]  ;;  %v2149_v50 = vrot.slane %v2020_v37, 7  ;;  %v2151_v45 = vrot.slane %v2021_v39, 6 }
 0x232   : > { %v1717_v0 = vsel %vm298_vm4, %v1716_v51, %v1715_v62  ;;  %v2024_v52 = vld [vmem:[%s6462_s30 + $0x1ac] sm:$0x1]  ;;  %v2153_v11 = vrot.slane %v2022_v53, 5  ;;  %v2155_v51 = vrot.slane %v2023_v40, 4 }
 0x233   : > { %1829 = vmatpush.bf16.msra.mxu2 %v1817_v46  ;;  %v1719_v1 = vsel %vm301_vm5, %v1718_v56, %v1717_v0  ;;  %1851 = vmatpush.bf16.msra.mxu3 %v1817_v46  ;;  %v2025_v41 = vld [vmem:[%s6462_s30 + $0x1cc] sm:$0x1]  ;;  %v2138_v56 = vsel %vm289_vm1, %v2137_v43, %v2136_v19  ;;  %v2150_v59 = vsel %vm286_vm0, %v2149_v50, %v2019_v36  ;;  %v2157_v60 = vrot.slane %v2024_v52, 3  ;;  %v1995_v0 = vld [vmem:[%s6462_s30 + $0xb] sm:$0x1] }
 0x234   : > { %v1721_v2 = vsel %vm304_vm6, %v1720_v61, %v1719_v1  ;;  %v2140_v61 = vsel %vm292_vm2, %v2139_v44, %v2138_v56  ;;  %v2152_v62 = vsel %vm289_vm1, %v2151_v45, %v2150_v59  ;;  %v2089_v1 = vrot.slane %v1996_v54, 7  ;;  %v1980_v36 = vld [vmem:[%s6462_s30 + $0x2a] sm:$0x1] }
 0x235   : > { %v1816_v6 = vpack.c.bf16 %v1721_v2, %v1707_v63  ;;  %v2159_v63 = vrot.slane %v2025_v41, 2  ;;  %v2142_v2 = vsel %vm295_vm3, %v2141_v47, %v2140_v61  ;;  %v2154_v4 = vsel %vm292_vm2, %v2153_v11, %v2152_v62  ;;  %v1981_v41 = vld [vmem:[%s6462_s30 + $0x4a] sm:$0x1] }
 0x236   : > { %v2156_v8 = vsel %vm295_vm3, %v2155_v51, %v2154_v4  ;;  %v1982_v47 = vld [vmem:[%s6462_s30 + $0x6a] sm:$0x1]  ;;  %v2043_v11 = vrot.slane %v1980_v36, 7  ;;  %v2115_v56 = vrot.slane %v2010_v32, 1 }
 0x237   : > { %1830 = vmatpush.bf16.msra.mxu2 %v1816_v6  ;;  %1852 = vmatpush.bf16.msra.mxu3 %v1816_v6  ;;  %v1983_v19 = vld [vmem:[%s6462_s30 + $0x8a] sm:$0x1] }
 0x238   : > { %v1984_v45 = vld [vmem:[%s6462_s30 + $0xaa] sm:$0x1]  ;;  %v2049_v7 = vrot.slane %v1983_v19, 4 }
 0x239   : > { %v1986_v59 = vld [vmem:[%s6462_s30 + $0xea] sm:$0x1] }
 0x23a   : > { %5708 = vmatmul.msk.bf16.vlgmr.msra.gmra.mxu2 %vm418_vm7, %v1819_v38  ;;  %v2144_v38 = vsel %vm298_vm4, %v2143_v48, %v2142_v2  ;;  %v1987_v62 = vld [vmem:[%s6462_s30 + $0x10a] sm:$0x1] }
 0x23b   : > { %1928 = vmatpush.bf16.msrb.mxu2 %v7059_v57  ;;  %v6184_v57 = vld [vmem:[%s8544_s2 + $0x20] sm:$0xff]  ;;  %v1991_v4 = vld [vmem:[%s6462_s30 + $0x18a] sm:$0x1] }
 0x23c   : > { %1614 = vmatpush.bf16.msrb.mxu1 %v6184_v57  ;;  %v2000_v57 = vld [vmem:[%s6462_s30 + $0xab] sm:$0x1] }
 0x23d   : > { %v2097_v30 = vrot.slane %v2000_v57, 3  ;;  %v2051_v57 = vrot.slane %v1984_v45, 3 }
 0x23f   : > { %1929 = vmatpush.bf16.msrb.mxu2 %v1817_v46  ;;  %v2026_v46 = vld [vmem:[%s6462_s30 + $0x1ec] sm:$0x1] }
 0x240   : > { %1912 = vmatpush.bf16.msra.mxu1 %v6187_v27  ;;  %v2161_v5 = vrot.slane %v2026_v46, 1  ;;  %v1979_v46 = vld [vmem:[%s6462_s30 + $0xa] sm:$0x1] }
 0x243   : > { %1930 = vmatpush.bf16.msrb.mxu2 %v1816_v6  ;;  %v1998_v6 = vld [vmem:[%s6462_s30 + $0x6b] sm:$0x1] }
 0x244   : > { %1913 = vmatpush.bf16.msra.mxu1 %v6186_v28  ;;  %v2009_v28 = vld [vmem:[%s6462_s30 + $0x1cb] sm:$0x1] }
 0x245   : > { %v2113_v50 = vrot.slane %v2009_v28, 2 }
 0x24a   : > { %5734 = vmatmul.msk.bf16.vlgmr.msrb.gmra.mxu2 %vm418_vm7, %v5733_v13  ;;  %v2146_v13 = vsel %vm301_vm5, %v2145_v49, %v2144_v38 }
 0x287   : > { %v1189_v10 = vpop.f32.mrf.mxu0 }
 0x288   : > { %v1218_v12 = vadd.f32 %v7029_v21, %v1189_v10  ;;  %v2001_v10 = vld [vmem:[%s6462_s30 + $0xcb] sm:$0x1] }
 0x289   : > { %v2099_v16 = vrot.slane %v2001_v10, 2 }
 0x28a   : > { %v1271_v15 = vadd.f32 %v1267_v9, %v1218_v12  ;;  %v1997_v9 = vld [vmem:[%s6462_s30 + $0x4b] sm:$0x1] }
 0x28b   : > { %v2002_v12 = vld [vmem:[%s6462_s30 + $0xeb] sm:$0x1] }
 0x28c   : > { %v1278_v18 = vadd.f32 %v1276_v14, %v1271_v15  ;;  %v2158_v14 = vsel %vm298_vm4, %v2157_v60, %v2156_v8  ;;  %v2003_v15 = vld [vmem:[%s6462_s30 + $0x10b] sm:$0x1]  ;;  %v2101_v34 = vrot.slane %v2002_v12, 1  ;;  %v1992_v8 = vld [vmem:[%s6462_s30 + $0x1aa] sm:$0x1]  ;;  %v2055_v12 = vrot.slane %v1986_v59, 1 }
 0x28d   : > { %v2104_v43 = vsel %vm286_vm0, %v2103_v35, %v2003_v15 }
 0x28e   : > { %5666 = vst.msk [vmem:[%s6982_s6 + $0x8] sm:$0xf] %vm581_vm9, %v1278_v18  ;;  %v2005_v18 = vld [vmem:[%s6462_s30 + $0x14b] sm:$0x1] }
 0x28f   : > { %v1191_v20 = vpop.f32.mrf.mxu0  ;;  %v2105_v53 = vrot.slane %v2005_v18, 6 }
 0x290   : > { %v2006_v20 = vld [vmem:[%s6462_s30 + $0x16b] sm:$0x1] }
 0x291   : > { %v2107_v40 = vrot.slane %v2006_v20, 5  ;;  %v2106_v49 = vsel %vm289_vm1, %v2105_v53, %v2104_v43  ;;  %v6191_v53 = vld [vmem:[%s8544_s2 + $0x28] sm:$0xff]  ;;  %v6190_v43 = vld [vmem:[%s8544_s2 + $0x20] sm:$0xff] }
 0x293   : > { %v2108_v54 = vsel %vm292_vm2, %v2107_v40, %v2106_v49 }
 0x297   : > { %v1483_v21 = vpop.f32.mrf.mxu0 }
 0x298   : > { %v1487_v22 = vpack.c.bf16 %v1483_v21, %v1483_v21  ;;  %v2090_v21 = vsel %vm286_vm0, %v2089_v1, %v1995_v0  ;;  %v1989_v0 = vld [vmem:[%s6462_s30 + $0x14a] sm:$0x1]  ;;  %v2044_v1 = vsel %vm286_vm0, %v2043_v11, %v1979_v46  ;;  %v5750_v46 = vld [vmem:[%s8543_s1 + $0x2] sm:$0x3] }
 0x299   : > { %v2059_v18 = vrot.slane %v1989_v0, 6  ;;  %v6194_v0 = vld [vmem:[%s8544_s2 + $0x10] sm:$0xff] }
 0x29a   : > { %5691 = vmatmul.msk.bf16.vlgmr.msrb.gmra.mxu3 %vm476_vm8, %v1487_v22  ;;  %v2148_v22 = vsel %vm304_vm6, %v2147_v58, %v2146_v13  ;;  %v1985_v58 = vld [vmem:[%s6462_s30 + $0xca] sm:$0x1] }
 0x29b   : > { %v2053_v10 = vrot.slane %v1985_v58, 2  ;;  %1962 = vmatpush.bf16.msrb.mxu3 %v6191_v53  ;;  %v2346_v53 = vld [vmem:[%s6462_s30 + $0x4d] sm:$0x1] }
 0x29f   : > { %v1485_v23 = vpop.f32.mrf.mxu0  ;;  %1963 = vmatpush.bf16.msrb.mxu3 %v6190_v43  ;;  %v2347_v43 = vld [vmem:[%s6462_s30 + $0x6d] sm:$0x1] }
 0x2a0   : > { %v2160_v23 = vsel %vm301_vm5, %v2159_v63, %v2158_v14  ;;  %v1988_v63 = vld [vmem:[%s6462_s30 + $0x12a] sm:$0x1] }
 0x2a1   : > { %v7165_v55 = vpop.f32.mrf.mxu2  ;;  %v2162_v27 = vsel %vm304_vm6, %v2161_v5, %v2160_v23  ;;  %v2045_v5 = vrot.slane %v1981_v41, 6  ;;  %v1993_v14 = vld [vmem:[%s6462_s30 + $0x1ca] sm:$0x1]  ;;  %v2057_v17 = vrot.slane %v1988_v63, 7  ;;  %v6195_v63 = vld [vmem:[%s8544_s2 + $0x18] sm:$0xff] }
 0x2a2   : > { %v7195_v31 = vpack.c.bf16 %v2162_v27, %v2148_v22  ;;  %v1994_v22 = vld [vmem:[%s6462_s30 + $0x1ea] sm:$0x1]  ;;  %v2067_v32 = vrot.slane %v1993_v14, 2  ;;  %2233 = vmatpush.bf16.msra.mxu2 %v6195_v63  ;;  %v2373_v14 = vld [vmem:[%s6462_s30 + $0x1ae] sm:$0x1] }
 0x2a3   : > { %v2046_v15 = vsel %vm289_vm1, %v2045_v5, %v2044_v1  ;;  %v2058_v28 = vsel %vm286_vm0, %v2057_v17, %v1987_v62  ;;  %v2069_v35 = vrot.slane %v1994_v22, 1  ;;  %v2168_v62 = vld [vmem:[%s8543_s1] sm:$0x3]  ;;  %v2362_v1 = vld [vmem:[%s6462_s30 + $0x4e] sm:$0x1] }
 0x2a4   : > { %v2364_v5 = vld [vmem:[%s6462_s30 + $0x8e] sm:$0x1] }
 0x2a5   : > { %v2490_v22 = vrot.slane %v2364_v5, 4  ;;  %v2359_v5 = vld [vmem:[%s6462_s30 + $0x1ed] sm:$0x1] }
 0x2a6   : > { %2234 = vmatpush.bf16.msra.mxu2 %v6194_v0  ;;  %v2358_v0 = vld [vmem:[%s6462_s30 + $0x1cd] sm:$0x1] }
 0x2a7   : > { %v1583_v24 = vpop.f32.mrf.mxu0 }
 0x2a8   : > { %v1587_v25 = vpack.c.bf16 %v1583_v24, %v1583_v24  ;;  %v2007_v24 = vld [vmem:[%s6462_s30 + $0x18b] sm:$0x1] }
 0x2a9   : > { %v1540_v37 = vpop.f32.mrf.mxu2  ;;  %v2109_v52 = vrot.slane %v2007_v24, 4 }
 0x2aa   : > { %5706 = vmatmul.msk.bf16.vlgmr.msrb.gmra.mxu1 %vm476_vm8, %v1587_v25  ;;  %5710 = vmatmul.msk.bf16.vlgmr.msra.gmra.mxu3 %vm418_vm7, %v5709_v3  ;;  %v2008_v3 = vld [vmem:[%s6462_s30 + $0x1ab] sm:$0x1]  ;;  %v2091_v25 = vrot.slane %v1997_v9, 6  ;;  %v1990_v9 = vld [vmem:[%s6462_s30 + $0x16a] sm:$0x1] }
 0x2ab   : > { %2199 = vmatpush.bf16.msrb.mxu1 %v7195_v31  ;;  %v2111_v44 = vrot.slane %v2008_v3, 3  ;;  %v2110_v61 = vsel %vm295_vm3, %v2109_v52, %v2108_v54  ;;  %v2061_v24 = vrot.slane %v1990_v9, 5  ;;  %v2063_v3 = vrot.slane %v1991_v4, 4  ;;  %v2361_v9 = vld [vmem:[%s6462_s30 + $0x2e] sm:$0x1] }
 0x2ac   : > { %v2092_v33 = vsel %vm289_vm1, %v2091_v25, %v2090_v21  ;;  %v6189_v25 = vld [vmem:[%s8544_s2 + $0x18] sm:$0xff]  ;;  %v2360_v4 = vld [vmem:[%s6462_s30 + $0xe] sm:$0x1]  ;;  %v2484_v17 = vrot.slane %v2361_v9, 7 }
 0x2ad   : > { %v2112_v2 = vsel %vm298_vm4, %v2111_v44, %v2110_v61  ;;  %1884 = vmatpush.bf16.msra.mxu0 %v6189_v25  ;;  %v6188_v44 = vld [vmem:[%s8544_s2 + $0x10] sm:$0xff]  ;;  %v1970_v61 = vld [vmem:[%s8545_s3] sm:$0xf] }
 0x2ae   : > { %v2114_v38 = vsel %vm301_vm5, %v2113_v50, %v2112_v2  ;;  %1973 = vperm.xlu2 %6297, %v1970_v61   ;;  %v2363_v2 = vld [vmem:[%s6462_s30 + $0x6e] sm:$0x1]  ;;  %v2485_v25 = vsel %vm286_vm0, %v2484_v17, %v2360_v4  ;;  %v2356_v61 = vld [vmem:[%s6462_s30 + $0x18d] sm:$0x1] }
 0x2af   : > { %v1585_v26 = vpop.f32.mrf.mxu0  ;;  %v2116_v13 = vsel %vm304_vm6, %v2115_v56, %v2114_v38  ;;  %v2367_v38 = vld [vmem:[%s6462_s30 + $0xee] sm:$0x1] }
 0x2b0   : > { %v2093_v26 = vrot.slane %v1998_v6, 5  ;;  %v2047_v6 = vrot.slane %v1982_v47, 5 }
 0x2b1   : > { %1885 = vmatpush.bf16.msra.mxu0 %v6188_v44  ;;  %v2348_v44 = vld [vmem:[%s6462_s30 + $0x8d] sm:$0x1] }
 0x2b2   : > { %v2094_v39 = vsel %vm292_vm2, %v2093_v26, %v2092_v33  ;;  %v2048_v23 = vsel %vm292_vm2, %v2047_v6, %v2046_v15  ;;  %v2365_v6 = vld [vmem:[%s6462_s30 + $0xae] sm:$0x1]  ;;  %v2444_v9 = vrot.slane %v2348_v44, 4 }
 0x2b3   : > { %v2096_v42 = vsel %vm295_vm3, %v2095_v29, %v2094_v39  ;;  %v2050_v27 = vsel %vm295_vm3, %v2049_v7, %v2048_v23  ;;  %v2065_v29 = vrot.slane %v1992_v8, 3  ;;  %v2366_v7 = vld [vmem:[%s6462_s30 + $0xce] sm:$0x1]  ;;  %v2492_v23 = vrot.slane %v2365_v6, 3 }
 0x2b4   : > { %v2098_v48 = vsel %vm298_vm4, %v2097_v30, %v2096_v42  ;;  %v2052_v30 = vsel %vm298_vm4, %v2051_v57, %v2050_v27  ;;  %v2368_v8 = vld [vmem:[%s6462_s30 + $0x10e] sm:$0x1] }
 0x2b5   : > { %v2100_v51 = vsel %vm301_vm5, %v2099_v16, %v2098_v48  ;;  %v2060_v16 = vsel %vm289_vm1, %v2059_v18, %v2058_v28  ;;  %v2054_v33 = vsel %vm301_vm5, %v2053_v10, %v2052_v30  ;;  %2177 = vmatpush.bf16.msrb.mxu0 %v7195_v31  ;;  %v2369_v57 = vld [vmem:[%s6462_s30 + $0x12e] sm:$0x1]  ;;  %v2486_v18 = vrot.slane %v2362_v1, 6 }
 0x2b6   : > { %v2102_v60 = vsel %vm304_vm6, %v2101_v34, %v2100_v51  ;;  %v2062_v34 = vsel %vm292_vm2, %v2061_v24, %v2060_v16  ;;  %v2056_v37 = vsel %vm304_vm6, %v2055_v12, %v2054_v33  ;;  %v1625_v51 = vpop.permute.xlu1 %1624  ;;  %v2370_v10 = vld [vmem:[%s6462_s30 + $0x14e] sm:$0x1]  ;;  %v2494_v24 = vrot.slane %v2366_v7, 2 }
 0x2b7   : > { %v2166_v21 = vpack.c.bf16 %v2116_v13, %v2102_v60  ;;  %v2064_v36 = vsel %vm295_vm3, %v2063_v3, %v2062_v34  ;;  %v2371_v12 = vld [vmem:[%s6462_s30 + $0x16e] sm:$0x1]  ;;  %v2498_v3 = vrot.slane %v2369_v57, 7  ;;  %v2487_v16 = vsel %vm289_vm1, %v2486_v18, %v2485_v25  ;;  %v2332_v25 = vld [vmem:[%s6462_s30 + $0x8c] sm:$0x1] }
 0x2b8   : > { %v2066_v39 = vsel %vm298_vm4, %v2065_v29, %v2064_v36  ;;  %v2372_v13 = vld [vmem:[%s6462_s30 + $0x18e] sm:$0x1]  ;;  %v2502_v27 = vrot.slane %v2371_v12, 5  ;;  %v2345_v29 = vld [vmem:[%s6462_s30 + $0x2d] sm:$0x1]  ;;  %v2506_v34 = vrot.slane %v2373_v14, 3 }
 0x2b9   : > { %2200 = vmatpush.bf16.msrb.mxu1 %v2166_v21  ;;  %v2068_v40 = vsel %vm301_vm5, %v2067_v32, %v2066_v39  ;;  %2178 = vmatpush.bf16.msrb.mxu0 %v2166_v21  ;;  %v2374_v15 = vld [vmem:[%s6462_s30 + $0x1ce] sm:$0x1]  ;;  %v2504_v28 = vrot.slane %v2372_v13, 4  ;;  %v2496_v32 = vrot.slane %v2367_v38, 1  ;;  %v2499_v33 = vsel %vm286_vm0, %v2498_v3, %v2368_v8  ;;  %v2344_v39 = vld [vmem:[%s6462_s30 + $0xd] sm:$0x1] }
 0x2ba   : > { %v2070_v52 = vsel %vm304_vm6, %v2069_v35, %v2068_v40  ;;  %v2438_v40 = vrot.slane %v2345_v29, 7  ;;  %v2329_v8 = vld [vmem:[%s6462_s30 + $0x2c] sm:$0x1]  ;;  %v2458_v14 = vrot.slane %v2356_v61, 4  ;;  %v2462_v3 = vrot.slane %v2358_v0, 2 }
 0x2bb   : > { %v2165_v42 = vpack.c.bf16 %v2070_v52, %v2056_v37  ;;  %v2508_v37 = vrot.slane %v2374_v15, 2  ;;  %v2330_v15 = vld [vmem:[%s6462_s30 + $0x4c] sm:$0x1]  ;;  %v2398_v44 = vrot.slane %v2332_v25, 4 }
 0x2bd   : > { %v1832_v20 = vpop.f32.mrf.mxu2  ;;  %2201 = vmatpush.bf16.msrb.mxu1 %v2165_v42  ;;  %2179 = vmatpush.bf16.msrb.mxu0 %v2165_v42 }
 0x2be   : > { %v1836_v26 = vpack.c.bf16 %v1832_v20, %v1832_v20  ;;  %v2488_v20 = vrot.slane %v2363_v2, 5 }
 0x2c0   : > { %5732 = vmatmul.msk.bf16.vlgmr.msra.gmra.mxu1 %vm476_vm8, %v1836_v26  ;;  %v2500_v26 = vrot.slane %v2370_v10, 6  ;;  %v2489_v35 = vsel %vm292_vm2, %v2488_v20, %v2487_v16  ;;  %v2464_v16 = vrot.slane %v2359_v5, 1  ;;  %v6193_v5 = vld [vmem:[%s8544_s2 + $0x8] sm:$0xff] }
 0x2c1   : > { %v2491_v52 = vsel %vm295_vm3, %v2490_v22, %v2489_v35  ;;  %v2331_v22 = vld [vmem:[%s6462_s30 + $0x6c] sm:$0x1]  ;;  %2261 = vmatpush.bf16.msra.mxu3 %v6193_v5 }
 0x2c2   : > { %v2501_v36 = vsel %vm289_vm1, %v2500_v26, %v2499_v33  ;;  %v2333_v26 = vld [vmem:[%s6462_s30 + $0xac] sm:$0x1] }
 0x2c3   : > { %v2335_v33 = vld [vmem:[%s6462_s30 + $0xec] sm:$0x1] }
 0x2c5   : > { %v1834_v41 = vpop.f32.mrf.mxu2 }
 0x2c6   : > { %v2503_v41 = vsel %vm292_vm2, %v2502_v27, %v2501_v36  ;;  %v2392_v27 = vrot.slane %v2329_v8, 7  ;;  %v2336_v36 = vld [vmem:[%s6462_s30 + $0x10c] sm:$0x1] }
 0x2cd   : > { %v1932_v47 = vpop.f32.mrf.mxu2 }
 0x2ce   : > { %v1936_v48 = vpack.c.bf16 %v1932_v47, %v1932_v47  ;;  %v2505_v47 = vsel %vm295_vm3, %v2504_v28, %v2503_v41  ;;  %v2340_v41 = vld [vmem:[%s6462_s30 + $0x18c] sm:$0x1] }
 0x2d0   : > { %5751 = vmatmul.msk.bf16.vlgmr.msrb.gmra.mxu1 %vm418_vm7, %v5750_v46  ;;  %5747 = vmatmul.msk.bf16.vlgmr.msrb.gmra.mxu3 %vm476_vm8, %v1936_v48  ;;  %v2493_v46 = vsel %vm298_vm4, %v2492_v23, %v2491_v52  ;;  %v2349_v48 = vld [vmem:[%s6462_s30 + $0xad] sm:$0x1] }
 0x2d1   : > { %v2446_v1 = vrot.slane %v2349_v48, 3  ;;  %v2400_v48 = vrot.slane %v2333_v26, 3 }
 0x2d5   : > { %v1934_v49 = vpop.f32.mrf.mxu2 }
 0x2d6   : > { %v2350_v49 = vld [vmem:[%s6462_s30 + $0xcd] sm:$0x1] }
 0x2d7   : > { %v2448_v2 = vrot.slane %v2350_v49, 2 }
 0x308   : > { %v1974_v25 = vpop.permute.xlu2 %1973 }
 0x31d   : > { %v1566_v50 = vpop.f32.mrf.mxu3 }
 0x31e   : > { %v1567_v45 = vadd.f32 %v1566_v50, %v7165_v55  ;;  %v2351_v50 = vld [vmem:[%s6462_s30 + $0xed] sm:$0x1] }
 0x31f   : > { %v2450_v7 = vrot.slane %v2351_v50, 1  ;;  %v2404_v50 = vrot.slane %v2335_v33, 1 }
 0x325   : > { %v1568_v19 = vpop.f32.mrf.mxu3 }
 0x326   : > { %v2495_v19 = vsel %vm301_vm5, %v2494_v24, %v2493_v46 }
 0x327   : > { %v1616_v11 = vpop.f32.mrf.mxu1 }
 0x328   : > { %v1620_v54 = vadd.f32 %v1616_v11, %v1567_v45  ;;  %v2507_v45 = vsel %vm298_vm4, %v2506_v34, %v2505_v47  ;;  %v2352_v11 = vld [vmem:[%s6462_s30 + $0x10d] sm:$0x1]  ;;  %v2341_v47 = vld [vmem:[%s6462_s30 + $0x1ac] sm:$0x1] }
 0x329   : > { %v2414_v0 = vrot.slane %v2341_v47, 3  ;;  %v2717_v47 = vld [vmem:[%s6462_s30 + $0x110] sm:$0x1] }
 0x32a   : > { %v1627_v56 = vadd.f32 %v1625_v51, %v1620_v54  ;;  %v2353_v51 = vld [vmem:[%s6462_s30 + $0x12d] sm:$0x1] }
 0x32b   : > { %v2354_v54 = vld [vmem:[%s6462_s30 + $0x14d] sm:$0x1]  ;;  %v2452_v38 = vrot.slane %v2353_v51, 7 }
 0x32c   : > { %5707 = vst.msk [vmem:[%s6982_s6 + $0xc] sm:$0xf] %vm581_vm9, %v1627_v56  ;;  %v2355_v56 = vld [vmem:[%s6462_s30 + $0x16d] sm:$0x1]  ;;  %v2454_v12 = vrot.slane %v2354_v54, 6 }
 0x32d   : > { %v1854_v58 = vpop.f32.mrf.mxu3  ;;  %v2456_v13 = vrot.slane %v2355_v56, 5  ;;  %v2453_v18 = vsel %vm286_vm0, %v2452_v38, %v2352_v11 }
 0x32e   : > { %v1858_v59 = vpack.c.bf16 %v1854_v58, %v1854_v58  ;;  %v2439_v58 = vsel %vm286_vm0, %v2438_v40, %v2344_v39  ;;  %v2455_v24 = vsel %vm289_vm1, %v2454_v12, %v2453_v18  ;;  %v2338_v39 = vld [vmem:[%s6462_s30 + $0x14c] sm:$0x1] }
 0x32f   : > { %v1618_v60 = vpop.f32.mrf.mxu1  ;;  %v2457_v29 = vsel %vm292_vm2, %v2456_v13, %v2455_v24  ;;  %v2408_v54 = vrot.slane %v2338_v39, 6  ;;  %v6198_v39 = vld [vmem:[%s8544_s2] sm:$0xff] }
 0x330   : > { %5723 = vmatmul.msk.bf16.vlgmr.msra.gmra.mxu0 %vm476_vm8, %v1858_v59  ;;  %v2497_v59 = vsel %vm304_vm6, %v2496_v32, %v2495_v19  ;;  %v2509_v60 = vsel %vm301_vm5, %v2508_v37, %v2507_v45  ;;  %v2334_v32 = vld [vmem:[%s6462_s30 + $0xcc] sm:$0x1]  ;;  %v2459_v35 = vsel %vm295_vm3, %v2458_v14, %v2457_v29 }
 0x331   : > { %2277 = vmatpush.bf16.msra.mxu0 %v7195_v31  ;;  %v5774_v31 = vld [vmem:[%s8543_s1 + $0x4] sm:$0x3]  ;;  %v2337_v37 = vld [vmem:[%s6462_s30 + $0x12c] sm:$0x1]  ;;  %v2402_v49 = vrot.slane %v2334_v32, 2 }
 0x332   : > { %v2342_v45 = vld [vmem:[%s6462_s30 + $0x1cc] sm:$0x1]  ;;  %v2406_v51 = vrot.slane %v2337_v37, 7 }
 0x333   : > { %v6199_v37 = vld [vmem:[%s8544_s2 + $0x8] sm:$0xff] }
 0x335   : > { %v1856_v55 = vpop.f32.mrf.mxu3  ;;  %2278 = vmatpush.bf16.msra.mxu0 %v2166_v21  ;;  %v2375_v21 = vld [vmem:[%s6462_s30 + $0x1ee] sm:$0x1] }
 0x336   : > { %v2357_v55 = vld [vmem:[%s6462_s30 + $0x1ad] sm:$0x1] }
 0x337   : > { %v2460_v20 = vrot.slane %v2357_v55, 3  ;;  %v2412_v55 = vrot.slane %v2340_v41, 4  ;;  %v2709_v41 = vld [vmem:[%s6462_s30 + $0x10] sm:$0x1] }
 0x339   : > { %2279 = vmatpush.bf16.msra.mxu0 %v2165_v42  ;;  %v2510_v42 = vrot.slane %v2375_v21, 1  ;;  %v2328_v21 = vld [vmem:[%s6462_s30 + $0xc] sm:$0x1]  ;;  %v2461_v52 = vsel %vm298_vm4, %v2460_v20, %v2459_v35 }
 0x33a   : > { %v2393_v40 = vsel %vm286_vm0, %v2392_v27, %v2328_v21  ;;  %v2463_v46 = vsel %vm301_vm5, %v2462_v3, %v2461_v52  ;;  %v2517_v21 = vld [vmem:[%s8543_s1] sm:$0x3]  ;;  %v5815_v3 = vld [vmem:[%s8543_s1 + $0x4] sm:$0x3]  ;;  %v2712_v52 = vld [vmem:[%s6462_s30 + $0x70] sm:$0x1] }
 0x33b   : > { %v2511_v63 = vsel %vm304_vm6, %v2510_v42, %v2509_v60  ;;  %v2394_v42 = vrot.slane %v2330_v15, 6  ;;  %v2465_v19 = vsel %vm304_vm6, %v2464_v16, %v2463_v46  ;;  %v6192_v15 = vld [vmem:[%s8544_s2] sm:$0xff]  ;;  %v2716_v46 = vld [vmem:[%s6462_s30 + $0xf0] sm:$0x1] }
 0x33c   : > { %v7331_v4 = vpack.c.bf16 %v2511_v63, %v2497_v59  ;;  %v2343_v59 = vld [vmem:[%s6462_s30 + $0x1ec] sm:$0x1]  ;;  %v2407_v63 = vsel %vm286_vm0, %v2406_v51, %v2336_v36  ;;  %2262 = vmatpush.bf16.msra.mxu3 %v6192_v15  ;;  %v2319_v27 = vld [vmem:[%s8545_s3] sm:$0xf]  ;;  %v2845_v5 = vrot.slane %v2716_v46, 1 }
 0x33d   : > { %v7301_v30 = vpop.f32.mrf.mxu1  ;;  %v2395_v11 = vsel %vm289_vm1, %v2394_v42, %v2393_v40  ;;  %v2418_v38 = vrot.slane %v2343_v59, 1  ;;  %2322 = vperm.xlu2 %6297, %v2319_v27   ;;  %v2711_v40 = vld [vmem:[%s6462_s30 + $0x50] sm:$0x1]  ;;  %v2702_v27 = vld [vmem:[%s6462_s30 + $0x12f] sm:$0x1] }
 0x33e   : > { %2526 = vmatpush.bf16.msrb.mxu2 %v7331_v4  ;;  %v2713_v42 = vld [vmem:[%s6462_s30 + $0x90] sm:$0x1]  ;;  %v2801_v46 = vrot.slane %v2702_v27, 7 }
 0x33f   : > { %v2839_v59 = vrot.slane %v2713_v42, 4  ;;  %v2708_v42 = vld [vmem:[%s6462_s30 + $0x1ef] sm:$0x1] }
 0x340   : > { %5749 = vmatmul.msk.bf16.vlgmr.msrb.gmra.mxu0 %vm418_vm7, %v2168_v62  ;;  %v2440_v62 = vrot.slane %v2346_v53, 6  ;;  %v2339_v53 = vld [vmem:[%s6462_s30 + $0x16c] sm:$0x1]  ;;  %2548 = vmatpush.bf16.msrb.mxu3 %v7331_v4 }
 0x341   : > { %v2410_v61 = vrot.slane %v2339_v53, 5  ;;  %v2710_v53 = vld [vmem:[%s6462_s30 + $0x30] sm:$0x1] }
 0x342   : > { %v2441_v6 = vsel %vm289_vm1, %v2440_v62, %v2439_v58  ;;  %v2833_v51 = vrot.slane %v2710_v53, 7 }
 0x345   : > { %v1917_v57 = vpop.f32.mrf.mxu1 }
 0x34d   : > { %v2203_v56 = vpop.f32.mrf.mxu1 }
 0x34e   : > { %v2207_v62 = vpack.c.bf16 %v2203_v56, %v2203_v56  ;;  %v2837_v56 = vrot.slane %v2712_v52, 5 }
 0x350   : > { %5775 = vmatmul.msk.bf16.vlgmr.msra.gmra.mxu0 %vm418_vm7, %v5774_v31  ;;  %v2442_v31 = vrot.slane %v2347_v43, 5  ;;  %v2396_v43 = vrot.slane %v2331_v22, 5  ;;  %5764 = vmatmul.msk.bf16.vlgmr.msra.gmra.mxu2 %vm476_vm8, %v2207_v62  ;;  %v6197_v22 = vld [vmem:[%s8544_s2 + $0x28] sm:$0xff]  ;;  %v2834_v62 = vsel %vm286_vm0, %v2833_v51, %v2709_v41 }
 0x351   : > { %2311 = vmatpush.bf16.msra.mxu1 %v6197_v22 }
 0x352   : > { %v2443_v10 = vsel %vm292_vm2, %v2442_v31, %v2441_v6  ;;  %v2397_v60 = vsel %vm292_vm2, %v2396_v43, %v2395_v11  ;;  %v2714_v43 = vld [vmem:[%s6462_s30 + $0xb0] sm:$0x1] }
 0x353   : > { %v2445_v17 = vsel %vm295_vm3, %v2444_v9, %v2443_v10  ;;  %v2399_v31 = vsel %vm295_vm3, %v2398_v44, %v2397_v60  ;;  %v1965_v12 = vpop.f32.mrf.mxu3  ;;  %v2715_v44 = vld [vmem:[%s6462_s30 + $0xd0] sm:$0x1]  ;;  %v2841_v60 = vrot.slane %v2714_v43, 3 }
 0x354   : > { %v2447_v23 = vsel %vm298_vm4, %v2446_v1, %v2445_v17  ;;  %v2401_v9 = vsel %vm298_vm4, %v2400_v48, %v2399_v31  ;;  %v2409_v1 = vsel %vm289_vm1, %v2408_v54, %v2407_v63  ;;  %v2718_v48 = vld [vmem:[%s6462_s30 + $0x130] sm:$0x1]  ;;  %v2835_v54 = vrot.slane %v2711_v40, 6 }
 0x355   : > { %v2449_v28 = vsel %vm301_vm5, %v2448_v2, %v2447_v23  ;;  %v2416_v2 = vrot.slane %v2342_v45, 2  ;;  %v2403_v6 = vsel %vm301_vm5, %v2402_v49, %v2401_v9  ;;  %v2205_v17 = vpop.f32.mrf.mxu1  ;;  %v2719_v49 = vld [vmem:[%s6462_s30 + $0x150] sm:$0x1]  ;;  %v2694_v9 = vld [vmem:[%s6462_s30 + $0x2f] sm:$0x1] }
 0x356   : > { %v2451_v34 = vsel %vm304_vm6, %v2450_v7, %v2449_v28  ;;  %v2411_v7 = vsel %vm292_vm2, %v2410_v61, %v2409_v1  ;;  %v2405_v57 = vsel %vm304_vm6, %v2404_v50, %v2403_v6  ;;  %v2720_v50 = vld [vmem:[%s6462_s30 + $0x170] sm:$0x1]  ;;  %v2843_v61 = vrot.slane %v2715_v44, 2 }
 0x357   : > { %v2515_v58 = vpack.c.bf16 %v2465_v19, %v2451_v34  ;;  %v2413_v8 = vsel %vm295_vm3, %v2412_v55, %v2411_v7  ;;  %v5791_v34 = vld [vmem:[%s8543_s1 + $0x2] sm:$0x3]  ;;  %v2721_v19 = vld [vmem:[%s6462_s30 + $0x190] sm:$0x1]  ;;  %v2847_v55 = vrot.slane %v2718_v48, 7  ;;  %v2849_v31 = vrot.slane %v2719_v49, 6 }
 0x358   : > { %v2415_v10 = vsel %vm298_vm4, %v2414_v0, %v2413_v8  ;;  %v2722_v45 = vld [vmem:[%s6462_s30 + $0x1b0] sm:$0x1]  ;;  %v2851_v63 = vrot.slane %v2720_v50, 5  ;;  %v2853_v0 = vrot.slane %v2721_v19, 4 }
 0x359   : > { %2527 = vmatpush.bf16.msrb.mxu2 %v2515_v58  ;;  %v2417_v13 = vsel %vm301_vm5, %v2416_v2, %v2415_v10  ;;  %2549 = vmatpush.bf16.msrb.mxu3 %v2515_v58  ;;  %v2723_v11 = vld [vmem:[%s6462_s30 + $0x1d0] sm:$0x1]  ;;  %v2836_v2 = vsel %vm289_vm1, %v2835_v54, %v2834_v62  ;;  %v2848_v6 = vsel %vm286_vm0, %v2847_v55, %v2717_v47  ;;  %v2855_v7 = vrot.slane %v2722_v45, 3  ;;  %v2693_v10 = vld [vmem:[%s6462_s30 + $0xf] sm:$0x1] }
 0x35a   : > { %v2419_v14 = vsel %vm304_vm6, %v2418_v38, %v2417_v13  ;;  %v2838_v38 = vsel %vm292_vm2, %v2837_v56, %v2836_v2  ;;  %v2850_v8 = vsel %vm289_vm1, %v2849_v31, %v2848_v6  ;;  %v2787_v13 = vrot.slane %v2694_v9, 7  ;;  %v2678_v47 = vld [vmem:[%s6462_s30 + $0x2e] sm:$0x1] }
 0x35b   : > { %v2514_v18 = vpack.c.bf16 %v2419_v14, %v2405_v57  ;;  %v1967_v20 = vpop.f32.mrf.mxu3  ;;  %v2857_v57 = vrot.slane %v2723_v11, 2  ;;  %v2840_v14 = vsel %vm295_vm3, %v2839_v59, %v2838_v38  ;;  %v2852_v15 = vsel %vm292_vm2, %v2851_v63, %v2850_v8  ;;  %v2679_v11 = vld [vmem:[%s6462_s30 + $0x4e] sm:$0x1] }
 0x35c   : > { %v2697_v20 = vld [vmem:[%s6462_s30 + $0x8f] sm:$0x1]  ;;  %v2854_v22 = vsel %vm295_vm3, %v2853_v0, %v2852_v15  ;;  %v2680_v59 = vld [vmem:[%s6462_s30 + $0x6e] sm:$0x1]  ;;  %v2741_v63 = vrot.slane %v2678_v47, 7  ;;  %v2813_v2 = vrot.slane %v2708_v42, 1 }
 0x35d   : > { %2528 = vmatpush.bf16.msrb.mxu2 %v2514_v18  ;;  %2550 = vmatpush.bf16.msrb.mxu3 %v2514_v18  ;;  %v2793_v53 = vrot.slane %v2697_v20, 4  ;;  %v2681_v62 = vld [vmem:[%s6462_s30 + $0x8e] sm:$0x1] }
 0x35e   : > { %v2682_v31 = vld [vmem:[%s6462_s30 + $0xae] sm:$0x1]  ;;  %v2747_v20 = vrot.slane %v2681_v62, 4 }
 0x35f   : > { %v2684_v6 = vld [vmem:[%s6462_s30 + $0xee] sm:$0x1] }
 0x360   : > { %5790 = vmatmul.msk.bf16.vlgmr.msrb.gmra.mxu2 %vm418_vm7, %v2517_v21  ;;  %v2842_v21 = vsel %vm298_vm4, %v2841_v60, %v2840_v14  ;;  %v2685_v8 = vld [vmem:[%s6462_s30 + $0x10e] sm:$0x1] }
 0x361   : > { %2626 = vmatpush.bf16.msra.mxu2 %v7331_v4  ;;  %v6196_v4 = vld [vmem:[%s8544_s2 + $0x20] sm:$0xff]  ;;  %v2689_v15 = vld [vmem:[%s6462_s30 + $0x18e] sm:$0x1] }
 0x362   : > { %2312 = vmatpush.bf16.msra.mxu1 %v6196_v4  ;;  %v2698_v4 = vld [vmem:[%s6462_s30 + $0xaf] sm:$0x1] }
 0x363   : > { %v2795_v40 = vrot.slane %v2698_v4, 3  ;;  %v2749_v4 = vrot.slane %v2682_v31, 3 }
 0x365   : > { %2627 = vmatpush.bf16.msra.mxu2 %v2515_v58  ;;  %v2724_v58 = vld [vmem:[%s6462_s30 + $0x1f0] sm:$0x1] }
 0x366   : > { %2610 = vmatpush.bf16.msrb.mxu1 %v6199_v37  ;;  %v2859_v17 = vrot.slane %v2724_v58, 1  ;;  %v2677_v58 = vld [vmem:[%s6462_s30 + $0xe] sm:$0x1] }
 0x369   : > { %2628 = vmatpush.bf16.msra.mxu2 %v2514_v18  ;;  %v2696_v18 = vld [vmem:[%s6462_s30 + $0x6f] sm:$0x1] }
 0x36a   : > { %2611 = vmatpush.bf16.msrb.mxu1 %v6198_v39  ;;  %v2707_v39 = vld [vmem:[%s6462_s30 + $0x1cf] sm:$0x1] }
 0x36b   : > { %v2811_v55 = vrot.slane %v2707_v39, 2 }
 0x370   : > { %5816 = vmatmul.msk.bf16.vlgmr.msra.gmra.mxu2 %vm418_vm7, %v5815_v3  ;;  %v2844_v3 = vsel %vm301_vm5, %v2843_v61, %v2842_v21 }
 0x3ad   : > { %v1887_v23 = vpop.f32.mrf.mxu0 }
 0x3ae   : > { %v1916_v24 = vadd.f32 %v7301_v30, %v1887_v23  ;;  %v2699_v23 = vld [vmem:[%s6462_s30 + $0xcf] sm:$0x1] }
 0x3af   : > { %v2797_v52 = vrot.slane %v2699_v23, 2 }
 0x3b0   : > { %v1969_v26 = vadd.f32 %v1965_v12, %v1916_v24  ;;  %v2695_v12 = vld [vmem:[%s6462_s30 + $0x4f] sm:$0x1] }
 0x3b1   : > { %v2700_v24 = vld [vmem:[%s6462_s30 + $0xef] sm:$0x1] }
 0x3b2   : > { %v1976_v28 = vadd.f32 %v1974_v25, %v1969_v26  ;;  %v2856_v25 = vsel %vm298_vm4, %v2855_v7, %v2854_v22  ;;  %v2701_v26 = vld [vmem:[%s6462_s30 + $0x10f] sm:$0x1]  ;;  %v2799_v44 = vrot.slane %v2700_v24, 1  ;;  %v2690_v22 = vld [vmem:[%s6462_s30 + $0x1ae] sm:$0x1]  ;;  %v2753_v24 = vrot.slane %v2684_v6, 1 }
 0x3b3   : > { %v2802_v54 = vsel %vm286_vm0, %v2801_v46, %v2701_v26 }
 0x3b4   : > { %5748 = vst.msk [vmem:[%s6982_s6 + $0x10] sm:$0xf] %vm581_vm9, %v1976_v28  ;;  %v2703_v28 = vld [vmem:[%s6462_s30 + $0x14f] sm:$0x1] }
 0x3b5   : > { %v1889_v29 = vpop.f32.mrf.mxu0  ;;  %v2803_v50 = vrot.slane %v2703_v28, 6 }
 0x3b6   : > { %v2704_v29 = vld [vmem:[%s6462_s30 + $0x16f] sm:$0x1] }
 0x3b7   : > { %v2805_v19 = vrot.slane %v2704_v29, 5  ;;  %v2804_v61 = vsel %vm289_vm1, %v2803_v50, %v2802_v54  ;;  %v6203_v50 = vld [vmem:[%s8544_s2 + $0x28] sm:$0xff]  ;;  %v6202_v54 = vld [vmem:[%s8544_s2 + $0x20] sm:$0xff] }
 0x3b9   : > { %v2806_v9 = vsel %vm292_vm2, %v2805_v19, %v2804_v61  ;;  %v2668_v61 = vld [vmem:[%s8545_s3] sm:$0xf] }
 0x3ba   : > { %2671 = vperm.xlu0 %6295, %v2668_v61   ;;  %v3048_v61 = vld [vmem:[%s6462_s30 + $0xd1] sm:$0x1] }
 0x3bd   : > { %v2181_v30 = vpop.f32.mrf.mxu0 }
 0x3be   : > { %v2185_v16 = vpack.c.bf16 %v2181_v30, %v2181_v30  ;;  %v2788_v30 = vsel %vm286_vm0, %v2787_v13, %v2693_v10  ;;  %v2687_v10 = vld [vmem:[%s6462_s30 + $0x14e] sm:$0x1]  ;;  %v2742_v13 = vsel %vm286_vm0, %v2741_v63, %v2677_v58  ;;  %v5832_v58 = vld [vmem:[%s8543_s1 + $0x2] sm:$0x3] }
 0x3bf   : > { %v2757_v28 = vrot.slane %v2687_v10, 6  ;;  %v6206_v10 = vld [vmem:[%s8544_s2 + $0x10] sm:$0xff] }
 0x3c0   : > { %5773 = vmatmul.msk.bf16.vlgmr.msra.gmra.mxu3 %vm476_vm8, %v2185_v16  ;;  %v2846_v16 = vsel %vm304_vm6, %v2845_v5, %v2844_v3  ;;  %v2683_v5 = vld [vmem:[%s6462_s30 + $0xce] sm:$0x1] }
 0x3c1   : > { %v2751_v23 = vrot.slane %v2683_v5, 2  ;;  %2660 = vmatpush.bf16.msra.mxu3 %v6203_v50  ;;  %v3044_v50 = vld [vmem:[%s6462_s30 + $0x51] sm:$0x1] }
 0x3c5   : > { %v2183_v32 = vpop.f32.mrf.mxu0  ;;  %2661 = vmatpush.bf16.msra.mxu3 %v6202_v54  ;;  %v3045_v54 = vld [vmem:[%s6462_s30 + $0x71] sm:$0x1] }
 0x3c6   : > { %v2858_v32 = vsel %vm301_vm5, %v2857_v57, %v2856_v25  ;;  %v2686_v57 = vld [vmem:[%s6462_s30 + $0x12e] sm:$0x1] }
 0x3c7   : > { %v2860_v37 = vsel %vm304_vm6, %v2859_v17, %v2858_v32  ;;  %v2743_v17 = vrot.slane %v2679_v11, 6  ;;  %v2691_v25 = vld [vmem:[%s6462_s30 + $0x1ce] sm:$0x1]  ;;  %v2755_v27 = vrot.slane %v2686_v57, 7  ;;  %v5856_v57 = vld [vmem:[%s8543_s1 + $0x4] sm:$0x3] }
 0x3c8   : > { %v7467_v41 = vpack.c.bf16 %v2860_v37, %v2846_v16  ;;  %v2692_v16 = vld [vmem:[%s6462_s30 + $0x1ee] sm:$0x1]  ;;  %v2765_v42 = vrot.slane %v2691_v25, 2  ;;  %v3071_v25 = vld [vmem:[%s6462_s30 + $0x1b2] sm:$0x1] }
 0x3c9   : > { %v2744_v26 = vsel %vm289_vm1, %v2743_v17, %v2742_v13  ;;  %v2756_v39 = vsel %vm286_vm0, %v2755_v27, %v2685_v8  ;;  %v2767_v46 = vrot.slane %v2692_v16, 1  ;;  %v3060_v13 = vld [vmem:[%s6462_s30 + $0x52] sm:$0x1] }
 0x3ca   : > { %v3062_v17 = vld [vmem:[%s6462_s30 + $0x92] sm:$0x1] }
 0x3cb   : > { %v3188_v16 = vrot.slane %v3062_v17, 4  ;;  %v3057_v17 = vld [vmem:[%s6462_s30 + $0x1f1] sm:$0x1] }
 0x3cd   : > { %v2281_v33 = vpop.f32.mrf.mxu0 }
 0x3ce   : > { %v2285_v35 = vpack.c.bf16 %v2281_v33, %v2281_v33  ;;  %v2705_v33 = vld [vmem:[%s6462_s30 + $0x18f] sm:$0x1] }
 0x3cf   : > { %v2807_v45 = vrot.slane %v2705_v33, 4 }
 0x3d0   : > { %5788 = vmatmul.msk.bf16.vlgmr.msra.gmra.mxu1 %vm476_vm8, %v2285_v35  ;;  %5792 = vmatmul.msk.bf16.vlgmr.msrb.gmra.mxu3 %vm418_vm7, %v5791_v34  ;;  %v2706_v34 = vld [vmem:[%s6462_s30 + $0x1af] sm:$0x1]  ;;  %v2789_v35 = vrot.slane %v2695_v12, 6  ;;  %v2688_v12 = vld [vmem:[%s6462_s30 + $0x16e] sm:$0x1] }
 0x3d1   : > { %2897 = vmatpush.bf16.msra.mxu1 %v7467_v41  ;;  %v2809_v56 = vrot.slane %v2706_v34, 3  ;;  %v2808_v38 = vsel %vm295_vm3, %v2807_v45, %v2806_v9  ;;  %v2759_v33 = vrot.slane %v2688_v12, 5  ;;  %v2761_v34 = vrot.slane %v2689_v15, 4  ;;  %v2323_v9 = vpop.permute.xlu2 %2322  ;;  %v3059_v12 = vld [vmem:[%s6462_s30 + $0x32] sm:$0x1] }
 0x3d2   : > { %v2790_v43 = vsel %vm289_vm1, %v2789_v35, %v2788_v30  ;;  %v6201_v35 = vld [vmem:[%s8544_s2 + $0x18] sm:$0xff]  ;;  %v3058_v15 = vld [vmem:[%s6462_s30 + $0x12] sm:$0x1]  ;;  %v3182_v27 = vrot.slane %v3059_v12, 7 }
 0x3d3   : > { %v7437_v1 = vpop.f32.mrf.mxu2  ;;  %v2810_v14 = vsel %vm298_vm4, %v2809_v56, %v2808_v38  ;;  %2582 = vmatpush.bf16.msrb.mxu0 %v6201_v35  ;;  %v6200_v56 = vld [vmem:[%s8544_s2 + $0x10] sm:$0xff] }
 0x3d4   : > { %v2812_v21 = vsel %vm301_vm5, %v2811_v55, %v2810_v14  ;;  %v3061_v14 = vld [vmem:[%s6462_s30 + $0x72] sm:$0x1]  ;;  %v3183_v35 = vsel %vm286_vm0, %v3182_v27, %v3058_v15 }
 0x3d5   : > { %v2283_v36 = vpop.f32.mrf.mxu0  ;;  %v2814_v3 = vsel %vm304_vm6, %v2813_v2, %v2812_v21  ;;  %v3065_v21 = vld [vmem:[%s6462_s30 + $0xf2] sm:$0x1] }
 0x3d6   : > { %v2791_v36 = vrot.slane %v2696_v18, 5  ;;  %v2745_v18 = vrot.slane %v2680_v59, 5 }
 0x3d7   : > { %2583 = vmatpush.bf16.msrb.mxu0 %v6200_v56  ;;  %v3046_v56 = vld [vmem:[%s6462_s30 + $0x91] sm:$0x1] }
 0x3d8   : > { %v2792_v49 = vsel %vm292_vm2, %v2791_v36, %v2790_v43  ;;  %v2746_v32 = vsel %vm292_vm2, %v2745_v18, %v2744_v26  ;;  %v3063_v18 = vld [vmem:[%s6462_s30 + $0xb2] sm:$0x1]  ;;  %v3142_v12 = vrot.slane %v3046_v56, 4 }
 0x3d9   : > { %v2794_v51 = vsel %vm295_vm3, %v2793_v53, %v2792_v49  ;;  %v2748_v37 = vsel %vm295_vm3, %v2747_v20, %v2746_v32  ;;  %v2763_v53 = vrot.slane %v2690_v22, 3  ;;  %v3064_v20 = vld [vmem:[%s6462_s30 + $0xd2] sm:$0x1]  ;;  %v3190_v32 = vrot.slane %v3063_v18, 3 }
 0x3da   : > { %v2796_v60 = vsel %vm298_vm4, %v2795_v40, %v2794_v51  ;;  %v2750_v40 = vsel %vm298_vm4, %v2749_v4, %v2748_v37  ;;  %v3066_v22 = vld [vmem:[%s6462_s30 + $0x112] sm:$0x1] }
 0x3db   : > { %v2238_v48 = vpop.f32.mrf.mxu2  ;;  %v2798_v0 = vsel %vm301_vm5, %v2797_v52, %v2796_v60  ;;  %v2758_v52 = vsel %vm289_vm1, %v2757_v28, %v2756_v39  ;;  %v2752_v43 = vsel %vm301_vm5, %v2751_v23, %v2750_v40  ;;  %2875 = vmatpush.bf16.msra.mxu0 %v7467_v41  ;;  %v3067_v4 = vld [vmem:[%s6462_s30 + $0x132] sm:$0x1]  ;;  %v3184_v28 = vrot.slane %v3060_v13, 6 }
 0x3dc   : > { %v2800_v7 = vsel %vm304_vm6, %v2799_v44, %v2798_v0  ;;  %v2760_v44 = vsel %vm292_vm2, %v2759_v33, %v2758_v52  ;;  %v2754_v48 = vsel %vm304_vm6, %v2753_v24, %v2752_v43  ;;  %v3068_v23 = vld [vmem:[%s6462_s30 + $0x152] sm:$0x1]  ;;  %v3192_v33 = vrot.slane %v3064_v20, 2 }
 0x3dd   : > { %v2864_v30 = vpack.c.bf16 %v2814_v3, %v2800_v7  ;;  %v2762_v47 = vsel %vm295_vm3, %v2761_v34, %v2760_v44  ;;  %v3069_v24 = vld [vmem:[%s6462_s30 + $0x172] sm:$0x1]  ;;  %v3196_v34 = vrot.slane %v3067_v4, 7  ;;  %v3185_v52 = vsel %vm289_vm1, %v3184_v28, %v3183_v35  ;;  %v3030_v35 = vld [vmem:[%s6462_s30 + $0x90] sm:$0x1] }
 0x3de   : > { %v2764_v49 = vsel %vm298_vm4, %v2763_v53, %v2762_v47  ;;  %v3070_v3 = vld [vmem:[%s6462_s30 + $0x192] sm:$0x1]  ;;  %v3200_v37 = vrot.slane %v3069_v24, 5  ;;  %v3043_v53 = vld [vmem:[%s6462_s30 + $0x31] sm:$0x1]  ;;  %v3204_v44 = vrot.slane %v3071_v25, 3 }
 0x3df   : > { %2898 = vmatpush.bf16.msra.mxu1 %v2864_v30  ;;  %v2766_v19 = vsel %vm301_vm5, %v2765_v42, %v2764_v49  ;;  %2876 = vmatpush.bf16.msra.mxu0 %v2864_v30  ;;  %v3072_v26 = vld [vmem:[%s6462_s30 + $0x1d2] sm:$0x1]  ;;  %v3202_v39 = vrot.slane %v3070_v3, 4  ;;  %v3194_v42 = vrot.slane %v3065_v21, 1  ;;  %v3197_v43 = vsel %vm286_vm0, %v3196_v34, %v3066_v22  ;;  %v3042_v49 = vld [vmem:[%s6462_s30 + $0x11] sm:$0x1] }
 0x3e0   : > { %v2768_v45 = vsel %vm304_vm6, %v2767_v46, %v2766_v19  ;;  %v3136_v19 = vrot.slane %v3043_v53, 7  ;;  %v3027_v22 = vld [vmem:[%s6462_s30 + $0x30] sm:$0x1]  ;;  %v3096_v56 = vrot.slane %v3030_v35, 4 }
 0x3e1   : > { %v2863_v51 = vpack.c.bf16 %v2768_v45, %v2754_v48  ;;  %v3206_v48 = vrot.slane %v3072_v26, 2  ;;  %v3028_v26 = vld [vmem:[%s6462_s30 + $0x50] sm:$0x1] }
 0x3e3   : > { %v2530_v29 = vpop.f32.mrf.mxu2  ;;  %2899 = vmatpush.bf16.msra.mxu1 %v2863_v51  ;;  %2877 = vmatpush.bf16.msra.mxu0 %v2863_v51 }
 0x3e4   : > { %v2534_v36 = vpack.c.bf16 %v2530_v29, %v2530_v29  ;;  %v3186_v29 = vrot.slane %v3061_v14, 5  ;;  %v3146_v14 = vrot.slane %v3048_v61, 2 }
 0x3e6   : > { %5814 = vmatmul.msk.bf16.vlgmr.msrb.gmra.mxu1 %vm476_vm8, %v2534_v36  ;;  %v3198_v36 = vrot.slane %v3068_v23, 6  ;;  %v3187_v46 = vsel %vm292_vm2, %v3186_v29, %v3185_v52  ;;  %v3162_v52 = vrot.slane %v3057_v17, 1  ;;  %v6205_v17 = vld [vmem:[%s8544_s2 + $0x8] sm:$0xff] }
 0x3e7   : > { %v3189_v45 = vsel %vm295_vm3, %v3188_v16, %v3187_v46  ;;  %v3029_v16 = vld [vmem:[%s6462_s30 + $0x70] sm:$0x1]  ;;  %2959 = vmatpush.bf16.msrb.mxu3 %v6205_v17 }
 0x3e8   : > { %v3199_v47 = vsel %vm289_vm1, %v3198_v36, %v3197_v43  ;;  %v3031_v36 = vld [vmem:[%s6462_s30 + $0xb0] sm:$0x1] }
 0x3e9   : > { %v3033_v43 = vld [vmem:[%s6462_s30 + $0xf0] sm:$0x1] }
 0x3eb   : > { %v2532_v11 = vpop.f32.mrf.mxu2 }
 0x3ec   : > { %v3201_v11 = vsel %vm292_vm2, %v3200_v37, %v3199_v47  ;;  %v3090_v37 = vrot.slane %v3027_v22, 7  ;;  %v3034_v47 = vld [vmem:[%s6462_s30 + $0x110] sm:$0x1] }
 0x3f3   : > { %v2630_v59 = vpop.f32.mrf.mxu2 }
 0x3f4   : > { %v2634_v60 = vpack.c.bf16 %v2630_v59, %v2630_v59  ;;  %v3203_v59 = vsel %vm295_vm3, %v3202_v39, %v3201_v11  ;;  %v3038_v11 = vld [vmem:[%s6462_s30 + $0x190] sm:$0x1] }
 0x3f6   : > { %5833 = vmatmul.msk.bf16.vlgmr.msra.gmra.mxu1 %vm418_vm7, %v5832_v58  ;;  %5829 = vmatmul.msk.bf16.vlgmr.msra.gmra.mxu3 %vm476_vm8, %v2634_v60  ;;  %v3191_v58 = vsel %vm298_vm4, %v3190_v32, %v3189_v45  ;;  %v3047_v60 = vld [vmem:[%s6462_s30 + $0xb1] sm:$0x1] }
 0x3f7   : > { %v3144_v13 = vrot.slane %v3047_v60, 3  ;;  %v3098_v60 = vrot.slane %v3031_v36, 3 }
 0x3fb   : > { %v2632_v55 = vpop.f32.mrf.mxu2 }
 0x3fc   : > { %v3049_v55 = vld [vmem:[%s6462_s30 + $0xf1] sm:$0x1] }
 0x3fd   : > { %v3148_v20 = vrot.slane %v3049_v55, 1  ;;  %v3102_v55 = vrot.slane %v3033_v43, 1 }
 0x42c   : > { %v2672_v35 = vpop.permute.xlu0 %2671 }
 0x443   : > { %v2264_v62 = vpop.f32.mrf.mxu3 }
 0x444   : > { %v2265_v63 = vadd.f32 %v2264_v62, %v7437_v1  ;;  %v2866_v1 = vld [vmem:[%s8543_s1] sm:$0x3]  ;;  %v3193_v62 = vsel %vm301_vm5, %v3192_v33, %v3191_v58 }
 0x44b   : > { %v2266_v31 = vpop.f32.mrf.mxu3 }
 0x44c   : > { %v3205_v31 = vsel %vm298_vm4, %v3204_v44, %v3203_v59  ;;  %v3039_v59 = vld [vmem:[%s6462_s30 + $0x1b0] sm:$0x1] }
 0x44d   : > { %v2314_v0 = vpop.f32.mrf.mxu1 }
 0x44e   : > { %v2318_v2 = vadd.f32 %v2314_v0, %v2265_v63  ;;  %v3050_v63 = vld [vmem:[%s6462_s30 + $0x111] sm:$0x1] }
 0x44f   : > { %v3051_v0 = vld [vmem:[%s6462_s30 + $0x131] sm:$0x1] }
 0x450   : > { %v2325_v5 = vadd.f32 %v2323_v9, %v2318_v2  ;;  %v3052_v9 = vld [vmem:[%s6462_s30 + $0x151] sm:$0x1]  ;;  %v3150_v21 = vrot.slane %v3051_v0, 7 }
 0x451   : > { %v3053_v2 = vld [vmem:[%s6462_s30 + $0x171] sm:$0x1]  ;;  %v3152_v24 = vrot.slane %v3052_v9, 6 }
 0x452   : > { %5789 = vst.msk [vmem:[%s6982_s6 + $0x14] sm:$0xf] %vm581_vm9, %v2325_v5  ;;  %v3137_v5 = vsel %vm286_vm0, %v3136_v19, %v3042_v49  ;;  %v3154_v3 = vrot.slane %v3053_v2, 5  ;;  %v3151_v28 = vsel %vm286_vm0, %v3150_v21, %v3050_v63  ;;  %v3036_v49 = vld [vmem:[%s6462_s30 + $0x150] sm:$0x1] }
 0x453   : > { %v2552_v6 = vpop.f32.mrf.mxu3  ;;  %v3153_v33 = vsel %vm289_vm1, %v3152_v24, %v3151_v28  ;;  %v3106_v9 = vrot.slane %v3036_v49, 6  ;;  %v6210_v49 = vld [vmem:[%s8544_s2] sm:$0xff] }
 0x454   : > { %v2556_v7 = vpack.c.bf16 %v2552_v6, %v2552_v6  ;;  %v3195_v6 = vsel %vm304_vm6, %v3194_v42, %v3193_v62  ;;  %v3155_v53 = vsel %vm292_vm2, %v3154_v3, %v3153_v33  ;;  %v3032_v42 = vld [vmem:[%s6462_s30 + $0xd0] sm:$0x1] }
 0x455   : > { %v2316_v38 = vpop.f32.mrf.mxu1  ;;  %v3100_v61 = vrot.slane %v3032_v42, 2 }
 0x456   : > { %5805 = vmatmul.msk.bf16.vlgmr.msrb.gmra.mxu0 %vm476_vm8, %v2556_v7  ;;  %v3207_v7 = vsel %vm301_vm5, %v3206_v48, %v3205_v31  ;;  %v3054_v38 = vld [vmem:[%s6462_s30 + $0x191] sm:$0x1]  ;;  %v3035_v48 = vld [vmem:[%s6462_s30 + $0x130] sm:$0x1] }
 0x457   : > { %2975 = vmatpush.bf16.msrb.mxu0 %v7467_v41  ;;  %v6207_v41 = vld [vmem:[%s8544_s2 + $0x18] sm:$0xff]  ;;  %v3156_v25 = vrot.slane %v3054_v38, 4  ;;  %v3040_v31 = vld [vmem:[%s6462_s30 + $0x1d0] sm:$0x1]  ;;  %v3104_v0 = vrot.slane %v3035_v48, 7  ;;  %v6211_v48 = vld [vmem:[%s8544_s2 + $0x8] sm:$0xff] }
 0x458   : > { %2931 = vmatpush.bf16.msrb.mxu2 %v6207_v41 }
 0x459   : > { %v3157_v46 = vsel %vm295_vm3, %v3156_v25, %v3155_v53 }
 0x45b   : > { %v2554_v8 = vpop.f32.mrf.mxu3  ;;  %2976 = vmatpush.bf16.msrb.mxu0 %v2864_v30  ;;  %v3073_v30 = vld [vmem:[%s6462_s30 + $0x1f2] sm:$0x1] }
 0x45c   : > { %2932 = vmatpush.bf16.msrb.mxu2 %v6206_v10  ;;  %v3055_v8 = vld [vmem:[%s6462_s30 + $0x1b1] sm:$0x1] }
 0x45d   : > { %v3056_v10 = vld [vmem:[%s6462_s30 + $0x1d1] sm:$0x1]  ;;  %v3158_v29 = vrot.slane %v3055_v8, 3  ;;  %v3110_v8 = vrot.slane %v3038_v11, 4  ;;  %v3407_v11 = vld [vmem:[%s6462_s30 + $0x14] sm:$0x1] }
 0x45e   : > { %v3160_v34 = vrot.slane %v3056_v10, 2  ;;  %v3112_v10 = vrot.slane %v3039_v59, 3  ;;  %v3415_v59 = vld [vmem:[%s6462_s30 + $0x114] sm:$0x1] }
 0x45f   : > { %2977 = vmatpush.bf16.msrb.mxu0 %v2863_v51  ;;  %v3208_v51 = vrot.slane %v3073_v30, 1  ;;  %v3026_v30 = vld [vmem:[%s6462_s30 + $0x10] sm:$0x1]  ;;  %v3159_v45 = vsel %vm298_vm4, %v3158_v29, %v3157_v46 }
 0x460   : > { %v3091_v19 = vsel %vm286_vm0, %v3090_v37, %v3026_v30  ;;  %v3161_v58 = vsel %vm301_vm5, %v3160_v34, %v3159_v45  ;;  %v3215_v30 = vld [vmem:[%s8543_s1] sm:$0x3]  ;;  %v5897_v34 = vld [vmem:[%s8543_s1 + $0x4] sm:$0x3]  ;;  %v3410_v45 = vld [vmem:[%s6462_s30 + $0x74] sm:$0x1] }
 0x461   : > { %v3209_v41 = vsel %vm304_vm6, %v3208_v51, %v3207_v7  ;;  %v3092_v51 = vrot.slane %v3028_v26, 6  ;;  %v3163_v62 = vsel %vm304_vm6, %v3162_v52, %v3161_v58  ;;  %v6204_v26 = vld [vmem:[%s8544_s2] sm:$0xff]  ;;  %v3414_v58 = vld [vmem:[%s6462_s30 + $0xf4] sm:$0x1] }
 0x462   : > { %v7603_v15 = vpack.c.bf16 %v3209_v41, %v3195_v6  ;;  %v3041_v6 = vld [vmem:[%s6462_s30 + $0x1f0] sm:$0x1]  ;;  %v3105_v41 = vsel %vm286_vm0, %v3104_v0, %v3034_v47  ;;  %2960 = vmatpush.bf16.msrb.mxu3 %v6204_v26  ;;  %v3017_v37 = vld [vmem:[%s8545_s3] sm:$0xf]  ;;  %v3543_v17 = vrot.slane %v3414_v58, 1 }
 0x463   : > { %v7573_v40 = vpop.f32.mrf.mxu1  ;;  %v3093_v63 = vsel %vm289_vm1, %v3092_v51, %v3091_v19  ;;  %v3116_v21 = vrot.slane %v3041_v6, 1  ;;  %3020 = vperm.xlu1 %6296, %v3017_v37   ;;  %v3409_v19 = vld [vmem:[%s6462_s30 + $0x54] sm:$0x1]  ;;  %v3400_v37 = vld [vmem:[%s6462_s30 + $0x133] sm:$0x1] }
 0x464   : > { %3224 = vmatpush.bf16.msra.mxu2 %v7603_v15  ;;  %v3411_v51 = vld [vmem:[%s6462_s30 + $0x94] sm:$0x1]  ;;  %v3499_v58 = vrot.slane %v3400_v37, 7 }
 0x465   : > { %v3537_v6 = vrot.slane %v3411_v51, 4  ;;  %v3406_v51 = vld [vmem:[%s6462_s30 + $0x1f3] sm:$0x1] }
 0x466   : > { %5831 = vmatmul.msk.bf16.vlgmr.msra.gmra.mxu0 %vm418_vm7, %v2866_v1  ;;  %v3138_v1 = vrot.slane %v3044_v50, 6  ;;  %v3037_v50 = vld [vmem:[%s6462_s30 + $0x170] sm:$0x1]  ;;  %3246 = vmatpush.bf16.msra.mxu3 %v7603_v15 }
 0x467   : > { %v3108_v38 = vrot.slane %v3037_v50, 5  ;;  %v3408_v50 = vld [vmem:[%s6462_s30 + $0x34] sm:$0x1] }
 0x468   : > { %v3139_v18 = vsel %vm289_vm1, %v3138_v1, %v3137_v5  ;;  %v3531_v0 = vrot.slane %v3408_v50, 7 }
 0x46b   : > { %v2615_v4 = vpop.f32.mrf.mxu1 }
 0x473   : > { %v2901_v2 = vpop.f32.mrf.mxu1 }
 0x474   : > { %v2905_v1 = vpack.c.bf16 %v2901_v2, %v2901_v2  ;;  %v3535_v2 = vrot.slane %v3410_v45, 5 }
 0x476   : > { %5857 = vmatmul.msk.bf16.vlgmr.msrb.gmra.mxu0 %vm418_vm7, %v5856_v57  ;;  %v3140_v57 = vrot.slane %v3045_v54, 5  ;;  %v3094_v54 = vrot.slane %v3029_v16, 5  ;;  %5846 = vmatmul.msk.bf16.vlgmr.msrb.gmra.mxu2 %vm476_vm8, %v2905_v1  ;;  %v6209_v16 = vld [vmem:[%s8544_s2 + $0x28] sm:$0xff]  ;;  %v3532_v1 = vsel %vm286_vm0, %v3531_v0, %v3407_v11 }
 0x477   : > { %3009 = vmatpush.bf16.msrb.mxu1 %v6209_v16 }
 0x478   : > { %v3141_v23 = vsel %vm292_vm2, %v3140_v57, %v3139_v18  ;;  %v3095_v7 = vsel %vm292_vm2, %v3094_v54, %v3093_v63  ;;  %v3412_v54 = vld [vmem:[%s6462_s30 + $0xb4] sm:$0x1] }
 0x479   : > { %v3143_v27 = vsel %vm295_vm3, %v3142_v12, %v3141_v23  ;;  %v3097_v57 = vsel %vm295_vm3, %v3096_v56, %v3095_v7  ;;  %v2663_v24 = vpop.f32.mrf.mxu3  ;;  %v3413_v56 = vld [vmem:[%s6462_s30 + $0xd4] sm:$0x1]  ;;  %v3539_v7 = vrot.slane %v3412_v54, 3 }
 0x47a   : > { %v3145_v32 = vsel %vm298_vm4, %v3144_v13, %v3143_v27  ;;  %v3099_v12 = vsel %vm298_vm4, %v3098_v60, %v3097_v57  ;;  %v3107_v13 = vsel %vm289_vm1, %v3106_v9, %v3105_v41  ;;  %v3416_v60 = vld [vmem:[%s6462_s30 + $0x134] sm:$0x1]  ;;  %v3533_v9 = vrot.slane %v3409_v19, 6 }
 0x47b   : > { %v3147_v39 = vsel %vm301_vm5, %v3146_v14, %v3145_v32  ;;  %v3114_v14 = vrot.slane %v3040_v31, 2  ;;  %v3101_v18 = vsel %vm301_vm5, %v3100_v61, %v3099_v12  ;;  %v2903_v27 = vpop.f32.mrf.mxu1  ;;  %v3417_v61 = vld [vmem:[%s6462_s30 + $0x154] sm:$0x1]  ;;  %v3392_v12 = vld [vmem:[%s6462_s30 + $0x33] sm:$0x1] }
 0x47c   : > { %v3149_v44 = vsel %vm304_vm6, %v3148_v20, %v3147_v39  ;;  %v3109_v20 = vsel %vm292_vm2, %v3108_v38, %v3107_v13  ;;  %v3103_v4 = vsel %vm304_vm6, %v3102_v55, %v3101_v18  ;;  %v3418_v55 = vld [vmem:[%s6462_s30 + $0x174] sm:$0x1]  ;;  %v3541_v38 = vrot.slane %v3413_v56, 2 }
 0x47d   : > { %v3213_v5 = vpack.c.bf16 %v3163_v62, %v3149_v44  ;;  %v3111_v22 = vsel %vm295_vm3, %v3110_v8, %v3109_v20  ;;  %v5873_v44 = vld [vmem:[%s8543_s1 + $0x2] sm:$0x3]  ;;  %v3419_v62 = vld [vmem:[%s6462_s30 + $0x194] sm:$0x1]  ;;  %v3545_v8 = vrot.slane %v3416_v60, 7  ;;  %v3547_v57 = vrot.slane %v3417_v61, 6 }
 0x47e   : > { %v3113_v23 = vsel %vm298_vm4, %v3112_v10, %v3111_v22  ;;  %v3420_v31 = vld [vmem:[%s6462_s30 + $0x1b4] sm:$0x1]  ;;  %v3549_v41 = vrot.slane %v3418_v55, 5  ;;  %v3551_v10 = vrot.slane %v3419_v62, 4 }
 0x47f   : > { %3225 = vmatpush.bf16.msra.mxu2 %v3213_v5  ;;  %v3115_v3 = vsel %vm301_vm5, %v3114_v14, %v3113_v23  ;;  %3247 = vmatpush.bf16.msra.mxu3 %v3213_v5  ;;  %v3421_v63 = vld [vmem:[%s6462_s30 + $0x1d4] sm:$0x1]  ;;  %v3534_v14 = vsel %vm289_vm1, %v3533_v9, %v3532_v1  ;;  %v3546_v18 = vsel %vm286_vm0, %v3545_v8, %v3415_v59  ;;  %v3553_v20 = vrot.slane %v3420_v31, 3  ;;  %v3391_v23 = vld [vmem:[%s6462_s30 + $0x13] sm:$0x1] }
 0x480   : > { %v3117_v25 = vsel %vm304_vm6, %v3116_v21, %v3115_v3  ;;  %v3536_v21 = vsel %vm292_vm2, %v3535_v2, %v3534_v14  ;;  %v3548_v22 = vsel %vm289_vm1, %v3547_v57, %v3546_v18  ;;  %v3485_v3 = vrot.slane %v3392_v12, 7  ;;  %v3376_v59 = vld [vmem:[%s6462_s30 + $0x32] sm:$0x1] }
 0x481   : > { %v3212_v28 = vpack.c.bf16 %v3117_v25, %v3103_v4  ;;  %v2665_v29 = vpop.f32.mrf.mxu3  ;;  %v3555_v4 = vrot.slane %v3421_v63, 2  ;;  %v3538_v25 = vsel %vm295_vm3, %v3537_v6, %v3536_v21  ;;  %v3550_v26 = vsel %vm292_vm2, %v3549_v41, %v3548_v22  ;;  %v3377_v63 = vld [vmem:[%s6462_s30 + $0x52] sm:$0x1] }
 0x482   : > { %v3395_v29 = vld [vmem:[%s6462_s30 + $0x93] sm:$0x1]  ;;  %v3552_v16 = vsel %vm295_vm3, %v3551_v10, %v3550_v26  ;;  %v3378_v6 = vld [vmem:[%s6462_s30 + $0x72] sm:$0x1]  ;;  %v3439_v41 = vrot.slane %v3376_v59, 7  ;;  %v3511_v14 = vrot.slane %v3406_v51, 1 }
 0x483   : > { %3226 = vmatpush.bf16.msra.mxu2 %v3212_v28  ;;  %3248 = vmatpush.bf16.msra.mxu3 %v3212_v28  ;;  %v3491_v50 = vrot.slane %v3395_v29, 4  ;;  %v3379_v1 = vld [vmem:[%s6462_s30 + $0x92] sm:$0x1] }
 0x484   : > { %v3380_v57 = vld [vmem:[%s6462_s30 + $0xb2] sm:$0x1]  ;;  %v3445_v29 = vrot.slane %v3379_v1, 4 }
 0x485   : > { %v3382_v18 = vld [vmem:[%s6462_s30 + $0xf2] sm:$0x1] }
 0x486   : > { %5872 = vmatmul.msk.bf16.vlgmr.msra.gmra.mxu2 %vm418_vm7, %v3215_v30  ;;  %v3540_v30 = vsel %vm298_vm4, %v3539_v7, %v3538_v25  ;;  %v3383_v22 = vld [vmem:[%s6462_s30 + $0x112] sm:$0x1] }
 0x487   : > { %3324 = vmatpush.bf16.msrb.mxu2 %v7603_v15  ;;  %v6208_v15 = vld [vmem:[%s8544_s2 + $0x20] sm:$0xff]  ;;  %v3387_v26 = vld [vmem:[%s6462_s30 + $0x192] sm:$0x1] }
 0x488   : > { %3010 = vmatpush.bf16.msrb.mxu1 %v6208_v15  ;;  %v3396_v15 = vld [vmem:[%s6462_s30 + $0xb3] sm:$0x1] }
 0x489   : > { %v3493_v19 = vrot.slane %v3396_v15, 3  ;;  %v3447_v15 = vrot.slane %v3380_v57, 3 }
 0x48b   : > { %3325 = vmatpush.bf16.msrb.mxu2 %v3213_v5  ;;  %v3422_v5 = vld [vmem:[%s6462_s30 + $0x1f4] sm:$0x1] }
 0x48c   : > { %3308 = vmatpush.bf16.msra.mxu1 %v6211_v48  ;;  %v3557_v27 = vrot.slane %v3422_v5, 1  ;;  %v3375_v5 = vld [vmem:[%s6462_s30 + $0x12] sm:$0x1] }
 0x48f   : > { %3326 = vmatpush.bf16.msrb.mxu2 %v3212_v28  ;;  %v3394_v28 = vld [vmem:[%s6462_s30 + $0x73] sm:$0x1] }
 0x490   : > { %3309 = vmatpush.bf16.msra.mxu1 %v6210_v49  ;;  %v3405_v49 = vld [vmem:[%s6462_s30 + $0x1d3] sm:$0x1] }
 0x491   : > { %v3509_v8 = vrot.slane %v3405_v49, 2 }
 0x496   : > { %5898 = vmatmul.msk.bf16.vlgmr.msrb.gmra.mxu2 %vm418_vm7, %v5897_v34  ;;  %v3542_v34 = vsel %vm301_vm5, %v3541_v38, %v3540_v30 }
 0x4d3   : > { %v2585_v32 = vpop.f32.mrf.mxu0 }
 0x4d4   : > { %v2614_v33 = vadd.f32 %v7573_v40, %v2585_v32  ;;  %v3397_v32 = vld [vmem:[%s6462_s30 + $0xd3] sm:$0x1] }
 0x4d5   : > { %v3495_v45 = vrot.slane %v3397_v32, 2 }
 0x4d6   : > { %v2667_v36 = vadd.f32 %v2663_v24, %v2614_v33  ;;  %v3393_v24 = vld [vmem:[%s6462_s30 + $0x53] sm:$0x1] }
 0x4d7   : > { %v3398_v33 = vld [vmem:[%s6462_s30 + $0xf3] sm:$0x1] }
 0x4d8   : > { %v2674_v39 = vadd.f32 %v2672_v35, %v2667_v36  ;;  %v3554_v35 = vsel %vm298_vm4, %v3553_v20, %v3552_v16  ;;  %v3399_v36 = vld [vmem:[%s6462_s30 + $0x113] sm:$0x1]  ;;  %v3497_v56 = vrot.slane %v3398_v33, 1  ;;  %v3388_v16 = vld [vmem:[%s6462_s30 + $0x1b2] sm:$0x1]  ;;  %v3451_v33 = vrot.slane %v3382_v18, 1 }
 0x4d9   : > { %v3500_v9 = vsel %vm286_vm0, %v3499_v58, %v3399_v36 }
 0x4da   : > { %5830 = vst.msk [vmem:[%s6982_s6 + $0x18] sm:$0xf] %vm581_vm9, %v2674_v39  ;;  %v3401_v39 = vld [vmem:[%s6462_s30 + $0x153] sm:$0x1] }
 0x4db   : > { %v2587_v53 = vpop.f32.mrf.mxu0  ;;  %v3501_v55 = vrot.slane %v3401_v39, 6 }
 0x4dc   : > { %v3402_v53 = vld [vmem:[%s6462_s30 + $0x173] sm:$0x1] }
 0x4dd   : > { %v3503_v62 = vrot.slane %v3402_v53, 5  ;;  %v3502_v38 = vsel %vm289_vm1, %v3501_v55, %v3500_v9  ;;  %v6215_v55 = vld [vmem:[%s8544_s2 + $0x28] sm:$0xff]  ;;  %v6214_v9 = vld [vmem:[%s8544_s2 + $0x20] sm:$0xff] }
 0x4df   : > { %v3504_v12 = vsel %vm292_vm2, %v3503_v62, %v3502_v38 }
 0x4e3   : > { %v2879_v40 = vpop.f32.mrf.mxu0 }
 0x4e4   : > { %v2883_v52 = vpack.c.bf16 %v2879_v40, %v2879_v40  ;;  %v3486_v40 = vsel %vm286_vm0, %v3485_v3, %v3391_v23  ;;  %v3385_v23 = vld [vmem:[%s6462_s30 + $0x152] sm:$0x1]  ;;  %v3440_v3 = vsel %vm286_vm0, %v3439_v41, %v3375_v5  ;;  %v5914_v5 = vld [vmem:[%s8543_s1 + $0x2] sm:$0x3] }
 0x4e5   : > { %v3455_v39 = vrot.slane %v3385_v23, 6  ;;  %v6218_v23 = vld [vmem:[%s8544_s2 + $0x10] sm:$0xff] }
 0x4e6   : > { %5855 = vmatmul.msk.bf16.vlgmr.msrb.gmra.mxu3 %vm476_vm8, %v2883_v52  ;;  %v3544_v52 = vsel %vm304_vm6, %v3543_v17, %v3542_v34  ;;  %v3381_v17 = vld [vmem:[%s6462_s30 + $0xd2] sm:$0x1] }
 0x4e7   : > { %v3449_v32 = vrot.slane %v3381_v17, 2  ;;  %3358 = vmatpush.bf16.msrb.mxu3 %v6215_v55  ;;  %v3742_v55 = vld [vmem:[%s6462_s30 + $0x55] sm:$0x1] }
 0x4eb   : > { %v2881_v42 = vpop.f32.mrf.mxu0  ;;  %3359 = vmatpush.bf16.msrb.mxu3 %v6214_v9  ;;  %v3743_v9 = vld [vmem:[%s6462_s30 + $0x75] sm:$0x1] }
 0x4ec   : > { %v3556_v42 = vsel %vm301_vm5, %v3555_v4, %v3554_v35  ;;  %v3384_v4 = vld [vmem:[%s6462_s30 + $0x132] sm:$0x1] }
 0x4ed   : > { %v3558_v48 = vsel %vm304_vm6, %v3557_v27, %v3556_v42  ;;  %v3441_v27 = vrot.slane %v3377_v63, 6  ;;  %v3389_v35 = vld [vmem:[%s6462_s30 + $0x1d2] sm:$0x1]  ;;  %v3453_v37 = vrot.slane %v3384_v4, 7  ;;  %v6219_v4 = vld [vmem:[%s8544_s2 + $0x18] sm:$0xff] }
 0x4ee   : > { %v7739_v11 = vpack.c.bf16 %v3558_v48, %v3544_v52  ;;  %v3390_v52 = vld [vmem:[%s6462_s30 + $0x1f2] sm:$0x1]  ;;  %v3463_v51 = vrot.slane %v3389_v35, 2  ;;  %3629 = vmatpush.bf16.msra.mxu2 %v6219_v4  ;;  %v3769_v35 = vld [vmem:[%s6462_s30 + $0x1b6] sm:$0x1] }
 0x4ef   : > { %v3442_v36 = vsel %vm289_vm1, %v3441_v27, %v3440_v3  ;;  %v3454_v49 = vsel %vm286_vm0, %v3453_v37, %v3383_v22  ;;  %v3465_v58 = vrot.slane %v3390_v52, 1  ;;  %v3564_v22 = vld [vmem:[%s8543_s1] sm:$0x3]  ;;  %v3758_v3 = vld [vmem:[%s6462_s30 + $0x56] sm:$0x1] }
 0x4f0   : > { %v3760_v27 = vld [vmem:[%s6462_s30 + $0x96] sm:$0x1] }
 0x4f1   : > { %v3886_v52 = vrot.slane %v3760_v27, 4  ;;  %v3755_v27 = vld [vmem:[%s6462_s30 + $0x1f5] sm:$0x1] }
 0x4f2   : > { %3630 = vmatpush.bf16.msra.mxu2 %v6218_v23  ;;  %v3754_v23 = vld [vmem:[%s6462_s30 + $0x1d5] sm:$0x1] }
 0x4f3   : > { %v2979_v43 = vpop.f32.mrf.mxu0 }
 0x4f4   : > { %v2983_v46 = vpack.c.bf16 %v2979_v43, %v2979_v43  ;;  %v3403_v43 = vld [vmem:[%s6462_s30 + $0x193] sm:$0x1] }
 0x4f5   : > { %v3505_v31 = vrot.slane %v3403_v43, 4 }
 0x4f6   : > { %5870 = vmatmul.msk.bf16.vlgmr.msrb.gmra.mxu1 %vm476_vm8, %v2983_v46  ;;  %5874 = vmatmul.msk.bf16.vlgmr.msra.gmra.mxu3 %vm418_vm7, %v5873_v44  ;;  %v3404_v44 = vld [vmem:[%s6462_s30 + $0x1b3] sm:$0x1]  ;;  %v3487_v46 = vrot.slane %v3393_v24, 6  ;;  %v3386_v24 = vld [vmem:[%s6462_s30 + $0x172] sm:$0x1] }
 0x4f7   : > { %3595 = vmatpush.bf16.msrb.mxu1 %v7739_v11  ;;  %v3507_v2 = vrot.slane %v3404_v44, 3  ;;  %v3506_v21 = vsel %vm295_vm3, %v3505_v31, %v3504_v12  ;;  %v3457_v43 = vrot.slane %v3386_v24, 5  ;;  %v3459_v44 = vrot.slane %v3387_v26, 4  ;;  %v3757_v24 = vld [vmem:[%s6462_s30 + $0x36] sm:$0x1] }
 0x4f8   : > { %v3488_v54 = vsel %vm289_vm1, %v3487_v46, %v3486_v40  ;;  %v6213_v46 = vld [vmem:[%s8544_s2 + $0x18] sm:$0xff]  ;;  %v3756_v26 = vld [vmem:[%s6462_s30 + $0x16] sm:$0x1]  ;;  %v3880_v37 = vrot.slane %v3757_v24, 7 }
 0x4f9   : > { %v7709_v13 = vpop.f32.mrf.mxu2  ;;  %v3508_v25 = vsel %vm298_vm4, %v3507_v2, %v3506_v21  ;;  %3280 = vmatpush.bf16.msra.mxu0 %v6213_v46  ;;  %v6212_v2 = vld [vmem:[%s8544_s2 + $0x10] sm:$0xff]  ;;  %v3366_v21 = vld [vmem:[%s8545_s3] sm:$0xf] }
 0x4fa   : > { %v3510_v30 = vsel %vm301_vm5, %v3509_v8, %v3508_v25  ;;  %3369 = vperm.xlu2 %6297, %v3366_v21   ;;  %v3759_v25 = vld [vmem:[%s6462_s30 + $0x76] sm:$0x1]  ;;  %v3881_v46 = vsel %vm286_vm0, %v3880_v37, %v3756_v26  ;;  %v3752_v21 = vld [vmem:[%s6462_s30 + $0x195] sm:$0x1] }
 0x4fb   : > { %v2981_v47 = vpop.f32.mrf.mxu0  ;;  %v3512_v34 = vsel %vm304_vm6, %v3511_v14, %v3510_v30  ;;  %v3763_v30 = vld [vmem:[%s6462_s30 + $0xf6] sm:$0x1] }
 0x4fc   : > { %v3489_v47 = vrot.slane %v3394_v28, 5  ;;  %v3443_v28 = vrot.slane %v3378_v6, 5 }
 0x4fd   : > { %3281 = vmatpush.bf16.msra.mxu0 %v6212_v2  ;;  %v3744_v2 = vld [vmem:[%s6462_s30 + $0x95] sm:$0x1] }
 0x4fe   : > { %v3490_v61 = vsel %vm292_vm2, %v3489_v47, %v3488_v54  ;;  %v3444_v42 = vsel %vm292_vm2, %v3443_v28, %v3442_v36  ;;  %v3761_v28 = vld [vmem:[%s6462_s30 + $0xb6] sm:$0x1]  ;;  %v3840_v24 = vrot.slane %v3744_v2, 4 }
 0x4ff   : > { %v3492_v0 = vsel %vm295_vm3, %v3491_v50, %v3490_v61  ;;  %v3446_v48 = vsel %vm295_vm3, %v3445_v29, %v3444_v42  ;;  %v3461_v50 = vrot.slane %v3388_v16, 3  ;;  %v3762_v29 = vld [vmem:[%s6462_s30 + $0xd6] sm:$0x1]  ;;  %v3888_v42 = vrot.slane %v3761_v28, 3 }
 0x500   : > { %v3494_v7 = vsel %vm298_vm4, %v3493_v19, %v3492_v0  ;;  %v3448_v19 = vsel %vm298_vm4, %v3447_v15, %v3446_v48  ;;  %v3764_v16 = vld [vmem:[%s6462_s30 + $0x116] sm:$0x1] }
 0x501   : > { %v2936_v60 = vpop.f32.mrf.mxu2  ;;  %v3496_v10 = vsel %vm301_vm5, %v3495_v45, %v3494_v7  ;;  %v3456_v45 = vsel %vm289_vm1, %v3455_v39, %v3454_v49  ;;  %v3450_v54 = vsel %vm301_vm5, %v3449_v32, %v3448_v19  ;;  %3573 = vmatpush.bf16.msrb.mxu0 %v7739_v11  ;;  %v3765_v15 = vld [vmem:[%s6462_s30 + $0x136] sm:$0x1]  ;;  %v3882_v39 = vrot.slane %v3758_v3, 6 }
 0x502   : > { %v3498_v20 = vsel %vm304_vm6, %v3497_v56, %v3496_v10  ;;  %v3458_v56 = vsel %vm292_vm2, %v3457_v43, %v3456_v45  ;;  %v3452_v60 = vsel %vm304_vm6, %v3451_v33, %v3450_v54  ;;  %v3021_v10 = vpop.permute.xlu1 %3020  ;;  %v3766_v32 = vld [vmem:[%s6462_s30 + $0x156] sm:$0x1]  ;;  %v3890_v43 = vrot.slane %v3762_v29, 2 }
 0x503   : > { %v3562_v40 = vpack.c.bf16 %v3512_v34, %v3498_v20  ;;  %v3460_v59 = vsel %vm295_vm3, %v3459_v44, %v3458_v56  ;;  %v3767_v33 = vld [vmem:[%s6462_s30 + $0x176] sm:$0x1]  ;;  %v3894_v44 = vrot.slane %v3765_v15, 7  ;;  %v3883_v45 = vsel %vm289_vm1, %v3882_v39, %v3881_v46  ;;  %v3728_v46 = vld [vmem:[%s6462_s30 + $0x94] sm:$0x1] }
 0x504   : > { %v3462_v61 = vsel %vm298_vm4, %v3461_v50, %v3460_v59  ;;  %v3768_v34 = vld [vmem:[%s6462_s30 + $0x196] sm:$0x1]  ;;  %v3898_v48 = vrot.slane %v3767_v33, 5  ;;  %v3741_v50 = vld [vmem:[%s6462_s30 + $0x35] sm:$0x1]  ;;  %v3902_v56 = vrot.slane %v3769_v35, 3 }
 0x505   : > { %3596 = vmatpush.bf16.msrb.mxu1 %v3562_v40  ;;  %v3464_v62 = vsel %vm301_vm5, %v3463_v51, %v3462_v61  ;;  %3574 = vmatpush.bf16.msrb.mxu0 %v3562_v40  ;;  %v3770_v36 = vld [vmem:[%s6462_s30 + $0x1d6] sm:$0x1]  ;;  %v3900_v49 = vrot.slane %v3768_v34, 4  ;;  %v3892_v51 = vrot.slane %v3763_v30, 1  ;;  %v3895_v54 = vsel %vm286_vm0, %v3894_v44, %v3764_v16  ;;  %v3740_v61 = vld [vmem:[%s6462_s30 + $0x15] sm:$0x1] }
 0x506   : > { %v3466_v31 = vsel %vm304_vm6, %v3465_v58, %v3464_v62  ;;  %v3834_v62 = vrot.slane %v3741_v50, 7  ;;  %v3725_v16 = vld [vmem:[%s6462_s30 + $0x34] sm:$0x1]  ;;  %v3854_v35 = vrot.slane %v3752_v21, 4  ;;  %v3858_v44 = vrot.slane %v3754_v23, 2 }
 0x507   : > { %v3561_v0 = vpack.c.bf16 %v3466_v31, %v3452_v60  ;;  %v3904_v60 = vrot.slane %v3770_v36, 2  ;;  %v3726_v36 = vld [vmem:[%s6462_s30 + $0x54] sm:$0x1]  ;;  %v3794_v2 = vrot.slane %v3728_v46, 4 }
 0x509   : > { %v3228_v53 = vpop.f32.mrf.mxu2  ;;  %3597 = vmatpush.bf16.msrb.mxu1 %v3561_v0  ;;  %3575 = vmatpush.bf16.msrb.mxu0 %v3561_v0 }
 0x50a   : > { %v3232_v47 = vpack.c.bf16 %v3228_v53, %v3228_v53  ;;  %v3884_v53 = vrot.slane %v3759_v25, 5 }
 0x50c   : > { %5896 = vmatmul.msk.bf16.vlgmr.msra.gmra.mxu1 %vm476_vm8, %v3232_v47  ;;  %v3896_v47 = vrot.slane %v3766_v32, 6  ;;  %v3885_v58 = vsel %vm292_vm2, %v3884_v53, %v3883_v45  ;;  %v3860_v45 = vrot.slane %v3755_v27, 1  ;;  %v6217_v27 = vld [vmem:[%s8544_s2 + $0x8] sm:$0xff] }
 0x50d   : > { %v3887_v31 = vsel %vm295_vm3, %v3886_v52, %v3885_v58  ;;  %v3727_v52 = vld [vmem:[%s6462_s30 + $0x74] sm:$0x1]  ;;  %3657 = vmatpush.bf16.msra.mxu3 %v6217_v27 }
 0x50e   : > { %v3897_v59 = vsel %vm289_vm1, %v3896_v47, %v3895_v54  ;;  %v3729_v47 = vld [vmem:[%s6462_s30 + $0xb4] sm:$0x1] }
 0x50f   : > { %v3731_v54 = vld [vmem:[%s6462_s30 + $0xf4] sm:$0x1] }
 0x511   : > { %v3230_v63 = vpop.f32.mrf.mxu2 }
 0x512   : > { %v3899_v63 = vsel %vm292_vm2, %v3898_v48, %v3897_v59  ;;  %v3788_v48 = vrot.slane %v3725_v16, 7  ;;  %v3732_v59 = vld [vmem:[%s6462_s30 + $0x114] sm:$0x1] }
 0x519   : > { %v3328_v6 = vpop.f32.mrf.mxu2 }
 0x51a   : > { %v3332_v7 = vpack.c.bf16 %v3328_v6, %v3328_v6  ;;  %v3901_v6 = vsel %vm295_vm3, %v3900_v49, %v3899_v63  ;;  %v3736_v63 = vld [vmem:[%s6462_s30 + $0x194] sm:$0x1] }
 0x51c   : > { %5915 = vmatmul.msk.bf16.vlgmr.msrb.gmra.mxu1 %vm418_vm7, %v5914_v5  ;;  %5911 = vmatmul.msk.bf16.vlgmr.msrb.gmra.mxu3 %vm476_vm8, %v3332_v7  ;;  %v3889_v5 = vsel %vm298_vm4, %v3888_v42, %v3887_v31  ;;  %v3745_v7 = vld [vmem:[%s6462_s30 + $0xb5] sm:$0x1] }
 0x51d   : > { %v3842_v3 = vrot.slane %v3745_v7, 3  ;;  %v3796_v7 = vrot.slane %v3729_v47, 3 }
 0x521   : > { %v3330_v38 = vpop.f32.mrf.mxu2 }
 0x522   : > { %v3746_v38 = vld [vmem:[%s6462_s30 + $0xd5] sm:$0x1] }
 0x523   : > { %v3844_v25 = vrot.slane %v3746_v38, 2 }
 0x554   : > { %v3370_v46 = vpop.permute.xlu2 %3369 }
 0x569   : > { %v2962_v8 = vpop.f32.mrf.mxu3 }
 0x56a   : > { %v2963_v57 = vadd.f32 %v2962_v8, %v7709_v13  ;;  %v3747_v8 = vld [vmem:[%s6462_s30 + $0xf5] sm:$0x1] }
 0x56b   : > { %v3846_v29 = vrot.slane %v3747_v8, 1  ;;  %v3800_v8 = vrot.slane %v3731_v54, 1 }
 0x571   : > { %v2964_v1 = vpop.f32.mrf.mxu3 }
 0x572   : > { %v3891_v1 = vsel %vm301_vm5, %v3890_v43, %v3889_v5 }
 0x573   : > { %v3012_v41 = vpop.f32.mrf.mxu1 }
 0x574   : > { %v3016_v12 = vadd.f32 %v3012_v41, %v2963_v57  ;;  %v3903_v57 = vsel %vm298_vm4, %v3902_v56, %v3901_v6  ;;  %v3748_v41 = vld [vmem:[%s6462_s30 + $0x115] sm:$0x1]  ;;  %v3737_v6 = vld [vmem:[%s6462_s30 + $0x1b4] sm:$0x1] }
 0x575   : > { %v3810_v23 = vrot.slane %v3737_v6, 3  ;;  %v4113_v6 = vld [vmem:[%s6462_s30 + $0x118] sm:$0x1] }
 0x576   : > { %v3023_v14 = vadd.f32 %v3021_v10, %v3016_v12  ;;  %v3749_v10 = vld [vmem:[%s6462_s30 + $0x135] sm:$0x1] }
 0x577   : > { %v3750_v12 = vld [vmem:[%s6462_s30 + $0x155] sm:$0x1]  ;;  %v3848_v30 = vrot.slane %v3749_v10, 7 }
 0x578   : > { %5871 = vst.msk [vmem:[%s6982_s6 + $0x1c] sm:$0xf] %vm581_vm9, %v3023_v14  ;;  %v3751_v14 = vld [vmem:[%s6462_s30 + $0x175] sm:$0x1]  ;;  %v3850_v33 = vrot.slane %v3750_v12, 6 }
 0x579   : > { %v3250_v17 = vpop.f32.mrf.mxu3  ;;  %v3852_v34 = vrot.slane %v3751_v14, 5  ;;  %v3849_v39 = vsel %vm286_vm0, %v3848_v30, %v3748_v41 }
 0x57a   : > { %v3254_v18 = vpack.c.bf16 %v3250_v17, %v3250_v17  ;;  %v3835_v17 = vsel %vm286_vm0, %v3834_v62, %v3740_v61  ;;  %v3851_v43 = vsel %vm289_vm1, %v3850_v33, %v3849_v39  ;;  %v3734_v61 = vld [vmem:[%s6462_s30 + $0x154] sm:$0x1] }
 0x57b   : > { %v3014_v20 = vpop.f32.mrf.mxu1  ;;  %v3853_v50 = vsel %vm292_vm2, %v3852_v34, %v3851_v43  ;;  %v3804_v12 = vrot.slane %v3734_v61, 6  ;;  %v6222_v61 = vld [vmem:[%s8544_s2] sm:$0xff] }
 0x57c   : > { %5887 = vmatmul.msk.bf16.vlgmr.msra.gmra.mxu0 %vm476_vm8, %v3254_v18  ;;  %v3893_v18 = vsel %vm304_vm6, %v3892_v51, %v3891_v1  ;;  %v3905_v20 = vsel %vm301_vm5, %v3904_v60, %v3903_v57  ;;  %v3730_v51 = vld [vmem:[%s6462_s30 + $0xd4] sm:$0x1]  ;;  %v3855_v58 = vsel %vm295_vm3, %v3854_v35, %v3853_v50 }
 0x57d   : > { %3673 = vmatpush.bf16.msra.mxu0 %v7739_v11  ;;  %v5938_v11 = vld [vmem:[%s8543_s1 + $0x4] sm:$0x3]  ;;  %v3733_v60 = vld [vmem:[%s6462_s30 + $0x134] sm:$0x1]  ;;  %v3798_v38 = vrot.slane %v3730_v51, 2 }
 0x57e   : > { %v3738_v57 = vld [vmem:[%s6462_s30 + $0x1d4] sm:$0x1]  ;;  %v3802_v10 = vrot.slane %v3733_v60, 7  ;;  %v6223_v60 = vld [vmem:[%s8544_s2 + $0x8] sm:$0xff] }
 0x581   : > { %v3252_v13 = vpop.f32.mrf.mxu3  ;;  %3674 = vmatpush.bf16.msra.mxu0 %v3562_v40  ;;  %v3771_v40 = vld [vmem:[%s6462_s30 + $0x1f6] sm:$0x1] }
 0x582   : > { %v3753_v13 = vld [vmem:[%s6462_s30 + $0x1b5] sm:$0x1] }
 0x583   : > { %v3856_v53 = vrot.slane %v3753_v13, 3  ;;  %v3808_v13 = vrot.slane %v3736_v63, 4  ;;  %v4105_v63 = vld [vmem:[%s6462_s30 + $0x18] sm:$0x1] }
 0x585   : > { %3675 = vmatpush.bf16.msra.mxu0 %v3561_v0  ;;  %v3906_v0 = vrot.slane %v3771_v40, 1  ;;  %v3724_v40 = vld [vmem:[%s6462_s30 + $0x14] sm:$0x1]  ;;  %v3857_v31 = vsel %vm298_vm4, %v3856_v53, %v3855_v58 }
 0x586   : > { %v3789_v62 = vsel %vm286_vm0, %v3788_v48, %v3724_v40  ;;  %v3859_v5 = vsel %vm301_vm5, %v3858_v44, %v3857_v31  ;;  %v3913_v40 = vld [vmem:[%s8543_s1] sm:$0x3]  ;;  %v5979_v44 = vld [vmem:[%s8543_s1 + $0x4] sm:$0x3]  ;;  %v4108_v31 = vld [vmem:[%s6462_s30 + $0x78] sm:$0x1] }
 0x587   : > { %v3907_v4 = vsel %vm304_vm6, %v3906_v0, %v3905_v20  ;;  %v3790_v0 = vrot.slane %v3726_v36, 6  ;;  %v3861_v1 = vsel %vm304_vm6, %v3860_v45, %v3859_v5  ;;  %v6216_v36 = vld [vmem:[%s8544_s2] sm:$0xff]  ;;  %v4112_v5 = vld [vmem:[%s6462_s30 + $0xf8] sm:$0x1] }
 0x588   : > { %v7875_v26 = vpack.c.bf16 %v3907_v4, %v3893_v18  ;;  %v3739_v18 = vld [vmem:[%s6462_s30 + $0x1f4] sm:$0x1]  ;;  %v3803_v4 = vsel %vm286_vm0, %v3802_v10, %v3732_v59  ;;  %3658 = vmatpush.bf16.msra.mxu3 %v6216_v36  ;;  %v3715_v48 = vld [vmem:[%s8545_s3] sm:$0xf]  ;;  %v4241_v27 = vrot.slane %v4112_v5, 1 }
 0x589   : > { %v7845_v19 = vpop.f32.mrf.mxu1  ;;  %v3791_v41 = vsel %vm289_vm1, %v3790_v0, %v3789_v62  ;;  %v3814_v30 = vrot.slane %v3739_v18, 1  ;;  %3718 = vperm.xlu0 %6295, %v3715_v48   ;;  %v4107_v62 = vld [vmem:[%s6462_s30 + $0x58] sm:$0x1]  ;;  %v4098_v48 = vld [vmem:[%s6462_s30 + $0x137] sm:$0x1] }
 0x58a   : > { %3922 = vmatpush.bf16.msrb.mxu2 %v7875_v26  ;;  %v4109_v0 = vld [vmem:[%s6462_s30 + $0x98] sm:$0x1]  ;;  %v4197_v5 = vrot.slane %v4098_v48, 7 }
 0x58b   : > { %v4235_v18 = vrot.slane %v4109_v0, 4  ;;  %v4104_v0 = vld [vmem:[%s6462_s30 + $0x1f7] sm:$0x1] }
 0x58c   : > { %5913 = vmatmul.msk.bf16.vlgmr.msrb.gmra.mxu0 %vm418_vm7, %v3564_v22  ;;  %v3836_v22 = vrot.slane %v3742_v55, 6  ;;  %v3735_v55 = vld [vmem:[%s6462_s30 + $0x174] sm:$0x1]  ;;  %3944 = vmatpush.bf16.msrb.mxu3 %v7875_v26 }
 0x58d   : > { %v3806_v21 = vrot.slane %v3735_v55, 5  ;;  %v4106_v55 = vld [vmem:[%s6462_s30 + $0x38] sm:$0x1] }
 0x58e   : > { %v3837_v28 = vsel %vm289_vm1, %v3836_v22, %v3835_v17  ;;  %v4229_v10 = vrot.slane %v4106_v55, 7 }
 0x591   : > { %v3313_v15 = vpop.f32.mrf.mxu1 }
 0x599   : > { %v3599_v14 = vpop.f32.mrf.mxu1 }
 0x59a   : > { %v3603_v22 = vpack.c.bf16 %v3599_v14, %v3599_v14  ;;  %v4233_v14 = vrot.slane %v4108_v31, 5 }
 0x59c   : > { %5939 = vmatmul.msk.bf16.vlgmr.msra.gmra.mxu0 %vm418_vm7, %v5938_v11  ;;  %v3838_v11 = vrot.slane %v3743_v9, 5  ;;  %v3792_v9 = vrot.slane %v3727_v52, 5  ;;  %5928 = vmatmul.msk.bf16.vlgmr.msra.gmra.mxu2 %vm476_vm8, %v3603_v22  ;;  %v6221_v52 = vld [vmem:[%s8544_s2 + $0x28] sm:$0xff]  ;;  %v4230_v22 = vsel %vm286_vm0, %v4229_v10, %v4105_v63 }
 0x59d   : > { %3707 = vmatpush.bf16.msra.mxu1 %v6221_v52 }
 0x59e   : > { %v3839_v32 = vsel %vm292_vm2, %v3838_v11, %v3837_v28  ;;  %v3793_v20 = vsel %vm292_vm2, %v3792_v9, %v3791_v41  ;;  %v4110_v9 = vld [vmem:[%s6462_s30 + $0xb8] sm:$0x1] }
 0x59f   : > { %v3841_v37 = vsel %vm295_vm3, %v3840_v24, %v3839_v32  ;;  %v3795_v11 = vsel %vm295_vm3, %v3794_v2, %v3793_v20  ;;  %v3361_v33 = vpop.f32.mrf.mxu3  ;;  %v4111_v2 = vld [vmem:[%s6462_s30 + $0xd8] sm:$0x1]  ;;  %v4237_v20 = vrot.slane %v4110_v9, 3 }
 0x5a0   : > { %v3843_v42 = vsel %vm298_vm4, %v3842_v3, %v3841_v37  ;;  %v3797_v24 = vsel %vm298_vm4, %v3796_v7, %v3795_v11  ;;  %v3805_v3 = vsel %vm289_vm1, %v3804_v12, %v3803_v4  ;;  %v4114_v7 = vld [vmem:[%s6462_s30 + $0x138] sm:$0x1]  ;;  %v4231_v12 = vrot.slane %v4107_v62, 6 }
 0x5a1   : > { %v3845_v49 = vsel %vm301_vm5, %v3844_v25, %v3843_v42  ;;  %v3812_v25 = vrot.slane %v3738_v57, 2  ;;  %v3799_v28 = vsel %vm301_vm5, %v3798_v38, %v3797_v24  ;;  %v3601_v37 = vpop.f32.mrf.mxu1  ;;  %v4115_v38 = vld [vmem:[%s6462_s30 + $0x158] sm:$0x1]  ;;  %v4090_v24 = vld [vmem:[%s6462_s30 + $0x37] sm:$0x1] }
 0x5a2   : > { %v3847_v56 = vsel %vm304_vm6, %v3846_v29, %v3845_v49  ;;  %v3807_v29 = vsel %vm292_vm2, %v3806_v21, %v3805_v3  ;;  %v3801_v15 = vsel %vm304_vm6, %v3800_v8, %v3799_v28  ;;  %v4116_v8 = vld [vmem:[%s6462_s30 + $0x178] sm:$0x1]  ;;  %v4239_v21 = vrot.slane %v4111_v2, 2 }
 0x5a3   : > { %v3911_v17 = vpack.c.bf16 %v3861_v1, %v3847_v56  ;;  %v3809_v16 = vsel %vm295_vm3, %v3808_v13, %v3807_v29  ;;  %v5955_v56 = vld [vmem:[%s8543_s1 + $0x2] sm:$0x3]  ;;  %v4117_v1 = vld [vmem:[%s6462_s30 + $0x198] sm:$0x1]  ;;  %v4243_v13 = vrot.slane %v4114_v7, 7  ;;  %v4245_v11 = vrot.slane %v4115_v38, 6 }
 0x5a4   : > { %v3811_v32 = vsel %vm298_vm4, %v3810_v23, %v3809_v16  ;;  %v4118_v57 = vld [vmem:[%s6462_s30 + $0x1b8] sm:$0x1]  ;;  %v4247_v4 = vrot.slane %v4116_v8, 5  ;;  %v4249_v23 = vrot.slane %v4117_v1, 4 }
 0x5a5   : > { %3923 = vmatpush.bf16.msrb.mxu2 %v3911_v17  ;;  %v3813_v34 = vsel %vm301_vm5, %v3812_v25, %v3811_v32  ;;  %3945 = vmatpush.bf16.msrb.mxu3 %v3911_v17  ;;  %v4119_v41 = vld [vmem:[%s6462_s30 + $0x1d8] sm:$0x1]  ;;  %v4232_v25 = vsel %vm289_vm1, %v4231_v12, %v4230_v22  ;;  %v4244_v28 = vsel %vm286_vm0, %v4243_v13, %v4113_v6  ;;  %v4251_v29 = vrot.slane %v4118_v57, 3  ;;  %v4089_v32 = vld [vmem:[%s6462_s30 + $0x17] sm:$0x1] }
 0x5a6   : > { %v3815_v35 = vsel %vm304_vm6, %v3814_v30, %v3813_v34  ;;  %v4234_v30 = vsel %vm292_vm2, %v4233_v14, %v4232_v25  ;;  %v4246_v16 = vsel %vm289_vm1, %v4245_v11, %v4244_v28  ;;  %v4183_v34 = vrot.slane %v4090_v24, 7  ;;  %v4074_v6 = vld [vmem:[%s6462_s30 + $0x36] sm:$0x1] }
 0x5a7   : > { %v3910_v39 = vpack.c.bf16 %v3815_v35, %v3801_v15  ;;  %v3363_v53 = vpop.f32.mrf.mxu3  ;;  %v4253_v15 = vrot.slane %v4119_v41, 2  ;;  %v4236_v35 = vsel %vm295_vm3, %v4235_v18, %v4234_v30  ;;  %v4248_v36 = vsel %vm292_vm2, %v4247_v4, %v4246_v16  ;;  %v4075_v41 = vld [vmem:[%s6462_s30 + $0x56] sm:$0x1] }
 0x5a8   : > { %v4093_v53 = vld [vmem:[%s6462_s30 + $0x97] sm:$0x1]  ;;  %v4250_v52 = vsel %vm295_vm3, %v4249_v23, %v4248_v36  ;;  %v4076_v18 = vld [vmem:[%s6462_s30 + $0x76] sm:$0x1]  ;;  %v4137_v4 = vrot.slane %v4074_v6, 7  ;;  %v4209_v25 = vrot.slane %v4104_v0, 1 }
 0x5a9   : > { %3924 = vmatpush.bf16.msrb.mxu2 %v3910_v39  ;;  %3946 = vmatpush.bf16.msrb.mxu3 %v3910_v39  ;;  %v4189_v55 = vrot.slane %v4093_v53, 4  ;;  %v4077_v22 = vld [vmem:[%s6462_s30 + $0x96] sm:$0x1] }
 0x5aa   : > { %v4078_v11 = vld [vmem:[%s6462_s30 + $0xb6] sm:$0x1]  ;;  %v4143_v53 = vrot.slane %v4077_v22, 4 }
 0x5ab   : > { %v4080_v28 = vld [vmem:[%s6462_s30 + $0xf6] sm:$0x1] }
 0x5ac   : > { %5954 = vmatmul.msk.bf16.vlgmr.msrb.gmra.mxu2 %vm418_vm7, %v3913_v40  ;;  %v4238_v40 = vsel %vm298_vm4, %v4237_v20, %v4236_v35  ;;  %v4081_v16 = vld [vmem:[%s6462_s30 + $0x116] sm:$0x1] }
 0x5ad   : > { %4022 = vmatpush.bf16.msra.mxu2 %v7875_v26  ;;  %v6220_v26 = vld [vmem:[%s8544_s2 + $0x20] sm:$0xff]  ;;  %v4085_v36 = vld [vmem:[%s6462_s30 + $0x196] sm:$0x1] }
 0x5ae   : > { %3708 = vmatpush.bf16.msra.mxu1 %v6220_v26  ;;  %v4094_v26 = vld [vmem:[%s6462_s30 + $0xb7] sm:$0x1] }
 0x5af   : > { %v4191_v62 = vrot.slane %v4094_v26, 3  ;;  %v4145_v26 = vrot.slane %v4078_v11, 3 }
 0x5b1   : > { %4023 = vmatpush.bf16.msra.mxu2 %v3911_v17  ;;  %v4120_v17 = vld [vmem:[%s6462_s30 + $0x1f8] sm:$0x1] }
 0x5b2   : > { %4006 = vmatpush.bf16.msrb.mxu1 %v6223_v60  ;;  %v4255_v37 = vrot.slane %v4120_v17, 1  ;;  %v4073_v17 = vld [vmem:[%s6462_s30 + $0x16] sm:$0x1] }
 0x5b5   : > { %4024 = vmatpush.bf16.msra.mxu2 %v3910_v39  ;;  %v4092_v39 = vld [vmem:[%s6462_s30 + $0x77] sm:$0x1] }
 0x5b6   : > { %4007 = vmatpush.bf16.msrb.mxu1 %v6222_v61  ;;  %v4103_v61 = vld [vmem:[%s6462_s30 + $0x1d7] sm:$0x1] }
 0x5b7   : > { %v4207_v13 = vrot.slane %v4103_v61, 2 }
 0x5bc   : > { %5980 = vmatmul.msk.bf16.vlgmr.msra.gmra.mxu2 %vm418_vm7, %v5979_v44  ;;  %v4240_v44 = vsel %vm301_vm5, %v4239_v21, %v4238_v40 }
 0x5f9   : > { %v3283_v42 = vpop.f32.mrf.mxu0 }
 0x5fa   : > { %v3312_v43 = vadd.f32 %v7845_v19, %v3283_v42  ;;  %v4095_v42 = vld [vmem:[%s6462_s30 + $0xd7] sm:$0x1] }
 0x5fb   : > { %v4193_v31 = vrot.slane %v4095_v42, 2 }
 0x5fc   : > { %v3365_v47 = vadd.f32 %v3361_v33, %v3312_v43  ;;  %v4091_v33 = vld [vmem:[%s6462_s30 + $0x57] sm:$0x1] }
 0x5fd   : > { %v4096_v43 = vld [vmem:[%s6462_s30 + $0xf7] sm:$0x1] }
 0x5fe   : > { %v3372_v49 = vadd.f32 %v3370_v46, %v3365_v47  ;;  %v4252_v46 = vsel %vm298_vm4, %v4251_v29, %v4250_v52  ;;  %v4097_v47 = vld [vmem:[%s6462_s30 + $0x117] sm:$0x1]  ;;  %v4195_v2 = vrot.slane %v4096_v43, 1  ;;  %v4086_v52 = vld [vmem:[%s6462_s30 + $0x1b6] sm:$0x1]  ;;  %v4149_v43 = vrot.slane %v4080_v28, 1 }
 0x5ff   : > { %v4198_v12 = vsel %vm286_vm0, %v4197_v5, %v4097_v47 }
 0x600   : > { %5912 = vst.msk [vmem:[%s6982_s6 + $0x20] sm:$0xf] %vm581_vm9, %v3372_v49  ;;  %v4099_v49 = vld [vmem:[%s6462_s30 + $0x157] sm:$0x1] }
 0x601   : > { %v3285_v50 = vpop.f32.mrf.mxu0  ;;  %v4199_v8 = vrot.slane %v4099_v49, 6 }
 0x602   : > { %v4100_v50 = vld [vmem:[%s6462_s30 + $0x177] sm:$0x1] }
 0x603   : > { %v4201_v1 = vrot.slane %v4100_v50, 5  ;;  %v4200_v21 = vsel %vm289_vm1, %v4199_v8, %v4198_v12  ;;  %v6227_v8 = vld [vmem:[%s8544_s2 + $0x28] sm:$0xff]  ;;  %v6226_v12 = vld [vmem:[%s8544_s2 + $0x20] sm:$0xff] }
 0x605   : > { %v4202_v24 = vsel %vm292_vm2, %v4201_v1, %v4200_v21  ;;  %v4064_v21 = vld [vmem:[%s8545_s3] sm:$0xf] }
 0x606   : > { %4067 = vperm.xlu1 %6296, %v4064_v21   ;;  %v4444_v21 = vld [vmem:[%s6462_s30 + $0xd9] sm:$0x1] }
 0x609   : > { %v3577_v19 = vpop.f32.mrf.mxu0 }
 0x60a   : > { %v3581_v45 = vpack.c.bf16 %v3577_v19, %v3577_v19  ;;  %v4184_v19 = vsel %vm286_vm0, %v4183_v34, %v4089_v32  ;;  %v4083_v32 = vld [vmem:[%s6462_s30 + $0x156] sm:$0x1]  ;;  %v4138_v34 = vsel %vm286_vm0, %v4137_v4, %v4073_v17  ;;  %v5996_v17 = vld [vmem:[%s8543_s1 + $0x2] sm:$0x3] }
 0x60b   : > { %v4153_v49 = vrot.slane %v4083_v32, 6  ;;  %v6230_v32 = vld [vmem:[%s8544_s2 + $0x10] sm:$0xff] }
 0x60c   : > { %5937 = vmatmul.msk.bf16.vlgmr.msra.gmra.mxu3 %vm476_vm8, %v3581_v45  ;;  %v4242_v45 = vsel %vm304_vm6, %v4241_v27, %v4240_v44  ;;  %v4079_v27 = vld [vmem:[%s6462_s30 + $0xd6] sm:$0x1] }
 0x60d   : > { %v4147_v42 = vrot.slane %v4079_v27, 2  ;;  %4056 = vmatpush.bf16.msra.mxu3 %v6227_v8  ;;  %v4440_v8 = vld [vmem:[%s6462_s30 + $0x59] sm:$0x1] }
 0x611   : > { %v3579_v51 = vpop.f32.mrf.mxu0  ;;  %4057 = vmatpush.bf16.msra.mxu3 %v6226_v12  ;;  %v4441_v12 = vld [vmem:[%s6462_s30 + $0x79] sm:$0x1] }
 0x612   : > { %v4254_v51 = vsel %vm301_vm5, %v4253_v15, %v4252_v46  ;;  %v4082_v15 = vld [vmem:[%s6462_s30 + $0x136] sm:$0x1] }
 0x613   : > { %v4256_v60 = vsel %vm304_vm6, %v4255_v37, %v4254_v51  ;;  %v4139_v37 = vrot.slane %v4075_v41, 6  ;;  %v4087_v46 = vld [vmem:[%s6462_s30 + $0x1d6] sm:$0x1]  ;;  %v4151_v48 = vrot.slane %v4082_v15, 7  ;;  %v6020_v15 = vld [vmem:[%s8543_s1 + $0x4] sm:$0x3] }
 0x614   : > { %v8011_v63 = vpack.c.bf16 %v4256_v60, %v4242_v45  ;;  %v4088_v45 = vld [vmem:[%s6462_s30 + $0x1f6] sm:$0x1]  ;;  %v4161_v0 = vrot.slane %v4087_v46, 2  ;;  %v4467_v46 = vld [vmem:[%s6462_s30 + $0x1ba] sm:$0x1] }
 0x615   : > { %v4140_v47 = vsel %vm289_vm1, %v4139_v37, %v4138_v34  ;;  %v4152_v61 = vsel %vm286_vm0, %v4151_v48, %v4081_v16  ;;  %v4163_v5 = vrot.slane %v4088_v45, 1  ;;  %v4456_v34 = vld [vmem:[%s6462_s30 + $0x5a] sm:$0x1] }
 0x616   : > { %v4458_v37 = vld [vmem:[%s6462_s30 + $0x9a] sm:$0x1] }
 0x617   : > { %v4584_v45 = vrot.slane %v4458_v37, 4  ;;  %v4453_v37 = vld [vmem:[%s6462_s30 + $0x1f9] sm:$0x1] }
 0x619   : > { %v3677_v54 = vpop.f32.mrf.mxu0 }
 0x61a   : > { %v3681_v58 = vpack.c.bf16 %v3677_v54, %v3677_v54  ;;  %v4101_v54 = vld [vmem:[%s6462_s30 + $0x197] sm:$0x1] }
 0x61b   : > { %v4203_v57 = vrot.slane %v4101_v54, 4 }
 0x61c   : > { %5952 = vmatmul.msk.bf16.vlgmr.msra.gmra.mxu1 %vm476_vm8, %v3681_v58  ;;  %5956 = vmatmul.msk.bf16.vlgmr.msrb.gmra.mxu3 %vm418_vm7, %v5955_v56  ;;  %v4102_v56 = vld [vmem:[%s6462_s30 + $0x1b7] sm:$0x1]  ;;  %v4185_v58 = vrot.slane %v4091_v33, 6  ;;  %v4084_v33 = vld [vmem:[%s6462_s30 + $0x176] sm:$0x1] }
 0x61d   : > { %4293 = vmatpush.bf16.msra.mxu1 %v8011_v63  ;;  %v4205_v14 = vrot.slane %v4102_v56, 3  ;;  %v4204_v30 = vsel %vm295_vm3, %v4203_v57, %v4202_v24  ;;  %v4155_v54 = vrot.slane %v4084_v33, 5  ;;  %v4157_v56 = vrot.slane %v4085_v36, 4  ;;  %v3719_v24 = vpop.permute.xlu0 %3718  ;;  %v4455_v33 = vld [vmem:[%s6462_s30 + $0x3a] sm:$0x1] }
 0x61e   : > { %v4186_v9 = vsel %vm289_vm1, %v4185_v58, %v4184_v19  ;;  %v6225_v58 = vld [vmem:[%s8544_s2 + $0x18] sm:$0xff]  ;;  %v4578_v48 = vrot.slane %v4455_v33, 7 }
 0x61f   : > { %v7981_v3 = vpop.f32.mrf.mxu2  ;;  %v4206_v35 = vsel %vm298_vm4, %v4205_v14, %v4204_v30  ;;  %3978 = vmatpush.bf16.msrb.mxu0 %v6225_v58  ;;  %v6224_v14 = vld [vmem:[%s8544_s2 + $0x10] sm:$0xff]  ;;  %v4454_v36 = vld [vmem:[%s6462_s30 + $0x1a] sm:$0x1] }
 0x620   : > { %v4208_v40 = vsel %vm301_vm5, %v4207_v13, %v4206_v35  ;;  %v4457_v35 = vld [vmem:[%s6462_s30 + $0x7a] sm:$0x1]  ;;  %v4579_v58 = vsel %vm286_vm0, %v4578_v48, %v4454_v36 }
 0x621   : > { %v3679_v59 = vpop.f32.mrf.mxu0  ;;  %v4210_v44 = vsel %vm304_vm6, %v4209_v25, %v4208_v40  ;;  %v4461_v40 = vld [vmem:[%s6462_s30 + $0xfa] sm:$0x1] }
 0x622   : > { %v4187_v59 = vrot.slane %v4092_v39, 5  ;;  %v4141_v39 = vrot.slane %v4076_v18, 5 }
 0x623   : > { %3979 = vmatpush.bf16.msrb.mxu0 %v6224_v14  ;;  %v4442_v14 = vld [vmem:[%s6462_s30 + $0x99] sm:$0x1] }
 0x624   : > { %v4188_v38 = vsel %vm292_vm2, %v4187_v59, %v4186_v9  ;;  %v4142_v51 = vsel %vm292_vm2, %v4141_v39, %v4140_v47  ;;  %v4459_v39 = vld [vmem:[%s6462_s30 + $0xba] sm:$0x1]  ;;  %v4538_v33 = vrot.slane %v4442_v14, 4 }
 0x625   : > { %v4190_v10 = vsel %vm295_vm3, %v4189_v55, %v4188_v38  ;;  %v4144_v60 = vsel %vm295_vm3, %v4143_v53, %v4142_v51  ;;  %v4159_v55 = vrot.slane %v4086_v52, 3  ;;  %v4460_v53 = vld [vmem:[%s6462_s30 + $0xda] sm:$0x1]  ;;  %v4586_v51 = vrot.slane %v4459_v39, 3 }
 0x626   : > { %v4192_v20 = vsel %vm298_vm4, %v4191_v62, %v4190_v10  ;;  %v4146_v62 = vsel %vm298_vm4, %v4145_v26, %v4144_v60  ;;  %v4462_v52 = vld [vmem:[%s6462_s30 + $0x11a] sm:$0x1] }
 0x627   : > { %v3634_v7 = vpop.f32.mrf.mxu2  ;;  %v4194_v23 = vsel %vm301_vm5, %v4193_v31, %v4192_v20  ;;  %v4154_v31 = vsel %vm289_vm1, %v4153_v49, %v4152_v61  ;;  %v4148_v9 = vsel %vm301_vm5, %v4147_v42, %v4146_v62  ;;  %4271 = vmatpush.bf16.msra.mxu0 %v8011_v63  ;;  %v4463_v26 = vld [vmem:[%s6462_s30 + $0x13a] sm:$0x1]  ;;  %v4580_v49 = vrot.slane %v4456_v34, 6 }
 0x628   : > { %v4196_v29 = vsel %vm304_vm6, %v4195_v2, %v4194_v23  ;;  %v4156_v2 = vsel %vm292_vm2, %v4155_v54, %v4154_v31  ;;  %v4150_v7 = vsel %vm304_vm6, %v4149_v43, %v4148_v9  ;;  %v4464_v42 = vld [vmem:[%s6462_s30 + $0x15a] sm:$0x1]  ;;  %v4588_v54 = vrot.slane %v4460_v53, 2 }
 0x629   : > { %v4260_v19 = vpack.c.bf16 %v4210_v44, %v4196_v29  ;;  %v4158_v6 = vsel %vm295_vm3, %v4157_v56, %v4156_v2  ;;  %v4465_v43 = vld [vmem:[%s6462_s30 + $0x17a] sm:$0x1]  ;;  %v4592_v56 = vrot.slane %v4463_v26, 7  ;;  %v4581_v31 = vsel %vm289_vm1, %v4580_v49, %v4579_v58  ;;  %v4426_v58 = vld [vmem:[%s6462_s30 + $0x98] sm:$0x1] }
 0x62a   : > { %v4160_v38 = vsel %vm298_vm4, %v4159_v55, %v4158_v6  ;;  %v4466_v44 = vld [vmem:[%s6462_s30 + $0x19a] sm:$0x1]  ;;  %v4596_v60 = vrot.slane %v4465_v43, 5  ;;  %v4439_v55 = vld [vmem:[%s6462_s30 + $0x39] sm:$0x1]  ;;  %v4600_v2 = vrot.slane %v4467_v46, 3 }
 0x62b   : > { %4294 = vmatpush.bf16.msra.mxu1 %v4260_v19  ;;  %v4162_v1 = vsel %vm301_vm5, %v4161_v0, %v4160_v38  ;;  %4272 = vmatpush.bf16.msra.mxu0 %v4260_v19  ;;  %v4468_v47 = vld [vmem:[%s6462_s30 + $0x1da] sm:$0x1]  ;;  %v4598_v61 = vrot.slane %v4466_v44, 4  ;;  %v4590_v0 = vrot.slane %v4461_v40, 1  ;;  %v4593_v9 = vsel %vm286_vm0, %v4592_v56, %v4462_v52  ;;  %v4438_v38 = vld [vmem:[%s6462_s30 + $0x19] sm:$0x1] }
 0x62c   : > { %v4164_v57 = vsel %vm304_vm6, %v4163_v5, %v4162_v1  ;;  %v4532_v1 = vrot.slane %v4439_v55, 7  ;;  %v4423_v52 = vld [vmem:[%s6462_s30 + $0x38] sm:$0x1]  ;;  %v4492_v14 = vrot.slane %v4426_v58, 4 }
 0x62d   : > { %v4259_v10 = vpack.c.bf16 %v4164_v57, %v4150_v7  ;;  %v4602_v7 = vrot.slane %v4468_v47, 2  ;;  %v4424_v47 = vld [vmem:[%s6462_s30 + $0x58] sm:$0x1] }
 0x62f   : > { %v3926_v50 = vpop.f32.mrf.mxu2  ;;  %4295 = vmatpush.bf16.msra.mxu1 %v4259_v10  ;;  %4273 = vmatpush.bf16.msra.mxu0 %v4259_v10 }
 0x630   : > { %v3930_v59 = vpack.c.bf16 %v3926_v50, %v3926_v50  ;;  %v4582_v50 = vrot.slane %v4457_v35, 5  ;;  %v4542_v35 = vrot.slane %v4444_v21, 2 }
 0x632   : > { %5978 = vmatmul.msk.bf16.vlgmr.msrb.gmra.mxu1 %vm476_vm8, %v3930_v59  ;;  %v4594_v59 = vrot.slane %v4464_v42, 6  ;;  %v4583_v5 = vsel %vm292_vm2, %v4582_v50, %v4581_v31  ;;  %v4558_v31 = vrot.slane %v4453_v37, 1  ;;  %v6229_v37 = vld [vmem:[%s8544_s2 + $0x8] sm:$0xff] }
 0x633   : > { %v4585_v57 = vsel %vm295_vm3, %v4584_v45, %v4583_v5  ;;  %v4425_v45 = vld [vmem:[%s6462_s30 + $0x78] sm:$0x1]  ;;  %4355 = vmatpush.bf16.msrb.mxu3 %v6229_v37 }
 0x634   : > { %v4595_v6 = vsel %vm289_vm1, %v4594_v59, %v4593_v9  ;;  %v4427_v59 = vld [vmem:[%s6462_s30 + $0xb8] sm:$0x1] }
 0x635   : > { %v4429_v9 = vld [vmem:[%s6462_s30 + $0xf8] sm:$0x1] }
 0x637   : > { %v3928_v41 = vpop.f32.mrf.mxu2 }
 0x638   : > { %v4597_v41 = vsel %vm292_vm2, %v4596_v60, %v4595_v6  ;;  %v4486_v60 = vrot.slane %v4423_v52, 7  ;;  %v4430_v6 = vld [vmem:[%s6462_s30 + $0x118] sm:$0x1] }
 0x63f   : > { %v4026_v18 = vpop.f32.mrf.mxu2 }
 0x640   : > { %v4030_v20 = vpack.c.bf16 %v4026_v18, %v4026_v18  ;;  %v4599_v18 = vsel %vm295_vm3, %v4598_v61, %v4597_v41  ;;  %v4434_v41 = vld [vmem:[%s6462_s30 + $0x198] sm:$0x1] }
 0x642   : > { %5997 = vmatmul.msk.bf16.vlgmr.msra.gmra.mxu1 %vm418_vm7, %v5996_v17  ;;  %5993 = vmatmul.msk.bf16.vlgmr.msra.gmra.mxu3 %vm476_vm8, %v4030_v20  ;;  %v4587_v17 = vsel %vm298_vm4, %v4586_v51, %v4585_v57  ;;  %v4443_v20 = vld [vmem:[%s6462_s30 + $0xb9] sm:$0x1] }
 0x643   : > { %v4540_v34 = vrot.slane %v4443_v20, 3  ;;  %v4494_v20 = vrot.slane %v4427_v59, 3 }
 0x647   : > { %v4028_v13 = vpop.f32.mrf.mxu2 }
 0x648   : > { %v4445_v13 = vld [vmem:[%s6462_s30 + $0xf9] sm:$0x1] }
 0x649   : > { %v4544_v53 = vrot.slane %v4445_v13, 1  ;;  %v4498_v13 = vrot.slane %v4429_v9, 1 }
 0x678   : > { %v4068_v58 = vpop.permute.xlu1 %4067 }
 0x68f   : > { %v3660_v22 = vpop.f32.mrf.mxu3 }
 0x690   : > { %v3661_v4 = vadd.f32 %v3660_v22, %v7981_v3  ;;  %v4262_v3 = vld [vmem:[%s8543_s1] sm:$0x3]  ;;  %v4589_v22 = vsel %vm301_vm5, %v4588_v54, %v4587_v17 }
 0x697   : > { %v3662_v11 = vpop.f32.mrf.mxu3 }
 0x698   : > { %v4601_v11 = vsel %vm298_vm4, %v4600_v2, %v4599_v18  ;;  %v4435_v18 = vld [vmem:[%s6462_s30 + $0x1b8] sm:$0x1] }
 0x699   : > { %v3710_v23 = vpop.f32.mrf.mxu1 }
 0x69a   : > { %v3714_v25 = vadd.f32 %v3710_v23, %v3661_v4  ;;  %v4446_v4 = vld [vmem:[%s6462_s30 + $0x119] sm:$0x1] }
 0x69b   : > { %v4447_v23 = vld [vmem:[%s6462_s30 + $0x139] sm:$0x1] }
 0x69c   : > { %v3721_v27 = vadd.f32 %v3719_v24, %v3714_v25  ;;  %v4448_v24 = vld [vmem:[%s6462_s30 + $0x159] sm:$0x1]  ;;  %v4546_v40 = vrot.slane %v4447_v23, 7 }
 0x69d   : > { %v4449_v25 = vld [vmem:[%s6462_s30 + $0x179] sm:$0x1]  ;;  %v4548_v43 = vrot.slane %v4448_v24, 6 }
 0x69e   : > { %5953 = vst.msk [vmem:[%s6982_s6 + $0x24] sm:$0xf] %vm581_vm9, %v3721_v27  ;;  %v4533_v27 = vsel %vm286_vm0, %v4532_v1, %v4438_v38  ;;  %v4550_v44 = vrot.slane %v4449_v25, 5  ;;  %v4547_v49 = vsel %vm286_vm0, %v4546_v40, %v4446_v4  ;;  %v4432_v38 = vld [vmem:[%s6462_s30 + $0x158] sm:$0x1] }
 0x69f   : > { %v3948_v28 = vpop.f32.mrf.mxu3  ;;  %v4549_v54 = vsel %vm289_vm1, %v4548_v43, %v4547_v49  ;;  %v4502_v24 = vrot.slane %v4432_v38, 6  ;;  %v6234_v38 = vld [vmem:[%s8544_s2] sm:$0xff] }
 0x6a0   : > { %v3952_v29 = vpack.c.bf16 %v3948_v28, %v3948_v28  ;;  %v4591_v28 = vsel %vm304_vm6, %v4590_v0, %v4589_v22  ;;  %v4551_v55 = vsel %vm292_vm2, %v4550_v44, %v4549_v54  ;;  %v4428_v0 = vld [vmem:[%s6462_s30 + $0xd8] sm:$0x1] }
 0x6a1   : > { %v3712_v30 = vpop.f32.mrf.mxu1  ;;  %v4496_v21 = vrot.slane %v4428_v0, 2 }
 0x6a2   : > { %5969 = vmatmul.msk.bf16.vlgmr.msrb.gmra.mxu0 %vm476_vm8, %v3952_v29  ;;  %v4603_v29 = vsel %vm301_vm5, %v4602_v7, %v4601_v11  ;;  %v4450_v30 = vld [vmem:[%s6462_s30 + $0x199] sm:$0x1]  ;;  %v4431_v7 = vld [vmem:[%s6462_s30 + $0x138] sm:$0x1] }
 0x6a3   : > { %4371 = vmatpush.bf16.msrb.mxu0 %v8011_v63  ;;  %v6231_v63 = vld [vmem:[%s8544_s2 + $0x18] sm:$0xff]  ;;  %v4552_v46 = vrot.slane %v4450_v30, 4  ;;  %v4500_v23 = vrot.slane %v4431_v7, 7  ;;  %v6235_v7 = vld [vmem:[%s8544_s2 + $0x8] sm:$0xff] }
 0x6a4   : > { %4327 = vmatpush.bf16.msrb.mxu2 %v6231_v63  ;;  %v4436_v11 = vld [vmem:[%s6462_s30 + $0x1d8] sm:$0x1] }
 0x6a5   : > { %v4553_v5 = vsel %vm295_vm3, %v4552_v46, %v4551_v55 }
 0x6a7   : > { %v3950_v16 = vpop.f32.mrf.mxu3  ;;  %4372 = vmatpush.bf16.msrb.mxu0 %v4260_v19  ;;  %v4469_v19 = vld [vmem:[%s6462_s30 + $0x1fa] sm:$0x1] }
 0x6a8   : > { %4328 = vmatpush.bf16.msrb.mxu2 %v6230_v32  ;;  %v4451_v16 = vld [vmem:[%s6462_s30 + $0x1b9] sm:$0x1] }
 0x6a9   : > { %v4452_v32 = vld [vmem:[%s6462_s30 + $0x1d9] sm:$0x1]  ;;  %v4554_v50 = vrot.slane %v4451_v16, 3  ;;  %v4506_v16 = vrot.slane %v4434_v41, 4  ;;  %v4803_v41 = vld [vmem:[%s6462_s30 + $0x1c] sm:$0x1] }
 0x6aa   : > { %v4556_v56 = vrot.slane %v4452_v32, 2  ;;  %v4508_v32 = vrot.slane %v4435_v18, 3  ;;  %v4811_v18 = vld [vmem:[%s6462_s30 + $0x11c] sm:$0x1] }
 0x6ab   : > { %4373 = vmatpush.bf16.msrb.mxu0 %v4259_v10  ;;  %v4604_v10 = vrot.slane %v4469_v19, 1  ;;  %v4422_v19 = vld [vmem:[%s6462_s30 + $0x18] sm:$0x1]  ;;  %v4555_v57 = vsel %vm298_vm4, %v4554_v50, %v4553_v5 }
 0x6ac   : > { %v4487_v1 = vsel %vm286_vm0, %v4486_v60, %v4422_v19  ;;  %v4557_v17 = vsel %vm301_vm5, %v4556_v56, %v4555_v57  ;;  %v4611_v19 = vld [vmem:[%s8543_s1] sm:$0x3]  ;;  %v6061_v56 = vld [vmem:[%s8543_s1 + $0x4] sm:$0x3]  ;;  %v4806_v57 = vld [vmem:[%s6462_s30 + $0x7c] sm:$0x1] }
 0x6ad   : > { %v4605_v63 = vsel %vm304_vm6, %v4604_v10, %v4603_v29  ;;  %v4488_v10 = vrot.slane %v4424_v47, 6  ;;  %v4559_v22 = vsel %vm304_vm6, %v4558_v31, %v4557_v17  ;;  %v6228_v47 = vld [vmem:[%s8544_s2] sm:$0xff]  ;;  %v4810_v17 = vld [vmem:[%s6462_s30 + $0xfc] sm:$0x1] }
 0x6ae   : > { %v8147_v36 = vpack.c.bf16 %v4605_v63, %v4591_v28  ;;  %v4437_v28 = vld [vmem:[%s6462_s30 + $0x1f8] sm:$0x1]  ;;  %v4501_v63 = vsel %vm286_vm0, %v4500_v23, %v4430_v6  ;;  %4356 = vmatpush.bf16.msrb.mxu3 %v6228_v47  ;;  %v4413_v60 = vld [vmem:[%s8545_s3] sm:$0xf]  ;;  %v4939_v37 = vrot.slane %v4810_v17, 1 }
 0x6af   : > { %v8117_v62 = vpop.f32.mrf.mxu1  ;;  %v4489_v4 = vsel %vm289_vm1, %v4488_v10, %v4487_v1  ;;  %v4512_v40 = vrot.slane %v4437_v28, 1  ;;  %4416 = vperm.xlu2 %6297, %v4413_v60   ;;  %v4805_v1 = vld [vmem:[%s6462_s30 + $0x5c] sm:$0x1]  ;;  %v4796_v60 = vld [vmem:[%s6462_s30 + $0x13b] sm:$0x1] }
 0x6b0   : > { %4620 = vmatpush.bf16.msra.mxu2 %v8147_v36  ;;  %v4807_v10 = vld [vmem:[%s6462_s30 + $0x9c] sm:$0x1]  ;;  %v4895_v17 = vrot.slane %v4796_v60, 7 }
 0x6b1   : > { %v4933_v28 = vrot.slane %v4807_v10, 4  ;;  %v4802_v10 = vld [vmem:[%s6462_s30 + $0x1fb] sm:$0x1] }
 0x6b2   : > { %5995 = vmatmul.msk.bf16.vlgmr.msra.gmra.mxu0 %vm418_vm7, %v4262_v3  ;;  %v4534_v3 = vrot.slane %v4440_v8, 6  ;;  %v4433_v8 = vld [vmem:[%s6462_s30 + $0x178] sm:$0x1]  ;;  %4642 = vmatpush.bf16.msra.mxu3 %v8147_v36 }
 0x6b3   : > { %v4504_v30 = vrot.slane %v4433_v8, 5  ;;  %v4804_v8 = vld [vmem:[%s6462_s30 + $0x3c] sm:$0x1] }
 0x6b4   : > { %v4535_v39 = vsel %vm289_vm1, %v4534_v3, %v4533_v27  ;;  %v4927_v23 = vrot.slane %v4804_v8, 7 }
 0x6b7   : > { %v4011_v26 = vpop.f32.mrf.mxu1 }
 0x6bf   : > { %v4297_v25 = vpop.f32.mrf.mxu1 }
 0x6c0   : > { %v4301_v3 = vpack.c.bf16 %v4297_v25, %v4297_v25  ;;  %v4931_v25 = vrot.slane %v4806_v57, 5 }
 0x6c2   : > { %6021 = vmatmul.msk.bf16.vlgmr.msrb.gmra.mxu0 %vm418_vm7, %v6020_v15  ;;  %v4536_v15 = vrot.slane %v4441_v12, 5  ;;  %v4490_v12 = vrot.slane %v4425_v45, 5  ;;  %6010 = vmatmul.msk.bf16.vlgmr.msrb.gmra.mxu2 %vm476_vm8, %v4301_v3  ;;  %v6233_v45 = vld [vmem:[%s8544_s2 + $0x28] sm:$0xff]  ;;  %v4928_v3 = vsel %vm286_vm0, %v4927_v23, %v4803_v41 }
 0x6c3   : > { %4405 = vmatpush.bf16.msrb.mxu1 %v6233_v45 }
 0x6c4   : > { %v4537_v42 = vsel %vm292_vm2, %v4536_v15, %v4535_v39  ;;  %v4491_v29 = vsel %vm292_vm2, %v4490_v12, %v4489_v4  ;;  %v4808_v12 = vld [vmem:[%s6462_s30 + $0xbc] sm:$0x1] }
 0x6c5   : > { %v4539_v48 = vsel %vm295_vm3, %v4538_v33, %v4537_v42  ;;  %v4493_v15 = vsel %vm295_vm3, %v4492_v14, %v4491_v29  ;;  %v4059_v43 = vpop.f32.mrf.mxu3  ;;  %v4809_v14 = vld [vmem:[%s6462_s30 + $0xdc] sm:$0x1]  ;;  %v4935_v29 = vrot.slane %v4808_v12, 3 }
 0x6c6   : > { %v4541_v51 = vsel %vm298_vm4, %v4540_v34, %v4539_v48  ;;  %v4495_v33 = vsel %vm298_vm4, %v4494_v20, %v4493_v15  ;;  %v4503_v34 = vsel %vm289_vm1, %v4502_v24, %v4501_v63  ;;  %v4812_v20 = vld [vmem:[%s6462_s30 + $0x13c] sm:$0x1]  ;;  %v4929_v24 = vrot.slane %v4805_v1, 6 }
 0x6c7   : > { %v4543_v61 = vsel %vm301_vm5, %v4542_v35, %v4541_v51  ;;  %v4510_v35 = vrot.slane %v4436_v11, 2  ;;  %v4497_v39 = vsel %vm301_vm5, %v4496_v21, %v4495_v33  ;;  %v4299_v48 = vpop.f32.mrf.mxu1  ;;  %v4813_v21 = vld [vmem:[%s6462_s30 + $0x15c] sm:$0x1]  ;;  %v4788_v33 = vld [vmem:[%s6462_s30 + $0x3b] sm:$0x1] }
 0x6c8   : > { %v4545_v2 = vsel %vm304_vm6, %v4544_v53, %v4543_v61  ;;  %v4505_v53 = vsel %vm292_vm2, %v4504_v30, %v4503_v34  ;;  %v4499_v26 = vsel %vm304_vm6, %v4498_v13, %v4497_v39  ;;  %v4814_v13 = vld [vmem:[%s6462_s30 + $0x17c] sm:$0x1]  ;;  %v4937_v30 = vrot.slane %v4809_v14, 2 }
 0x6c9   : > { %v4609_v27 = vpack.c.bf16 %v4559_v22, %v4545_v2  ;;  %v4507_v52 = vsel %vm295_vm3, %v4506_v16, %v4505_v53  ;;  %v6037_v2 = vld [vmem:[%s8543_s1 + $0x2] sm:$0x3]  ;;  %v4815_v22 = vld [vmem:[%s6462_s30 + $0x19c] sm:$0x1]  ;;  %v4941_v16 = vrot.slane %v4812_v20, 7  ;;  %v4943_v15 = vrot.slane %v4813_v21, 6 }
 0x6ca   : > { %v4509_v42 = vsel %vm298_vm4, %v4508_v32, %v4507_v52  ;;  %v4816_v11 = vld [vmem:[%s6462_s30 + $0x1bc] sm:$0x1]  ;;  %v4945_v63 = vrot.slane %v4814_v13, 5  ;;  %v4947_v32 = vrot.slane %v4815_v22, 4 }
 0x6cb   : > { %4621 = vmatpush.bf16.msra.mxu2 %v4609_v27  ;;  %v4511_v44 = vsel %vm301_vm5, %v4510_v35, %v4509_v42  ;;  %4643 = vmatpush.bf16.msra.mxu3 %v4609_v27  ;;  %v4817_v4 = vld [vmem:[%s6462_s30 + $0x1dc] sm:$0x1]  ;;  %v4930_v35 = vsel %vm289_vm1, %v4929_v24, %v4928_v3  ;;  %v4942_v39 = vsel %vm286_vm0, %v4941_v16, %v4811_v18  ;;  %v4949_v53 = vrot.slane %v4816_v11, 3  ;;  %v4787_v42 = vld [vmem:[%s6462_s30 + $0x1b] sm:$0x1] }
 0x6cc   : > { %v4513_v46 = vsel %vm304_vm6, %v4512_v40, %v4511_v44  ;;  %v4932_v40 = vsel %vm292_vm2, %v4931_v25, %v4930_v35  ;;  %v4944_v52 = vsel %vm289_vm1, %v4943_v15, %v4942_v39  ;;  %v4881_v44 = vrot.slane %v4788_v33, 7  ;;  %v4772_v18 = vld [vmem:[%s6462_s30 + $0x3a] sm:$0x1] }
 0x6cd   : > { %v4608_v49 = vpack.c.bf16 %v4513_v46, %v4499_v26  ;;  %v4061_v50 = vpop.f32.mrf.mxu3  ;;  %v4951_v26 = vrot.slane %v4817_v4, 2  ;;  %v4934_v46 = vsel %vm295_vm3, %v4933_v28, %v4932_v40  ;;  %v4946_v47 = vsel %vm292_vm2, %v4945_v63, %v4944_v52  ;;  %v4773_v4 = vld [vmem:[%s6462_s30 + $0x5a] sm:$0x1] }
 0x6ce   : > { %v4791_v50 = vld [vmem:[%s6462_s30 + $0x9b] sm:$0x1]  ;;  %v4948_v45 = vsel %vm295_vm3, %v4947_v32, %v4946_v47  ;;  %v4774_v28 = vld [vmem:[%s6462_s30 + $0x7a] sm:$0x1]  ;;  %v4835_v63 = vrot.slane %v4772_v18, 7  ;;  %v4907_v35 = vrot.slane %v4802_v10, 1 }
 0x6cf   : > { %4622 = vmatpush.bf16.msra.mxu2 %v4608_v49  ;;  %4644 = vmatpush.bf16.msra.mxu3 %v4608_v49  ;;  %v4887_v8 = vrot.slane %v4791_v50, 4  ;;  %v4775_v3 = vld [vmem:[%s6462_s30 + $0x9a] sm:$0x1] }
 0x6d0   : > { %v4776_v15 = vld [vmem:[%s6462_s30 + $0xba] sm:$0x1]  ;;  %v4841_v50 = vrot.slane %v4775_v3, 4 }
 0x6d1   : > { %v4778_v39 = vld [vmem:[%s6462_s30 + $0xfa] sm:$0x1] }
 0x6d2   : > { %6036 = vmatmul.msk.bf16.vlgmr.msra.gmra.mxu2 %vm418_vm7, %v4611_v19  ;;  %v4936_v19 = vsel %vm298_vm4, %v4935_v29, %v4934_v46  ;;  %v4779_v52 = vld [vmem:[%s6462_s30 + $0x11a] sm:$0x1] }
 0x6d3   : > { %4720 = vmatpush.bf16.msrb.mxu2 %v8147_v36  ;;  %v6232_v36 = vld [vmem:[%s8544_s2 + $0x20] sm:$0xff]  ;;  %v4783_v47 = vld [vmem:[%s6462_s30 + $0x19a] sm:$0x1] }
 0x6d4   : > { %4406 = vmatpush.bf16.msrb.mxu1 %v6232_v36  ;;  %v4792_v36 = vld [vmem:[%s6462_s30 + $0xbb] sm:$0x1] }
 0x6d5   : > { %v4889_v1 = vrot.slane %v4792_v36, 3  ;;  %v4843_v36 = vrot.slane %v4776_v15, 3 }
 0x6d7   : > { %4721 = vmatpush.bf16.msrb.mxu2 %v4609_v27  ;;  %v4818_v27 = vld [vmem:[%s6462_s30 + $0x1fc] sm:$0x1] }
 0x6d8   : > { %4704 = vmatpush.bf16.msra.mxu1 %v6235_v7  ;;  %v4953_v48 = vrot.slane %v4818_v27, 1  ;;  %v4771_v27 = vld [vmem:[%s6462_s30 + $0x1a] sm:$0x1] }
 0x6db   : > { %4722 = vmatpush.bf16.msrb.mxu2 %v4608_v49  ;;  %v4790_v49 = vld [vmem:[%s6462_s30 + $0x7b] sm:$0x1] }
 0x6dc   : > { %4705 = vmatpush.bf16.msra.mxu1 %v6234_v38  ;;  %v4801_v38 = vld [vmem:[%s6462_s30 + $0x1db] sm:$0x1] }
 0x6dd   : > { %v4905_v16 = vrot.slane %v4801_v38, 2 }
 0x6e2   : > { %6062 = vmatmul.msk.bf16.vlgmr.msrb.gmra.mxu2 %vm418_vm7, %v6061_v56  ;;  %v4938_v56 = vsel %vm301_vm5, %v4937_v30, %v4936_v19 }
 0x71f   : > { %v3981_v51 = vpop.f32.mrf.mxu0 }
 0x720   : > { %v4010_v54 = vadd.f32 %v8117_v62, %v3981_v51  ;;  %v4793_v51 = vld [vmem:[%s6462_s30 + $0xdb] sm:$0x1] }
 0x721   : > { %v4891_v57 = vrot.slane %v4793_v51, 2 }
 0x722   : > { %v4063_v59 = vadd.f32 %v4059_v43, %v4010_v54  ;;  %v4789_v43 = vld [vmem:[%s6462_s30 + $0x5b] sm:$0x1] }
 0x723   : > { %v4794_v54 = vld [vmem:[%s6462_s30 + $0xfb] sm:$0x1] }
 0x724   : > { %v4070_v61 = vadd.f32 %v4068_v58, %v4063_v59  ;;  %v4950_v58 = vsel %vm298_vm4, %v4949_v53, %v4948_v45  ;;  %v4795_v59 = vld [vmem:[%s6462_s30 + $0x11b] sm:$0x1]  ;;  %v4893_v14 = vrot.slane %v4794_v54, 1  ;;  %v4784_v45 = vld [vmem:[%s6462_s30 + $0x1ba] sm:$0x1]  ;;  %v4847_v54 = vrot.slane %v4778_v39, 1 }
 0x725   : > { %v4896_v24 = vsel %vm286_vm0, %v4895_v17, %v4795_v59 }
 0x726   : > { %5994 = vst.msk [vmem:[%s6982_s6 + $0x28] sm:$0xf] %vm581_vm9, %v4070_v61  ;;  %v4797_v61 = vld [vmem:[%s6462_s30 + $0x15b] sm:$0x1] }
 0x727   : > { %v3983_v55 = vpop.f32.mrf.mxu0  ;;  %v4897_v13 = vrot.slane %v4797_v61, 6 }
 0x728   : > { %v4798_v55 = vld [vmem:[%s6462_s30 + $0x17b] sm:$0x1] }
 0x729   : > { %v4899_v22 = vrot.slane %v4798_v55, 5  ;;  %v4898_v30 = vsel %vm289_vm1, %v4897_v13, %v4896_v24  ;;  %v6239_v13 = vld [vmem:[%s8544_s2 + $0x28] sm:$0xff]  ;;  %v6238_v24 = vld [vmem:[%s8544_s2 + $0x20] sm:$0xff] }
 0x72b   : > { %v4900_v33 = vsel %vm292_vm2, %v4899_v22, %v4898_v30  ;;  %v4762_v30 = vld [vmem:[%s8545_s3] sm:$0xf] }
 0x72c   : > { %4765 = vperm.xlu0 %6295, %v4762_v30   ;;  %v5142_v30 = vld [vmem:[%s6462_s30 + $0xdd] sm:$0x1] }
 0x72f   : > { %v4275_v62 = vpop.f32.mrf.mxu0 }
 0x730   : > { %v4279_v31 = vpack.c.bf16 %v4275_v62, %v4275_v62  ;;  %v4882_v62 = vsel %vm286_vm0, %v4881_v44, %v4787_v42  ;;  %v4781_v42 = vld [vmem:[%s6462_s30 + $0x15a] sm:$0x1]  ;;  %v4836_v44 = vsel %vm286_vm0, %v4835_v63, %v4771_v27  ;;  %v6078_v27 = vld [vmem:[%s8543_s1 + $0x2] sm:$0x3] }
 0x731   : > { %v4851_v61 = vrot.slane %v4781_v42, 6  ;;  %v6242_v42 = vld [vmem:[%s8544_s2 + $0x10] sm:$0xff] }
 0x732   : > { %6019 = vmatmul.msk.bf16.vlgmr.msrb.gmra.mxu3 %vm476_vm8, %v4279_v31  ;;  %v4940_v31 = vsel %vm304_vm6, %v4939_v37, %v4938_v56  ;;  %v4777_v37 = vld [vmem:[%s6462_s30 + $0xda] sm:$0x1] }
 0x733   : > { %v4845_v51 = vrot.slane %v4777_v37, 2  ;;  %4754 = vmatpush.bf16.msrb.mxu3 %v6239_v13  ;;  %v5138_v13 = vld [vmem:[%s6462_s30 + $0x5d] sm:$0x1] }
 0x737   : > { %v4277_v0 = vpop.f32.mrf.mxu0  ;;  %4755 = vmatpush.bf16.msrb.mxu3 %v6238_v24  ;;  %v5139_v24 = vld [vmem:[%s6462_s30 + $0x7d] sm:$0x1] }
 0x738   : > { %v4952_v0 = vsel %vm301_vm5, %v4951_v26, %v4950_v58  ;;  %v4780_v26 = vld [vmem:[%s6462_s30 + $0x13a] sm:$0x1] }
 0x739   : > { %v4954_v7 = vsel %vm304_vm6, %v4953_v48, %v4952_v0  ;;  %v4837_v48 = vrot.slane %v4773_v4, 6  ;;  %v4785_v58 = vld [vmem:[%s6462_s30 + $0x1da] sm:$0x1]  ;;  %v4849_v60 = vrot.slane %v4780_v26, 7  ;;  %v6102_v26 = vld [vmem:[%s8543_s1 + $0x4] sm:$0x3] }
 0x73a   : > { %v8283_v41 = vpack.c.bf16 %v4954_v7, %v4940_v31  ;;  %v4786_v31 = vld [vmem:[%s6462_s30 + $0x1fa] sm:$0x1]  ;;  %v4859_v10 = vrot.slane %v4785_v58, 2  ;;  %v5165_v58 = vld [vmem:[%s6462_s30 + $0x1be] sm:$0x1] }
 0x73b   : > { %v4838_v59 = vsel %vm289_vm1, %v4837_v48, %v4836_v44  ;;  %v4850_v38 = vsel %vm286_vm0, %v4849_v60, %v4779_v52  ;;  %v4861_v17 = vrot.slane %v4786_v31, 1  ;;  %v5154_v44 = vld [vmem:[%s6462_s30 + $0x5e] sm:$0x1] }
 0x73c   : > { %v5156_v48 = vld [vmem:[%s6462_s30 + $0x9e] sm:$0x1] }
 0x73d   : > { %v5282_v31 = vrot.slane %v5156_v48, 4  ;;  %v5151_v48 = vld [vmem:[%s6462_s30 + $0x1fd] sm:$0x1] }
 0x73f   : > { %v4375_v9 = vpop.f32.mrf.mxu0 }
 0x740   : > { %v4379_v5 = vpack.c.bf16 %v4375_v9, %v4375_v9  ;;  %v4799_v9 = vld [vmem:[%s6462_s30 + $0x19b] sm:$0x1] }
 0x741   : > { %v4901_v11 = vrot.slane %v4799_v9, 4 }
 0x742   : > { %6034 = vmatmul.msk.bf16.vlgmr.msrb.gmra.mxu1 %vm476_vm8, %v4379_v5  ;;  %6038 = vmatmul.msk.bf16.vlgmr.msra.gmra.mxu3 %vm418_vm7, %v6037_v2  ;;  %v4800_v2 = vld [vmem:[%s6462_s30 + $0x1bb] sm:$0x1]  ;;  %v4883_v5 = vrot.slane %v4789_v43, 6  ;;  %v4782_v43 = vld [vmem:[%s6462_s30 + $0x17a] sm:$0x1] }
 0x743   : > { %4991 = vmatpush.bf16.msrb.mxu1 %v8283_v41  ;;  %v4903_v25 = vrot.slane %v4800_v2, 3  ;;  %v4902_v40 = vsel %vm295_vm3, %v4901_v11, %v4900_v33  ;;  %v4853_v9 = vrot.slane %v4782_v43, 5  ;;  %v4855_v2 = vrot.slane %v4783_v47, 4  ;;  %v4417_v33 = vpop.permute.xlu2 %4416  ;;  %v5153_v43 = vld [vmem:[%s6462_s30 + $0x3e] sm:$0x1] }
 0x744   : > { %v4884_v12 = vsel %vm289_vm1, %v4883_v5, %v4882_v62  ;;  %v6237_v5 = vld [vmem:[%s8544_s2 + $0x18] sm:$0xff]  ;;  %v5276_v60 = vrot.slane %v5153_v43, 7 }
 0x745   : > { %v8253_v34 = vpop.f32.mrf.mxu2  ;;  %v4904_v46 = vsel %vm298_vm4, %v4903_v25, %v4902_v40  ;;  %4676 = vmatpush.bf16.msra.mxu0 %v6237_v5  ;;  %v6236_v25 = vld [vmem:[%s8544_s2 + $0x10] sm:$0xff]  ;;  %v5152_v47 = vld [vmem:[%s6462_s30 + $0x1e] sm:$0x1] }
 0x746   : > { %v4906_v19 = vsel %vm301_vm5, %v4905_v16, %v4904_v46  ;;  %v5155_v46 = vld [vmem:[%s6462_s30 + $0x7e] sm:$0x1]  ;;  %v5277_v5 = vsel %vm286_vm0, %v5276_v60, %v5152_v47 }
 0x747   : > { %v4377_v6 = vpop.f32.mrf.mxu0  ;;  %v4908_v56 = vsel %vm304_vm6, %v4907_v35, %v4906_v19  ;;  %v5159_v19 = vld [vmem:[%s6462_s30 + $0xfe] sm:$0x1] }
 0x748   : > { %v4885_v6 = vrot.slane %v4790_v49, 5  ;;  %v4839_v49 = vrot.slane %v4774_v28, 5 }
 0x749   : > { %4677 = vmatpush.bf16.msra.mxu0 %v6236_v25  ;;  %v5140_v25 = vld [vmem:[%s6462_s30 + $0x9d] sm:$0x1] }
 0x74a   : > { %v4886_v21 = vsel %vm292_vm2, %v4885_v6, %v4884_v12  ;;  %v4840_v0 = vsel %vm292_vm2, %v4839_v49, %v4838_v59  ;;  %v5157_v49 = vld [vmem:[%s6462_s30 + $0xbe] sm:$0x1]  ;;  %v5236_v43 = vrot.slane %v5140_v25, 4 }
 0x74b   : > { %v4888_v23 = vsel %vm295_vm3, %v4887_v8, %v4886_v21  ;;  %v4842_v7 = vsel %vm295_vm3, %v4841_v50, %v4840_v0  ;;  %v4857_v8 = vrot.slane %v4784_v45, 3  ;;  %v5158_v50 = vld [vmem:[%s6462_s30 + $0xde] sm:$0x1]  ;;  %v5284_v0 = vrot.slane %v5157_v49, 3 }
 0x74c   : > { %v4890_v29 = vsel %vm298_vm4, %v4889_v1, %v4888_v23  ;;  %v4844_v1 = vsel %vm298_vm4, %v4843_v36, %v4842_v7  ;;  %v5160_v45 = vld [vmem:[%s6462_s30 + $0x11e] sm:$0x1] }
 0x74d   : > { %v4332_v20 = vpop.f32.mrf.mxu2  ;;  %v4892_v32 = vsel %vm301_vm5, %v4891_v57, %v4890_v29  ;;  %v4852_v57 = vsel %vm289_vm1, %v4851_v61, %v4850_v38  ;;  %v4846_v12 = vsel %vm301_vm5, %v4845_v51, %v4844_v1  ;;  %4969 = vmatpush.bf16.msrb.mxu0 %v8283_v41  ;;  %v5161_v36 = vld [vmem:[%s6462_s30 + $0x13e] sm:$0x1]  ;;  %v5278_v61 = vrot.slane %v5154_v44, 6 }
 0x74e   : > { %v4894_v53 = vsel %vm304_vm6, %v4893_v14, %v4892_v32  ;;  %v4854_v14 = vsel %vm292_vm2, %v4853_v9, %v4852_v57  ;;  %v4848_v20 = vsel %vm304_vm6, %v4847_v54, %v4846_v12  ;;  %v5162_v51 = vld [vmem:[%s6462_s30 + $0x15e] sm:$0x1]  ;;  %v5286_v9 = vrot.slane %v5158_v50, 2 }
 0x74f   : > { %v4958_v62 = vpack.c.bf16 %v4908_v56, %v4894_v53  ;;  %v4856_v18 = vsel %vm295_vm3, %v4855_v2, %v4854_v14  ;;  %v5163_v54 = vld [vmem:[%s6462_s30 + $0x17e] sm:$0x1]  ;;  %v5290_v2 = vrot.slane %v5161_v36, 7  ;;  %v5279_v57 = vsel %vm289_vm1, %v5278_v61, %v5277_v5  ;;  %v5124_v5 = vld [vmem:[%s6462_s30 + $0x9c] sm:$0x1] }
 0x750   : > { %v4858_v21 = vsel %vm298_vm4, %v4857_v8, %v4856_v18  ;;  %v5164_v56 = vld [vmem:[%s6462_s30 + $0x19e] sm:$0x1]  ;;  %v5294_v7 = vrot.slane %v5163_v54, 5  ;;  %v5137_v8 = vld [vmem:[%s6462_s30 + $0x3d] sm:$0x1]  ;;  %v5298_v14 = vrot.slane %v5165_v58, 3 }
 0x751   : > { %4992 = vmatpush.bf16.msrb.mxu1 %v4958_v62  ;;  %v4860_v22 = vsel %vm301_vm5, %v4859_v10, %v4858_v21  ;;  %4970 = vmatpush.bf16.msrb.mxu0 %v4958_v62  ;;  %v5166_v59 = vld [vmem:[%s6462_s30 + $0x1de] sm:$0x1]  ;;  %v5296_v38 = vrot.slane %v5164_v56, 4  ;;  %v5288_v10 = vrot.slane %v5159_v19, 1  ;;  %v5291_v12 = vsel %vm286_vm0, %v5290_v2, %v5160_v45  ;;  %v5136_v21 = vld [vmem:[%s6462_s30 + $0x1d] sm:$0x1] }
 0x752   : > { %v4862_v11 = vsel %vm304_vm6, %v4861_v17, %v4860_v22  ;;  %v5230_v22 = vrot.slane %v5137_v8, 7  ;;  %v5121_v45 = vld [vmem:[%s6462_s30 + $0x3c] sm:$0x1]  ;;  %v5190_v25 = vrot.slane %v5124_v5, 4 }
 0x753   : > { %v4957_v23 = vpack.c.bf16 %v4862_v11, %v4848_v20  ;;  %v5300_v20 = vrot.slane %v5166_v59, 2  ;;  %v5122_v59 = vld [vmem:[%s6462_s30 + $0x5c] sm:$0x1] }
 0x755   : > { %v4624_v55 = vpop.f32.mrf.mxu2  ;;  %4993 = vmatpush.bf16.msrb.mxu1 %v4957_v23  ;;  %4971 = vmatpush.bf16.msrb.mxu0 %v4957_v23 }
 0x756   : > { %v4628_v6 = vpack.c.bf16 %v4624_v55, %v4624_v55  ;;  %v5280_v55 = vrot.slane %v5155_v46, 5  ;;  %v5240_v46 = vrot.slane %v5142_v30, 2 }
 0x758   : > { %6060 = vmatmul.msk.bf16.vlgmr.msra.gmra.mxu1 %vm476_vm8, %v4628_v6  ;;  %v5292_v6 = vrot.slane %v5162_v51, 6  ;;  %v5281_v17 = vsel %vm292_vm2, %v5280_v55, %v5279_v57  ;;  %v5256_v57 = vrot.slane %v5151_v48, 1  ;;  %v6241_v48 = vld [vmem:[%s8544_s2 + $0x8] sm:$0xff] }
 0x759   : > { %v5283_v11 = vsel %vm295_vm3, %v5282_v31, %v5281_v17  ;;  %v5123_v31 = vld [vmem:[%s6462_s30 + $0x7c] sm:$0x1]  ;;  %5053 = vmatpush.bf16.msra.mxu3 %v6241_v48 }
 0x75a   : > { %v5293_v18 = vsel %vm289_vm1, %v5292_v6, %v5291_v12  ;;  %v5125_v6 = vld [vmem:[%s6462_s30 + $0xbc] sm:$0x1] }
 0x75b   : > { %v5127_v12 = vld [vmem:[%s6462_s30 + $0xfc] sm:$0x1] }
 0x75d   : > { %v4626_v4 = vpop.f32.mrf.mxu2 }
 0x75e   : > { %v5295_v4 = vsel %vm292_vm2, %v5294_v7, %v5293_v18  ;;  %v5184_v7 = vrot.slane %v5121_v45, 7  ;;  %v5128_v18 = vld [vmem:[%s6462_s30 + $0x11c] sm:$0x1] }
 0x765   : > { %v4724_v28 = vpop.f32.mrf.mxu2 }
 0x766   : > { %v4728_v29 = vpack.c.bf16 %v4724_v28, %v4724_v28  ;;  %v5297_v28 = vsel %vm295_vm3, %v5296_v38, %v5295_v4  ;;  %v5132_v4 = vld [vmem:[%s6462_s30 + $0x19c] sm:$0x1] }
 0x768   : > { %6079 = vmatmul.msk.bf16.vlgmr.msrb.gmra.mxu1 %vm418_vm7, %v6078_v27  ;;  %6075 = vmatmul.msk.bf16.vlgmr.msrb.gmra.mxu3 %vm476_vm8, %v4728_v29  ;;  %v5285_v27 = vsel %vm298_vm4, %v5284_v0, %v5283_v11  ;;  %v5141_v29 = vld [vmem:[%s6462_s30 + $0xbd] sm:$0x1] }
 0x769   : > { %v5238_v44 = vrot.slane %v5141_v29, 3  ;;  %v5192_v29 = vrot.slane %v5125_v6, 3 }
 0x76d   : > { %v4726_v16 = vpop.f32.mrf.mxu2 }
 0x76e   : > { %v5143_v16 = vld [vmem:[%s6462_s30 + $0xfd] sm:$0x1] }
 0x76f   : > { %v5242_v50 = vrot.slane %v5143_v16, 1  ;;  %v5196_v16 = vrot.slane %v5127_v12, 1 }
 0x79e   : > { %v4766_v5 = vpop.permute.xlu0 %4765 }
 0x7b5   : > { %v4358_v3 = vpop.f32.mrf.mxu3 }
 0x7b6   : > { %v4359_v63 = vadd.f32 %v4358_v3, %v8253_v34  ;;  %v4960_v34 = vld [vmem:[%s8543_s1] sm:$0x3]  ;;  %v5287_v3 = vsel %vm301_vm5, %v5286_v9, %v5285_v27 }
 0x7bd   : > { %v4360_v15 = vpop.f32.mrf.mxu3 }
 0x7be   : > { %v5299_v15 = vsel %vm298_vm4, %v5298_v14, %v5297_v28  ;;  %v5133_v28 = vld [vmem:[%s6462_s30 + $0x1bc] sm:$0x1] }
 0x7bf   : > { %v4408_v32 = vpop.f32.mrf.mxu1 }
 0x7c0   : > { %v4412_v35 = vadd.f32 %v4408_v32, %v4359_v63  ;;  %v5144_v63 = vld [vmem:[%s6462_s30 + $0x11d] sm:$0x1] }
 0x7c1   : > { %v5145_v32 = vld [vmem:[%s6462_s30 + $0x13d] sm:$0x1] }
 0x7c2   : > { %v4419_v37 = vadd.f32 %v4417_v33, %v4412_v35  ;;  %v5146_v33 = vld [vmem:[%s6462_s30 + $0x15d] sm:$0x1]  ;;  %v5244_v19 = vrot.slane %v5145_v32, 7 }
 0x7c3   : > { %v5147_v35 = vld [vmem:[%s6462_s30 + $0x17d] sm:$0x1]  ;;  %v5246_v54 = vrot.slane %v5146_v33, 6 }
 0x7c4   : > { %6035 = vst.msk [vmem:[%s6982_s6 + $0x2c] sm:$0xf] %vm581_vm9, %v4419_v37  ;;  %v5231_v37 = vsel %vm286_vm0, %v5230_v22, %v5136_v21  ;;  %v5248_v56 = vrot.slane %v5147_v35, 5  ;;  %v5245_v61 = vsel %vm286_vm0, %v5244_v19, %v5144_v63  ;;  %v5130_v21 = vld [vmem:[%s6462_s30 + $0x15c] sm:$0x1] }
 0x7c5   : > { %v4646_v39 = vpop.f32.mrf.mxu3  ;;  %v5247_v9 = vsel %vm289_vm1, %v5246_v54, %v5245_v61  ;;  %v5200_v33 = vrot.slane %v5130_v21, 6  ;;  %v6246_v21 = vld [vmem:[%s8544_s2] sm:$0xff] }
 0x7c6   : > { %v4650_v53 = vpack.c.bf16 %v4646_v39, %v4646_v39  ;;  %v5289_v39 = vsel %vm304_vm6, %v5288_v10, %v5287_v3  ;;  %v5249_v8 = vsel %vm292_vm2, %v5248_v56, %v5247_v9  ;;  %v5126_v10 = vld [vmem:[%s6462_s30 + $0xdc] sm:$0x1] }
 0x7c7   : > { %v4410_v40 = vpop.f32.mrf.mxu1  ;;  %v5194_v30 = vrot.slane %v5126_v10, 2 }
 0x7c8   : > { %6051 = vmatmul.msk.bf16.vlgmr.msra.gmra.mxu0 %vm476_vm8, %v4650_v53  ;;  %v5301_v53 = vsel %vm301_vm5, %v5300_v20, %v5299_v15  ;;  %v5148_v40 = vld [vmem:[%s6462_s30 + $0x19d] sm:$0x1]  ;;  %v5129_v20 = vld [vmem:[%s6462_s30 + $0x13c] sm:$0x1] }
 0x7c9   : > { %5069 = vmatpush.bf16.msra.mxu0 %v8283_v41  ;;  %v6243_v41 = vld [vmem:[%s8544_s2 + $0x18] sm:$0xff]  ;;  %v5250_v58 = vrot.slane %v5148_v40, 4  ;;  %v5198_v32 = vrot.slane %v5129_v20, 7  ;;  %v6247_v20 = vld [vmem:[%s8544_s2 + $0x8] sm:$0xff] }
 0x7ca   : > { %5025 = vmatpush.bf16.msra.mxu2 %v6243_v41  ;;  %v5134_v15 = vld [vmem:[%s6462_s30 + $0x1dc] sm:$0x1] }
 0x7cb   : > { %v5251_v17 = vsel %vm295_vm3, %v5250_v58, %v5249_v8 }
 0x7cd   : > { %v4648_v52 = vpop.f32.mrf.mxu3  ;;  %5070 = vmatpush.bf16.msra.mxu0 %v4958_v62  ;;  %v5167_v62 = vld [vmem:[%s6462_s30 + $0x1fe] sm:$0x1] }
 0x7ce   : > { %5026 = vmatpush.bf16.msra.mxu2 %v6242_v42  ;;  %v5149_v52 = vld [vmem:[%s6462_s30 + $0x1bd] sm:$0x1] }
 0x7cf   : > { %v5150_v42 = vld [vmem:[%s6462_s30 + $0x1dd] sm:$0x1]  ;;  %v5252_v55 = vrot.slane %v5149_v52, 3  ;;  %v5204_v52 = vrot.slane %v5132_v4, 4  ;;  %v6250_v4 = vld [vmem:[%s8544_s2 + $0x20] sm:$0xff] }
 0x7d0   : > { %v5254_v2 = vrot.slane %v5150_v42, 2  ;;  %v5206_v42 = vrot.slane %v5133_v28, 3  ;;  %v6248_v28 = vld [vmem:[%s8544_s2 + $0x10] sm:$0xff] }
 0x7d1   : > { %5071 = vmatpush.bf16.msra.mxu0 %v4957_v23  ;;  %v5302_v23 = vrot.slane %v5167_v62, 1  ;;  %v5120_v62 = vld [vmem:[%s6462_s30 + $0x1c] sm:$0x1]  ;;  %v5253_v11 = vsel %vm298_vm4, %v5252_v55, %v5251_v17 }
 0x7d2   : > { %v5185_v22 = vsel %vm286_vm0, %v5184_v7, %v5120_v62  ;;  %v5255_v27 = vsel %vm301_vm5, %v5254_v2, %v5253_v11  ;;  %v5309_v62 = vld [vmem:[%s8543_s1] sm:$0x3]  ;;  %v6143_v2 = vld [vmem:[%s8543_s1 + $0x4] sm:$0x3] }
 0x7d3   : > { %v5303_v41 = vsel %vm304_vm6, %v5302_v23, %v5301_v53  ;;  %v5186_v23 = vrot.slane %v5122_v59, 6  ;;  %v5257_v3 = vsel %vm304_vm6, %v5256_v57, %v5255_v27  ;;  %v6240_v59 = vld [vmem:[%s8544_s2] sm:$0xff] }
 0x7d4   : > { %v8419_v47 = vpack.c.bf16 %v5303_v41, %v5289_v39  ;;  %v5135_v39 = vld [vmem:[%s6462_s30 + $0x1fc] sm:$0x1]  ;;  %v5199_v41 = vsel %vm286_vm0, %v5198_v32, %v5128_v18  ;;  %5054 = vmatpush.bf16.msra.mxu3 %v6240_v59  ;;  %v5111_v7 = vld [vmem:[%s8545_s3] sm:$0xf] }
 0x7d5   : > { %v8389_v1 = vpop.f32.mrf.mxu1  ;;  %v5187_v63 = vsel %vm289_vm1, %v5186_v23, %v5185_v22  ;;  %v5210_v19 = vrot.slane %v5135_v39, 1  ;;  %5114 = vperm.xlu1 %6296, %v5111_v7  }
 0x7d6   : > { %5318 = vmatpush.bf16.msrb.mxu2 %v8419_v47 }
 0x7d8   : > { %6077 = vmatmul.msk.bf16.vlgmr.msrb.gmra.mxu0 %vm418_vm7, %v4960_v34  ;;  %v5232_v34 = vrot.slane %v5138_v13, 6  ;;  %v5131_v13 = vld [vmem:[%s6462_s30 + $0x17c] sm:$0x1]  ;;  %5340 = vmatpush.bf16.msrb.mxu3 %v8419_v47 }
 0x7d9   : > { %v5202_v40 = vrot.slane %v5131_v13, 5  ;;  %v6251_v13 = vld [vmem:[%s8544_s2 + $0x28] sm:$0xff] }
 0x7da   : > { %v5233_v49 = vsel %vm289_vm1, %v5232_v34, %v5231_v37 }
 0x7dd   : > { %v4709_v36 = vpop.f32.mrf.mxu1 }
 0x7e5   : > { %v4995_v35 = vpop.f32.mrf.mxu1 }
 0x7e6   : > { %v4999_v34 = vpack.c.bf16 %v4995_v35, %v4995_v35 }
 0x7e8   : > { %6103 = vmatmul.msk.bf16.vlgmr.msra.gmra.mxu0 %vm418_vm7, %v6102_v26  ;;  %v5234_v26 = vrot.slane %v5139_v24, 5  ;;  %v5188_v24 = vrot.slane %v5123_v31, 5  ;;  %6092 = vmatmul.msk.bf16.vlgmr.msra.gmra.mxu2 %vm476_vm8, %v4999_v34  ;;  %v6245_v31 = vld [vmem:[%s8544_s2 + $0x28] sm:$0xff] }
 0x7e9   : > { %5103 = vmatpush.bf16.msra.mxu1 %v6245_v31 }
 0x7ea   : > { %v5235_v51 = vsel %vm292_vm2, %v5234_v26, %v5233_v49  ;;  %v5189_v53 = vsel %vm292_vm2, %v5188_v24, %v5187_v63  ;;  %v6249_v24 = vld [vmem:[%s8544_s2 + $0x18] sm:$0xff] }
 0x7eb   : > { %v5237_v60 = vsel %vm295_vm3, %v5236_v43, %v5235_v51  ;;  %v5191_v26 = vsel %vm295_vm3, %v5190_v25, %v5189_v53  ;;  %v4757_v54 = vpop.f32.mrf.mxu3  ;;  %5374 = vmatpush.bf16.msrb.mxu0 %v6249_v24 }
 0x7ec   : > { %v5239_v0 = vsel %vm298_vm4, %v5238_v44, %v5237_v60  ;;  %v5193_v43 = vsel %vm298_vm4, %v5192_v29, %v5191_v26  ;;  %v5201_v44 = vsel %vm289_vm1, %v5200_v33, %v5199_v41 }
 0x7ed   : > { %v5241_v38 = vsel %vm301_vm5, %v5240_v46, %v5239_v0  ;;  %v5208_v46 = vrot.slane %v5134_v15, 2  ;;  %v5195_v49 = vsel %vm301_vm5, %v5194_v30, %v5193_v43  ;;  %v4997_v60 = vpop.f32.mrf.mxu1 }
 0x7ee   : > { %v5243_v14 = vsel %vm304_vm6, %v5242_v50, %v5241_v38  ;;  %v5203_v50 = vsel %vm292_vm2, %v5202_v40, %v5201_v44  ;;  %v5197_v36 = vsel %vm304_vm6, %v5196_v16, %v5195_v49  ;;  %v5460_v16 = vld [vmem:[%s8545_s3] sm:$0xf] }
 0x7ef   : > { %v5307_v37 = vpack.c.bf16 %v5257_v3, %v5243_v14  ;;  %v5205_v45 = vsel %vm295_vm3, %v5204_v52, %v5203_v50  ;;  %v6119_v14 = vld [vmem:[%s8543_s1 + $0x2] sm:$0x3]  ;;  %5375 = vmatpush.bf16.msrb.mxu0 %v6248_v28  ;;  %5463 = vperm.xlu2 %6297, %v5460_v16  }
 0x7f0   : > { %v5207_v51 = vsel %vm298_vm4, %v5206_v42, %v5205_v45 }
 0x7f1   : > { %5319 = vmatpush.bf16.msrb.mxu2 %v5307_v37  ;;  %v5209_v56 = vsel %vm301_vm5, %v5208_v46, %v5207_v51  ;;  %5341 = vmatpush.bf16.msrb.mxu3 %v5307_v37 }
 0x7f2   : > { %v5211_v58 = vsel %vm304_vm6, %v5210_v19, %v5209_v56 }
 0x7f3   : > { %v5306_v61 = vpack.c.bf16 %v5211_v58, %v5197_v36  ;;  %v4759_v55 = vpop.f32.mrf.mxu3 }
 0x7f5   : > { %5320 = vmatpush.bf16.msrb.mxu2 %v5306_v61  ;;  %5342 = vmatpush.bf16.msrb.mxu3 %v5306_v61 }
 0x7f8   : > { %6118 = vmatmul.msk.bf16.vlgmr.msrb.gmra.mxu2 %vm418_vm7, %v5309_v62 }
 0x7f9   : > { %5418 = vmatpush.bf16.msra.mxu2 %v8419_v47  ;;  %v6244_v47 = vld [vmem:[%s8544_s2 + $0x20] sm:$0xff] }
 0x7fa   : > { %5104 = vmatpush.bf16.msra.mxu1 %v6244_v47 }
 0x7fd   : > { %5419 = vmatpush.bf16.msra.mxu2 %v5307_v37 }
 0x7fe   : > { %5402 = vmatpush.bf16.msrb.mxu1 %v6247_v20 }
 0x801   : > { %5420 = vmatpush.bf16.msra.mxu2 %v5306_v61 }
 0x802   : > { %5403 = vmatpush.bf16.msrb.mxu1 %v6246_v21 }
 0x808   : > { %6144 = vmatmul.msk.bf16.vlgmr.msra.gmra.mxu2 %vm418_vm7, %v6143_v2 }
 0x845   : > { %v4679_v0 = vpop.f32.mrf.mxu0 }
 0x846   : > { %v4708_v9 = vadd.f32 %v8389_v1, %v4679_v0 }
 0x847   : > { %v5115_v35 = vpop.permute.xlu1 %5114 }
 0x848   : > { %v4761_v6 = vadd.f32 %v4757_v54, %v4708_v9 }
 0x849   : > { %v5464_v49 = vpop.permute.xlu2 %5463 }
 0x84a   : > { %v4768_v38 = vadd.f32 %v4766_v5, %v4761_v6 }
 0x84c   : > { %6076 = vst.msk [vmem:[%s6982_s6 + $0x30] sm:$0xf] %vm581_vm9, %v4768_v38 }
 0x84d   : > { %v4681_v8 = vpop.f32.mrf.mxu0 }
 0x855   : > { %v4973_v57 = vpop.f32.mrf.mxu0 }
 0x856   : > { %v4977_v10 = vpack.c.bf16 %v4973_v57, %v4973_v57 }
 0x858   : > { %6101 = vmatmul.msk.bf16.vlgmr.msra.gmra.mxu3 %vm476_vm8, %v4977_v10 }
 0x859   : > { %5452 = vmatpush.bf16.msra.mxu3 %v6251_v13 }
 0x85d   : > { %v4975_v1 = vpop.f32.mrf.mxu0  ;;  %5453 = vmatpush.bf16.msra.mxu3 %v6250_v4 }
 0x865   : > { %v5073_v12 = vpop.f32.mrf.mxu0 }
 0x866   : > { %v5077_v17 = vpack.c.bf16 %v5073_v12, %v5073_v12 }
 0x868   : > { %6116 = vmatmul.msk.bf16.vlgmr.msra.gmra.mxu1 %vm476_vm8, %v5077_v17  ;;  %6120 = vmatmul.msk.bf16.vlgmr.msrb.gmra.mxu3 %vm418_vm7, %v6119_v14 }
 0x86b   : > { %v5028_v22 = vpop.f32.mrf.mxu2 }
 0x86d   : > { %v5075_v18 = vpop.f32.mrf.mxu0 }
 0x873   : > { %v5030_v11 = vpop.f32.mrf.mxu2 }
 0x87b   : > { %v5322_v23 = vpop.f32.mrf.mxu2 }
 0x87c   : > { %v5326_v25 = vpack.c.bf16 %v5322_v23, %v5322_v23 }
 0x87e   : > { %6142 = vmatmul.msk.bf16.vlgmr.msrb.gmra.mxu1 %vm476_vm8, %v5326_v25 }
 0x883   : > { %v5324_v27 = vpop.f32.mrf.mxu2 }
 0x88b   : > { %v5422_v29 = vpop.f32.mrf.mxu2 }
 0x88c   : > { %v5426_v30 = vpack.c.bf16 %v5422_v29, %v5422_v29 }
 0x88e   : > { %6157 = vmatmul.msk.bf16.vlgmr.msra.gmra.mxu3 %vm476_vm8, %v5426_v30 }
 0x893   : > { %v5424_v3 = vpop.f32.mrf.mxu2 }
 0x8db   : > { %v5056_v15 = vpop.f32.mrf.mxu3 }
 0x8dc   : > { %v5057_v32 = vadd.f32 %v5056_v15, %v5028_v22 }
 0x8e3   : > { %v5058_v63 = vpop.f32.mrf.mxu3 }
 0x8e5   : > { %v5106_v33 = vpop.f32.mrf.mxu1 }
 0x8e6   : > { %v5110_v37 = vadd.f32 %v5106_v33, %v5057_v32 }
 0x8e8   : > { %v5117_v39 = vadd.f32 %v5115_v35, %v5110_v37 }
 0x8ea   : > { %6117 = vst.msk [vmem:[%s6982_s6 + $0x34] sm:$0xf] %vm581_vm9, %v5117_v39 }
 0x8eb   : > { %v5344_v53 = vpop.f32.mrf.mxu3 }
 0x8ec   : > { %v5348_v40 = vpack.c.bf16 %v5344_v53, %v5344_v53 }
 0x8ed   : > { %v5108_v52 = vpop.f32.mrf.mxu1 }
 0x8ee   : > { %6133 = vmatmul.msk.bf16.vlgmr.msrb.gmra.mxu0 %vm476_vm8, %v5348_v40 }
 0x8f3   : > { %v5346_v34 = vpop.f32.mrf.mxu3 }
 0x8fb   : > { %v5405_v26 = vpop.f32.mrf.mxu1 }
 0x903   : > { %v5407_v41 = vpop.f32.mrf.mxu1 }
 0x911   : > { %v5455_v42 = vpop.f32.mrf.mxu3 }
 0x919   : > { %v5457_v43 = vpop.f32.mrf.mxu3 }
 0x96b   : > { %v5377_v44 = vpop.f32.mrf.mxu0 }
 0x96c   : > { %v5406_v46 = vadd.f32 %v5405_v26, %v5377_v44 }
 0x96e   : > { %v5459_v48 = vadd.f32 %v5455_v42, %v5406_v46 }
 0x970   : > { %v5466_v50 = vadd.f32 %v5464_v49, %v5459_v48 }
 0x972   : > { %6158 = vst.msk [vmem:[%s6982_s6 + $0x38] sm:$0xf] %vm581_vm9, %v5466_v50 }
 0x973   : > { %v5379_v19 = vpop.f32.mrf.mxu0 }
 0x974 PF: > { %p14_p7 = scmp.ge.s32.totalorder %s6414_s20, 4   ;;  %s8550_s15 = smov %s6354_s16 }
 0x975   : > { %s8551_s16 = smov %s6358_s17  ;;  %s8552_s17 = smov %s6424_s23 }
 0x976   : > { %s8553_s18 = smov %s6414_s20  ;;  %16 = sbr.rel (!%p14_p7) target bundleno = 3 (0x3), region = 94 }
 0x97b   :  { %5490 = vsyncpa [#allocation3], 1 }
 0x97c   :  { %5492 = vsyncpa [#allocation3 + $0x1], 1 }

</bundles_post_ra>
